<compile_context>
chip_gen: v6e
topology: v6e:2x2x1
jax: 0.10.0
libtpu: 0.0.40
codegen_flags: <defaults>
</compile_context>

<pallas_src>
import functools

import numpy as np
import jax
import jax.numpy as jnp
from jax import lax
from jax.experimental import pallas as pl
from jax.experimental.pallas import tpu as pltpu


@functools.lru_cache(maxsize=None)
def _probe_roll_mode():
    """Determine pltpu.roll's sublane-shift convention on this backend.

    Returns "fwd" if pltpu.roll(x, shift=1, axis=0) == jnp.roll(x, 1, axis=0),
    "rev" if it is the opposite rotation, or None if sublane roll is unavailable
    (the kernel then falls back to direct +/-1-row VMEM loads)."""
    try:
        def k(x_ref, o_ref):
            o_ref[...] = pltpu.roll(x_ref[...], shift=1, axis=0)
        x = np.arange(8 * 128, dtype=np.float32).reshape(8, 128)
        y = pl.pallas_call(k, out_shape=jax.ShapeDtypeStruct((8, 128), jnp.float32))(
            jnp.asarray(x))
        y = np.asarray(jax.block_until_ready(y))
        if np.array_equal(y, np.roll(x, 1, axis=0)):
            return "fwd"
        if np.array_equal(y, np.roll(x, -1, axis=0)):
            return "rev"
    except Exception:
        pass
    return None


def _vmem_limit_bytes(per_step_bytes):
    """Generation-aware VMEM limit derived from the actual per-step working set."""
    try:
        cap = int(pltpu.get_tpu_info().vmem_capacity_bytes)
    except Exception:
        kind = jax.devices()[0].device_kind.lower()
        cap = (64 if ("v7" in kind or "7x" in kind) else 128) * 1024 * 1024
    want = max(4 * per_step_bytes, 16 * 1024 * 1024)   # double-buffering + spill headroom
    return int(max(min(want, cap - (24 << 20)), 8 << 20))


def bottle2neckx_kernel(x_ref, w1_ref, wdw_ref, w3_ref, out_ref,
                        sp_cat_ref, pad_ref,
                        *, scale, W, HW, D, base, roll_mode):
    # ---- conv1 (1x1): one full-width bf16 MXU matmul (f32 accumulation), ReLU
    # fused; the result is aliased straight into the bf16 conv3-operand scratch
    # instead of living as an (HW, planes) f32 value (no spill traffic).
    y = jnp.dot(x_ref[...], w1_ref[...], preferred_element_type=jnp.float32)
    sp_cat_ref[...] = jnp.maximum(y, 0.0).astype(sp_cat_ref.dtype)

    # ---- hoisted W-edge masks (column position within each image row) ------------
    wpos = lax.broadcasted_iota(jnp.int32, (HW, 1), 0) % W
    not_left_edge = wpos != 0
    not_right_edge = wpos != (W - 1)

    # ---- zero the halo rows of the flat dwconv scratch ---------------------------
    # Re-done every grid step: under ("parallel",) megacore sharding each core has
    # a private scratch and only one core ever sees program_id(0)==0, so a one-off
    # pl.when init would be unsafe.  Cost: 2*(W+8)*D f32 stores per image.
    zhalo = jnp.zeros((base, D), jnp.float32)
    pad_ref[0:base] = zhalo
    pad_ref[base + HW:base + HW + base] = zhalo

    if roll_mode is not None:
        lsh = 1 if roll_mode == "fwd" else HW - 1   # roll giving value[j-1] at pixel j
        rsh = HW - lsh                              # roll giving value[j+1] at pixel j

    sp = None
    for i in range(scale):
        # hierarchical residual: sp = spx[i] (i == 0) else prev + spx[i]; the chunk
        # is read back out of sp_cat (bf16) before its columns are overwritten.
        chunk = sp_cat_ref[:, i * D:(i + 1) * D].astype(jnp.float32)
        s = chunk if i == 0 else sp + chunk

        # depthwise 3x3, stride 1, padding 1: one write of the conv input into the
        # zero-halo flat buffer, then only the 3 kh-aligned rows are loaded; the
        # kw = -1/+1 operands are XLU rolls of the loaded rows.  The rolled wrap
        # elements (pixel 0 / pixel HW-1) are exactly the W-edge-masked pixels.
        pad_ref[base:base + HW] = s

        # tap weights for this split: one (1, D) row each, hoisted out of the MAC loop
        taps = [[wdw_ref[i * 9 + kh * 3 + kw:i * 9 + kh * 3 + kw + 1, :]
                 for kw in range(3)] for kh in range(3)]

        left_sum = jnp.zeros((HW, D), jnp.float32)
        center_sum = jnp.zeros((HW, D), jnp.float32)
        right_sum = jnp.zeros((HW, D), jnp.float32)
        for kh in range(3):
            row0 = base + (kh - 1) * W
            center = pad_ref[row0:row0 + HW]
            if roll_mode is not None:
                left = pltpu.roll(center, shift=lsh, axis=0)
                right = pltpu.roll(center, shift=rsh, axis=0)
            else:  # fallback: direct (sublane-misaligned) +/-1-row loads
                left = pad_ref[row0 - 1:row0 - 1 + HW]
                right = pad_ref[row0 + 1:row0 + 1 + HW]
            left_sum = left_sum + left * taps[kh][0]
            center_sum = center_sum + center * taps[kh][1]
            right_sum = right_sum + right * taps[kh][2]

        # W-boundary correction: left taps invalid at w==0, right taps at w==W-1.
        sp = (center_sum
              + jnp.where(not_left_edge, left_sum, 0.0)
              + jnp.where(not_right_edge, right_sum, 0.0))       # (HW, D) f32

        # overwrite this split's columns with the dwconv output (== torch.cat operand)
        sp_cat_ref[:, i * D:(i + 1) * D] = sp.astype(sp_cat_ref.dtype)

    # ---- conv3 (1x1): one full-width bf16 MXU matmul + final ReLU -----------------
    acc = jnp.dot(sp_cat_ref[...], w3_ref[...], preferred_element_type=jnp.float32)
    out_ref[...] = jnp.maximum(acc, 0.0).astype(out_ref.dtype)


def bottle2neckx_pallas(x_nchw, w1_full, wdw, w3_full, *, scale):
    """x_nchw: (N, Cin, H, W); w1_full: (Cin, planes); wdw: (scale, 3, 3, D);
    w3_full: (planes, planes) with (in, out) ordering."""
    N, Cin, H, W = x_nchw.shape
    planes = w1_full.shape[1]
    assert planes % scale == 0
    D = planes // scale
    HW = H * W
    out_dtype = x_nchw.dtype
    # Zero-halo rows on each side of the flat dwconv buffer.  base >= W+1 is needed
    # for the 3x3 taps; W+8 keeps the kh=0 center-row loads (at base-W) 8-aligned.
    base = W + 8

    # Flatten to (N, H*W, C) in XLA so every in-kernel access is a lane-dense 2-D
    # slab; bf16 operands for the MXU matmuls (f32 accumulation in-kernel).
    x = jnp.transpose(x_nchw, (0, 2, 3, 1)).reshape(N, HW, Cin).astype(jnp.bfloat16)
    w1 = w1_full.astype(jnp.bfloat16)
    w3 = w3_full.astype(jnp.bfloat16)
    # Depthwise taps stay f32 (identical VPU math on v5e/v6e/v7x); one row per tap.
    wdw_taps = wdw.astype(jnp.float32).reshape(scale * 9, D)

    roll_mode = _probe_roll_mode()
    kern = functools.partial(bottle2neckx_kernel, scale=scale, W=W, HW=HW, D=D,
                             base=base, roll_mode=roll_mode)

    out_isz = jnp.dtype(out_dtype).itemsize
    per_step_bytes = (2 * HW * Cin * 2              # double-buffered bf16 x block
                      + 2 * HW * planes * out_isz   # double-buffered out block
                      + HW * planes * 2             # sp_cat scratch (bf16)
                      + (HW + 2 * base) * D * 4     # zero-halo dwconv scratch (f32)
                      + (Cin + planes) * planes * 2 + scale * 9 * D * 4)  # weights

    # Advisory only; scratch / spill traffic intentionally not counted.
    flops = int(N * HW * (2 * Cin * planes + 18 * planes + 2 * planes * planes))
    bytes_accessed = int(x.size * 2 + w1.size * 2 + w3.size * 2 + wdw_taps.size * 4
                         + N * HW * planes * out_isz)

    out = pl.pallas_call(
        kern,
        out_shape=jax.ShapeDtypeStruct((N, HW, planes), out_dtype),
        grid_spec=pltpu.PrefetchScalarGridSpec(
            num_scalar_prefetch=0,
            grid=(N,),
            in_specs=[
                pl.BlockSpec((None, HW, Cin), lambda n: (n, 0, 0)),
                pl.BlockSpec((Cin, planes), lambda n: (0, 0)),
                pl.BlockSpec((scale * 9, D), lambda n: (0, 0)),
                pl.BlockSpec((planes, planes), lambda n: (0, 0)),
            ],
            out_specs=pl.BlockSpec((None, HW, planes), lambda n: (n, 0, 0)),
            scratch_shapes=[
                pltpu.VMEM((HW, planes), jnp.bfloat16),       # conv1 out / torch.cat / conv3 operand
                pltpu.VMEM((HW + 2 * base, D), jnp.float32),  # zero-halo dwconv buffer
            ],
        ),
        compiler_params=pltpu.CompilerParams(
            dimension_semantics=("parallel",),
            vmem_limit_bytes=_vmem_limit_bytes(per_step_bytes),
        ),
        cost_estimate=pl.CostEstimate(flops=flops, transcendentals=0,
                                      bytes_accessed=bytes_accessed),
    )(x, w1, wdw_taps, w3)
    out = out.reshape(N, H, W, planes)
    return jnp.transpose(out, (0, 3, 1, 2))               # back to NCHW


def bottle2neckx_ref(x_nchw, w1_full, wdw, w3_full, *, scale):
    """Pure-JAX f32 reference mirroring the PyTorch forward exactly."""
    N, Cin, H, W = x_nchw.shape
    planes = w1_full.shape[1]
    D = planes // scale
    dn = ('NHWC', 'HWIO', 'NHWC')
    x = jnp.transpose(x_nchw, (0, 2, 3, 1))
    out = lax.conv_general_dilated(x, w1_full.reshape(1, 1, Cin, planes),
                                   (1, 1), 'VALID', dimension_numbers=dn)
    out = jnp.maximum(out, 0.0)
    spx = [out[..., i * D:(i + 1) * D] for i in range(scale)]
    outs = []
    sp = None
    for i in range(scale):
        sp = spx[i] if i == 0 else sp + spx[i]
        k = wdw[i].reshape(3, 3, 1, D)
        sp = lax.conv_general_dilated(sp, k, (1, 1), ((1, 1), (1, 1)),
                                      dimension_numbers=dn, feature_group_count=D)
        outs.append(sp)
    out = jnp.concatenate(outs, axis=-1)
    out = lax.conv_general_dilated(out, w3_full.reshape(1, 1, planes, planes),
                                   (1, 1), 'VALID', dimension_numbers=dn)
    out = jnp.maximum(out, 0.0)
    return jnp.transpose(out, (0, 3, 1, 2))


if __name__ == "__main__":
    # Small shapes consistent with the module defaults (dim=1, stride=1, scale=4).
    N, Cin, H, W = 2, 4, 16, 16
    planes, scale = 8, 4
    D = planes // scale

    key = jax.random.PRNGKey(0)
    kx, k1, k2, k3 = jax.random.split(key, 4)
    x = jax.random.normal(kx, (N, Cin, H, W), jnp.float32)                 # NCHW input
    # Deterministic synthetic weights (matching shapes implied by __init__).
    w1_full = 0.3 * jax.random.normal(k1, (Cin, planes), jnp.float32)      # conv1 (in, out)
    wdw = 0.3 * jax.random.normal(k2, (scale, 3, 3, D), jnp.float32)       # depthwise 3x3 per split
    w3_full = 0.3 * jax.random.normal(k3, (planes, planes), jnp.float32)   # conv3 (in, out)

    out = bottle2neckx_pallas(x, w1_full, wdw, w3_full, scale=scale)
    out = jax.block_until_ready(out)

    ref = bottle2neckx_ref(x, w1_full, wdw, w3_full, scale=scale)
    # bf16 MXU operands + bf16 storage of the conv1 / dwconv intermediates (all
    # accumulation in f32) -> compare against the f32 reference with
    # bf16-appropriate tolerances.
    np.testing.assert_allclose(np.asarray(out), np.asarray(ref), rtol=3e-2, atol=3e-2)

    print("KERNEL_OK")
</pallas_src>

<mosaic_0001>
module attributes {stable_mosaic.version = 11 : i64} {
  func.func @k(%arg0: memref<8x128xf32, #tpu.memory_space<vmem>>, %arg1: memref<8x128xf32, #tpu.memory_space<vmem>>) attributes {dimension_semantics = [], scalar_prefetch = 0 : i64, scratch_operands = 0 : i64, tpu.core_type = #tpu.core_type<tc>} {
    %c0 = arith.constant 0 : index
    %c0_0 = arith.constant 0 : index
    %0 = vector.load %arg0[%c0, %c0_0] : memref<8x128xf32, #tpu.memory_space<vmem>>, vector<8x128xf32>
    %c1_i32 = arith.constant 1 : i32
    %1 = tpu.dynamic_rotate %0 by %c1_i32 dim 0 : vector<8x128xf32>, i32 -> vector<8x128xf32>
    %c0_1 = arith.constant 0 : index
    %c0_2 = arith.constant 0 : index
    %2 = vector.load %arg1[%c0_1, %c0_2] : memref<8x128xf32, #tpu.memory_space<vmem>>, vector<8x128xf32>
    tpu.vector_store %arg1[%c0_1, %c0_2], %1 {strides = array<i32>} : memref<8x128xf32, #tpu.memory_space<vmem>>, vector<8x128xf32>,
    return
  }
}

module attributes {stable_mosaic.version = 11 : i64} {
  func.func @bottle2neckx_kernel(%arg0: i32, %arg1: memref<1x256x4xbf16, #tpu.memory_space<vmem>>, %arg2: memref<4x8xbf16, #tpu.memory_space<vmem>>, %arg3: memref<36x2xf32, #tpu.memory_space<vmem>>, %arg4: memref<8x8xbf16, #tpu.memory_space<vmem>>, %arg5: memref<1x256x8xf32, #tpu.memory_space<vmem>>, %arg6: memref<256x8xbf16, #tpu.memory_space<vmem>>, %arg7: memref<304x2xf32, #tpu.memory_space<vmem>>) attributes {dimension_semantics = [#tpu.dimension_semantics<parallel>], iteration_bounds = array<i64: 2>, scalar_prefetch = 0 : i64, scratch_operands = 2 : i64, tpu.core_type = #tpu.core_type<tc>, window_params = [{transform_indices = @transform_0, window_bounds = array<i64: 1, 256, 4>}, {pipeline_mode = #tpu.pipeline_mode<synchronous>, transform_indices = @transform_1, window_bounds = array<i64: 4, 8>}, {pipeline_mode = #tpu.pipeline_mode<synchronous>, transform_indices = @transform_2, window_bounds = array<i64: 36, 2>}, {pipeline_mode = #tpu.pipeline_mode<synchronous>, transform_indices = @transform_3, window_bounds = array<i64: 8, 8>}, {transform_indices = @transform_4, window_bounds = array<i64: 1, 256, 8>}]} {
    %c0 = arith.constant 0 : index
    %c0_0 = arith.constant 0 : index
    %c0_1 = arith.constant 0 : index
    %0 = vector.load %arg1[%c0, %c0_0, %c0_1] : memref<1x256x4xbf16, #tpu.memory_space<vmem>>, vector<1x256x4xbf16>
    %1 = vector.shape_cast %0 : vector<1x256x4xbf16> to vector<256x4xbf16>
    %c0_2 = arith.constant 0 : index
    %c0_3 = arith.constant 0 : index
    %2 = vector.load %arg2[%c0_2, %c0_3] : memref<4x8xbf16, #tpu.memory_space<vmem>>, vector<4x8xbf16>
    %cst = arith.constant dense<0.000000e+00> : vector<256x8xf32>
    %3 = tpu.matmul %1, %2, %cst {dimension_numbers = #tpu.dot_dimension_numbers<[1], [0], [0], [1], [0, 0, 1, 1], [], []>} : vector<256x4xbf16>, vector<4x8xbf16>, vector<256x8xf32> -> vector<256x8xf32>
    %cst_4 = arith.constant 0.000000e+00 : f32
    %4 = vector.broadcast %cst_4 : f32 to vector<256x8xf32>
    %5 = arith.maximumf %3, %4 : vector<256x8xf32>
    %6 = arith.truncf %5 : vector<256x8xf32> to vector<256x8xbf16>
    %c0_5 = arith.constant 0 : index
    %c0_6 = arith.constant 0 : index
    %7 = vector.load %arg6[%c0_5, %c0_6] : memref<256x8xbf16, #tpu.memory_space<vmem>>, vector<256x8xbf16>
    tpu.vector_store %arg6[%c0_5, %c0_6], %6 {strides = array<i32>} : memref<256x8xbf16, #tpu.memory_space<vmem>>, vector<256x8xbf16>,
    %8 = tpu.iota {dimensions = array<i32: 0>} : vector<256x1xi32>
    %c16_i32 = arith.constant 16 : i32
    %c0_i32 = arith.constant 0 : i32
    %9 = arith.cmpi eq, %c16_i32, %c0_i32 : i32
    %c1_i32 = arith.constant 1 : i32
    %10 = arith.select %9, %c1_i32, %c16_i32 : i32
    %11 = vector.broadcast %10 : i32 to vector<256x1xi32>
    %12 = arith.remsi %8, %11 : vector<256x1xi32>
    %c0_i32_7 = arith.constant 0 : i32
    %13 = vector.broadcast %c0_i32_7 : i32 to vector<256x1xi32>
    %14 = arith.cmpi ne, %12, %13 : vector<256x1xi32>
    %c0_i32_8 = arith.constant 0 : i32
    %15 = vector.broadcast %c0_i32_8 : i32 to vector<256x1xi32>
    %16 = arith.cmpi slt, %12, %15 : vector<256x1xi32>
    %c0_i32_9 = arith.constant 0 : i32
    %17 = arith.cmpi slt, %10, %c0_i32_9 : i32
    %18 = vector.broadcast %17 : i1 to vector<256x1xi1>
    %19 = vector.broadcast %18 : vector<256x1xi1> to vector<256x1xi1>
    %20 = arith.xori %16, %19 : vector<256x1xi1>
    %21 = arith.andi %20, %14 : vector<256x1xi1>
    %22 = vector.broadcast %10 : i32 to vector<256x1xi32>
    %23 = arith.addi %12, %22 : vector<256x1xi32>
    %24 = arith.select %21, %23, %12 : vector<256x1xi1>, vector<256x1xi32>
    %c0_i32_10 = arith.constant 0 : i32
    %25 = vector.broadcast %c0_i32_10 : i32 to vector<256x1xi32>
    %26 = arith.cmpi ne, %24, %25 : vector<256x1xi32>
    %c15_i32 = arith.constant 15 : i32
    %27 = vector.broadcast %c15_i32 : i32 to vector<256x1xi32>
    %28 = arith.cmpi ne, %24, %27 : vector<256x1xi32>
    %cst_11 = arith.constant 0.000000e+00 : f32
    %29 = vector.broadcast %cst_11 : f32 to vector<24x2xf32>
    %c0_12 = arith.constant 0 : index
    %c0_13 = arith.constant 0 : index
    %30 = vector.load %arg7[%c0_12, %c0_13] : memref<304x2xf32, #tpu.memory_space<vmem>>, vector<24x2xf32>
    tpu.vector_store %arg7[%c0_12, %c0_13], %29 {strides = array<i32>} : memref<304x2xf32, #tpu.memory_space<vmem>>, vector<24x2xf32>,
    %c280 = arith.constant 280 : index
    %c0_14 = arith.constant 0 : index
    %31 = vector.load %arg7[%c280, %c0_14] : memref<304x2xf32, #tpu.memory_space<vmem>>, vector<24x2xf32>
    tpu.vector_store %arg7[%c280, %c0_14], %29 {strides = array<i32>} : memref<304x2xf32, #tpu.memory_space<vmem>>, vector<24x2xf32>,
    %c0_15 = arith.constant 0 : index
    %c0_16 = arith.constant 0 : index
    %32 = vector.load %arg6[%c0_15, %c0_16] : memref<256x8xbf16, #tpu.memory_space<vmem>>, vector<256x2xbf16>
    %33 = arith.extf %32 : vector<256x2xbf16> to vector<256x2xf32>
    %c24 = arith.constant 24 : index
    %c0_17 = arith.constant 0 : index
    %34 = vector.load %arg7[%c24, %c0_17] : memref<304x2xf32, #tpu.memory_space<vmem>>, vector<256x2xf32>
    tpu.vector_store %arg7[%c24, %c0_17], %33 {strides = array<i32>} : memref<304x2xf32, #tpu.memory_space<vmem>>, vector<256x2xf32>,
    %c0_18 = arith.constant 0 : index
    %c0_19 = arith.constant 0 : index
    %35 = vector.load %arg3[%c0_18, %c0_19] : memref<36x2xf32, #tpu.memory_space<vmem>>, vector<1x2xf32>
    %c1 = arith.constant 1 : index
    %c0_20 = arith.constant 0 : index
    %36 = vector.load %arg3[%c1, %c0_20] : memref<36x2xf32, #tpu.memory_space<vmem>>, vector<1x2xf32>
    %c2 = arith.constant 2 : index
    %c0_21 = arith.constant 0 : index
    %37 = vector.load %arg3[%c2, %c0_21] : memref<36x2xf32, #tpu.memory_space<vmem>>, vector<1x2xf32>
    %c3 = arith.constant 3 : index
    %c0_22 = arith.constant 0 : index
    %38 = vector.load %arg3[%c3, %c0_22] : memref<36x2xf32, #tpu.memory_space<vmem>>, vector<1x2xf32>
    %c4 = arith.constant 4 : index
    %c0_23 = arith.constant 0 : index
    %39 = vector.load %arg3[%c4, %c0_23] : memref<36x2xf32, #tpu.memory_space<vmem>>, vector<1x2xf32>
    %c5 = arith.constant 5 : index
    %c0_24 = arith.constant 0 : index
    %40 = vector.load %arg3[%c5, %c0_24] : memref<36x2xf32, #tpu.memory_space<vmem>>, vector<1x2xf32>
    %c6 = arith.constant 6 : index
    %c0_25 = arith.constant 0 : index
    %41 = vector.load %arg3[%c6, %c0_25] : memref<36x2xf32, #tpu.memory_space<vmem>>, vector<1x2xf32>
    %c7 = arith.constant 7 : index
    %c0_26 = arith.constant 0 : index
    %42 = vector.load %arg3[%c7, %c0_26] : memref<36x2xf32, #tpu.memory_space<vmem>>, vector<1x2xf32>
    %c8 = arith.constant 8 : index
    %c0_27 = arith.constant 0 : index
    %43 = vector.load %arg3[%c8, %c0_27] : memref<36x2xf32, #tpu.memory_space<vmem>>, vector<1x2xf32>
    %cst_28 = arith.constant 0.000000e+00 : f32
    %44 = vector.broadcast %cst_28 : f32 to vector<256x2xf32>
    %cst_29 = arith.constant 0.000000e+00 : f32
    %45 = vector.broadcast %cst_29 : f32 to vector<256x2xf32>
    %cst_30 = arith.constant 0.000000e+00 : f32
    %46 = vector.broadcast %cst_30 : f32 to vector<256x2xf32>
    %c8_31 = arith.constant 8 : index
    %c0_32 = arith.constant 0 : index
    %47 = vector.load %arg7[%c8_31, %c0_32] : memref<304x2xf32, #tpu.memory_space<vmem>>, vector<256x2xf32>
    %c7_33 = arith.constant 7 : index
    %c0_34 = arith.constant 0 : index
    %48 = vector.load %arg7[%c7_33, %c0_34] : memref<304x2xf32, #tpu.memory_space<vmem>>, vector<256x2xf32>
    %c9 = arith.constant 9 : index
    %c0_35 = arith.constant 0 : index
    %49 = vector.load %arg7[%c9, %c0_35] : memref<304x2xf32, #tpu.memory_space<vmem>>, vector<256x2xf32>
    %50 = vector.broadcast %35 : vector<1x2xf32> to vector<256x2xf32>
    %51 = arith.mulf %48, %50 : vector<256x2xf32>
    %52 = arith.addf %44, %51 : vector<256x2xf32>
    %53 = vector.broadcast %36 : vector<1x2xf32> to vector<256x2xf32>
    %54 = arith.mulf %47, %53 : vector<256x2xf32>
    %55 = arith.addf %45, %54 : vector<256x2xf32>
    %56 = vector.broadcast %37 : vector<1x2xf32> to vector<256x2xf32>
    %57 = arith.mulf %49, %56 : vector<256x2xf32>
    %58 = arith.addf %46, %57 : vector<256x2xf32>
    %c24_36 = arith.constant 24 : index
    %c0_37 = arith.constant 0 : index
    %59 = vector.load %arg7[%c24_36, %c0_37] : memref<304x2xf32, #tpu.memory_space<vmem>>, vector<256x2xf32>
    %c23 = arith.constant 23 : index
    %c0_38 = arith.constant 0 : index
    %60 = vector.load %arg7[%c23, %c0_38] : memref<304x2xf32, #tpu.memory_space<vmem>>, vector<256x2xf32>
    %c25 = arith.constant 25 : index
    %c0_39 = arith.constant 0 : index
    %61 = vector.load %arg7[%c25, %c0_39] : memref<304x2xf32, #tpu.memory_space<vmem>>, vector<256x2xf32>
    %62 = vector.broadcast %38 : vector<1x2xf32> to vector<256x2xf32>
    %63 = arith.mulf %60, %62 : vector<256x2xf32>
    %64 = arith.addf %52, %63 : vector<256x2xf32>
    %65 = vector.broadcast %39 : vector<1x2xf32> to vector<256x2xf32>
    %66 = arith.mulf %59, %65 : vector<256x2xf32>
    %67 = arith.addf %55, %66 : vector<256x2xf32>
    %68 = vector.broadcast %40 : vector<1x2xf32> to vector<256x2xf32>
    %69 = arith.mulf %61, %68 : vector<256x2xf32>
    %70 = arith.addf %58, %69 : vector<256x2xf32>
    %c40 = arith.constant 40 : index
    %c0_40 = arith.constant 0 : index
    %71 = vector.load %arg7[%c40, %c0_40] : memref<304x2xf32, #tpu.memory_space<vmem>>, vector<256x2xf32>
    %c39 = arith.constant 39 : index
    %c0_41 = arith.constant 0 : index
    %72 = vector.load %arg7[%c39, %c0_41] : memref<304x2xf32, #tpu.memory_space<vmem>>, vector<256x2xf32>
    %c41 = arith.constant 41 : index
    %c0_42 = arith.constant 0 : index
    %73 = vector.load %arg7[%c41, %c0_42] : memref<304x2xf32, #tpu.memory_space<vmem>>, vector<256x2xf32>
    %74 = vector.broadcast %41 : vector<1x2xf32> to vector<256x2xf32>
    %75 = arith.mulf %72, %74 : vector<256x2xf32>
    %76 = arith.addf %64, %75 : vector<256x2xf32>
    %77 = vector.broadcast %42 : vector<1x2xf32> to vector<256x2xf32>
    %78 = arith.mulf %71, %77 : vector<256x2xf32>
    %79 = arith.addf %67, %78 : vector<256x2xf32>
    %80 = vector.broadcast %43 : vector<1x2xf32> to vector<256x2xf32>
    %81 = arith.mulf %73, %80 : vector<256x2xf32>
    %82 = arith.addf %70, %81 : vector<256x2xf32>
    %cst_43 = arith.constant 0.000000e+00 : f32
    %83 = vector.shape_cast %26 : vector<256x1xi1> to vector<256x1xi1>
    %84 = vector.broadcast %83 : vector<256x1xi1> to vector<256x2xi1>
    %85 = vector.broadcast %cst_43 : f32 to vector<256x2xf32>
    %86 = arith.select %84, %76, %85 : vector<256x2xi1>, vector<256x2xf32>
    %87 = arith.addf %79, %86 : vector<256x2xf32>
    %cst_44 = arith.constant 0.000000e+00 : f32
    %88 = vector.shape_cast %28 : vector<256x1xi1> to vector<256x1xi1>
    %89 = vector.broadcast %88 : vector<256x1xi1> to vector<256x2xi1>
    %90 = vector.broadcast %cst_44 : f32 to vector<256x2xf32>
    %91 = arith.select %89, %82, %90 : vector<256x2xi1>, vector<256x2xf32>
    %92 = arith.addf %87, %91 : vector<256x2xf32>
    %93 = arith.truncf %92 : vector<256x2xf32> to vector<256x2xbf16>
    %c0_45 = arith.constant 0 : index
    %c0_46 = arith.constant 0 : index
    %94 = vector.load %arg6[%c0_45, %c0_46] : memref<256x8xbf16, #tpu.memory_space<vmem>>, vector<256x2xbf16>
    tpu.vector_store %arg6[%c0_45, %c0_46], %93 {strides = array<i32>} : memref<256x8xbf16, #tpu.memory_space<vmem>>, vector<256x2xbf16>,
    %c0_47 = arith.constant 0 : index
    %c2_48 = arith.constant 2 : index
    %95 = vector.load %arg6[%c0_47, %c2_48] : memref<256x8xbf16, #tpu.memory_space<vmem>>, vector<256x2xbf16>
    %96 = arith.extf %95 : vector<256x2xbf16> to vector<256x2xf32>
    %97 = arith.addf %92, %96 : vector<256x2xf32>
    %c24_49 = arith.constant 24 : index
    %c0_50 = arith.constant 0 : index
    %98 = vector.load %arg7[%c24_49, %c0_50] : memref<304x2xf32, #tpu.memory_space<vmem>>, vector<256x2xf32>
    tpu.vector_store %arg7[%c24_49, %c0_50], %97 {strides = array<i32>} : memref<304x2xf32, #tpu.memory_space<vmem>>, vector<256x2xf32>,
    %c9_51 = arith.constant 9 : index
    %c0_52 = arith.constant 0 : index
    %99 = vector.load %arg3[%c9_51, %c0_52] : memref<36x2xf32, #tpu.memory_space<vmem>>, vector<1x2xf32>
    %c10 = arith.constant 10 : index
    %c0_53 = arith.constant 0 : index
    %100 = vector.load %arg3[%c10, %c0_53] : memref<36x2xf32, #tpu.memory_space<vmem>>, vector<1x2xf32>
    %c11 = arith.constant 11 : index
    %c0_54 = arith.constant 0 : index
    %101 = vector.load %arg3[%c11, %c0_54] : memref<36x2xf32, #tpu.memory_space<vmem>>, vector<1x2xf32>
    %c12 = arith.constant 12 : index
    %c0_55 = arith.constant 0 : index
    %102 = vector.load %arg3[%c12, %c0_55] : memref<36x2xf32, #tpu.memory_space<vmem>>, vector<1x2xf32>
    %c13 = arith.constant 13 : index
    %c0_56 = arith.constant 0 : index
    %103 = vector.load %arg3[%c13, %c0_56] : memref<36x2xf32, #tpu.memory_space<vmem>>, vector<1x2xf32>
    %c14 = arith.constant 14 : index
    %c0_57 = arith.constant 0 : index
    %104 = vector.load %arg3[%c14, %c0_57] : memref<36x2xf32, #tpu.memory_space<vmem>>, vector<1x2xf32>
    %c15 = arith.constant 15 : index
    %c0_58 = arith.constant 0 : index
    %105 = vector.load %arg3[%c15, %c0_58] : memref<36x2xf32, #tpu.memory_space<vmem>>, vector<1x2xf32>
    %c16 = arith.constant 16 : index
    %c0_59 = arith.constant 0 : index
    %106 = vector.load %arg3[%c16, %c0_59] : memref<36x2xf32, #tpu.memory_space<vmem>>, vector<1x2xf32>
    %c17 = arith.constant 17 : index
    %c0_60 = arith.constant 0 : index
    %107 = vector.load %arg3[%c17, %c0_60] : memref<36x2xf32, #tpu.memory_space<vmem>>, vector<1x2xf32>
    %cst_61 = arith.constant 0.000000e+00 : f32
    %108 = vector.broadcast %cst_61 : f32 to vector<256x2xf32>
    %cst_62 = arith.constant 0.000000e+00 : f32
    %109 = vector.broadcast %cst_62 : f32 to vector<256x2xf32>
    %cst_63 = arith.constant 0.000000e+00 : f32
    %110 = vector.broadcast %cst_63 : f32 to vector<256x2xf32>
    %c8_64 = arith.constant 8 : index
    %c0_65 = arith.constant 0 : index
    %111 = vector.load %arg7[%c8_64, %c0_65] : memref<304x2xf32, #tpu.memory_space<vmem>>, vector<256x2xf32>
    %c7_66 = arith.constant 7 : index
    %c0_67 = arith.constant 0 : index
    %112 = vector.load %arg7[%c7_66, %c0_67] : memref<304x2xf32, #tpu.memory_space<vmem>>, vector<256x2xf32>
    %c9_68 = arith.constant 9 : index
    %c0_69 = arith.constant 0 : index
    %113 = vector.load %arg7[%c9_68, %c0_69] : memref<304x2xf32, #tpu.memory_space<vmem>>, vector<256x2xf32>
    %114 = vector.broadcast %99 : vector<1x2xf32> to vector<256x2xf32>
    %115 = arith.mulf %112, %114 : vector<256x2xf32>
    %116 = arith.addf %108, %115 : vector<256x2xf32>
    %117 = vector.broadcast %100 : vector<1x2xf32> to vector<256x2xf32>
    %118 = arith.mulf %111, %117 : vector<256x2xf32>
    %119 = arith.addf %109, %118 : vector<256x2xf32>
    %120 = vector.broadcast %101 : vector<1x2xf32> to vector<256x2xf32>
    %121 = arith.mulf %113, %120 : vector<256x2xf32>
    %122 = arith.addf %110, %121 : vector<256x2xf32>
    %c24_70 = arith.constant 24 : index
    %c0_71 = arith.constant 0 : index
    %123 = vector.load %arg7[%c24_70, %c0_71] : memref<304x2xf32, #tpu.memory_space<vmem>>, vector<256x2xf32>
    %c23_72 = arith.constant 23 : index
    %c0_73 = arith.constant 0 : index
    %124 = vector.load %arg7[%c23_72, %c0_73] : memref<304x2xf32, #tpu.memory_space<vmem>>, vector<256x2xf32>
    %c25_74 = arith.constant 25 : index
    %c0_75 = arith.constant 0 : index
    %125 = vector.load %arg7[%c25_74, %c0_75] : memref<304x2xf32, #tpu.memory_space<vmem>>, vector<256x2xf32>
    %126 = vector.broadcast %102 : vector<1x2xf32> to vector<256x2xf32>
    %127 = arith.mulf %124, %126 : vector<256x2xf32>
    %128 = arith.addf %116, %127 : vector<256x2xf32>
    %129 = vector.broadcast %103 : vector<1x2xf32> to vector<256x2xf32>
    %130 = arith.mulf %123, %129 : vector<256x2xf32>
    %131 = arith.addf %119, %130 : vector<256x2xf32>
    %132 = vector.broadcast %104 : vector<1x2xf32> to vector<256x2xf32>
    %133 = arith.mulf %125, %132 : vector<256x2xf32>
    %134 = arith.addf %122, %133 : vector<256x2xf32>
    %c40_76 = arith.constant 40 : index
    %c0_77 = arith.constant 0 : index
    %135 = vector.load %arg7[%c40_76, %c0_77] : memref<304x2xf32, #tpu.memory_space<vmem>>, vector<256x2xf32>
    %c39_78 = arith.constant 39 : index
    %c0_79 = arith.constant 0 : index
    %136 = vector.load %arg7[%c39_78, %c0_79] : memref<304x2xf32, #tpu.memory_space<vmem>>, vector<256x2xf32>
    %c41_80 = arith.constant 41 : index
    %c0_81 = arith.constant 0 : index
    %137 = vector.load %arg7[%c41_80, %c0_81] : memref<304x2xf32, #tpu.memory_space<vmem>>, vector<256x2xf32>
    %138 = vector.broadcast %105 : vector<1x2xf32> to vector<256x2xf32>
    %139 = arith.mulf %136, %138 : vector<256x2xf32>
    %140 = arith.addf %128, %139 : vector<256x2xf32>
    %141 = vector.broadcast %106 : vector<1x2xf32> to vector<256x2xf32>
    %142 = arith.mulf %135, %141 : vector<256x2xf32>
    %143 = arith.addf %131, %142 : vector<256x2xf32>
    %144 = vector.broadcast %107 : vector<1x2xf32> to vector<256x2xf32>
    %145 = arith.mulf %137, %144 : vector<256x2xf32>
    %146 = arith.addf %134, %145 : vector<256x2xf32>
    %cst_82 = arith.constant 0.000000e+00 : f32
    %147 = vector.shape_cast %26 : vector<256x1xi1> to vector<256x1xi1>
    %148 = vector.broadcast %147 : vector<256x1xi1> to vector<256x2xi1>
    %149 = vector.broadcast %cst_82 : f32 to vector<256x2xf32>
    %150 = arith.select %148, %140, %149 : vector<256x2xi1>, vector<256x2xf32>
    %151 = arith.addf %143, %150 : vector<256x2xf32>
    %cst_83 = arith.constant 0.000000e+00 : f32
    %152 = vector.shape_cast %28 : vector<256x1xi1> to vector<256x1xi1>
    %153 = vector.broadcast %152 : vector<256x1xi1> to vector<256x2xi1>
    %154 = vector.broadcast %cst_83 : f32 to vector<256x2xf32>
    %155 = arith.select %153, %146, %154 : vector<256x2xi1>, vector<256x2xf32>
    %156 = arith.addf %151, %155 : vector<256x2xf32>
    %157 = arith.truncf %156 : vector<256x2xf32> to vector<256x2xbf16>
    %c0_84 = arith.constant 0 : index
    %c2_85 = arith.constant 2 : index
    %158 = vector.load %arg6[%c0_84, %c2_85] : memref<256x8xbf16, #tpu.memory_space<vmem>>, vector<256x2xbf16>
    tpu.vector_store %arg6[%c0_84, %c2_85], %157 {strides = array<i32>} : memref<256x8xbf16, #tpu.memory_space<vmem>>, vector<256x2xbf16>,
    %c0_86 = arith.constant 0 : index
    %c4_87 = arith.constant 4 : index
    %159 = vector.load %arg6[%c0_86, %c4_87] : memref<256x8xbf16, #tpu.memory_space<vmem>>, vector<256x2xbf16>
    %160 = arith.extf %159 : vector<256x2xbf16> to vector<256x2xf32>
    %161 = arith.addf %156, %160 : vector<256x2xf32>
    %c24_88 = arith.constant 24 : index
    %c0_89 = arith.constant 0 : index
    %162 = vector.load %arg7[%c24_88, %c0_89] : memref<304x2xf32, #tpu.memory_space<vmem>>, vector<256x2xf32>
    tpu.vector_store %arg7[%c24_88, %c0_89], %161 {strides = array<i32>} : memref<304x2xf32, #tpu.memory_space<vmem>>, vector<256x2xf32>,
    %c18 = arith.constant 18 : index
    %c0_90 = arith.constant 0 : index
    %163 = vector.load %arg3[%c18, %c0_90] : memref<36x2xf32, #tpu.memory_space<vmem>>, vector<1x2xf32>
    %c19 = arith.constant 19 : index
    %c0_91 = arith.constant 0 : index
    %164 = vector.load %arg3[%c19, %c0_91] : memref<36x2xf32, #tpu.memory_space<vmem>>, vector<1x2xf32>
    %c20 = arith.constant 20 : index
    %c0_92 = arith.constant 0 : index
    %165 = vector.load %arg3[%c20, %c0_92] : memref<36x2xf32, #tpu.memory_space<vmem>>, vector<1x2xf32>
    %c21 = arith.constant 21 : index
    %c0_93 = arith.constant 0 : index
    %166 = vector.load %arg3[%c21, %c0_93] : memref<36x2xf32, #tpu.memory_space<vmem>>, vector<1x2xf32>
    %c22 = arith.constant 22 : index
    %c0_94 = arith.constant 0 : index
    %167 = vector.load %arg3[%c22, %c0_94] : memref<36x2xf32, #tpu.memory_space<vmem>>, vector<1x2xf32>
    %c23_95 = arith.constant 23 : index
    %c0_96 = arith.constant 0 : index
    %168 = vector.load %arg3[%c23_95, %c0_96] : memref<36x2xf32, #tpu.memory_space<vmem>>, vector<1x2xf32>
    %c24_97 = arith.constant 24 : index
    %c0_98 = arith.constant 0 : index
    %169 = vector.load %arg3[%c24_97, %c0_98] : memref<36x2xf32, #tpu.memory_space<vmem>>, vector<1x2xf32>
    %c25_99 = arith.constant 25 : index
    %c0_100 = arith.constant 0 : index
    %170 = vector.load %arg3[%c25_99, %c0_100] : memref<36x2xf32, #tpu.memory_space<vmem>>, vector<1x2xf32>
    %c26 = arith.constant 26 : index
    %c0_101 = arith.constant 0 : index
    %171 = vector.load %arg3[%c26, %c0_101] : memref<36x2xf32, #tpu.memory_space<vmem>>, vector<1x2xf32>
    %cst_102 = arith.constant 0.000000e+00 : f32
    %172 = vector.broadcast %cst_102 : f32 to vector<256x2xf32>
    %cst_103 = arith.constant 0.000000e+00 : f32
    %173 = vector.broadcast %cst_103 : f32 to vector<256x2xf32>
    %cst_104 = arith.constant 0.000000e+00 : f32
    %174 = vector.broadcast %cst_104 : f32 to vector<256x2xf32>
    %c8_105 = arith.constant 8 : index
    %c0_106 = arith.constant 0 : index
    %175 = vector.load %arg7[%c8_105, %c0_106] : memref<304x2xf32, #tpu.memory_space<vmem>>, vector<256x2xf32>
    %c7_107 = arith.constant 7 : index
    %c0_108 = arith.constant 0 : index
    %176 = vector.load %arg7[%c7_107, %c0_108] : memref<304x2xf32, #tpu.memory_space<vmem>>, vector<256x2xf32>
    %c9_109 = arith.constant 9 : index
    %c0_110 = arith.constant 0 : index
    %177 = vector.load %arg7[%c9_109, %c0_110] : memref<304x2xf32, #tpu.memory_space<vmem>>, vector<256x2xf32>
    %178 = vector.broadcast %163 : vector<1x2xf32> to vector<256x2xf32>
    %179 = arith.mulf %176, %178 : vector<256x2xf32>
    %180 = arith.addf %172, %179 : vector<256x2xf32>
    %181 = vector.broadcast %164 : vector<1x2xf32> to vector<256x2xf32>
    %182 = arith.mulf %175, %181 : vector<256x2xf32>
    %183 = arith.addf %173, %182 : vector<256x2xf32>
    %184 = vector.broadcast %165 : vector<1x2xf32> to vector<256x2xf32>
    %185 = arith.mulf %177, %184 : vector<256x2xf32>
    %186 = arith.addf %174, %185 : vector<256x2xf32>
    %c24_111 = arith.constant 24 : index
    %c0_112 = arith.constant 0 : index
    %187 = vector.load %arg7[%c24_111, %c0_112] : memref<304x2xf32, #tpu.memory_space<vmem>>, vector<256x2xf32>
    %c23_113 = arith.constant 23 : index
    %c0_114 = arith.constant 0 : index
    %188 = vector.load %arg7[%c23_113, %c0_114] : memref<304x2xf32, #tpu.memory_space<vmem>>, vector<256x2xf32>
    %c25_115 = arith.constant 25 : index
    %c0_116 = arith.constant 0 : index
    %189 = vector.load %arg7[%c25_115, %c0_116] : memref<304x2xf32, #tpu.memory_space<vmem>>, vector<256x2xf32>
    %190 = vector.broadcast %166 : vector<1x2xf32> to vector<256x2xf32>
    %191 = arith.mulf %188, %190 : vector<256x2xf32>
    %192 = arith.addf %180, %191 : vector<256x2xf32>
    %193 = vector.broadcast %167 : vector<1x2xf32> to vector<256x2xf32>
    %194 = arith.mulf %187, %193 : vector<256x2xf32>
    %195 = arith.addf %183, %194 : vector<256x2xf32>
    %196 = vector.broadcast %168 : vector<1x2xf32> to vector<256x2xf32>
    %197 = arith.mulf %189, %196 : vector<256x2xf32>
    %198 = arith.addf %186, %197 : vector<256x2xf32>
    %c40_117 = arith.constant 40 : index
    %c0_118 = arith.constant 0 : index
    %199 = vector.load %arg7[%c40_117, %c0_118] : memref<304x2xf32, #tpu.memory_space<vmem>>, vector<256x2xf32>
    %c39_119 = arith.constant 39 : index
    %c0_120 = arith.constant 0 : index
    %200 = vector.load %arg7[%c39_119, %c0_120] : memref<304x2xf32, #tpu.memory_space<vmem>>, vector<256x2xf32>
    %c41_121 = arith.constant 41 : index
    %c0_122 = arith.constant 0 : index
    %201 = vector.load %arg7[%c41_121, %c0_122] : memref<304x2xf32, #tpu.memory_space<vmem>>, vector<256x2xf32>
    %202 = vector.broadcast %169 : vector<1x2xf32> to vector<256x2xf32>
    %203 = arith.mulf %200, %202 : vector<256x2xf32>
    %204 = arith.addf %192, %203 : vector<256x2xf32>
    %205 = vector.broadcast %170 : vector<1x2xf32> to vector<256x2xf32>
    %206 = arith.mulf %199, %205 : vector<256x2xf32>
    %207 = arith.addf %195, %206 : vector<256x2xf32>
    %208 = vector.broadcast %171 : vector<1x2xf32> to vector<256x2xf32>
    %209 = arith.mulf %201, %208 : vector<256x2xf32>
    %210 = arith.addf %198, %209 : vector<256x2xf32>
    %cst_123 = arith.constant 0.000000e+00 : f32
    %211 = vector.shape_cast %26 : vector<256x1xi1> to vector<256x1xi1>
    %212 = vector.broadcast %211 : vector<256x1xi1> to vector<256x2xi1>
    %213 = vector.broadcast %cst_123 : f32 to vector<256x2xf32>
    %214 = arith.select %212, %204, %213 : vector<256x2xi1>, vector<256x2xf32>
    %215 = arith.addf %207, %214 : vector<256x2xf32>
    %cst_124 = arith.constant 0.000000e+00 : f32
    %216 = vector.shape_cast %28 : vector<256x1xi1> to vector<256x1xi1>
    %217 = vector.broadcast %216 : vector<256x1xi1> to vector<256x2xi1>
    %218 = vector.broadcast %cst_124 : f32 to vector<256x2xf32>
    %219 = arith.select %217, %210, %218 : vector<256x2xi1>, vector<256x2xf32>
    %220 = arith.addf %215, %219 : vector<256x2xf32>
    %221 = arith.truncf %220 : vector<256x2xf32> to vector<256x2xbf16>
    %c0_125 = arith.constant 0 : index
    %c4_126 = arith.constant 4 : index
    %222 = vector.load %arg6[%c0_125, %c4_126] : memref<256x8xbf16, #tpu.memory_space<vmem>>, vector<256x2xbf16>
    tpu.vector_store %arg6[%c0_125, %c4_126], %221 {strides = array<i32>} : memref<256x8xbf16, #tpu.memory_space<vmem>>, vector<256x2xbf16>,
    %c0_127 = arith.constant 0 : index
    %c6_128 = arith.constant 6 : index
    %223 = vector.load %arg6[%c0_127, %c6_128] : memref<256x8xbf16, #tpu.memory_space<vmem>>, vector<256x2xbf16>
    %224 = arith.extf %223 : vector<256x2xbf16> to vector<256x2xf32>
    %225 = arith.addf %220, %224 : vector<256x2xf32>
    %c24_129 = arith.constant 24 : index
    %c0_130 = arith.constant 0 : index
    %226 = vector.load %arg7[%c24_129, %c0_130] : memref<304x2xf32, #tpu.memory_space<vmem>>, vector<256x2xf32>
    tpu.vector_store %arg7[%c24_129, %c0_130], %225 {strides = array<i32>} : memref<304x2xf32, #tpu.memory_space<vmem>>, vector<256x2xf32>,
    %c27 = arith.constant 27 : index
    %c0_131 = arith.constant 0 : index
    %227 = vector.load %arg3[%c27, %c0_131] : memref<36x2xf32, #tpu.memory_space<vmem>>, vector<1x2xf32>
    %c28 = arith.constant 28 : index
    %c0_132 = arith.constant 0 : index
    %228 = vector.load %arg3[%c28, %c0_132] : memref<36x2xf32, #tpu.memory_space<vmem>>, vector<1x2xf32>
    %c29 = arith.constant 29 : index
    %c0_133 = arith.constant 0 : index
    %229 = vector.load %arg3[%c29, %c0_133] : memref<36x2xf32, #tpu.memory_space<vmem>>, vector<1x2xf32>
    %c30 = arith.constant 30 : index
    %c0_134 = arith.constant 0 : index
    %230 = vector.load %arg3[%c30, %c0_134] : memref<36x2xf32, #tpu.memory_space<vmem>>, vector<1x2xf32>
    %c31 = arith.constant 31 : index
    %c0_135 = arith.constant 0 : index
    %231 = vector.load %arg3[%c31, %c0_135] : memref<36x2xf32, #tpu.memory_space<vmem>>, vector<1x2xf32>
    %c32 = arith.constant 32 : index
    %c0_136 = arith.constant 0 : index
    %232 = vector.load %arg3[%c32, %c0_136] : memref<36x2xf32, #tpu.memory_space<vmem>>, vector<1x2xf32>
    %c33 = arith.constant 33 : index
    %c0_137 = arith.constant 0 : index
    %233 = vector.load %arg3[%c33, %c0_137] : memref<36x2xf32, #tpu.memory_space<vmem>>, vector<1x2xf32>
    %c34 = arith.constant 34 : index
    %c0_138 = arith.constant 0 : index
    %234 = vector.load %arg3[%c34, %c0_138] : memref<36x2xf32, #tpu.memory_space<vmem>>, vector<1x2xf32>
    %c35 = arith.constant 35 : index
    %c0_139 = arith.constant 0 : index
    %235 = vector.load %arg3[%c35, %c0_139] : memref<36x2xf32, #tpu.memory_space<vmem>>, vector<1x2xf32>
    %cst_140 = arith.constant 0.000000e+00 : f32
    %236 = vector.broadcast %cst_140 : f32 to vector<256x2xf32>
    %cst_141 = arith.constant 0.000000e+00 : f32
    %237 = vector.broadcast %cst_141 : f32 to vector<256x2xf32>
    %cst_142 = arith.constant 0.000000e+00 : f32
    %238 = vector.broadcast %cst_142 : f32 to vector<256x2xf32>
    %c8_143 = arith.constant 8 : index
    %c0_144 = arith.constant 0 : index
    %239 = vector.load %arg7[%c8_143, %c0_144] : memref<304x2xf32, #tpu.memory_space<vmem>>, vector<256x2xf32>
    %c7_145 = arith.constant 7 : index
    %c0_146 = arith.constant 0 : index
    %240 = vector.load %arg7[%c7_145, %c0_146] : memref<304x2xf32, #tpu.memory_space<vmem>>, vector<256x2xf32>
    %c9_147 = arith.constant 9 : index
    %c0_148 = arith.constant 0 : index
    %241 = vector.load %arg7[%c9_147, %c0_148] : memref<304x2xf32, #tpu.memory_space<vmem>>, vector<256x2xf32>
    %242 = vector.broadcast %227 : vector<1x2xf32> to vector<256x2xf32>
    %243 = arith.mulf %240, %242 : vector<256x2xf32>
    %244 = arith.addf %236, %243 : vector<256x2xf32>
    %245 = vector.broadcast %228 : vector<1x2xf32> to vector<256x2xf32>
    %246 = arith.mulf %239, %245 : vector<256x2xf32>
    %247 = arith.addf %237, %246 : vector<256x2xf32>
    %248 = vector.broadcast %229 : vector<1x2xf32> to vector<256x2xf32>
    %249 = arith.mulf %241, %248 : vector<256x2xf32>
    %250 = arith.addf %238, %249 : vector<256x2xf32>
    %c24_149 = arith.constant 24 : index
    %c0_150 = arith.constant 0 : index
    %251 = vector.load %arg7[%c24_149, %c0_150] : memref<304x2xf32, #tpu.memory_space<vmem>>, vector<256x2xf32>
    %c23_151 = arith.constant 23 : index
    %c0_152 = arith.constant 0 : index
    %252 = vector.load %arg7[%c23_151, %c0_152] : memref<304x2xf32, #tpu.memory_space<vmem>>, vector<256x2xf32>
    %c25_153 = arith.constant 25 : index
    %c0_154 = arith.constant 0 : index
    %253 = vector.load %arg7[%c25_153, %c0_154] : memref<304x2xf32, #tpu.memory_space<vmem>>, vector<256x2xf32>
    %254 = vector.broadcast %230 : vector<1x2xf32> to vector<256x2xf32>
    %255 = arith.mulf %252, %254 : vector<256x2xf32>
    %256 = arith.addf %244, %255 : vector<256x2xf32>
    %257 = vector.broadcast %231 : vector<1x2xf32> to vector<256x2xf32>
    %258 = arith.mulf %251, %257 : vector<256x2xf32>
    %259 = arith.addf %247, %258 : vector<256x2xf32>
    %260 = vector.broadcast %232 : vector<1x2xf32> to vector<256x2xf32>
    %261 = arith.mulf %253, %260 : vector<256x2xf32>
    %262 = arith.addf %250, %261 : vector<256x2xf32>
    %c40_155 = arith.constant 40 : index
    %c0_156 = arith.constant 0 : index
    %263 = vector.load %arg7[%c40_155, %c0_156] : memref<304x2xf32, #tpu.memory_space<vmem>>, vector<256x2xf32>
    %c39_157 = arith.constant 39 : index
    %c0_158 = arith.constant 0 : index
    %264 = vector.load %arg7[%c39_157, %c0_158] : memref<304x2xf32, #tpu.memory_space<vmem>>, vector<256x2xf32>
    %c41_159 = arith.constant 41 : index
    %c0_160 = arith.constant 0 : index
    %265 = vector.load %arg7[%c41_159, %c0_160] : memref<304x2xf32, #tpu.memory_space<vmem>>, vector<256x2xf32>
    %266 = vector.broadcast %233 : vector<1x2xf32> to vector<256x2xf32>
    %267 = arith.mulf %264, %266 : vector<256x2xf32>
    %268 = arith.addf %256, %267 : vector<256x2xf32>
    %269 = vector.broadcast %234 : vector<1x2xf32> to vector<256x2xf32>
    %270 = arith.mulf %263, %269 : vector<256x2xf32>
    %271 = arith.addf %259, %270 : vector<256x2xf32>
    %272 = vector.broadcast %235 : vector<1x2xf32> to vector<256x2xf32>
    %273 = arith.mulf %265, %272 : vector<256x2xf32>
    %274 = arith.addf %262, %273 : vector<256x2xf32>
    %cst_161 = arith.constant 0.000000e+00 : f32
    %275 = vector.shape_cast %26 : vector<256x1xi1> to vector<256x1xi1>
    %276 = vector.broadcast %275 : vector<256x1xi1> to vector<256x2xi1>
    %277 = vector.broadcast %cst_161 : f32 to vector<256x2xf32>
    %278 = arith.select %276, %268, %277 : vector<256x2xi1>, vector<256x2xf32>
    %279 = arith.addf %271, %278 : vector<256x2xf32>
    %cst_162 = arith.constant 0.000000e+00 : f32
    %280 = vector.shape_cast %28 : vector<256x1xi1> to vector<256x1xi1>
    %281 = vector.broadcast %280 : vector<256x1xi1> to vector<256x2xi1>
    %282 = vector.broadcast %cst_162 : f32 to vector<256x2xf32>
    %283 = arith.select %281, %274, %282 : vector<256x2xi1>, vector<256x2xf32>
    %284 = arith.addf %279, %283 : vector<256x2xf32>
    %285 = arith.truncf %284 : vector<256x2xf32> to vector<256x2xbf16>
    %c0_163 = arith.constant 0 : index
    %c6_164 = arith.constant 6 : index
    %286 = vector.load %arg6[%c0_163, %c6_164] : memref<256x8xbf16, #tpu.memory_space<vmem>>, vector<256x2xbf16>
    tpu.vector_store %arg6[%c0_163, %c6_164], %285 {strides = array<i32>} : memref<256x8xbf16, #tpu.memory_space<vmem>>, vector<256x2xbf16>,
    %c0_165 = arith.constant 0 : index
    %c0_166 = arith.constant 0 : index
    %287 = vector.load %arg6[%c0_165, %c0_166] : memref<256x8xbf16, #tpu.memory_space<vmem>>, vector<256x8xbf16>
    %c0_167 = arith.constant 0 : index
    %c0_168 = arith.constant 0 : index
    %288 = vector.load %arg4[%c0_167, %c0_168] : memref<8x8xbf16, #tpu.memory_space<vmem>>, vector<8x8xbf16>
    %cst_169 = arith.constant dense<0.000000e+00> : vector<256x8xf32>
    %289 = tpu.matmul %287, %288, %cst_169 {dimension_numbers = #tpu.dot_dimension_numbers<[1], [0], [0], [1], [0, 0, 1, 1], [], []>} : vector<256x8xbf16>, vector<8x8xbf16>, vector<256x8xf32> -> vector<256x8xf32>
    %cst_170 = arith.constant 0.000000e+00 : f32
    %290 = vector.broadcast %cst_170 : f32 to vector<256x8xf32>
    %291 = arith.maximumf %289, %290 : vector<256x8xf32>
    %c0_171 = arith.constant 0 : index
    %c0_172 = arith.constant 0 : index
    %c0_173 = arith.constant 0 : index
    %292 = vector.load %arg5[%c0_171, %c0_172, %c0_173] : memref<1x256x8xf32, #tpu.memory_space<vmem>>, vector<1x256x8xf32>
    %293 = vector.shape_cast %292 : vector<1x256x8xf32> to vector<256x8xf32>
    %294 = vector.shape_cast %291 : vector<256x8xf32> to vector<1x256x8xf32>
    tpu.vector_store %arg5[%c0_171, %c0_172, %c0_173], %294 {strides = array<i32>} : memref<1x256x8xf32, #tpu.memory_space<vmem>>, vector<1x256x8xf32>,
    return
  }
  func.func @transform_0(%arg0: i32) -> (i32, i32, i32) {
    %c0_i32 = arith.constant 0 : i32
    %c0_i32_0 = arith.constant 0 : i32
    %c0_i32_1 = arith.constant 0 : i32
    return %arg0, %c0_i32, %c0_i32_0 : i32, i32, i32
  }
  func.func @transform_1(%arg0: i32) -> (i32, i32) {
    %c0_i32 = arith.constant 0 : i32
    %c0_i32_0 = arith.constant 0 : i32
    %c0_i32_1 = arith.constant 0 : i32
    return %c0_i32, %c0_i32_0 : i32, i32
  }
  func.func @transform_2(%arg0: i32) -> (i32, i32) {
    %c0_i32 = arith.constant 0 : i32
    %c0_i32_0 = arith.constant 0 : i32
    %c0_i32_1 = arith.constant 0 : i32
    return %c0_i32, %c0_i32_0 : i32, i32
  }
  func.func @transform_3(%arg0: i32) -> (i32, i32) {
    %c0_i32 = arith.constant 0 : i32
    %c0_i32_0 = arith.constant 0 : i32
    %c0_i32_1 = arith.constant 0 : i32
    return %c0_i32, %c0_i32_0 : i32, i32
  }
  func.func @transform_4(%arg0: i32) -> (i32, i32, i32) {
    %c0_i32 = arith.constant 0 : i32
    %c0_i32_0 = arith.constant 0 : i32
    %c0_i32_1 = arith.constant 0 : i32
    return %arg0, %c0_i32, %c0_i32_0 : i32, i32, i32
  }
}

</mosaic_0001>

<bundles_post_ra>
// kernel: tpu_custom_call.1
= control target key start
LH: loop header
LB: loop body
LE: loop exit
PB: predicated region body
PF: predicated region fallthrough
CT: control target
= control target key end

     0   :  { %6 = vsyncpa [#allocation3], 0  ;;  %s103_s0 = inlined_call_operand.hbm [shape: f32[8,128], index: 0, kind: input, shape index: {}]   ;;  %s104_s1 = inlined_call_operand.hbm [shape: f32[8,128], index: 1, kind: output, shape index: {}]  }
   0x1   :  { %7 = vsyncpa [#allocation4], 0  ;;  %s85_s6 = smov [#allocation2]  }
   0x2   :  { %s14_s7 = sshll.u32 %s85_s6, 4  ;;  %s15_s7 = int_to_ptr.vmem [resolvable:$true] %s14_s7 }
   0x3   :  { %s49_s8 = scalar_lea.vmem %s15_s7, 128  ;;  %p54_p1 = scmp.lt.s32.totalorder %s15_s7, %s15_s7 }
   0x4   :  { %p50_p0 = scmp.ne.s32.totalorder %s15_s7, %s49_s8  ;;  %p55_p2 = scmp.lt.s32.totalorder %s49_s8, %s49_s8 }
   0x6   :  { %p56_p3 = por %p55_p2, %p54_p1 }
   0x8   :  { %p57_p4 = pnand %p56_p3, %p50_p0 }
   0xa   :  { %60 = shalt.err (!%p57_p4)
}
   0xb   :  { %17 = dma.hbm_to_vmem [thread:$0]  %s103_s0, 128, %s15_s7, [#allocation3]  }
   0xc   :  { %81 = dma.done.wait [#allocation3], 128  }
   0xd   :  { %82 = vsyncadd [#allocation3], 4294967168  ;;  %s86_s11 = smov [#allocation5]   ;;  %v21_v0 = vld [vmem:[#allocation2] sm:$0xff] }
   0xe   :  { %s30_s12 = sshll.u32 %s86_s11, 4  ;;  %v22_v1 = vrot.slane %v21_v0, 7  ;;  %s31_s12 = int_to_ptr.vmem [resolvable:$true] %s30_s12 }
   0xf   :  { %s61_s13 = scalar_lea.vmem %s31_s12, 128  ;;  %p66_p6 = scmp.lt.s32.totalorder %s31_s12, %s31_s12 }
  0x10   :  { %23 = vst [vmem:[#allocation5] sm:$0xff] %v22_v1  ;;  %p62_p5 = scmp.ne.s32.totalorder %s31_s12, %s61_s13  ;;  %p67_p7 = scmp.lt.s32.totalorder %s61_s13, %s61_s13 }
  0x12   :  { %p68_p8 = por %p67_p7, %p66_p6 }
  0x14   :  { %p69_p9 = pnand %p68_p8, %p62_p5 }
  0x16   :  { %72 = shalt.err (!%p69_p9)
}
  0x17   :  { %33 = dma.vmem_to_hbm [thread:$0]  %s31_s12, 128, %s104_s1, [#allocation4]  }
  0x18   :  { %83 = dma.done.wait [#allocation4], 128  }
  0x19   :  { %84 = vsyncadd [#allocation4], 4294967168 }
  0x1a   :  { %37 = vsyncpa [#allocation3], 1 }
  0x1b   :  { %38 = vsyncpa [#allocation4], 1 }

// kernel: tpu_custom_call.1
= control target key start
LH: loop header
LB: loop body
LE: loop exit
PB: predicated region body
PF: predicated region fallthrough
CT: control target
= control target key end

     0   :  { %s8203_s15 = smov 0   ;;  %s12973_s0 = inlined_call_operand.vmem [shape: bf16[2,256,4], index: 0, kind: input, shape index: {}]   ;;  %s12974_s1 = inlined_call_operand.vmem [shape: bf16[4,8], index: 1, kind: input, shape index: {}]   ;;  %s12975_s2 = inlined_call_operand.vmem [shape: f32[36,2], index: 2, kind: input, shape index: {}]   ;;  %s12976_s3 = inlined_call_operand.vmem [shape: bf16[8,8], index: 3, kind: input, shape index: {}]   ;;  %s12977_s4 = inlined_call_operand.vmem [shape: f32[2,256,8], index: 4, kind: output, shape index: {}]  }
   0x1 LB: > { %s6909_s16 = sadd.s32 4294967295, %s8169_s15   ;;  %p6913_p0 = scmp.ge.s32.totalorder %s8169_s15, 1  ;;  %s8169_s15 = sphi %s8203_s15, %s14_s15  }
   0x2   : > { %p162_p1 = scmp.lt.s32.totalorder %s8169_s15, 3 }
   0x4   : > { %p163_p2 = pnand %p6913_p0, %p162_p1 }
   0x6   : > { %166 = sbr.rel (%p163_p2) target bundleno = 1566 (0x61e), region = 36 }
   0xb   : > { %v231_v0 = vld [vmem:[%s12974_s1] sm:$0x3]  ;;  %vm361_vm0 = vcmask 1041408   ;;  %p188_p3 = scmp.lt.s32.totalorder %s6909_s16, 1  ;;  %vm312_vm1 = vcmask 31744   ;;  %vm13021_vm2 = vcmask 15360   ;;  %v719_v24 = vlaneseq }
   0xc   : > { %7760 = vmatprep.subr.msk.bf16.mxu0 %vm361_vm0, %v231_v0  ;;  %v363_v1 = vsel %vm361_vm0, %v231_v0, 0  ;;  %v8171_v18 = vmov 0.0   ;;  %vm686_vm3 = vcmask 60416   ;;  %v8271_v38 = vld [vmem:[%s12975_s2] ss:$0 sm:$0xff]  ;;  %vm13022_vm6 = vcmask 11264  }
   0xd   : > { %7693 = vmatpush3.bf16.msra.mxu0 %v363_v1  ;;  %s13697_s16 = smov (!%p188_p3, %s6909_s16), 1  ;;  %1201 = vst.msk [vmem:[#allocation3] sm:$0xff] %vm13021_vm2, %v8171_v18  ;;  %1202 = vst.msk [vmem:[#allocation3 + $0x8] sm:$0xff] %vm13021_vm2, %v8171_v18  ;;  %v8262_v31 = vshrl.u32 %v719_v24, 7  ;;  %v8289_v49 = vld [vmem:[%s12975_s2 + $0x1] ss:$0 sm:$0xff] }
   0xe   : > { %s7180_s19 = sshll.u32 %s13697_s16, 7  ;;  %1203 = vst.msk [vmem:[#allocation3 + $0x10] sm:$0xff] %vm13021_vm2, %v8171_v18  ;;  %1204 = vst.msk [vmem:[#allocation3 + $0x118] sm:$0xff] %vm13021_vm2, %v8171_v18  ;;  %v8301_v54 = vld [vmem:[%s12975_s2 + $0x2] ss:$0 sm:$0xff]  ;;  %s8172_s17 = smov 126  }
   0xf   : > { %s8220_s22 = scalar_lea.vmem %s12973_s0, %s7180_s19  ;;  %1205 = vst.msk [vmem:[#allocation3 + $0x120] sm:$0xff] %vm13021_vm2, %v8171_v18  ;;  %1206 = vst.msk [vmem:[#allocation3 + $0x128] sm:$0xff] %vm13021_vm2, %v8171_v18  ;;  %v8266_v37 = vadd.s32 8, %v8262_v31  ;;  %v8280_v45 = vadd.s32 16, %v8262_v31  ;;  %v8283_v46 = vadd.s32 24, %v8262_v31  ;;  %v8292_v50 = vadd.s32 32, %v8262_v31 }
  0x10   : > { %v8002_v2 = vld [vmem:[%s8220_s22] sm:$0xff]   ;;  %v8003_v3 = vld [vmem:[%s8220_s22 + $0x8] sm:$0xff]   ;;  %v8004_v4 = vld [vmem:[%s8220_s22 + $0x10] sm:$0xff]   ;;  %13158 = vst [vmem:[#allocation4_spill] sm:$0xff] %v8262_v31  ;;  %v8295_v51 = vadd.s32 40, %v8262_v31  ;;  %v756_v53 = vand.u32 15, %v8262_v31 }
  0x11   : > { %7694 = vmatprep.mubr.msk.bf16.mxu0 %vm312_vm1, %v8002_v2  ;;  %v8005_v5 = vld [vmem:[%s8220_s22 + $0x18] sm:$0xff]   ;;  %v8006_v6 = vld [vmem:[%s8220_s22 + $0x20] sm:$0xff]   ;;  %v8007_v7 = vld [vmem:[%s8220_s22 + $0x28] sm:$0xff]   ;;  %13159 = vst [vmem:[#allocation5_spill] sm:$0xff] %v8292_v50  ;;  %v8310_v57 = vadd.s32 168, %v8262_v31  ;;  %v8320_v1 = vadd.s32 184, %v8262_v31 }
  0x12   : > { %7695 = vmatmul.mubr.msk.bf16.vlgmr.msra.gmra.mxu0 %vm312_vm1, %v8003_v3  ;;  %v8008_v8 = vld [vmem:[%s8220_s22 + $0x30] sm:$0xff]   ;;  %v8009_v9 = vld [vmem:[%s8220_s22 + $0x38] sm:$0xff]   ;;  %v8010_v10 = vld [vmem:[%s8220_s22 + $0x40] sm:$0xff]   ;;  %13160 = vst [vmem:[#allocation6_spill] sm:$0xff] %v8295_v51  ;;  %v8323_v2 = vadd.s32 200, %v8262_v31  ;;  %vm8397_vm4 = vcmp.ne.s32.totalorder %v756_v53, 0 }
  0x13   : > { %7698 = vmatprep.mubr.msk.bf16.mxu0 %vm312_vm1, %v8004_v4  ;;  %v8011_v11 = vld [vmem:[%s8220_s22 + $0x48] sm:$0xff]   ;;  %v8012_v12 = vld [vmem:[%s8220_s22 + $0x50] sm:$0xff]   ;;  %v8013_v13 = vld [vmem:[%s8220_s22 + $0x58] sm:$0xff]   ;;  %s8173_s5 = smov 2   ;;  %s8174_s26 = smov 124  }
  0x14   : > { %v8014_v14 = vld [vmem:[%s8220_s22 + $0x60] sm:$0xff]   ;;  %v8015_v15 = vld [vmem:[%s8220_s22 + $0x68] sm:$0xff]   ;;  %v8016_v16 = vld [vmem:[%s8220_s22 + $0x70] sm:$0xff]   ;;  %s8175_s21 = smov 4   ;;  %s8176_s13 = smov 122  }
  0x15   : > { %v8017_v17 = vld [vmem:[%s8220_s22 + $0x78] sm:$0xff]   ;;  %v1344_v32 = vld [vmem:[#allocation3 + $0x7] sm:$0xff]  ;;  %v1345_v33 = vld [vmem:[#allocation3 + $0xf] sm:$0xff]  ;;  %s8177_s8 = smov 6  }
  0x16   : > { %v1312_v39 = vld [vmem:[#allocation3 + $0x8] sm:$0xff]  ;;  %v1313_v40 = vld [vmem:[#allocation3 + $0x10] sm:$0xff]  ;;  %v8274_v43 = vmul.f32 %v8271_v38, %v1344_v32  ;;  %v8277_v44 = vmul.f32 %v8271_v38, %v1345_v33  ;;  %v8356_v32 = vadd.s32 64, %v8262_v31  ;;  %v8359_v33 = vadd.s32 72, %v8262_v31 }
  0x17   : > { %v1376_v42 = vld [vmem:[#allocation3 + $0x9] sm:$0xff]  ;;  %v8304_v55 = vmul.f32 %v8289_v49, %v1312_v39  ;;  %v8307_v56 = vmul.f32 %v8289_v49, %v1313_v40  ;;  %v8373_v40 = vld [vmem:[%s12975_s2 + $0x7] ss:$0 sm:$0xff] }
  0x18   : > { %v8315_v61 = vmul.f32 %v8301_v54, %v1376_v42  ;;  %13164 = vst [vmem:[#allocation10_spill] sm:$0xff] %v8356_v32  ;;  %13165 = vst [vmem:[#allocation11_spill] sm:$0xff] %v8359_v33 }
  0x1a   : > { %7699 = vmatmul.mubr.msk.bf16.gmra.mxu0 %vm312_vm1, %v8005_v5 }
  0x1b   : > { %7702 = vmatprep.mubr.msk.bf16.mxu0 %vm312_vm1, %v8006_v6 }
  0x22   : > { %7703 = vmatmul.mubr.msk.bf16.gmra.mxu0 %vm312_vm1, %v8007_v7 }
  0x23   : > { %7706 = vmatprep.mubr.msk.bf16.mxu0 %vm312_vm1, %v8008_v8 }
  0x2a   : > { %7707 = vmatmul.mubr.msk.bf16.gmra.mxu0 %vm312_vm1, %v8009_v9  ;;  %v8329_v9 = vadd.s32 216, %v8262_v31 }
  0x2b   : > { %7710 = vmatprep.mubr.msk.bf16.mxu0 %vm312_vm1, %v8010_v10  ;;  %v8332_v10 = vadd.s32 232, %v8262_v31 }
  0x32   : > { %7711 = vmatmul.mubr.msk.bf16.gmra.mxu0 %vm312_vm1, %v8011_v11  ;;  %v8335_v11 = vadd.s32 248, %v8262_v31 }
  0x33   : > { %7714 = vmatprep.mubr.msk.bf16.mxu0 %vm312_vm1, %v8012_v12 }
  0x34   : > { %13161 = vst [vmem:[#allocation7_spill] sm:$0xff] %v8335_v11 }
  0x3a   : > { %7715 = vmatmul.mubr.msk.bf16.gmra.mxu0 %vm312_vm1, %v8013_v13 }
  0x3b   : > { %7718 = vmatprep.mubr.msk.bf16.mxu0 %vm312_vm1, %v8014_v14 }
  0x42   : > { %7719 = vmatmul.mubr.msk.bf16.gmra.mxu0 %vm312_vm1, %v8015_v15 }
  0x43   : > { %7722 = vmatprep.mubr.msk.bf16.mxu0 %vm312_vm1, %v8016_v16 }
  0x4a   : > { %7723 = vmatmul.mubr.msk.bf16.gmra.mxu0 %vm312_vm1, %v8017_v17 }
  0xd2   : > { %v7696_v19 = vpop.f32.mrf.mxu0 }
  0xd3   : > { %v528_v20 = vmax.f32 %v7696_v19, 0.0 }
  0xd4   : > { %v399_v21 = vpop.f32.mrf.mxu0 }
  0xd5   : > { %v7184_v22 = vpack.c.bf16 %v528_v20, %v528_v20  ;;  %v526_v23 = vmax.f32 %v399_v21, 0.0  ;;  %v8342_v21 = vadd.s32 48, %v8262_v31 }
  0xd6   : > { %v7697_v25 = vpop.f32.mrf.mxu0 }
  0xd7   : > { %689 = vst.msk [vmem:[#allocation2 + $0x8] sm:$0xf] %vm686_vm3, %v7184_v22  ;;  %v7182_v26 = vpack.c.bf16 %v526_v23, %v526_v23  ;;  %v529_v27 = vmax.f32 %v7697_v25, 0.0  ;;  %13162 = vst [vmem:[#allocation8_spill] sm:$0xff] %v8342_v21  ;;  %v8345_v22 = vadd.s32 56, %v8262_v31 }
  0xd8   : > { %v402_v28 = vpop.f32.mrf.mxu0 }
  0xd9   : > { %687 = vst.msk [vmem:[#allocation2] sm:$0xf] %vm686_vm3, %v7182_v26  ;;  %v7185_v29 = vpack.c.bf16 %v529_v27, %v529_v27  ;;  %v527_v30 = vmax.f32 %v402_v28, 0.0  ;;  %13163 = vst [vmem:[#allocation9_spill] sm:$0xff] %v8345_v22  ;;  %v1823_v27 = vld [vmem:[#allocation3 + $0x120] sm:$0xff] }
  0xda   : > { %v7700_v34 = vpop.f32.mrf.mxu0  ;;  %v1825_v28 = vld [vmem:[#allocation3 + $0x11f] sm:$0xff] }
  0xdb   : > { %690 = vst.msk [vmem:[#allocation2 + $0xc] sm:$0xf] %vm686_vm3, %v7185_v29  ;;  %v7183_v35 = vpack.c.bf16 %v527_v30, %v527_v30  ;;  %v532_v36 = vmax.f32 %v7700_v34, 0.0  ;;  %v8353_v30 = vld [vmem:[%s12975_s2 + $0x6] ss:$0 sm:$0xff]  ;;  %v8362_v34 = vadd.s32 80, %v8262_v31 }
  0xdc   : > { %v415_v41 = vpop.f32.mrf.mxu0 }
  0xdd   : > { %688 = vst.msk [vmem:[#allocation2 + $0x4] sm:$0xf] %vm686_vm3, %v7183_v35  ;;  %v7188_v47 = vpack.c.bf16 %v532_v36, %v532_v36  ;;  %v530_v48 = vmax.f32 %v415_v41, 0.0  ;;  %13166 = vst [vmem:[#allocation12_spill] sm:$0xff] %v8362_v34  ;;  %v8365_v35 = vadd.s32 88, %v8262_v31  ;;  %v13179_v34 = vmov 0 }
  0xde   : > { %v7701_v52 = vpop.f32.mrf.mxu0 }
  0xdf   : > { %693 = vst.msk [vmem:[#allocation2 + $0x18] sm:$0xf] %vm686_vm3, %v7188_v47  ;;  %v7186_v58 = vpack.c.bf16 %v530_v48, %v530_v48  ;;  %v533_v59 = vmax.f32 %v7701_v52, 0.0  ;;  %13167 = vst [vmem:[#allocation13_spill] sm:$0xff] %v8365_v35  ;;  %v8379_v52 = vmul.f32 %v8353_v30, %v1825_v28  ;;  %v8404_v28 = vld [vmem:[%s12975_s2 + $0x8] ss:$0 sm:$0xff] }
  0xe0   : > { %v418_v62 = vpop.f32.mrf.mxu0  ;;  %v13178_v35 = vand.u32 15, %v8266_v37 }
  0xe1   : > { %691 = vst.msk [vmem:[#allocation2 + $0x10] sm:$0xf] %vm686_vm3, %v7186_v58  ;;  %v7189_v3 = vpack.c.bf16 %v533_v59, %v533_v59  ;;  %v531_v4 = vmax.f32 %v418_v62, 0.0  ;;  %13168 = vst [vmem:[#allocation14_spill] sm:$0xff] %v8379_v52  ;;  %v8382_v58 = vmul.f32 %v8373_v40, %v1823_v27  ;;  %v8385_v59 = vadd.s32 96, %v8262_v31 }
  0xe2   : > { %v7598_v7 = vld [vmem:[#allocation2 + $0x8] sm:$0xff]   ;;  %v7704_v8 = vpop.f32.mrf.mxu0  ;;  %v13171_v27 = vmov 0  ;;  %vm8473_vm5 = vcmp.ne.s32.totalorder %v13178_v35, 15 }
  0xe3   : > { %v7348_v13 = vunpack.c.l.bf16 %v7598_v7  ;;  %v7349_v14 = vunpack.c.h.bf16 %v7598_v7  ;;  %694 = vst.msk [vmem:[#allocation2 + $0x1c] sm:$0xf] %vm686_vm3, %v7189_v3  ;;  %v7187_v15 = vpack.c.bf16 %v531_v4, %v531_v4  ;;  %v536_v16 = vmax.f32 %v7704_v8, 0.0  ;;  %13169 = vst [vmem:[#allocation15_spill] sm:$0xff] %v8382_v58  ;;  %v1827_v4 = vld [vmem:[#allocation3 + $0x121] sm:$0xff] }
  0xe4   : > { %v7343_v17 = vld [vmem:[#allocation2] sm:$0xff]   ;;  %v431_v18 = vpop.f32.mrf.mxu0  ;;  %13170 = vst [vmem:[#allocation16_spill] sm:$0xff] %v8385_v59  ;;  %v13172_v27 = vsel %vm8397_vm4, 4294967295, %v13171_v27  ;;  %v8416_v53 = vmul.f32 %v8404_v28, %v1827_v4  ;;  %v13180_v34 = vsel %vm8473_vm5, 4294967295, %v13179_v34 }
  0xe5   : > { %1273 = vst.msk [vmem:[#allocation3 + $0x28] sm:$0xff] %vm13021_vm2, %v7348_v13  ;;  %1274 = vst.msk [vmem:[#allocation3 + $0x30] sm:$0xff] %vm13021_vm2, %v7349_v14  ;;  %v7344_v23 = vunpack.c.l.bf16 %v7343_v17  ;;  %v7345_v24 = vunpack.c.h.bf16 %v7343_v17  ;;  %v7192_v25 = vpack.c.bf16 %v536_v16, %v536_v16  ;;  %v534_v26 = vmax.f32 %v431_v18, 0.0  ;;  %v8431_v4 = vld [vmem:[%s12975_s2 + $0x4] ss:$0 sm:$0xff] }
  0xe6   : > { %692 = vst.msk [vmem:[#allocation2 + $0x14] sm:$0xf] %vm686_vm3, %v7187_v15  ;;  %v7705_v29 = vpop.f32.mrf.mxu0  ;;  %13173 = vst [vmem:[#allocation17_spill] sm:$0xff] %v13172_v27 }
  0xe7   : > { %1271 = vst.msk [vmem:[#allocation3 + $0x18] sm:$0xff] %vm13021_vm2, %v7344_v23  ;;  %1272 = vst.msk [vmem:[#allocation3 + $0x20] sm:$0xff] %vm13021_vm2, %v7345_v24  ;;  %v7190_v36 = vpack.c.bf16 %v534_v26, %v534_v26  ;;  %v537_v39 = vmax.f32 %v7705_v29, 0.0 }
  0xe8   : > { %697 = vst.msk [vmem:[#allocation2 + $0x28] sm:$0xf] %vm686_vm3, %v7192_v25  ;;  %v434_v47 = vpop.f32.mrf.mxu0  ;;  %13175 = vst [vmem:[#allocation19_spill] sm:$0xff] %v8416_v53 }
  0xe9   : > { %695 = vst.msk [vmem:[#allocation2 + $0x20] sm:$0xf] %vm686_vm3, %v7190_v36  ;;  %v7193_v62 = vpack.c.bf16 %v537_v39, %v537_v39  ;;  %v535_v3 = vmax.f32 %v434_v47, 0.0  ;;  %v8409_v39 = vld [vmem:[%s12975_s2 + $0x3] ss:$0 sm:$0xff]  ;;  %13181 = vst [vmem:[#allocation22_spill] sm:$0xff] %v13180_v34 }
  0xea   : > { %v7600_v13 = vld [vmem:[#allocation2 + $0x18] sm:$0xff]   ;;  %v7708_v14 = vpop.f32.mrf.mxu0  ;;  %13174 = vst [vmem:[#allocation18_spill] sm:$0xff] %v8409_v39 }
  0xeb   : > { %v7356_v23 = vunpack.c.l.bf16 %v7600_v13  ;;  %v7357_v24 = vunpack.c.h.bf16 %v7600_v13  ;;  %698 = vst.msk [vmem:[#allocation2 + $0x2c] sm:$0xf] %vm686_vm3, %v7193_v62  ;;  %v7191_v25 = vpack.c.bf16 %v535_v3, %v535_v3  ;;  %v540_v26 = vmax.f32 %v7708_v14, 0.0 }
  0xec   : > { %v447_v36 = vpop.f32.mrf.mxu0  ;;  %v8411_v47 = vld [vmem:[#allocation3 + $0x28] sm:$0xff]  ;;  %v8413_v62 = vld [vmem:[#allocation3 + $0x30] sm:$0xff]  ;;  %v8419_v3 = vadd.s32 104, %v8262_v31  ;;  %v8423_v14 = vadd.s32 112, %v8262_v31 }
  0xed   : > { %v7599_v29 = vld [vmem:[#allocation2 + $0x10] sm:$0xff]   ;;  %1277 = vst.msk [vmem:[#allocation3 + $0x48] sm:$0xff] %vm13021_vm2, %v7356_v23  ;;  %1278 = vst.msk [vmem:[#allocation3 + $0x50] sm:$0xff] %vm13021_vm2, %v7357_v24  ;;  %v7196_v16 = vpack.c.bf16 %v540_v26, %v540_v26  ;;  %v538_v15 = vmax.f32 %v447_v36, 0.0  ;;  %v1900_v26 = vmul.f32 %v8373_v40, %v8411_v47 }
  0xee   : > { %13176 = vst [vmem:[#allocation20_spill] sm:$0xff] %v8419_v3  ;;  %13177 = vst [vmem:[#allocation21_spill] sm:$0xff] %v8423_v14  ;;  %v7352_v18 = vunpack.c.l.bf16 %v7599_v29  ;;  %v7353_v17 = vunpack.c.h.bf16 %v7599_v29  ;;  %v8433_v8 = vld [vmem:[#allocation3 + $0x2f] sm:$0xff]  ;;  %v7709_v7 = vpop.f32.mrf.mxu0  ;;  %v8437_v6 = vld [vmem:[#allocation3 + $0x18] sm:$0xff]  ;;  %v1901_v29 = vmul.f32 %v8373_v40, %v8413_v62 }
  0xef   : > { %696 = vst.msk [vmem:[#allocation2 + $0x24] sm:$0xf] %vm686_vm3, %v7191_v25  ;;  %v8435_v13 = vld [vmem:[#allocation3 + $0x29] sm:$0xff]  ;;  %v8439_v23 = vld [vmem:[#allocation3 + $0x20] sm:$0xff]  ;;  %v8441_v24 = vld [vmem:[#allocation3 + $0x17] sm:$0xff]  ;;  %v1833_v25 = vmul.f32 %v8353_v30, %v8433_v8  ;;  %v7194_v5 = vpack.c.bf16 %v538_v15, %v538_v15  ;;  %v541_v48 = vmax.f32 %v7709_v7, 0.0  ;;  %v1690_v12 = vmul.f32 %v8431_v4, %v8437_v6 }
  0xf0   : > { %v1968_v36 = vmul.f32 %v8404_v28, %v8435_v13  ;;  %1275 = vst.msk [vmem:[#allocation3 + $0x38] sm:$0xff] %vm13021_vm2, %v7352_v18  ;;  %1276 = vst.msk [vmem:[#allocation3 + $0x40] sm:$0xff] %vm13021_vm2, %v7353_v17  ;;  %v1347_v42 = vld [vmem:[#allocation3 + $0x1f] sm:$0xff]  ;;  %v8454_v41 = vld [vmem:[#allocation3 + $0x27] sm:$0xff]  ;;  %v1622_v19 = vmul.f32 %v8409_v39, %v8441_v24  ;;  %v450_v0 = vpop.f32.mrf.mxu0  ;;  %v1691_v7 = vmul.f32 %v8431_v4, %v8439_v23 }
  0xf1   : > { %701 = vst.msk [vmem:[#allocation2 + $0x38] sm:$0xf] %vm686_vm3, %v7196_v16  ;;  %v1377_v20 = vld [vmem:[#allocation3 + $0x11] sm:$0xff]  ;;  %v8460_v63 = vld [vmem:[#allocation3 + $0x19] sm:$0xff]  ;;  %v8462_v18 = vld [vmem:[#allocation3 + $0x21] sm:$0xff]  ;;  %v1623_v15 = vmul.f32 %v8409_v39, %v1347_v42  ;;  %v1832_v16 = vmul.f32 %v8353_v30, %v8454_v41  ;;  %v7197_v60 = vpack.c.bf16 %v541_v48, %v541_v48  ;;  %v539_v59 = vmax.f32 %v450_v0, 0.0 }
  0xf2   : > { %v1549_v17 = vmul.f32 %v8301_v54, %v1377_v20  ;;  %699 = vst.msk [vmem:[#allocation2 + $0x30] sm:$0xf] %vm686_vm3, %v7194_v5  ;;  %v8480_v20 = vld [vmem:[%s12975_s2 + $0x5] ss:$0 sm:$0xff]  ;;  %v1654_v33 = vadd.f32 %v1622_v19, %v8274_v43  ;;  %v1722_v32 = vadd.f32 %v1690_v12, %v8304_v55  ;;  %v7602_v22 = vld [vmem:[#allocation2 + $0x28] sm:$0xff]   ;;  %v7712_v21 = vpop.f32.mrf.mxu0  ;;  %v1723_v0 = vadd.f32 %v1691_v7, %v8307_v56 }
  0xf3   : > { %13182 = vst [vmem:[#allocation23_spill] sm:$0xff] %v8480_v20  ;;  %v1655_v5 = vadd.f32 %v1623_v15, %v8277_v44  ;;  %v1758_v37 = vmul.f32 %v8480_v20, %v8460_v63  ;;  %v1759_v35 = vmul.f32 %v8480_v20, %v8462_v18  ;;  %v7364_v48 = vunpack.c.l.bf16 %v7602_v22  ;;  %702 = vst.msk [vmem:[#allocation2 + $0x3c] sm:$0xf] %vm686_vm3, %v7197_v60 }
  0xf4   : > { %v7365_v51 = vunpack.c.h.bf16 %v7602_v22  ;;  %v7195_v50 = vpack.c.bf16 %v539_v59, %v539_v59  ;;  %v544_v43 = vmax.f32 %v7712_v21, 0.0  ;;  %v463_v12 = vpop.f32.mrf.mxu0  ;;  %v1864_v15 = vadd.f32 %v1832_v16, %v1654_v33 }
  0xf5   : > { %v1790_v19 = vadd.f32 %v1758_v37, %v8315_v61  ;;  %v1791_v44 = vadd.f32 %v1759_v35, %v1549_v17  ;;  %v1865_v56 = vadd.f32 %v1833_v25, %v1655_v5  ;;  %1281 = vst.msk [vmem:[#allocation3 + $0x68] sm:$0xff] %vm13021_vm2, %v7364_v48  ;;  %v542_v60 = vmax.f32 %v463_v12, 0.0 }
  0xf6   : > { %v7601_v55 = vld [vmem:[#allocation2 + $0x20] sm:$0xff]   ;;  %1282 = vst.msk [vmem:[#allocation3 + $0x70] sm:$0xff] %vm13021_vm2, %v7365_v51  ;;  %v7200_v22 = vpack.c.bf16 %v544_v43, %v544_v43  ;;  %v7713_v59 = vpop.f32.mrf.mxu0  ;;  %v1932_v58 = vadd.f32 %v1900_v26, %v1722_v32  ;;  %v1933_v52 = vadd.f32 %v1901_v29, %v1723_v0  ;;  %v2096_v61 = vsel %vm8397_vm4, %v1864_v15, 0.0 }
  0xf7   : > { %v7360_v7 = vunpack.c.l.bf16 %v7601_v55  ;;  %v7361_v53 = vunpack.c.h.bf16 %v7601_v55  ;;  %700 = vst.msk [vmem:[#allocation2 + $0x34] sm:$0xf] %vm686_vm3, %v7195_v50  ;;  %v8495_v21 = vld [vmem:[#allocation3 + $0x31] sm:$0xff]  ;;  %v2000_v11 = vadd.f32 %v1968_v36, %v1790_v19  ;;  %v7198_v51 = vpack.c.bf16 %v542_v60, %v542_v60 }
  0xf8   : > { %705 = vst.msk [vmem:[#allocation2 + $0x48] sm:$0xf] %vm686_vm3, %v7200_v22  ;;  %v545_v33 = vmax.f32 %v7713_v59, 0.0  ;;  %v1969_v50 = vmul.f32 %v8404_v28, %v8495_v21  ;;  %v1414_v25 = vmul.f32 %v8271_v38, %v8441_v24  ;;  %v466_v32 = vpop.f32.mrf.mxu0  ;;  %v2128_v26 = vadd.f32 %v2096_v61, %v1932_v58  ;;  %v8536_v60 = vld [vmem:[#allocation3 + $0x37] sm:$0xff] }
  0xf9   : > { %1279 = vst.msk [vmem:[#allocation3 + $0x58] sm:$0xff] %vm13021_vm2, %v7360_v7  ;;  %1280 = vst.msk [vmem:[#allocation3 + $0x60] sm:$0xff] %vm13021_vm2, %v7361_v53  ;;  %v2129_v29 = vadd.f32 %v1933_v52, %v1865_v56  ;;  %v1415_v36 = vmul.f32 %v8271_v38, %v1347_v42  ;;  %v1482_v17 = vmul.f32 %v8289_v49, %v8437_v6  ;;  %v543_v16 = vmax.f32 %v466_v32, 0.0 }
  0xfa   : > { %703 = vst.msk [vmem:[#allocation2 + $0x40] sm:$0xf] %vm686_vm3, %v7198_v51  ;;  %v7201_v53 = vpack.c.bf16 %v545_v33, %v545_v33  ;;  %v2001_v5 = vadd.f32 %v1969_v50, %v1791_v44  ;;  %v1483_v0 = vmul.f32 %v8289_v49, %v8439_v23  ;;  %v7604_v37 = vld [vmem:[#allocation2 + $0x38] sm:$0xff]   ;;  %v7716_v35 = vpop.f32.mrf.mxu0  ;;  %v8512_v48 = vadd.f32 %v2128_v26, %v2000_v11 }
  0xfb   : > { %v1550_v52 = vmul.f32 %v8301_v54, %v8460_v63  ;;  %v1551_v42 = vmul.f32 %v8301_v54, %v8462_v18  ;;  %v1624_v6 = vmul.f32 %v8409_v39, %v8454_v41  ;;  %v7372_v58 = vunpack.c.l.bf16 %v7604_v37  ;;  %13188 = vst [vmem:[#allocation26_spill] sm:$0xff] %v8536_v60 }
  0xfc   : > { %13183 = vst [vmem:[#allocation24_spill] sm:$0xff] %v8512_v48  ;;  %v7373_v24 = vunpack.c.h.bf16 %v7604_v37  ;;  %706 = vst.msk [vmem:[#allocation2 + $0x4c] sm:$0xf] %vm686_vm3, %v7201_v53  ;;  %v7199_v43 = vpack.c.bf16 %v543_v16, %v543_v16  ;;  %v548_v55 = vmax.f32 %v7716_v35, 0.0  ;;  %v13184_v23 = vand.u32 15, %v8280_v45  ;;  %v479_v63 = vpop.f32.mrf.mxu0  ;;  %v8556_v53 = vld [vmem:[#allocation3 + $0x40] sm:$0xff] }
  0xfd   : > { %v13185_v11 = vmov 0  ;;  %v2225_v18 = vsel %vm8473_vm5, %v2001_v5, 0.0  ;;  %v7214_v19 = vpack.c.bf16 %v8512_v48, %v8512_v48  ;;  %v1625_v44 = vmul.f32 %v8409_v39, %v8433_v8  ;;  %1285 = vst.msk [vmem:[#allocation3 + $0x88] sm:$0xff] %vm13021_vm2, %v7372_v58  ;;  %v8558_v16 = vld [vmem:[#allocation3 + $0x3f] sm:$0xff] }
  0xfe   : > { %vm8523_vm7 = vcmp.ne.s32.totalorder %v13184_v23, 0  ;;  %v7603_v12 = vld [vmem:[#allocation2 + $0x30] sm:$0xff]   ;;  %v1656_v15 = vadd.f32 %v1624_v6, %v1414_v25  ;;  %1286 = vst.msk [vmem:[#allocation3 + $0x90] sm:$0xff] %vm13021_vm2, %v7373_v24  ;;  %v7204_v7 = vpack.c.bf16 %v548_v55, %v548_v55  ;;  %v546_v22 = vmax.f32 %v479_v63, 0.0  ;;  %v7717_v59 = vpop.f32.mrf.mxu0  ;;  %13195 = vst [vmem:[#allocation30_spill] sm:$0xff] %v8558_v16  ;;  %v8569_v23 = vld [vmem:[#allocation3 + $0x39] sm:$0xff] }
  0xff   : > { %v13186_v11 = vsel %vm8523_vm7, 4294967295, %v13185_v11  ;;  %v7368_v45 = vunpack.c.l.bf16 %v7603_v12  ;;  %v7369_v56 = vunpack.c.h.bf16 %v7603_v12  ;;  %704 = vst.msk [vmem:[#allocation2 + $0x44] sm:$0xf] %vm686_vm3, %v7199_v43  ;;  %v8538_v61 = vadd.f32 %v2225_v18, %v2129_v29  ;;  %13196 = vst [vmem:[#allocation31_spill] sm:$0xff] %v8569_v23 }
 0x100   : > { %13187 = vst [vmem:[#allocation25_spill] sm:$0xff] %v13186_v11  ;;  %2417 = vst.msk [vmem:[#allocation2] sm:$0xf] %vm13022_vm6, %v7214_v19  ;;  %v1657_v51 = vadd.f32 %v1625_v44, %v1415_v36  ;;  %v1692_v33 = vmul.f32 %v8431_v4, %v8411_v47  ;;  %v1693_v50 = vmul.f32 %v8431_v4, %v8413_v62  ;;  %v549_v32 = vmax.f32 %v7717_v59, 0.0  ;;  %v8554_v36 = vld [vmem:[#allocation3 + $0x38] sm:$0xff]  ;;  %v482_v35 = vpop.f32.mrf.mxu0 }
 0x101   : > { %13189 = vst [vmem:[#allocation27_spill] sm:$0xff] %v8538_v61  ;;  %1283 = vst.msk [vmem:[#allocation3 + $0x78] sm:$0xff] %vm13021_vm2, %v7368_v45  ;;  %v7202_v25 = vpack.c.bf16 %v546_v22, %v546_v22  ;;  %v13190_v26 = vand.u32 15, %v8283_v46  ;;  %v13191_v29 = vmov 0  ;;  %v1760_v5 = vmul.f32 %v8480_v20, %v8435_v13  ;;  %v8579_v22 = vld [vmem:[#allocation3 + $0x41] sm:$0xff] }
 0x102   : > { %1284 = vst.msk [vmem:[#allocation3 + $0x80] sm:$0xff] %vm13021_vm2, %v7369_v56  ;;  %13194 = vst [vmem:[#allocation29_spill] sm:$0xff] %v8554_v36  ;;  %v1761_v37 = vmul.f32 %v8480_v20, %v8495_v21  ;;  %v7215_v46 = vpack.c.bf16 %v8538_v61, %v8538_v61  ;;  %v1724_v6 = vadd.f32 %v1692_v33, %v1482_v17  ;;  %v547_v55 = vmax.f32 %v482_v35, 0.0  ;;  %v7720_v19 = vpop.f32.mrf.mxu0 }
 0x103   : > { %709 = vst.msk [vmem:[#allocation2 + $0x58] sm:$0xf] %vm686_vm3, %v7204_v7  ;;  %vm8550_vm8 = vcmp.ne.s32.totalorder %v13190_v26, 15  ;;  %v1725_v58 = vadd.f32 %v1693_v50, %v1483_v0  ;;  %v1834_v24 = vmul.f32 %v8353_v30, %v8536_v60  ;;  %707 = vst.msk [vmem:[#allocation2 + $0x50] sm:$0xf] %vm686_vm3, %v7202_v25  ;;  %v7205_v43 = vpack.c.bf16 %v549_v32, %v549_v32  ;;  %v7606_v18 = vld [vmem:[#allocation2 + $0x48] sm:$0xff]  }
 0x104   : > { %v13192_v29 = vsel %vm8550_vm8, 4294967295, %v13191_v29  ;;  %v1792_v12 = vadd.f32 %v1760_v5, %v1550_v52  ;;  %v1793_v63 = vadd.f32 %v1761_v37, %v1551_v42  ;;  %2418 = vst.msk [vmem:[#allocation2 + $0x4] sm:$0xf] %vm13022_vm6, %v7215_v46  ;;  %v1835_v44 = vmul.f32 %v8353_v30, %v8558_v16  ;;  %13197 = vst [vmem:[#allocation32_spill] sm:$0xff] %v8579_v22  ;;  %v495_v33 = vpop.f32.mrf.mxu0 }
 0x105   : > { %13193 = vst [vmem:[#allocation28_spill] sm:$0xff] %v13192_v29  ;;  %v1866_v17 = vadd.f32 %v1834_v24, %v1656_v15  ;;  %v1902_v0 = vmul.f32 %v8373_v40, %v8554_v36  ;;  %v1903_v45 = vmul.f32 %v8373_v40, %v8556_v53  ;;  %v7380_v56 = vunpack.c.l.bf16 %v7606_v18  ;;  %710 = vst.msk [vmem:[#allocation2 + $0x5c] sm:$0xf] %vm686_vm3, %v7205_v43  ;;  %v8586_v46 = vld [vmem:[#allocation3 + $0x8f] sm:$0xff] }
 0x106   : > { %v7381_v7 = vunpack.c.h.bf16 %v7606_v18  ;;  %v7203_v52 = vpack.c.bf16 %v547_v55, %v547_v55  ;;  %v552_v42 = vmax.f32 %v7720_v19, 0.0  ;;  %v7605_v59 = vld [vmem:[#allocation2 + $0x40] sm:$0xff]   ;;  %v1867_v50 = vadd.f32 %v1835_v44, %v1657_v51  ;;  %13198 = vst [vmem:[#allocation33_spill] sm:$0xff] %v8586_v46  ;;  %v7721_v24 = vpop.f32.mrf.mxu0 }
 0x107   : > { %v1934_v25 = vadd.f32 %v1902_v0, %v1724_v6  ;;  %v1935_v32 = vadd.f32 %v1903_v45, %v1725_v58  ;;  %v1970_v15 = vmul.f32 %v8404_v28, %v8569_v23  ;;  %1289 = vst.msk [vmem:[#allocation3 + $0xa8] sm:$0xff] %vm13021_vm2, %v7380_v56  ;;  %v7376_v26 = vunpack.c.l.bf16 %v7605_v59  ;;  %v8592_v58 = vld [vmem:[#allocation3 + $0x90] sm:$0xff]  ;;  %v13241_v23 = vld [vmem:[#allocation15_spill] sm:$0xff] }
 0x108   : > { %1290 = vst.msk [vmem:[#allocation3 + $0xb0] sm:$0xff] %vm13021_vm2, %v7381_v7  ;;  %v7377_v5 = vunpack.c.h.bf16 %v7605_v59  ;;  %v7208_v37 = vpack.c.bf16 %v552_v42, %v552_v42  ;;  %v550_v35 = vmax.f32 %v495_v33, 0.0  ;;  %v1971_v51 = vmul.f32 %v8404_v28, %v8579_v22  ;;  %13199 = vst [vmem:[#allocation34_spill] sm:$0xff] %v8592_v58  ;;  %v498_v45 = vpop.f32.mrf.mxu0 }
 0x109   : > { %708 = vst.msk [vmem:[#allocation2 + $0x54] sm:$0xf] %vm686_vm3, %v7203_v52  ;;  %v2098_v6 = vsel %vm8523_vm7, %v1866_v17, 0.0  ;;  %v8596_v55 = vadd.s32 120, %v8262_v31  ;;  %v553_v19 = vmax.f32 %v7721_v24, 0.0  ;;  %v2002_v44 = vadd.f32 %v1970_v15, %v1792_v12 }
 0x10a   : > { %1287 = vst.msk [vmem:[#allocation3 + $0x98] sm:$0xff] %vm13021_vm2, %v7376_v26  ;;  %1288 = vst.msk [vmem:[#allocation3 + $0xa0] sm:$0xff] %vm13021_vm2, %v7377_v5  ;;  %v7206_v18 = vpack.c.bf16 %v550_v35, %v550_v35  ;;  %v2130_v0 = vadd.f32 %v2098_v6, %v1934_v25  ;;  %v2003_v56 = vadd.f32 %v1971_v51, %v1793_v63  ;;  %v551_v59 = vmax.f32 %v498_v45, 0.0  ;;  %v7724_v15 = vpop.f32.mrf.mxu0 }
 0x10b   : > { %13200 = vst [vmem:[#allocation35_spill] sm:$0xff] %v8596_v55  ;;  %713 = vst.msk [vmem:[#allocation2 + $0x68] sm:$0xf] %vm686_vm3, %v7208_v37  ;;  %v2131_v17 = vadd.f32 %v1935_v32, %v1867_v50  ;;  %v8603_v7 = vmul.f32 %v8271_v38, %v8586_v46  ;;  %v7209_v42 = vpack.c.bf16 %v553_v19, %v553_v19  ;;  %v7407_v33 = vld [vmem:[#allocation2] sm:$0xff]   ;;  %v556_v51 = vmax.f32 %v7724_v15, 0.0 }
 0x10c   : > { %711 = vst.msk [vmem:[#allocation2 + $0x60] sm:$0xf] %vm686_vm3, %v7206_v18  ;;  %v8607_v26 = vadd.f32 %v2130_v0, %v2002_v44  ;;  %v1497_v12 = vmul.f32 %v8289_v49, %v8592_v58  ;;  %v7608_v25 = vld [vmem:[#allocation2 + $0x58] sm:$0xff]   ;;  %v7408_v63 = vunpack.c.l.bf16 %v7407_v33  ;;  %v7409_v50 = vunpack.c.h.bf16 %v7407_v33  ;;  %v511_v19 = vpop.f32.mrf.mxu0 }
 0x10d   : > { %v2227_v32 = vsel %vm8550_vm8, %v2003_v56, 0.0  ;;  %v8615_v5 = vmul.f32 %v8271_v38, %v8454_v41  ;;  %v7388_v37 = vunpack.c.l.bf16 %v7608_v25  ;;  %v7389_v35 = vunpack.c.h.bf16 %v7608_v25  ;;  %714 = vst.msk [vmem:[#allocation2 + $0x6c] sm:$0xf] %vm686_vm3, %v7209_v42 }
 0x10e   : > { %13201 = vst [vmem:[#allocation36_spill] sm:$0xff] %v8607_v26  ;;  %v7207_v24 = vpack.c.bf16 %v551_v59, %v551_v59  ;;  %v7777_v18 = vpack.i.bf16 %v7409_v50, %v7408_v63  ;;  %v8618_v44 = vadd.f32 %v2227_v32, %v2131_v17  ;;  %v7216_v0 = vpack.c.bf16 %v8607_v26, %v8607_v26  ;;  %v7725_v17 = vpop.f32.mrf.mxu0 }
 0x10f   : > { %v1365_v45 = vld [vmem:[#allocation3 + $0xaf] sm:$0xff]  ;;  %v8624_v56 = vmul.f32 %v8271_v38, %v8433_v8  ;;  %1293 = vst.msk [vmem:[#allocation3 + $0xc8] sm:$0xff] %vm13021_vm2, %v7388_v37  ;;  %1294 = vst.msk [vmem:[#allocation3 + $0xd0] sm:$0xff] %vm13021_vm2, %v7389_v35  ;;  %v7212_v59 = vpack.c.bf16 %v556_v51, %v556_v51  ;;  %v554_v33 = vmax.f32 %v511_v19, 0.0  ;;  %v8639_v50 = vmul.f32 %v8289_v49, %v8411_v47 }
 0x110   : > { %v7607_v6 = vld [vmem:[#allocation2 + $0x50] sm:$0xff]   ;;  %13202 = vst [vmem:[#allocation37_spill] sm:$0xff] %v8618_v44  ;;  %712 = vst.msk [vmem:[#allocation2 + $0x64] sm:$0xf] %vm686_vm3, %v7207_v24  ;;  %7778 = vrot.lane.b32.xlu0 %v7777_v18, %s8172_s17  ;;  %v7217_v25 = vpack.c.bf16 %v8618_v44, %v8618_v44  ;;  %v8643_v32 = vmul.f32 %v8289_v49, %v8413_v62  ;;  %v8647_v37 = vmul.f32 %v8301_v54, %v8435_v13  ;;  %v514_v62 = vpop.f32.mrf.mxu0 }
 0x111   : > { %v7384_v41 = vunpack.c.l.bf16 %v7607_v6  ;;  %v7385_v42 = vunpack.c.h.bf16 %v7607_v6  ;;  %2419 = vst.msk [vmem:[#allocation2 + $0x8] sm:$0xf] %vm13022_vm6, %v7216_v0  ;;  %v8633_v8 = vld [vmem:[#allocation3 + $0xa0] sm:$0xff]  ;;  %v1333_v15 = vld [vmem:[#allocation3 + $0xb0] sm:$0xff]  ;;  %v7210_v35 = vpack.c.bf16 %v554_v33, %v554_v33  ;;  %v557_v24 = vmax.f32 %v7725_v17, 0.0 }
 0x112   : > { %13203 = vst [vmem:[#allocation38_spill] sm:$0xff] %v8633_v8  ;;  %v8635_v63 = vld [vmem:[#allocation3 + $0x9f] sm:$0xff]  ;;  %13205 = vst [vmem:[#allocation40_spill] sm:$0xff] %v8643_v32  ;;  %v1433_v51 = vmul.f32 %v8271_v38, %v1365_v45  ;;  %v1499_v13 = vmul.f32 %v8289_v49, %v8633_v8  ;;  %v1641_v18 = vmul.f32 %v8409_v39, %v1365_v45 }
 0x113   : > { %13204 = vst [vmem:[#allocation39_spill] sm:$0xff] %v8635_v63  ;;  %13206 = vst [vmem:[#allocation41_spill] sm:$0xff] %v8647_v37  ;;  %v1431_v47 = vmul.f32 %v8271_v38, %v8635_v63  ;;  %v1639_v6 = vmul.f32 %v8409_v39, %v8635_v63  ;;  %v1707_v19 = vmul.f32 %v8431_v4, %v8633_v8 }
 0x114   : > { %1291 = vst.msk [vmem:[#allocation3 + $0xb8] sm:$0xff] %vm13021_vm2, %v7384_v41  ;;  %1292 = vst.msk [vmem:[#allocation3 + $0xc0] sm:$0xff] %vm13021_vm2, %v7385_v42  ;;  %v7213_v0 = vpack.c.bf16 %v557_v24, %v557_v24  ;;  %v555_v41 = vmax.f32 %v514_v62, 0.0  ;;  %v1501_v42 = vmul.f32 %v8289_v49, %v1333_v15  ;;  %v7610_v33 = vld [vmem:[#allocation2 + $0x68] sm:$0xff]   ;;  %v1849_v43 = vmul.f32 %v8353_v30, %v1365_v45 }
 0x115   : > { %717 = vst.msk [vmem:[#allocation2 + $0x78] sm:$0xf] %vm686_vm3, %v7212_v59  ;;  %715 = vst.msk [vmem:[#allocation2 + $0x70] sm:$0xf] %vm686_vm3, %v7210_v35  ;;  %v1709_v59 = vmul.f32 %v8431_v4, %v1333_v15  ;;  %v1671_v17 = vadd.f32 %v1639_v6, %v8603_v7  ;;  %v1739_v52 = vadd.f32 %v1707_v19, %v1497_v12  ;;  %v7396_v29 = vunpack.c.l.bf16 %v7610_v33 }
 0x116   : > { %2420 = vst.msk [vmem:[#allocation2 + $0xc] sm:$0xf] %vm13022_vm6, %v7217_v25  ;;  %v1673_v25 = vadd.f32 %v1641_v18, %v1431_v47  ;;  %v7397_v11 = vunpack.c.h.bf16 %v7610_v33  ;;  %v7211_v34 = vpack.c.bf16 %v555_v41, %v555_v41  ;;  %v1917_v35 = vmul.f32 %v8373_v40, %v1333_v15  ;;  %v1337_v62 = vld [vmem:[#allocation3 + $0xd0] sm:$0xff] }
 0x117   : > { %718 = vst.msk [vmem:[#allocation2 + $0x7c] sm:$0xf] %vm686_vm3, %v7213_v0  ;;  %v7609_v24 = vld [vmem:[#allocation2 + $0x60] sm:$0xff]   ;;  %v1369_v27 = vld [vmem:[#allocation3 + $0xcf] sm:$0xff]  ;;  %v8670_v26 = vadd.f32 %v1709_v59, %v1499_v13  ;;  %v8672_v44 = vadd.f32 %v1849_v43, %v1671_v17  ;;  %v8676_v7 = vmul.f32 %v8301_v54, %v8495_v21  ;;  %v8680_v12 = vmul.f32 %v8409_v39, %v8536_v60 }
 0x118   : > { %1297 = vst.msk [vmem:[#allocation3 + $0xe8] sm:$0xff] %vm13021_vm2, %v7396_v29  ;;  %1298 = vst.msk [vmem:[#allocation3 + $0xf0] sm:$0xff] %vm13021_vm2, %v7397_v11  ;;  %v7392_v45 = vunpack.c.l.bf16 %v7609_v24  ;;  %v7393_v15 = vunpack.c.h.bf16 %v7609_v24  ;;  %v8685_v47 = vadd.f32 %v1917_v35, %v1739_v52  ;;  %v8689_v43 = vmul.f32 %v8409_v39, %v8558_v16 }
 0x119   : > { %13207 = vst [vmem:[#allocation42_spill] sm:$0xff] %v8670_v26  ;;  %13208 = vst [vmem:[#allocation43_spill] sm:$0xff] %v8672_v44  ;;  %v1437_v18 = vmul.f32 %v8271_v38, %v1369_v27  ;;  %v8695_v29 = vmul.f32 %v8289_v49, %v1337_v62  ;;  %v1645_v11 = vmul.f32 %v8409_v39, %v1369_v27 }
 0x11a   : > { %13209 = vst [vmem:[#allocation44_spill] sm:$0xff] %v8676_v7  ;;  %716 = vst.msk [vmem:[#allocation2 + $0x74] sm:$0xf] %vm686_vm3, %v7211_v34  ;;  %v8700_v34 = vmul.f32 %v8431_v4, %v8554_v36  ;;  %v1713_v33 = vmul.f32 %v8431_v4, %v1337_v62  ;;  %v1853_v61 = vmul.f32 %v8353_v30, %v1369_v27  ;;  %v13215_v7 = vand.u32 15, %v8310_v57 }
 0x11b   : > { %13210 = vst [vmem:[#allocation45_spill] sm:$0xff] %v8685_v47  ;;  %v1335_v21 = vld [vmem:[#allocation3 + $0xc0] sm:$0xff]  ;;  %v8691_v6 = vld [vmem:[#allocation3 + $0xb1] sm:$0xff]  ;;  %1295 = vst.msk [vmem:[#allocation3 + $0xd8] sm:$0xff] %vm13021_vm2, %v7392_v45  ;;  %v1921_v31 = vmul.f32 %v8373_v40, %v1337_v62  ;;  %v13223_v57 = vand.u32 15, %v8323_v2  ;;  %v13237_v2 = vmov 0 }
 0x11c   : > { %v1367_v13 = vld [vmem:[#allocation3 + $0xbf] sm:$0xff]  ;;  %13211 = vst [vmem:[#allocation46_spill] sm:$0xff] %v8691_v6  ;;  %13212 = vst [vmem:[#allocation47_spill] sm:$0xff] %v8700_v34  ;;  %v1503_v41 = vmul.f32 %v8289_v49, %v1335_v21  ;;  %v1569_v24 = vmul.f32 %v8301_v54, %v8691_v6  ;;  %v1711_v48 = vmul.f32 %v8431_v4, %v1335_v21  ;;  %vm8748_vm9 = vcmp.ne.s32.totalorder %v13215_v7, 15 }
 0x11d   : > { %1296 = vst.msk [vmem:[#allocation3 + $0xe0] sm:$0xff] %vm13021_vm2, %v7393_v15  ;;  %v7613_v52 = vld [vmem:[#allocation2 + $0x8] sm:$0xff]   ;;  %v1435_v0 = vmul.f32 %v8271_v38, %v1367_v13  ;;  %v1643_v59 = vmul.f32 %v8409_v39, %v1367_v13  ;;  %v1851_v44 = vmul.f32 %v8353_v30, %v1367_v13  ;;  %vm8761_vm11 = vcmp.ne.s32.totalorder %v13223_v57, 15 }
 0x11e   : > { %v1399_v19 = vld [vmem:[#allocation3 + $0xc1] sm:$0xff]  ;;  %v7412_v17 = vunpack.c.l.bf16 %v7613_v52  ;;  %v7413_v35 = vunpack.c.h.bf16 %v7613_v52  ;;  %v7612_v8 = vld [vmem:[#allocation2 + $0x78] sm:$0xff]   ;;  %v1743_v47 = vadd.f32 %v1711_v48, %v1501_v42  ;;  %v1745_v6 = vadd.f32 %v1713_v33, %v1503_v41 }
 0x11f   : > { %v1675_v45 = vadd.f32 %v1643_v59, %v1433_v51  ;;  %v1779_v15 = vmul.f32 %v8480_v20, %v1399_v19  ;;  %v1571_v14 = vmul.f32 %v8301_v54, %v1399_v19  ;;  %v7404_v52 = vunpack.c.l.bf16 %v7612_v8  ;;  %v1341_v59 = vld [vmem:[#allocation3 + $0xf0] sm:$0xff] }
 0x120   : > { %v7782_v63 = vpack.i.bf16 %v7413_v35, %v7412_v17  ;;  %v7405_v55 = vunpack.c.h.bf16 %v7612_v8  ;;  %v1677_v58 = vadd.f32 %v1645_v11, %v1435_v0  ;;  %v1373_v46 = vld [vmem:[#allocation3 + $0xef] sm:$0xff]  ;;  %v8717_v27 = vadd.f32 %v1851_v44, %v1673_v25 }
 0x121   : > { %v7611_v51 = vld [vmem:[#allocation2 + $0x70] sm:$0xff]   ;;  %v1811_v3 = vadd.f32 %v1779_v15, %v1569_v24  ;;  %v1885_v62 = vadd.f32 %v1853_v61, %v1675_v45  ;;  %v8720_v17 = vmul.f32 %v8373_v40, %v1335_v21  ;;  %1301 = vst.msk [vmem:[#allocation3 + $0x108] sm:$0xff] %vm13021_vm2, %v7404_v52  ;;  %v8725_v8 = vmul.f32 %v8271_v38, %v1373_v46 }
 0x122   : > { %7783 = vrot.lane.b32.xlu0 %v7782_v63, %s8172_s17  ;;  %13213 = vst [vmem:[#allocation48_spill] sm:$0xff] %v8717_v27  ;;  %v7400_v48 = vunpack.c.l.bf16 %v7611_v51  ;;  %v7401_v42 = vunpack.c.h.bf16 %v7611_v51  ;;  %1302 = vst.msk [vmem:[#allocation3 + $0x110] sm:$0xff] %vm13021_vm2, %v7405_v55  ;;  %v1953_v63 = vadd.f32 %v1921_v31, %v1743_v47  ;;  %v1401_v19 = vld [vmem:[#allocation3 + $0xd1] sm:$0xff]  ;;  %v1509_v44 = vmul.f32 %v8289_v49, %v1341_v59 }
 0x123   : > { %13214 = vst [vmem:[#allocation49_spill] sm:$0xff] %v8720_v17  ;;  %v1649_v61 = vmul.f32 %v8409_v39, %v1373_v46  ;;  %v1717_v25 = vmul.f32 %v8431_v4, %v1341_v59  ;;  %v1857_v21 = vmul.f32 %v8353_v30, %v1373_v46  ;;  %v1573_v47 = vmul.f32 %v8301_v54, %v1401_v19 }
 0x124   : > { %v1339_v13 = vld [vmem:[#allocation3 + $0xe0] sm:$0xff]  ;;  %1299 = vst.msk [vmem:[#allocation3 + $0xf8] sm:$0xff] %vm13021_vm2, %v7400_v48  ;;  %1300 = vst.msk [vmem:[#allocation3 + $0x100] sm:$0xff] %vm13021_vm2, %v7401_v42  ;;  %v1781_v35 = vmul.f32 %v8480_v20, %v1401_v19  ;;  %v1925_v46 = vmul.f32 %v8373_v40, %v1341_v59  ;;  %v1989_v60 = vmul.f32 %v8404_v28, %v1401_v19  ;;  %v13216_v59 = vmov 0 }
 0x125   : > { %v1371_v11 = vld [vmem:[#allocation3 + $0xdf] sm:$0xff]  ;;  %v1507_v31 = vmul.f32 %v8289_v49, %v1339_v13  ;;  %v1715_v33 = vmul.f32 %v8431_v4, %v1339_v13  ;;  %v1923_v17 = vmul.f32 %v8373_v40, %v1339_v13  ;;  %v13217_v59 = vsel %vm8748_vm9, 4294967295, %v13216_v59 }
 0x126   : > { %v1403_v55 = vld [vmem:[#allocation3 + $0xe1] sm:$0xff]  ;;  %v1439_v0 = vmul.f32 %v8271_v38, %v1371_v11  ;;  %v1647_v41 = vmul.f32 %v8409_v39, %v1371_v11  ;;  %v1855_v51 = vmul.f32 %v8353_v30, %v1371_v11  ;;  %v1813_v27 = vadd.f32 %v1781_v35, %v1571_v14  ;;  %13218 = vst [vmem:[#allocation50_spill] sm:$0xff] %v13217_v59 }
 0x127   : > { %v1783_v24 = vmul.f32 %v8480_v20, %v1403_v55  ;;  %v1575_v45 = vmul.f32 %v8301_v54, %v1403_v55  ;;  %v1747_v48 = vadd.f32 %v1715_v33, %v8695_v29  ;;  %v1749_v42 = vadd.f32 %v1717_v25, %v1507_v31 }
 0x128   : > { %v1679_v15 = vadd.f32 %v1647_v41, %v1437_v18  ;;  %v1681_v52 = vadd.f32 %v1649_v61, %v1439_v0  ;;  %v1887_v36 = vadd.f32 %v1855_v51, %v1677_v58  ;;  %v13219_v18 = vand.u32 15, %v8320_v1 }
 0x129   : > { %v1815_v26 = vadd.f32 %v1783_v24, %v1573_v47  ;;  %v13220_v11 = vmov 0  ;;  %v1613_v14 = vld [vmem:[#allocation3 + $0x110] sm:$0xff]  ;;  %v1955_v61 = vadd.f32 %v1923_v17, %v1745_v6  ;;  %v1957_v58 = vadd.f32 %v1925_v46, %v1747_v48  ;;  %v13235_v17 = vld [vmem:[#allocation7_spill] sm:$0xff] }
 0x12a   : > { %v1889_v16 = vadd.f32 %v1857_v21, %v1679_v15  ;;  %vm8754_vm10 = vcmp.ne.s32.totalorder %v13219_v18, 15  ;;  %v1615_v29 = vld [vmem:[#allocation3 + $0x10f] sm:$0xff]  ;;  %v1991_v25 = vmul.f32 %v8404_v28, %v1403_v55  ;;  %v2149_v19 = vadd.f32 %v1953_v63, %v1885_v62 }
 0x12b   : > { %v13221_v11 = vsel %vm8754_vm10, 4294967295, %v13220_v11  ;;  %v1617_v13 = vld [vmem:[#allocation3 + $0x111] sm:$0xff]  ;;  %v13224_v7 = vmov 0  ;;  %v13227_v1 = vand.u32 15, %v8329_v9  ;;  %v13228_v21 = vmov 0  ;;  %v1343_v47 = vld [vmem:[#allocation3 + $0x100] sm:$0xff] }
 0x12c   : > { %13222 = vst [vmem:[#allocation51_spill] sm:$0xff] %v13221_v11  ;;  %v13225_v7 = vsel %vm8761_vm11, 4294967295, %v13224_v7  ;;  %v13231_v0 = vand.u32 15, %v8332_v10  ;;  %v13232_v6 = vmov 0  ;;  %v13236_v62 = vand.u32 15, %v13235_v17  ;;  %v1375_v10 = vld [vmem:[#allocation3 + $0xff] sm:$0xff] }
 0x12d   : > { %13226 = vst [vmem:[#allocation52_spill] sm:$0xff] %v13225_v7  ;;  %vm8767_vm12 = vcmp.ne.s32.totalorder %v13227_v1, 15  ;;  %v1653_v63 = vmul.f32 %v8409_v39, %v1615_v29  ;;  %v1721_v9 = vmul.f32 %v8431_v4, %v1613_v14  ;;  %v1789_v55 = vmul.f32 %v8480_v20, %v1617_v13  ;;  %v1405_v46 = vld [vmem:[#allocation3 + $0xf1] sm:$0xff]  ;;  %v1407_v15 = vld [vmem:[#allocation3 + $0x101] sm:$0xff] }
 0x12e   : > { %v13229_v21 = vsel %vm8767_vm12, 4294967295, %v13228_v21  ;;  %vm8773_vm13 = vcmp.ne.s32.totalorder %v13231_v0, 15  ;;  %vm8779_vm14 = vcmp.ne.s32.totalorder %v13236_v62, 15  ;;  %v1861_v31 = vmul.f32 %v8353_v30, %v1615_v29 }
 0x12f   : > { %13230 = vst [vmem:[#allocation53_spill] sm:$0xff] %v13229_v21  ;;  %v13233_v6 = vsel %vm8773_vm13, 4294967295, %v13232_v6  ;;  %v13238_v2 = vsel %vm8779_vm14, 4294967295, %v13237_v2  ;;  %v1929_v41 = vmul.f32 %v8373_v40, %v1613_v14  ;;  %v1997_v33 = vmul.f32 %v8404_v28, %v1617_v13 }
 0x130   : > { %13234 = vst [vmem:[#allocation54_spill] sm:$0xff] %v13233_v6  ;;  %13239 = vst [vmem:[#allocation7_spill] sm:$0xff] %v13238_v2  ;;  %v2021_v35 = vadd.f32 %v1989_v60, %v1811_v3  ;;  %v2023_v24 = vadd.f32 %v1991_v25, %v1813_v27  ;;  %v1443_v51 = vmul.f32 %v8271_v38, %v1375_v10 }
 0x131   : > { %v1511_v48 = vmul.f32 %v8289_v49, %v1343_v47  ;;  %v1651_v18 = vmul.f32 %v8409_v39, %v1375_v10  ;;  %v1719_v57 = vmul.f32 %v8431_v4, %v1343_v47  ;;  %v1577_v29 = vmul.f32 %v8301_v54, %v1405_v46  ;;  %v13240_v39 = vld [vmem:[#allocation14_spill] sm:$0xff] }
 0x132   : > { %v1579_v1 = vmul.f32 %v8301_v54, %v1407_v15  ;;  %v1785_v14 = vmul.f32 %v8480_v20, %v1405_v46  ;;  %v1787_v13 = vmul.f32 %v8480_v20, %v1407_v15  ;;  %v1685_v60 = vadd.f32 %v1653_v63, %v1443_v51 }
 0x133   : > { %v1683_v3 = vadd.f32 %v1651_v18, %v8725_v8  ;;  %v1751_v27 = vadd.f32 %v1719_v57, %v1509_v44  ;;  %v1753_v25 = vadd.f32 %v1721_v9, %v1511_v48  ;;  %v1859_v17 = vmul.f32 %v8353_v30, %v1375_v10 }
 0x134   : > { %v1817_v38 = vadd.f32 %v1785_v14, %v1575_v45  ;;  %v1819_v0 = vadd.f32 %v1787_v13, %v1577_v29  ;;  %v1821_v49 = vadd.f32 %v1789_v55, %v1579_v1  ;;  %v1895_v37 = vadd.f32 %v13240_v39, %v1685_v60  ;;  %v13242_v45 = vld [vmem:[#allocation19_spill] sm:$0xff]  ;;  %v13243_v39 = vld [vmem:[#allocation5_spill] sm:$0xff]  ;;  %v8859_v60 = vld [vmem:[#allocation3 + $0x50] sm:$0xff] }
 0x135   : > { %v1893_v62 = vadd.f32 %v1861_v31, %v1683_v3  ;;  %v1927_v32 = vmul.f32 %v8373_v40, %v1343_v47  ;;  %v1961_v54 = vadd.f32 %v1929_v41, %v1751_v27  ;;  %v1891_v22 = vadd.f32 %v1859_v17, %v1681_v52  ;;  %v8857_v3 = vld [vmem:[#allocation3 + $0x48] sm:$0xff] }
 0x136   : > { %v1963_v34 = vadd.f32 %v13241_v23, %v1753_v25  ;;  %v1993_v20 = vmul.f32 %v8404_v28, %v1405_v46  ;;  %v1995_v8 = vmul.f32 %v8404_v28, %v1407_v15  ;;  %v2029_v63 = vadd.f32 %v1997_v33, %v1819_v0  ;;  %v8841_v46 = vld [vmem:[#allocation3 + $0x47] sm:$0xff] }
 0x137   : > { %v1959_v44 = vadd.f32 %v1927_v32, %v1749_v42  ;;  %v2031_v9 = vadd.f32 %v13242_v45, %v1821_v49  ;;  %v2151_v55 = vadd.f32 %v1955_v61, %v1887_v36  ;;  %v2153_v31 = vadd.f32 %v1957_v58, %v1889_v16  ;;  %v13252_v61 = vld [vmem:[#allocation6_spill] sm:$0xff]  ;;  %v13259_v27 = vld [vmem:[#allocation47_spill] sm:$0xff] }
 0x138   : > { %v2025_v51 = vadd.f32 %v1993_v20, %v1815_v26  ;;  %v2027_v10 = vadd.f32 %v1995_v8, %v1817_v38  ;;  %v2157_v48 = vadd.f32 %v1961_v54, %v1893_v62  ;;  %v13244_v18 = vand.u32 15, %v13243_v39  ;;  %v8875_v38 = vld [vmem:[#allocation3 + $0x51] sm:$0xff]  ;;  %v13260_v0 = vld [vmem:[#allocation31_spill] sm:$0xff] }
 0x139   : > { %v13245_v47 = vmov 0  ;;  %v2155_v23 = vadd.f32 %v1959_v44, %v1891_v22  ;;  %v2159_v52 = vadd.f32 %v1963_v34, %v1895_v37  ;;  %v2245_v41 = vsel %vm8748_vm9, %v2021_v35, 0.0  ;;  %v13261_v49 = vld [vmem:[#allocation23_spill] sm:$0xff]  ;;  %v13262_v62 = vld [vmem:[#allocation32_spill] sm:$0xff] }
 0x13a   : > { %vm8807_vm15 = vcmp.ne.s32.totalorder %v13244_v18, 0  ;;  %v2247_v32 = vsel %vm8754_vm10, %v2023_v24, 0.0  ;;  %v2249_v20 = vsel %vm8761_vm11, %v2025_v51, 0.0  ;;  %v2251_v36 = vsel %vm8767_vm12, %v2027_v10, 0.0  ;;  %v13263_v44 = vld [vmem:[#allocation40_spill] sm:$0xff]  ;;  %v13264_v51 = vld [vmem:[#allocation41_spill] sm:$0xff] }
 0x13b   : > { %v13246_v47 = vsel %vm8807_vm15, 4294967295, %v13245_v47  ;;  %v2253_v16 = vsel %vm8773_vm13, %v2029_v63, 0.0  ;;  %v2255_v26 = vsel %vm8779_vm14, %v2031_v9, 0.0  ;;  %v8823_v22 = vadd.f32 %v2245_v41, %v2149_v19  ;;  %v8843_v19 = vld [vmem:[#allocation3 + $0x4f] sm:$0xff] }
 0x13c   : > { %13247 = vst [vmem:[#allocation14_spill] sm:$0xff] %v13246_v47  ;;  %v8825_v37 = vadd.f32 %v2247_v32, %v2151_v55  ;;  %v8827_v34 = vadd.f32 %v2249_v20, %v2153_v31  ;;  %v8829_v42 = vadd.f32 %v2251_v36, %v2155_v23  ;;  %v13253_v58 = vand.u32 15, %v13252_v61  ;;  %v13265_v31 = vld [vmem:[#allocation44_spill] sm:$0xff]  ;;  %v13271_v36 = vld [vmem:[#allocation26_spill] sm:$0xff] }
 0x13d   : > { %13248 = vst [vmem:[#allocation15_spill] sm:$0xff] %v8823_v22  ;;  %v13254_v33 = vmov 0  ;;  %v8837_v35 = vadd.f32 %v2253_v16, %v2157_v48  ;;  %v8839_v24 = vadd.f32 %v2255_v26, %v2159_v52  ;;  %v1658_v15 = vadd.f32 %v8680_v12, %v8615_v5  ;;  %v8861_v5 = vld [vmem:[#allocation3 + $0x49] sm:$0xff] }
 0x13e   : > { %13249 = vst [vmem:[#allocation19_spill] sm:$0xff] %v8825_v37  ;;  %13250 = vst [vmem:[#allocation5_spill] sm:$0xff] %v8827_v34  ;;  %vm8833_vm0 = vcmp.ne.s32.totalorder %v13253_v58, 15  ;;  %v1659_v57 = vadd.f32 %v8689_v43, %v8624_v56  ;;  %v7235_v29 = vpack.c.bf16 %v8823_v22, %v8823_v22  ;;  %v7237_v1 = vpack.c.bf16 %v8825_v37, %v8825_v37  ;;  %v13266_v41 = vld [vmem:[#allocation8_spill] sm:$0xff]  ;;  %v13272_v58 = vld [vmem:[#allocation30_spill] sm:$0xff] }
 0x13f   : > { %13251 = vst [vmem:[#allocation55_spill] sm:$0xff] %v8829_v42  ;;  %v13255_v33 = vsel %vm8833_vm0, 4294967295, %v13254_v33  ;;  %13257 = vst [vmem:[#allocation56_spill] sm:$0xff] %v8837_v35  ;;  %v7239_v14 = vpack.c.bf16 %v8827_v34, %v8827_v34  ;;  %v7241_v13 = vpack.c.bf16 %v8829_v42, %v8829_v42  ;;  %v7243_v56 = vpack.c.bf16 %v8837_v35, %v8837_v35  ;;  %v13316_v34 = vld [vmem:[#allocation33_spill] sm:$0xff] }
 0x140   : > { %13256 = vst [vmem:[#allocation6_spill] sm:$0xff] %v13255_v33  ;;  %13258 = vst [vmem:[#allocation57_spill] sm:$0xff] %v8839_v24  ;;  %v7245_v12 = vpack.c.bf16 %v8839_v24, %v8839_v24  ;;  %v1695_v43 = vmul.f32 %v8431_v4, %v8556_v53  ;;  %v1726_v25 = vadd.f32 %v13259_v27, %v8639_v50  ;;  %v13267_v32 = vand.u32 15, %v13266_v41  ;;  %v13323_v22 = vld [vmem:[#allocation21_spill] sm:$0xff] }
 0x141   : > { %2442 = vst.msk [vmem:[#allocation2 + $0x64] sm:$0xf] %vm13022_vm6, %v7239_v14  ;;  %2444 = vst.msk [vmem:[#allocation2 + $0x6c] sm:$0xf] %vm13022_vm6, %v7241_v13  ;;  %v1762_v17 = vmul.f32 %v13261_v49, %v13260_v0  ;;  %v1763_v54 = vmul.f32 %v13261_v49, %v13262_v62  ;;  %v1836_v8 = vmul.f32 %v8353_v30, %v8841_v46  ;;  %v13268_v20 = vmov 0 }
 0x142   : > { %2438 = vst.msk [vmem:[#allocation2 + $0x54] sm:$0xf] %vm13022_vm6, %v7235_v29  ;;  %2440 = vst.msk [vmem:[#allocation2 + $0x5c] sm:$0xf] %vm13022_vm6, %v7237_v1  ;;  %v1837_v50 = vmul.f32 %v8353_v30, %v8843_v19  ;;  %v1727_v63 = vadd.f32 %v1695_v43, %v13263_v44  ;;  %v1904_v45 = vmul.f32 %v8373_v40, %v8857_v3  ;;  %vm8900_vm1 = vcmp.ne.s32.totalorder %v13267_v32, 0  ;;  %v13273_v29 = vld [vmem:[#allocation29_spill] sm:$0xff] }
 0x143   : > { %2446 = vst.msk [vmem:[#allocation2 + $0x74] sm:$0xf] %vm13022_vm6, %v7243_v56  ;;  %2448 = vst.msk [vmem:[#allocation2 + $0x7c] sm:$0xf] %vm13022_vm6, %v7245_v12  ;;  %v1905_v9 = vmul.f32 %v8373_v40, %v8859_v60  ;;  %v1972_v55 = vmul.f32 %v8404_v28, %v8861_v5  ;;  %v1794_v10 = vadd.f32 %v1762_v17, %v13264_v51  ;;  %v13269_v20 = vsel %vm8900_vm1, 4294967295, %v13268_v20  ;;  %v13274_v12 = vld [vmem:[#allocation9_spill] sm:$0xff] }
 0x144   : > { %v1795_v48 = vadd.f32 %v1763_v54, %v13265_v31  ;;  %v1868_v30 = vadd.f32 %v1836_v8, %v1658_v15  ;;  %v1869_v39 = vadd.f32 %v1837_v50, %v1659_v57  ;;  %v1936_v18 = vadd.f32 %v1904_v45, %v1726_v25  ;;  %13270 = vst [vmem:[#allocation47_spill] sm:$0xff] %v13269_v20  ;;  %v8907_v40 = vld [vmem:[%s12975_s2] ss:$0 sm:$0xff]  ;;  %v8918_v57 = vld [vmem:[%s12975_s2 + $0x1] ss:$0 sm:$0xff] }
 0x145   : > { %v1937_v23 = vadd.f32 %v1905_v9, %v1727_v63  ;;  %v1973_v52 = vmul.f32 %v8404_v28, %v8875_v38  ;;  %v1418_v16 = vmul.f32 %v8907_v40, %v13271_v36  ;;  %v2004_v26 = vadd.f32 %v1972_v55, %v1794_v10  ;;  %v8933_v17 = vld [vmem:[%s12975_s2 + $0x2] ss:$0 sm:$0xff]  ;;  %v8947_v9 = vld [vmem:[#allocation3 + $0x57] sm:$0xff] }
 0x146   : > { %v2100_v61 = vsel %vm8807_vm15, %v1868_v30, 0.0  ;;  %v1419_v15 = vmul.f32 %v8907_v40, %v13272_v58  ;;  %v1486_v1 = vmul.f32 %v8918_v57, %v13273_v29  ;;  %v13275_v43 = vand.u32 15, %v13274_v12  ;;  %v13279_v50 = vld [vmem:[#allocation18_spill] sm:$0xff]  ;;  %v8957_v10 = vld [vmem:[#allocation3 + $0x58] sm:$0xff] }
 0x147   : > { %v2005_v14 = vadd.f32 %v1973_v52, %v1795_v48  ;;  %v2132_v13 = vadd.f32 %v2100_v61, %v1936_v18  ;;  %v2133_v56 = vadd.f32 %v1937_v23, %v1869_v39  ;;  %v13276_v27 = vmov 0  ;;  %v8949_v55 = vld [vmem:[#allocation3 + $0x5f] sm:$0xff]  ;;  %v8986_v29 = vld [vmem:[%s12975_s2 + $0x7] ss:$0 sm:$0xff] }
 0x148   : > { %vm8924_vm3 = vcmp.ne.s32.totalorder %v13275_v43, 15  ;;  %v1487_v25 = vmul.f32 %v8918_v57, %v8556_v53  ;;  %v1554_v54 = vmul.f32 %v8933_v17, %v13260_v0  ;;  %v1555_v8 = vmul.f32 %v8933_v17, %v13262_v62  ;;  %v8959_v31 = vld [vmem:[#allocation3 + $0x60] sm:$0xff]  ;;  %v13281_v12 = vld [vmem:[#allocation49_spill] sm:$0xff] }
 0x149   : > { %v13277_v27 = vsel %vm8924_vm3, 4294967295, %v13276_v27  ;;  %v1628_v44 = vmul.f32 %v13279_v50, %v8841_v46  ;;  %v1629_v63 = vmul.f32 %v13279_v50, %v8843_v19  ;;  %v2229_v53 = vsel %vm8833_vm0, %v2005_v14, 0.0  ;;  %v8961_v48 = vld [vmem:[#allocation3 + $0x59] sm:$0xff]  ;;  %v8967_v52 = vld [vmem:[#allocation3 + $0x61] sm:$0xff] }
 0x14a   : > { %13278 = vst [vmem:[#allocation31_spill] sm:$0xff] %v13277_v27  ;;  %v8945_v45 = vadd.f32 %v2132_v13, %v2004_v26  ;;  %v1696_v0 = vmul.f32 %v8431_v4, %v8857_v3  ;;  %v1697_v62 = vmul.f32 %v8431_v4, %v8859_v60  ;;  %v8955_v51 = vadd.f32 %v2229_v53, %v2133_v56  ;;  %v13280_v56 = vld [vmem:[#allocation42_spill] sm:$0xff] }
 0x14b   : > { %v1660_v30 = vadd.f32 %v1628_v44, %v1418_v16  ;;  %v1661_v39 = vadd.f32 %v1629_v63, %v1419_v15  ;;  %v1764_v18 = vmul.f32 %v13261_v49, %v8861_v5  ;;  %v1765_v32 = vmul.f32 %v13261_v49, %v8875_v38  ;;  %v8976_v16 = vld [vmem:[%s12975_s2 + $0x6] ss:$0 sm:$0xff] }
 0x14c   : > { %v7218_v23 = vpack.c.bf16 %v8945_v45, %v8945_v45  ;;  %v1728_v41 = vadd.f32 %v1696_v0, %v1486_v1  ;;  %v1729_v4 = vadd.f32 %v1697_v62, %v1487_v25  ;;  %v7219_v36 = vpack.c.bf16 %v8955_v51, %v8955_v51 }
 0x14d   : > { %v1796_v26 = vadd.f32 %v1764_v18, %v1554_v54  ;;  %v1838_v61 = vmul.f32 %v8976_v16, %v8947_v9  ;;  %v1839_v58 = vmul.f32 %v8976_v16, %v8949_v55  ;;  %v1797_v15 = vadd.f32 %v1765_v32, %v1555_v8  ;;  %v9002_v8 = vld [vmem:[%s12975_s2 + $0x8] ss:$0 sm:$0xff] }
 0x14e   : > { %2421 = vst.msk [vmem:[#allocation2 + $0x10] sm:$0xf] %vm13022_vm6, %v7218_v23  ;;  %v1906_v1 = vmul.f32 %v8986_v29, %v8957_v10  ;;  %v1907_v14 = vmul.f32 %v8986_v29, %v8959_v31  ;;  %v1974_v13 = vmul.f32 %v8404_v28, %v8961_v48  ;;  %v8996_v43 = vadd.f32 %v13281_v12, %v13280_v56  ;;  %v13282_v28 = vld [vmem:[#allocation10_spill] sm:$0xff] }
 0x14f   : > { %2422 = vst.msk [vmem:[#allocation2 + $0x14] sm:$0xf] %vm13022_vm6, %v7219_v36  ;;  %v1870_v25 = vadd.f32 %v1838_v61, %v1660_v30  ;;  %v1871_v54 = vadd.f32 %v1839_v58, %v1661_v39  ;;  %v1975_v50 = vmul.f32 %v9002_v8, %v8967_v52  ;;  %v13283_v0 = vand.u32 15, %v13282_v28  ;;  %v13287_v36 = vld [vmem:[#allocation11_spill] sm:$0xff] }
 0x150   : > { %v1938_v44 = vadd.f32 %v1906_v1, %v1728_v41  ;;  %v1939_v63 = vadd.f32 %v1907_v14, %v1729_v4  ;;  %v2006_v53 = vadd.f32 %v1974_v13, %v1796_v26  ;;  %v13284_v62 = vmov 0  ;;  %v9052_v56 = vld [vmem:[#allocation3 + $0x67] sm:$0xff] }
 0x151   : > { %vm9008_vm2 = vcmp.ne.s32.totalorder %v13283_v0, 0  ;;  %v1420_v30 = vmul.f32 %v8907_v40, %v8841_v46  ;;  %v2007_v39 = vadd.f32 %v1975_v50, %v1797_v15  ;;  %v2102_v18 = vsel %vm8900_vm1, %v1870_v25, 0.0  ;;  %v9060_v50 = vld [vmem:[#allocation3 + $0x70] sm:$0xff] }
 0x152   : > { %v13285_v62 = vsel %vm9008_vm2, 4294967295, %v13284_v62  ;;  %v1421_v23 = vmul.f32 %v8907_v40, %v8843_v19  ;;  %v1488_v41 = vmul.f32 %v8918_v57, %v8857_v3  ;;  %v2134_v4 = vadd.f32 %v2102_v18, %v1938_v44  ;;  %v9035_v3 = vld [vmem:[%s12975_s2 + $0x3] ss:$0 sm:$0xff]  ;;  %v9062_v44 = vld [vmem:[#allocation3 + $0x6f] sm:$0xff] }
 0x153   : > { %13286 = vst [vmem:[#allocation23_spill] sm:$0xff] %v13285_v62  ;;  %v2135_v32 = vadd.f32 %v1939_v63, %v1871_v54  ;;  %v13288_v26 = vand.u32 15, %v13287_v36  ;;  %v13289_v61 = vmov 0  ;;  %v1489_v46 = vmul.f32 %v8918_v57, %v8859_v60  ;;  %v9044_v60 = vld [vmem:[%s12975_s2 + $0x4] ss:$0 sm:$0xff]  ;;  %v9058_v54 = vld [vmem:[#allocation3 + $0x68] sm:$0xff] }
 0x154   : > { %v1557_v58 = vmul.f32 %v8933_v17, %v8875_v38  ;;  %v2231_v19 = vsel %vm8924_vm3, %v2007_v39, 0.0  ;;  %v1630_v15 = vmul.f32 %v9035_v3, %v8947_v9  ;;  %v1631_v1 = vmul.f32 %v9035_v3, %v8949_v55  ;;  %v9074_v36 = vld [vmem:[#allocation3 + $0x71] sm:$0xff] }
 0x155   : > { %vm9022_vm6 = vcmp.ne.s32.totalorder %v13288_v26, 15  ;;  %v1698_v38 = vmul.f32 %v9044_v60, %v8957_v10  ;;  %v9048_v14 = vadd.f32 %v2134_v4, %v2006_v53  ;;  %v9050_v13 = vadd.f32 %v2231_v19, %v2135_v32  ;;  %v9072_v32 = vld [vmem:[#allocation3 + $0x69] sm:$0xff] }
 0x156   : > { %v13290_v61 = vsel %vm9022_vm6, 4294967295, %v13289_v61  ;;  %v1699_v12 = vmul.f32 %v9044_v60, %v8959_v31  ;;  %v1766_v25 = vmul.f32 %v13261_v49, %v8961_v48  ;;  %v1556_v63 = vmul.f32 %v8933_v17, %v8861_v5  ;;  %v7614_v39 = vld [vmem:[#allocation2 + $0x10] sm:$0xff]  }
 0x157   : > { %13291 = vst [vmem:[#allocation32_spill] sm:$0xff] %v13290_v61  ;;  %v1662_v53 = vadd.f32 %v1630_v15, %v1420_v30  ;;  %v1663_v28 = vadd.f32 %v1631_v1, %v1421_v23  ;;  %v1767_v0 = vmul.f32 %v13261_v49, %v8967_v52  ;;  %v7220_v18 = vpack.c.bf16 %v9048_v14, %v9048_v14 }
 0x158   : > { %v7221_v4 = vpack.c.bf16 %v9050_v13, %v9050_v13  ;;  %v1730_v26 = vadd.f32 %v1698_v38, %v1488_v41  ;;  %v1731_v19 = vadd.f32 %v1699_v12, %v1489_v46  ;;  %v7416_v2 = vunpack.c.l.bf16 %v7614_v39 }
 0x159   : > { %v7417_v5 = vunpack.c.h.bf16 %v7614_v39  ;;  %v1798_v30 = vadd.f32 %v1766_v25, %v1556_v63  ;;  %v1840_v23 = vmul.f32 %v8976_v16, %v9052_v56  ;;  %vm13292_vm14 = vcmask 11264  }
 0x15a   : > { %2423 = vst.msk [vmem:[#allocation2 + $0x18] sm:$0xf] %vm13292_vm14, %v7220_v18  ;;  %vm13293_vm13 = vmmov %vm13292_vm14  ;;  %v1799_v49 = vadd.f32 %v1767_v0, %v1557_v58  ;;  %v1841_v15 = vmul.f32 %v8976_v16, %v9062_v44  ;;  %v1908_v1 = vmul.f32 %v8986_v29, %v9058_v54  ;;  %v1909_v41 = vmul.f32 %v8986_v29, %v9060_v50 }
 0x15b   : > { %2424 = vst.msk [vmem:[#allocation2 + $0x1c] sm:$0xf] %vm13293_vm13, %v7221_v4  ;;  %v7787_v46 = vpack.i.bf16 %v7417_v5, %v7416_v2  ;;  %v1872_v38 = vadd.f32 %v1840_v23, %v1662_v53  ;;  %v1976_v12 = vmul.f32 %v9002_v8, %v9072_v32  ;;  %v1977_v25 = vmul.f32 %v9002_v8, %v9074_v36  ;;  %v13294_v53 = vld [vmem:[#allocation12_spill] sm:$0xff] }
 0x15c   : > { %v1873_v63 = vadd.f32 %v1841_v15, %v1663_v28  ;;  %v1940_v39 = vadd.f32 %v1908_v1, %v1730_v26  ;;  %v1941_v58 = vadd.f32 %v1909_v41, %v1731_v19  ;;  %v1422_v0 = vmul.f32 %v8907_v40, %v8947_v9  ;;  %v13299_v15 = vld [vmem:[#allocation13_spill] sm:$0xff] }
 0x15d   : > { %7788 = vrot.lane.b32.xlu1 %v7787_v46, %s8172_s17  ;;  %v2008_v18 = vadd.f32 %v1976_v12, %v1798_v30  ;;  %v2009_v4 = vadd.f32 %v1977_v25, %v1799_v49  ;;  %v2104_v2 = vsel %vm9008_vm2, %v1872_v38, 0.0  ;;  %v13295_v5 = vand.u32 15, %v13294_v53  ;;  %v9140_v53 = vld [vmem:[%s12975_s2 + $0x5] ss:$0 sm:$0xff] }
 0x15e   : > { %v13296_v23 = vmov 0  ;;  %v1423_v28 = vmul.f32 %v8907_v40, %v8949_v55  ;;  %v2136_v26 = vadd.f32 %v2104_v2, %v1940_v39  ;;  %v2137_v19 = vadd.f32 %v1941_v58, %v1873_v63  ;;  %v9133_v58 = vld [vmem:[#allocation3 + $0x7f] sm:$0xff] }
 0x15f   : > { %vm9097_vm13 = vcmp.ne.s32.totalorder %v13295_v5, 0  ;;  %v13300_v9 = vand.u32 15, %v13299_v15  ;;  %v13301_v1 = vmov 0  ;;  %v1490_v30 = vmul.f32 %v8918_v57, %v8957_v10  ;;  %v9125_v10 = vld [vmem:[#allocation3 + $0x78] sm:$0xff] }
 0x160   : > { %v13297_v23 = vsel %vm9097_vm13, 4294967295, %v13296_v23  ;;  %v1491_v49 = vmul.f32 %v8918_v57, %v8959_v31  ;;  %v2233_v41 = vsel %vm9022_vm6, %v2009_v4, 0.0  ;;  %v1558_v55 = vmul.f32 %v8933_v17, %v8961_v48  ;;  %v9131_v48 = vld [vmem:[#allocation3 + $0x77] sm:$0xff] }
 0x161   : > { %13298 = vst [vmem:[#allocation40_spill] sm:$0xff] %v13297_v23  ;;  %vm9105_vm14 = vcmp.ne.s32.totalorder %v13300_v9, 15  ;;  %v1632_v46 = vmul.f32 %v9035_v3, %v9052_v56  ;;  %v1633_v38 = vmul.f32 %v9035_v3, %v9062_v44  ;;  %v9121_v12 = vadd.f32 %v2136_v26, %v2008_v18  ;;  %v9150_v15 = vld [vmem:[#allocation3 + $0x79] sm:$0xff]  ;;  %v9152_v9 = vld [vmem:[#allocation3 + $0x81] sm:$0xff] }
 0x162   : > { %v13302_v1 = vsel %vm9105_vm14, 4294967295, %v13301_v1  ;;  %v9123_v25 = vadd.f32 %v2233_v41, %v2137_v19  ;;  %v1559_v31 = vmul.f32 %v8933_v17, %v8967_v52  ;;  %v1700_v63 = vmul.f32 %v9044_v60, %v9058_v54  ;;  %v7615_v39 = vld [vmem:[#allocation2 + $0x18] sm:$0xff]  }
 0x163   : > { %13303 = vst [vmem:[#allocation41_spill] sm:$0xff] %v13302_v1  ;;  %v1664_v4 = vadd.f32 %v1632_v46, %v1422_v0  ;;  %v1665_v2 = vadd.f32 %v1633_v38, %v1423_v28  ;;  %v1701_v18 = vmul.f32 %v9044_v60, %v9060_v50  ;;  %v1769_v52 = vmul.f32 %v9140_v53, %v9074_v36  ;;  %v9148_v28 = vld [vmem:[#allocation3 + $0x80] sm:$0xff] }
 0x164   : > { %v7420_v5 = vunpack.c.l.bf16 %v7615_v39  ;;  %v7421_v26 = vunpack.c.h.bf16 %v7615_v39  ;;  %v7222_v19 = vpack.c.bf16 %v9121_v12, %v9121_v12  ;;  %v7223_v0 = vpack.c.bf16 %v9123_v25, %v9123_v25  ;;  %v13334_v1 = vld [vmem:[#allocation38_spill] sm:$0xff] }
 0x165   : > { %v1732_v41 = vadd.f32 %v1700_v63, %v1490_v30  ;;  %v1733_v46 = vadd.f32 %v1701_v18, %v1491_v49  ;;  %v1768_v38 = vmul.f32 %v9140_v53, %v9072_v32  ;;  %v1801_v6 = vadd.f32 %v1769_v52, %v1559_v31 }
 0x166   : > { %v7792_v21 = vpack.i.bf16 %v7421_v26, %v7420_v5  ;;  %vm13304_vm12 = vcmask 11264   ;;  %v1842_v39 = vmul.f32 %v8976_v16, %v9131_v48  ;;  %v1843_v7 = vmul.f32 %v8976_v16, %v9133_v58 }
 0x167   : > { %2425 = vst.msk [vmem:[#allocation2 + $0x20] sm:$0xf] %vm13304_vm12, %v7222_v19  ;;  %vm13305_vm11 = vmmov %vm13304_vm12  ;;  %v1910_v11 = vmul.f32 %v8986_v29, %v9125_v10  ;;  %v1800_v30 = vadd.f32 %v1768_v38, %v1558_v55  ;;  %v1911_v49 = vmul.f32 %v8986_v29, %v9148_v28  ;;  %v1978_v31 = vmul.f32 %v9002_v8, %v9150_v15  ;;  %v13306_v38 = vld [vmem:[#allocation16_spill] sm:$0xff] }
 0x168   : > { %2426 = vst.msk [vmem:[#allocation2 + $0x24] sm:$0xf] %vm13305_vm11, %v7223_v0  ;;  %v1979_v63 = vmul.f32 %v9002_v8, %v9152_v9  ;;  %7793 = vrot.lane.b32.xlu1 %v7792_v21, %s8172_s17  ;;  %v1874_v18 = vadd.f32 %v1842_v39, %v1664_v4  ;;  %v1875_v52 = vadd.f32 %v1843_v7, %v1665_v2  ;;  %v13307_v59 = vand.u32 15, %v13306_v38  ;;  %v13311_v7 = vld [vmem:[#allocation20_spill] sm:$0xff] }
 0x169   : > { %v1942_v5 = vadd.f32 %v1910_v11, %v1732_v41  ;;  %v1424_v26 = vmul.f32 %v8907_v40, %v9052_v56  ;;  %v1943_v19 = vadd.f32 %v1911_v49, %v1733_v46  ;;  %v2010_v0 = vadd.f32 %v1978_v31, %v1800_v30  ;;  %v9219_v38 = vld [vmem:[#allocation3 + $0x91] sm:$0xff] }
 0x16a   : > { %v2011_v55 = vadd.f32 %v1979_v63, %v1801_v6  ;;  %vm9175_vm11 = vcmp.ne.s32.totalorder %v13307_v59, 0  ;;  %v13308_v35 = vmov 0  ;;  %v1425_v24 = vmul.f32 %v8907_v40, %v9062_v44  ;;  %v9211_v63 = vld [vmem:[#allocation3 + $0x87] sm:$0xff] }
 0x16b   : > { %v13309_v35 = vsel %vm9175_vm11, 4294967295, %v13308_v35  ;;  %v2106_v21 = vsel %vm9097_vm13, %v1874_v18, 0.0  ;;  %v13312_v11 = vand.u32 15, %v13311_v7  ;;  %v13313_v4 = vmov 0 }
 0x16c   : > { %13310 = vst [vmem:[#allocation44_spill] sm:$0xff] %v13309_v35  ;;  %v1492_v6 = vmul.f32 %v8918_v57, %v9058_v54  ;;  %v1493_v59 = vmul.f32 %v8918_v57, %v9060_v50  ;;  %v1560_v56 = vmul.f32 %v8933_v17, %v9072_v32  ;;  %v2138_v2 = vadd.f32 %v2106_v21, %v1942_v5 }
 0x16d   : > { %vm9185_vm12 = vcmp.ne.s32.totalorder %v13312_v11, 15  ;;  %v2139_v44 = vadd.f32 %v1943_v19, %v1875_v52  ;;  %v2235_v41 = vsel %vm9105_vm14, %v2011_v55, 0.0  ;;  %v1634_v46 = vmul.f32 %v9035_v3, %v9131_v48  ;;  %v9217_v55 = vld [vmem:[#allocation3 + $0x88] sm:$0xff] }
 0x16e   : > { %v13314_v4 = vsel %vm9185_vm12, 4294967295, %v13313_v4  ;;  %v1635_v39 = vmul.f32 %v9035_v3, %v9133_v58  ;;  %v1702_v54 = vmul.f32 %v9044_v60, %v9125_v10  ;;  %v1703_v50 = vmul.f32 %v9044_v60, %v9148_v28 }
 0x16f   : > { %13315 = vst [vmem:[#allocation8_spill] sm:$0xff] %v13314_v4  ;;  %v1770_v32 = vmul.f32 %v9140_v53, %v9150_v15  ;;  %v7616_v30 = vld [vmem:[#allocation2 + $0x20] sm:$0xff]   ;;  %v9207_v49 = vadd.f32 %v2138_v2, %v2010_v0  ;;  %v9209_v31 = vadd.f32 %v2235_v41, %v2139_v44  ;;  %v1561_v18 = vmul.f32 %v8933_v17, %v9074_v36  ;;  %v9225_v2 = vld [vmem:[#allocation3 + $0x89] sm:$0xff] }
 0x170   : > { %v1771_v52 = vmul.f32 %v9140_v53, %v9152_v9  ;;  %v7424_v5 = vunpack.c.l.bf16 %v7616_v30  ;;  %v7425_v19 = vunpack.c.h.bf16 %v7616_v30  ;;  %v1666_v21 = vadd.f32 %v1634_v46, %v1424_v26  ;;  %v13319_v46 = vld [vmem:[#allocation34_spill] sm:$0xff] }
 0x171   : > { %v1667_v7 = vadd.f32 %v1635_v39, %v1425_v24  ;;  %v7224_v0 = vpack.c.bf16 %v9207_v49, %v9207_v49  ;;  %v7225_v11 = vpack.c.bf16 %v9209_v31, %v9209_v31  ;;  %v1734_v36 = vadd.f32 %v1702_v54, %v1492_v6  ;;  %v13320_v54 = vld [vmem:[#allocation35_spill] sm:$0xff] }
 0x172   : > { %v1735_v44 = vadd.f32 %v1703_v50, %v1493_v59  ;;  %v7797_v41 = vpack.i.bf16 %v7425_v19, %v7424_v5  ;;  %v1802_v42 = vadd.f32 %v1770_v32, %v1560_v56  ;;  %v1844_v30 = vmul.f32 %v8976_v16, %v9211_v63  ;;  %v13321_v32 = vld [vmem:[#allocation43_spill] sm:$0xff] }
 0x173   : > { %v1845_v37 = vmul.f32 %v8976_v16, %v13316_v34  ;;  %vm13317_vm10 = vcmask 11264   ;;  %v1803_v24 = vadd.f32 %v1771_v52, %v1561_v18  ;;  %v1912_v26 = vmul.f32 %v8986_v29, %v9217_v55  ;;  %v13322_v18 = vld [vmem:[#allocation45_spill] sm:$0xff] }
 0x174   : > { %2427 = vst.msk [vmem:[#allocation2 + $0x28] sm:$0xf] %vm13317_vm10, %v7224_v0  ;;  %vm13318_vm9 = vmmov %vm13317_vm10  ;;  %v1913_v6 = vmul.f32 %v8986_v29, %v13319_v46  ;;  %v1981_v59 = vmul.f32 %v9002_v8, %v9219_v38  ;;  %7798 = vrot.lane.b32.xlu0 %v7797_v41, %s8172_s17  ;;  %v1876_v56 = vadd.f32 %v1844_v30, %v1666_v21  ;;  %v861_v50 = vand.u32 15, %v13320_v54  ;;  %v8044_v54 = vld [vmem:[#allocation3 + $0x90] sm:$0xff] }
 0x175   : > { %2428 = vst.msk [vmem:[#allocation2 + $0x2c] sm:$0xf] %vm13318_vm9, %v7225_v11  ;;  %v1877_v39 = vadd.f32 %v1845_v37, %v1667_v7  ;;  %v1980_v34 = vmul.f32 %v9002_v8, %v9225_v2  ;;  %v9245_v52 = vadd.f32 %v13322_v18, %v13321_v32  ;;  %v1944_v5 = vadd.f32 %v1912_v26, %v1734_v36 }
 0x176   : > { %v1945_v19 = vadd.f32 %v1913_v6, %v1735_v44  ;;  %v2013_v0 = vadd.f32 %v1981_v59, %v1803_v24  ;;  %v2108_v46 = vsel %vm9175_vm11, %v1876_v56, 0.0  ;;  %v13324_v41 = vand.u32 15, %v13323_v22  ;;  %v8043_v56 = vld [vmem:[#allocation3 + $0x8f] sm:$0xff] }
 0x177   : > { %v2012_v11 = vadd.f32 %v1980_v34, %v1802_v42  ;;  %v13325_v37 = vmov 0  ;;  %v1426_v21 = vmul.f32 %v8907_v40, %v9131_v48  ;;  %v1427_v7 = vmul.f32 %v8907_v40, %v9133_v58  ;;  %v9282_v34 = vld [vmem:[#allocation3 + $0x97] sm:$0xff] }
 0x178   : > { %vm9251_vm9 = vcmp.ne.s32.totalorder %v13324_v41, 0  ;;  %v2140_v30 = vadd.f32 %v2108_v46, %v1944_v5  ;;  %v2141_v36 = vadd.f32 %v1945_v19, %v1877_v39  ;;  %v2237_v42 = vsel %vm9185_vm12, %v2013_v0, 0.0  ;;  %v9295_v46 = vld [vmem:[#allocation3 + $0x99] sm:$0xff]  ;;  %v9297_v41 = vld [vmem:[#allocation3 + $0xa1] sm:$0xff] }
 0x179   : > { %v13326_v37 = vsel %vm9251_vm9, 4294967295, %v13325_v37  ;;  %vm9261_vm10 = vcmp.ne.s32.totalorder %v861_v50, 15  ;;  %v13328_v44 = vmov 0  ;;  %v1494_v22 = vmul.f32 %v8918_v57, %v9125_v10 }
 0x17a   : > { %13327 = vst [vmem:[#allocation26_spill] sm:$0xff] %v13326_v37  ;;  %v13329_v44 = vsel %vm9261_vm10, 4294967295, %v13328_v44  ;;  %v1495_v24 = vmul.f32 %v8918_v57, %v9148_v28  ;;  %v1562_v48 = vmul.f32 %v8933_v17, %v9150_v15  ;;  %v1563_v58 = vmul.f32 %v8933_v17, %v9152_v9 }
 0x17b   : > { %13330 = vst [vmem:[#allocation30_spill] sm:$0xff] %v13329_v44  ;;  %v1636_v26 = vmul.f32 %v9035_v3, %v9211_v63  ;;  %v9275_v6 = vadd.f32 %v2140_v30, %v2012_v11  ;;  %v9277_v59 = vadd.f32 %v2237_v42, %v2141_v36  ;;  %v1637_v39 = vmul.f32 %v8043_v56, %v9035_v3  ;;  %v9293_v11 = vld [vmem:[#allocation3 + $0x98] sm:$0xff] }
 0x17c   : > { %v1704_v10 = vmul.f32 %v9044_v60, %v9217_v55  ;;  %v7617_v28 = vld [vmem:[#allocation2 + $0x28] sm:$0xff]   ;;  %v1705_v9 = vmul.f32 %v8044_v54, %v9044_v60  ;;  %v1772_v50 = vmul.f32 %v9140_v53, %v9225_v2  ;;  %v1773_v32 = vmul.f32 %v9140_v53, %v9219_v38 }
 0x17d   : > { %v1668_v15 = vadd.f32 %v1636_v26, %v1426_v21  ;;  %v7428_v18 = vunpack.c.l.bf16 %v7617_v28  ;;  %v7429_v5 = vunpack.c.h.bf16 %v7617_v28  ;;  %v7226_v19 = vpack.c.bf16 %v9275_v6, %v9275_v6  ;;  %v13333_v54 = vld [vmem:[#allocation39_spill] sm:$0xff] }
 0x17e   : > { %v7227_v0 = vpack.c.bf16 %v9277_v59, %v9277_v59  ;;  %v1669_v21 = vadd.f32 %v1637_v39, %v1427_v7  ;;  %v1736_v30 = vadd.f32 %v1704_v10, %v1494_v22  ;;  %v1737_v36 = vadd.f32 %v1705_v9, %v1495_v24  ;;  %v13335_v39 = vld [vmem:[#allocation4_spill] sm:$0xff] }
 0x17f   : > { %v1804_v42 = vadd.f32 %v1772_v50, %v1562_v48  ;;  %v7802_v26 = vpack.i.bf16 %v7429_v5, %v7428_v18  ;;  %vm13331_vm12 = vcmask 11264   ;;  %v1805_v56 = vadd.f32 %v1773_v32, %v1563_v58  ;;  %v13336_v50 = vld [vmem:[#allocation48_spill] sm:$0xff] }
 0x180   : > { %2429 = vst.msk [vmem:[#allocation2 + $0x30] sm:$0xf] %vm13331_vm12, %v7226_v19  ;;  %vm13332_vm11 = vmmov %vm13331_vm12  ;;  %v1846_v28 = vmul.f32 %v8976_v16, %v9282_v34  ;;  %v1847_v4 = vmul.f32 %v8976_v16, %v13333_v54  ;;  %v1914_v35 = vmul.f32 %v8986_v29, %v9293_v11  ;;  %v1915_v7 = vmul.f32 %v8986_v29, %v13334_v1 }
 0x181   : > { %2430 = vst.msk [vmem:[#allocation2 + $0x34] sm:$0xf] %vm13332_vm11, %v7227_v0  ;;  %v1982_v22 = vmul.f32 %v9002_v8, %v9295_v46  ;;  %v1983_v24 = vmul.f32 %v9002_v8, %v9297_v41  ;;  %7803 = vrot.lane.b32.xlu1 %v7802_v26, %s8172_s17  ;;  %v736_v10 = vadd.s32 128, %v13335_v39  ;;  %v737_v9 = vadd.s32 136, %v13335_v39 }
 0x182   : > { %v1878_v48 = vadd.f32 %v1846_v28, %v1668_v15  ;;  %v1879_v58 = vadd.f32 %v1847_v4, %v1669_v21  ;;  %v9318_v32 = vadd.f32 %v8996_v43, %v13336_v50  ;;  %v1946_v18 = vadd.f32 %v1914_v35, %v1736_v30 }
 0x183   : > { %v1947_v1 = vadd.f32 %v1915_v7, %v1737_v36  ;;  %v2015_v5 = vadd.f32 %v1983_v24, %v1805_v56  ;;  %v2014_v19 = vadd.f32 %v1982_v22, %v1804_v42  ;;  %v868_v54 = vand.u32 15, %v736_v10  ;;  %v9340_v7 = vld [vmem:[#allocation3 + $0xa7] sm:$0xff] }
 0x184   : > { %v2110_v0 = vsel %vm9251_vm9, %v1878_v48, 0.0  ;;  %v875_v23 = vand.u32 15, %v737_v9  ;;  %v1428_v21 = vmul.f32 %v8907_v40, %v9211_v63  ;;  %v13337_v43 = vmov 0  ;;  %v9346_v48 = vld [vmem:[#allocation3 + $0xa8] sm:$0xff] }
 0x185   : > { %v2142_v26 = vadd.f32 %v2110_v0, %v1946_v18  ;;  %v2143_v15 = vadd.f32 %v1947_v1, %v1879_v58  ;;  %v2239_v4 = vsel %vm9261_vm10, %v2015_v5, 0.0  ;;  %vm9326_vm11 = vcmp.ne.s32.totalorder %v868_v54, 0  ;;  %v9356_v9 = vld [vmem:[#allocation3 + $0xa9] sm:$0xff] }
 0x186   : > { %v13338_v43 = vsel %vm9326_vm11, 4294967295, %v13337_v43  ;;  %v1496_v35 = vmul.f32 %v8918_v57, %v9217_v55  ;;  %v1564_v30 = vmul.f32 %v8933_v17, %v9225_v2  ;;  %v1565_v36 = vmul.f32 %v8933_v17, %v9219_v38 }
 0x187   : > { %13339 = vst [vmem:[#allocation29_spill] sm:$0xff] %v13338_v43  ;;  %v9336_v56 = vadd.f32 %v2142_v26, %v2014_v19  ;;  %v9338_v28 = vadd.f32 %v2239_v4, %v2143_v15  ;;  %v1638_v63 = vmul.f32 %v9035_v3, %v9282_v34  ;;  %v1706_v22 = vmul.f32 %v9044_v60, %v9293_v11  ;;  %v13345_v15 = vld [vmem:[#allocation46_spill] sm:$0xff] }
 0x188   : > { %v7618_v42 = vld [vmem:[#allocation2 + $0x30] sm:$0xff]   ;;  %v1774_v38 = vmul.f32 %v9140_v53, %v9295_v46  ;;  %v1775_v2 = vmul.f32 %v9140_v53, %v9297_v41  ;;  %vm9358_vm12 = vcmp.ne.s32.totalorder %v875_v23, 15  ;;  %v13340_v5 = vmov 0 }
 0x189   : > { %v7432_v55 = vunpack.c.l.bf16 %v7618_v42  ;;  %v7433_v24 = vunpack.c.h.bf16 %v7618_v42  ;;  %v7228_v58 = vpack.c.bf16 %v9336_v56, %v9336_v56  ;;  %v7229_v10 = vpack.c.bf16 %v9338_v28, %v9338_v28 }
 0x18a   : > { %v1670_v50 = vadd.f32 %v1638_v63, %v1428_v21  ;;  %v1738_v18 = vadd.f32 %v1706_v22, %v1496_v35  ;;  %v13341_v5 = vsel %vm9358_vm12, 4294967295, %v13340_v5  ;;  %v1806_v19 = vadd.f32 %v1774_v38, %v1564_v30 }
 0x18b   : > { %v7807_v1 = vpack.i.bf16 %v7433_v24, %v7432_v55  ;;  %13342 = vst [vmem:[#allocation9_spill] sm:$0xff] %v13341_v5  ;;  %v1848_v0 = vmul.f32 %v8976_v16, %v9340_v7  ;;  %vm13343_vm10 = vcmask 11264   ;;  %v1807_v54 = vadd.f32 %v1775_v2, %v1565_v36  ;;  %v8045_v5 = vld [vmem:[#allocation3 + $0xc1] sm:$0xff] }
 0x18c   : > { %2431 = vst.msk [vmem:[#allocation2 + $0x38] sm:$0xf] %vm13343_vm10, %v7228_v58  ;;  %vm13344_vm9 = vmmov %vm13343_vm10  ;;  %v1916_v26 = vmul.f32 %v8986_v29, %v9346_v48  ;;  %v1985_v4 = vmul.f32 %v9002_v8, %v13345_v15  ;;  %v738_v23 = vadd.s32 144, %v13335_v39  ;;  %v1984_v35 = vmul.f32 %v9002_v8, %v9356_v9  ;;  %v9381_v58 = vld [vmem:[#allocation3 + $0xb7] sm:$0xff] }
 0x18d   : > { %2432 = vst.msk [vmem:[#allocation2 + $0x3c] sm:$0xf] %vm13344_vm9, %v7229_v10  ;;  %7808 = vrot.lane.b32.xlu0 %v7807_v1, %s8172_s17  ;;  %v1880_v21 = vadd.f32 %v1848_v0, %v1670_v50  ;;  %v739_v30 = vadd.s32 152, %v13335_v39  ;;  %v1430_v42 = vmul.f32 %v8907_v40, %v9282_v34  ;;  %v1498_v55 = vmul.f32 %v8918_v57, %v9293_v11 }
 0x18e   : > { %v1948_v36 = vadd.f32 %v1916_v26, %v1738_v18  ;;  %v2017_v63 = vadd.f32 %v1985_v4, %v1807_v54  ;;  %v882_v22 = vand.u32 15, %v738_v23  ;;  %v2016_v24 = vadd.f32 %v1984_v35, %v1806_v19  ;;  %v9387_v18 = vld [vmem:[#allocation3 + $0xb8] sm:$0xff] }
 0x18f   : > { %v2112_v38 = vsel %vm9326_vm11, %v1880_v21, 0.0  ;;  %v889_v2 = vand.u32 15, %v739_v30  ;;  %v1566_v10 = vmul.f32 %v8933_v17, %v9295_v46  ;;  %v1567_v1 = vmul.f32 %v8933_v17, %v9297_v41  ;;  %v9408_v41 = vld [vmem:[#allocation3 + $0xb9] sm:$0xff] }
 0x190   : > { %v2144_v50 = vadd.f32 %v2112_v38, %v1948_v36  ;;  %v2241_v34 = vsel %vm9358_vm12, %v2017_v63, 0.0  ;;  %v1640_v11 = vmul.f32 %v9035_v3, %v9340_v7  ;;  %vm9396_vm9 = vcmp.ne.s32.totalorder %v882_v22, 0 }
 0x191   : > { %v9394_v19 = vadd.f32 %v2241_v34, %v9245_v52  ;;  %v13347_v0 = vmov 0  ;;  %vm9400_vm10 = vcmp.ne.s32.totalorder %v889_v2, 15  ;;  %v13350_v46 = vmov 0 }
 0x192   : > { %v13348_v0 = vsel %vm9396_vm9, 4294967295, %v13347_v0  ;;  %v13351_v46 = vsel %vm9400_vm10, 4294967295, %v13350_v46  ;;  %v1708_v54 = vmul.f32 %v9044_v60, %v9346_v48  ;;  %v9406_v26 = vadd.f32 %v2144_v50, %v2016_v24 }
 0x193   : > { %13346 = vst [vmem:[#allocation18_spill] sm:$0xff] %v9394_v19  ;;  %13349 = vst [vmem:[#allocation42_spill] sm:$0xff] %v13348_v0  ;;  %v1776_v4 = vmul.f32 %v9140_v53, %v9356_v9  ;;  %v1777_v52 = vmul.f32 %v9140_v53, %v13345_v15  ;;  %v1850_v23 = vmul.f32 %v8976_v16, %v9381_v58  ;;  %vm13353_vm12 = vcmask 11264  }
 0x194   : > { %13352 = vst [vmem:[#allocation49_spill] sm:$0xff] %v13351_v46  ;;  %v9416_v21 = vld [vmem:[#allocation2 + $0x38] sm:$0xff]   ;;  %v7231_v35 = vpack.c.bf16 %v9394_v19, %v9394_v19  ;;  %v1672_v30 = vadd.f32 %v1640_v11, %v1430_v42  ;;  %v1740_v36 = vadd.f32 %v1708_v54, %v1498_v55  ;;  %v1918_v63 = vmul.f32 %v8986_v29, %v9387_v18  ;;  %vm13354_vm11 = vmmov %vm13353_vm12  ;;  %v9432_v11 = vld [vmem:[#allocation3 + $0xc8] sm:$0xff] }
 0x195   : > { %v7436_v22 = vunpack.c.l.bf16 %v9416_v21  ;;  %v7230_v24 = vpack.c.bf16 %v9406_v26, %v9406_v26  ;;  %v1808_v38 = vadd.f32 %v1776_v4, %v1566_v10  ;;  %v1809_v15 = vadd.f32 %v1777_v52, %v1567_v1  ;;  %v1368_v10 = vld [vmem:[#allocation3 + $0xc7] sm:$0xff] }
 0x196   : > { %2434 = vst.msk [vmem:[#allocation2 + $0x44] sm:$0xf] %vm13353_vm12, %v7231_v35  ;;  %v1882_v2 = vadd.f32 %v1850_v23, %v1672_v30  ;;  %v1950_v50 = vadd.f32 %v1918_v63, %v1740_v36  ;;  %v1986_v34 = vmul.f32 %v9002_v8, %v9408_v41  ;;  %v1987_v42 = vmul.f32 %v8045_v5, %v9002_v8  ;;  %v9444_v63 = vld [vmem:[#allocation3 + $0xc9] sm:$0xff] }
 0x197   : > { %2573 = vrot.lane.b32.xlu1 %v7436_v22, %s8172_s17  ;;  %2433 = vst.msk [vmem:[#allocation2 + $0x40] sm:$0xf] %vm13354_vm11, %v7230_v24  ;;  %v740_v55 = vadd.s32 160, %v13335_v39  ;;  %v1432_v1 = vmul.f32 %v8907_v40, %v9340_v7  ;;  %v1500_v54 = vmul.f32 %v8918_v57, %v9346_v48  ;;  %v1568_v4 = vmul.f32 %v8933_v17, %v9356_v9  ;;  %v1614_v19 = vld [vmem:[#allocation3 + $0x107] sm:$0xff] }
 0x198   : > { %v2018_v52 = vadd.f32 %v1986_v34, %v1808_v38  ;;  %v2019_v5 = vadd.f32 %v1987_v42, %v1809_v15  ;;  %v2114_v23 = vsel %vm9396_vm9, %v1882_v2, 0.0  ;;  %v1642_v35 = vmul.f32 %v9035_v3, %v9381_v58 }
 0x199   : > { %v2146_v30 = vadd.f32 %v2114_v23, %v1950_v50  ;;  %v896_v36 = vand.u32 15, %v740_v55  ;;  %v1710_v7 = vmul.f32 %v9044_v60, %v9387_v18  ;;  %v1778_v48 = vmul.f32 %v9140_v53, %v9408_v41 }
 0x19a   : > { %v2243_v9 = vsel %vm9400_vm10, %v2019_v5, 0.0  ;;  %v1674_v22 = vadd.f32 %v1642_v35, %v1432_v1  ;;  %v1852_v24 = vmul.f32 %v8976_v16, %v1368_v10  ;;  %v1920_v38 = vmul.f32 %v8986_v29, %v9432_v11  ;;  %vm13359_vm10 = vmmov %vm13353_vm12 }
 0x19b   : > { %v9455_v15 = vadd.f32 %v2146_v30, %v2018_v52  ;;  %v9458_v2 = vadd.f32 %v2243_v9, %v9318_v32  ;;  %vm9460_vm11 = vcmp.ne.s32.totalorder %v896_v36, 0  ;;  %v13356_v50 = vmov 0 }
 0x19c   : > { %v13357_v50 = vsel %vm9460_vm11, 4294967295, %v13356_v50  ;;  %v1742_v34 = vadd.f32 %v1710_v7, %v1500_v54  ;;  %v1810_v42 = vadd.f32 %v1778_v48, %v1568_v4  ;;  %v1884_v55 = vadd.f32 %v1852_v24, %v1674_v22  ;;  %v1338_v4 = vld [vmem:[#allocation3 + $0xd8] sm:$0xff] }
 0x19d   : > { %13355 = vst [vmem:[#allocation10_spill] sm:$0xff] %v9458_v2  ;;  %13358 = vst [vmem:[#allocation11_spill] sm:$0xff] %v13357_v50  ;;  %v1988_v1 = vmul.f32 %v9002_v8, %v9444_v63  ;;  %v742_v5 = vadd.s32 176, %v13335_v39  ;;  %v7437_v23 = vunpack.c.h.bf16 %v9416_v21  ;;  %v7232_v52 = vpack.c.bf16 %v9455_v15, %v9455_v15  ;;  %v1370_v7 = vld [vmem:[#allocation3 + $0xd7] sm:$0xff] }
 0x19e   : > { %v7233_v32 = vpack.c.bf16 %v9458_v2, %v9458_v2  ;;  %v1952_v35 = vadd.f32 %v1920_v38, %v1742_v34  ;;  %v7620_v30 = vld [vmem:[#allocation2 + $0x40] sm:$0xff]   ;;  %v2116_v54 = vsel %vm9460_vm11, %v1884_v55, 0.0  ;;  %v1434_v48 = vmul.f32 %v8907_v40, %v9381_v58 }
 0x19f   : > { %v2020_v36 = vadd.f32 %v1988_v1, %v1810_v42  ;;  %v1502_v21 = vmul.f32 %v8918_v57, %v9387_v18  ;;  %v7440_v9 = vunpack.c.l.bf16 %v7620_v30  ;;  %2435 = vst.msk [vmem:[#allocation2 + $0x48] sm:$0xf] %vm13353_vm12, %v7232_v52  ;;  %v910_v24 = vand.u32 15, %v742_v5  ;;  %v1402_v38 = vld [vmem:[#allocation3 + $0xd9] sm:$0xff] }
 0x1a0   : > { %2436 = vst.msk [vmem:[#allocation2 + $0x4c] sm:$0xf] %vm13359_vm10, %v7233_v32  ;;  %v2148_v22 = vadd.f32 %v2116_v54, %v1952_v35  ;;  %v1570_v34 = vmul.f32 %v8933_v17, %v9408_v41  ;;  %v7441_v42 = vunpack.c.h.bf16 %v7620_v30  ;;  %v1644_v55 = vmul.f32 %v9035_v3, %v1368_v10 }
 0x1a1   : > { %v1712_v58 = vmul.f32 %v9044_v60, %v9432_v11  ;;  %v1780_v18 = vmul.f32 %v9140_v53, %v9444_v63  ;;  %v7812_v1 = vpack.i.bf16 %v7440_v9, %v7437_v23  ;;  %v1854_v52 = vmul.f32 %v8976_v16, %v1370_v7  ;;  %v1372_v9 = vld [vmem:[#allocation3 + $0xe7] sm:$0xff] }
 0x1a2   : > { %v9487_v50 = vadd.f32 %v2148_v22, %v2020_v36  ;;  %v1922_v5 = vmul.f32 %v8986_v29, %v1338_v4  ;;  %v1676_v32 = vadd.f32 %v1644_v55, %v1434_v48  ;;  %v1990_v41 = vmul.f32 %v9002_v8, %v1402_v38  ;;  %v9500_v36 = vld [vmem:[#allocation3 + $0xe8] sm:$0xff] }
 0x1a3   : > { %v1744_v35 = vadd.f32 %v1712_v58, %v1502_v21  ;;  %v1812_v54 = vadd.f32 %v1780_v18, %v1570_v34  ;;  %7813 = vrot.lane.b32.xlu0 %v7812_v1, %s8172_s17  ;;  %vm9495_vm10 = vcmp.ne.s32.totalorder %v910_v24, 0  ;;  %v13361_v46 = vmov 0  ;;  %v9503_v55 = vld [vmem:[#allocation3 + $0xe9] sm:$0xff] }
 0x1a4   : > { %13360 = vst [vmem:[#allocation12_spill] sm:$0xff] %v9487_v50  ;;  %v7234_v30 = vpack.c.bf16 %v9487_v50, %v9487_v50  ;;  %v13362_v46 = vsel %vm9495_vm10, 4294967295, %v13361_v46  ;;  %v744_v23 = vadd.s32 192, %v13335_v39  ;;  %v1436_v48 = vmul.f32 %v8907_v40, %v1368_v10  ;;  %v13418_v33 = vld [vmem:[#allocation10_spill] sm:$0xff] }
 0x1a5   : > { %13363 = vst [vmem:[#allocation13_spill] sm:$0xff] %v13362_v46  ;;  %v1886_v21 = vadd.f32 %v1854_v52, %v1676_v32  ;;  %v1954_v22 = vadd.f32 %v1922_v5, %v1744_v35  ;;  %v2022_v34 = vadd.f32 %v1990_v41, %v1812_v54  ;;  %v1504_v58 = vmul.f32 %v8918_v57, %v9432_v11 }
 0x1a6   : > { %2437 = vst.msk [vmem:[#allocation2 + $0x50] sm:$0xf] %vm13353_vm12, %v7234_v30  ;;  %v924_v24 = vand.u32 15, %v744_v23  ;;  %v1646_v18 = vmul.f32 %v9035_v3, %v1370_v7  ;;  %v1714_v1 = vmul.f32 %v9044_v60, %v1338_v4  ;;  %v1782_v0 = vmul.f32 %v9140_v53, %v1402_v38 }
 0x1a7   : > { %v7621_v43 = vld [vmem:[#allocation2 + $0x48] sm:$0xff]   ;;  %v2118_v10 = vsel %vm9495_vm10, %v1886_v21, 0.0  ;;  %v1572_v52 = vmul.f32 %v8933_v17, %v9444_v63  ;;  %v1856_v5 = vmul.f32 %v8976_v16, %v1372_v9  ;;  %v1924_v11 = vmul.f32 %v8986_v29, %v9500_v36  ;;  %v9521_v21 = vld [vmem:[#allocation3 + $0xf7] sm:$0xff] }
 0x1a8   : > { %v7444_v32 = vunpack.c.l.bf16 %v7621_v43  ;;  %v7445_v35 = vunpack.c.h.bf16 %v7621_v43  ;;  %v2150_v54 = vadd.f32 %v2118_v10, %v1954_v22  ;;  %v1992_v41 = vmul.f32 %v9002_v8, %v9503_v55 }
 0x1a9   : > { %v1678_v30 = vadd.f32 %v1646_v18, %v1436_v48  ;;  %v1746_v23 = vadd.f32 %v1714_v1, %v1504_v58  ;;  %v1814_v44 = vadd.f32 %v1782_v0, %v1572_v52  ;;  %v746_v46 = vadd.s32 208, %v13335_v39 }
 0x1aa   : > { %v7817_v37 = vpack.i.bf16 %v7444_v32, %v7441_v42  ;;  %v9523_v63 = vadd.f32 %v2150_v54, %v2022_v34  ;;  %vm9525_vm12 = vcmp.ne.s32.totalorder %v924_v24, 0  ;;  %v13365_v2 = vmov 0  ;;  %v1342_v42 = vld [vmem:[#allocation3 + $0xf8] sm:$0xff] }
 0x1ab   : > { %v13366_v2 = vsel %vm9525_vm12, 4294967295, %v13365_v2  ;;  %v1438_v43 = vmul.f32 %v8907_v40, %v1370_v7  ;;  %v1888_v22 = vadd.f32 %v1856_v5, %v1678_v30  ;;  %v1956_v10 = vadd.f32 %v1924_v11, %v1746_v23  ;;  %v1406_v34 = vld [vmem:[#allocation3 + $0xf9] sm:$0xff]  ;;  %v13417_v27 = vld [vmem:[#allocation12_spill] sm:$0xff] }
 0x1ac   : > { %13364 = vst [vmem:[#allocation16_spill] sm:$0xff] %v9523_v63  ;;  %13367 = vst [vmem:[#allocation20_spill] sm:$0xff] %v13366_v2  ;;  %v938_v50 = vand.u32 15, %v746_v46  ;;  %v1506_v48 = vmul.f32 %v8918_v57, %v1338_v4  ;;  %7818 = vrot.lane.b32.xlu1 %v7817_v37, %s8172_s17  ;;  %v7236_v0 = vpack.c.bf16 %v9523_v63, %v9523_v63  ;;  %vm13368_vm10 = vcmask 11264  }
 0x1ad   : > { %v2024_v58 = vadd.f32 %v1992_v41, %v1814_v44  ;;  %v1574_v24 = vmul.f32 %v8933_v17, %v1402_v38  ;;  %v1648_v18 = vmul.f32 %v9035_v3, %v1372_v9  ;;  %v7622_v1 = vld [vmem:[#allocation2 + $0x50] sm:$0xff]   ;;  %v2120_v7 = vsel %vm9525_vm12, %v1888_v22, 0.0 }
 0x1ae   : > { %v1716_v46 = vmul.f32 %v9044_v60, %v9500_v36  ;;  %v1784_v37 = vmul.f32 %v9140_v53, %v9503_v55  ;;  %v1858_v4 = vmul.f32 %v8976_v16, %v9521_v21  ;;  %v7448_v44 = vunpack.c.l.bf16 %v7622_v1  ;;  %2439 = vst.msk [vmem:[#allocation2 + $0x58] sm:$0xf] %vm13368_vm10, %v7236_v0 }
 0x1af   : > { %v2152_v52 = vadd.f32 %v2120_v7, %v1956_v10  ;;  %vm9545_vm11 = vcmp.ne.s32.totalorder %v938_v50, 0  ;;  %v13369_v38 = vmov 0  ;;  %v1680_v5 = vadd.f32 %v1648_v18, %v1438_v43  ;;  %v1612_v7 = vld [vmem:[#allocation3 + $0x108] sm:$0xff] }
 0x1b0   : > { %v13370_v38 = vsel %vm9545_vm11, 4294967295, %v13369_v38  ;;  %v1748_v11 = vadd.f32 %v1716_v46, %v1506_v48  ;;  %v1816_v32 = vadd.f32 %v1784_v37, %v1574_v24  ;;  %v1926_v54 = vmul.f32 %v8986_v29, %v1342_v42  ;;  %v1616_v24 = vld [vmem:[#allocation3 + $0x109] sm:$0xff] }
 0x1b1   : > { %13371 = vst [vmem:[#allocation33_spill] sm:$0xff] %v13370_v38  ;;  %v1994_v41 = vmul.f32 %v9002_v8, %v1406_v34  ;;  %v7822_v30 = vpack.i.bf16 %v7448_v44, %v7445_v35  ;;  %v9551_v23 = vadd.f32 %v2152_v52, %v2024_v58  ;;  %v1890_v22 = vadd.f32 %v1858_v4, %v1680_v5 }
 0x1b2   : > { %v748_v2 = vadd.s32 224, %v13335_v39  ;;  %v7449_v63 = vunpack.c.h.bf16 %v7622_v1  ;;  %v1958_v0 = vadd.f32 %v1926_v54, %v1748_v11  ;;  %v1440_v50 = vmul.f32 %v8907_v40, %v1372_v9  ;;  %v7779_v54 = vpop.permute.xlu0 %7778 }
 0x1b3   : > { %13372 = vst [vmem:[#allocation34_spill] sm:$0xff] %v9551_v23  ;;  %v2026_v10 = vadd.f32 %v1994_v41, %v1816_v32  ;;  %7823 = vrot.lane.b32.xlu0 %v7822_v30, %s8172_s17  ;;  %v7238_v43 = vpack.c.bf16 %v9551_v23, %v9551_v23  ;;  %v2122_v35 = vsel %vm9545_vm11, %v1890_v22, 0.0  ;;  %v1508_v58 = vmul.f32 %v8918_v57, %v9500_v36 }
 0x1b4   : > { %v952_v48 = vand.u32 15, %v748_v2  ;;  %v2154_v18 = vadd.f32 %v2122_v35, %v1958_v0  ;;  %v1650_v1 = vmul.f32 %v9035_v3, %v9521_v21  ;;  %v1718_v9 = vmul.f32 %v9044_v60, %v1342_v42 }
 0x1b5   : > { %v1786_v46 = vmul.f32 %v9140_v53, %v1406_v34  ;;  %2441 = vst.msk [vmem:[#allocation2 + $0x60] sm:$0xf] %vm13368_vm10, %v7238_v43  ;;  %v13373_v37 = vmov 0  ;;  %v1576_v2 = vmul.f32 %v8933_v17, %v9503_v55  ;;  %v1860_v36 = vmul.f32 %v8976_v16, %v1614_v19  ;;  %v7623_v44 = vld [vmem:[#allocation2 + $0x58] sm:$0xff]  }
 0x1b6   : > { %vm9567_vm12 = vcmp.ne.s32.totalorder %v952_v48, 0  ;;  %v1928_v4 = vmul.f32 %v8986_v29, %v1612_v7  ;;  %v9575_v52 = vadd.f32 %v2154_v18, %v2026_v10  ;;  %v1682_v5 = vadd.f32 %v1650_v1, %v1440_v50  ;;  %v1822_v10 = vld [vmem:[#allocation3 + $0x118] sm:$0xff] }
 0x1b7   : > { %v13374_v37 = vsel %vm9567_vm12, 4294967295, %v13373_v37  ;;  %v1750_v11 = vadd.f32 %v1718_v9, %v1508_v58  ;;  %v1996_v32 = vmul.f32 %v9002_v8, %v1616_v24  ;;  %v7452_v41 = vunpack.c.l.bf16 %v7623_v44  ;;  %v1824_v9 = vld [vmem:[#allocation3 + $0x117] sm:$0xff] }
 0x1b8   : > { %13375 = vst [vmem:[#allocation35_spill] sm:$0xff] %v13374_v37  ;;  %13376 = vst [vmem:[#allocation43_spill] sm:$0xff] %v9575_v52  ;;  %v7453_v30 = vunpack.c.h.bf16 %v7623_v44  ;;  %v1818_v22 = vadd.f32 %v1786_v46, %v1576_v2  ;;  %v750_v0 = vadd.s32 240, %v13335_v39  ;;  %v7240_v55 = vpack.c.bf16 %v9575_v52, %v9575_v52 }
 0x1b9   : > { %v1892_v43 = vadd.f32 %v1860_v36, %v1682_v5  ;;  %v1960_v35 = vadd.f32 %v1928_v4, %v1750_v11  ;;  %v1442_v48 = vmul.f32 %v8907_v40, %v9521_v21  ;;  %v7827_v18 = vpack.i.bf16 %v7452_v41, %v7449_v63  ;;  %v1826_v40 = vld [vmem:[#allocation3 + $0x119] sm:$0xff]  ;;  %v13381_v41 = vld [vmem:[#allocation27_spill] sm:$0xff] }
 0x1ba   : > { %v966_v50 = vand.u32 15, %v750_v0  ;;  %v1510_v58 = vmul.f32 %v8918_v57, %v1342_v42  ;;  %v1578_v1 = vmul.f32 %v8933_v17, %v1406_v34  ;;  %2443 = vst.msk [vmem:[#allocation2 + $0x68] sm:$0xf] %vm13368_vm10, %v7240_v55  ;;  %v1652_v46 = vmul.f32 %v9035_v3, %v1614_v19  ;;  %v13382_v0 = vld [vmem:[#allocation24_spill] sm:$0xff] }
 0x1bb   : > { %v2124_v39 = vsel %vm9567_vm12, %v1892_v43, 0.0  ;;  %v1720_v2 = vmul.f32 %v9044_v60, %v1612_v7  ;;  %v1788_v36 = vmul.f32 %v9140_v53, %v1616_v24  ;;  %7828 = vrot.lane.b32.xlu1 %v7827_v18, %s8172_s17  ;;  %v2028_v21 = vadd.f32 %v1996_v32, %v1818_v22  ;;  %v7784_v60 = vpop.permute.xlu0 %7783  ;;  %v13386_v18 = vld [vmem:[#allocation36_spill] sm:$0xff] }
 0x1bc   : > { %v2156_v63 = vadd.f32 %v2124_v39, %v1960_v35  ;;  %vm9592_vm11 = vcmp.ne.s32.totalorder %v966_v50, 0  ;;  %v13377_v57 = vmov 0  ;;  %v1930_v17 = vmul.f32 %v8986_v29, %v1822_v10  ;;  %v7624_v42 = vld [vmem:[#allocation2 + $0x60] sm:$0xff]  }
 0x1bd   : > { %v13378_v57 = vsel %vm9592_vm11, 4294967295, %v13377_v57  ;;  %v1684_v34 = vadd.f32 %v1652_v46, %v1442_v48  ;;  %v1752_v4 = vadd.f32 %v1720_v2, %v1510_v58  ;;  %v1820_v44 = vadd.f32 %v1788_v36, %v1578_v1  ;;  %v2746_v39 = vld [vmem:[#allocation3 + $0x7] sm:$0xff] }
 0x1be   : > { %13379 = vst [vmem:[#allocation45_spill] sm:$0xff] %v13378_v57  ;;  %v1862_v3 = vmul.f32 %v8976_v16, %v1824_v9  ;;  %v7456_v19 = vunpack.c.l.bf16 %v7624_v42  ;;  %v9598_v53 = vadd.f32 %v2156_v63, %v2028_v21  ;;  %v1998_v7 = vmul.f32 %v9002_v8, %v1826_v40  ;;  %v9622_v9 = vld [vmem:[%s12975_s2 + $0x9] ss:$0 sm:$0xff]  ;;  %v9628_v46 = vld [vmem:[%s12975_s2 + $0xa] ss:$0 sm:$0xff] }
 0x1bf   : > { %v1962_v5 = vadd.f32 %v1930_v17, %v1752_v4  ;;  %v8073_v29 = vadd.high.f32.bf16 %v13381_v41, %v7779_v54  ;;  %v8074_v55 = vadd.low.f32.bf16 %v13382_v0, %v7779_v54  ;;  %vm13383_vm12 = vcmask 15360   ;;  %v9633_v2 = vld [vmem:[%s12975_s2 + $0xb] ss:$0 sm:$0xff]  ;;  %v9639_v40 = vld [vmem:[%s12975_s2 + $0xc] ss:$0 sm:$0xff] }
 0x1c0   : > { %13380 = vst [vmem:[#allocation21_spill] sm:$0xff] %v9598_v53  ;;  %v1894_v24 = vadd.f32 %v1862_v3, %v1684_v34  ;;  %v7832_v11 = vpack.i.bf16 %v7456_v19, %v7453_v30  ;;  %v7242_v32 = vpack.c.bf16 %v9598_v53, %v9598_v53  ;;  %v2030_v43 = vadd.f32 %v1998_v7, %v1820_v44  ;;  %v13384_v30 = vld [vmem:[#allocation37_spill] sm:$0xff]  ;;  %vm13385_vm9 = vmmov %vm13383_vm12  ;;  %v2714_v36 = vld [vmem:[#allocation3 + $0x8] sm:$0xff] }
 0x1c1   : > { %v7625_v16 = vld [vmem:[#allocation2 + $0x68] sm:$0xff]   ;;  %2674 = vst.msk [vmem:[#allocation3 + $0x20] sm:$0xff] %vm13383_vm12, %v8073_v29  ;;  %v8075_v35 = vadd.high.f32.bf16 %v13384_v30, %v7784_v60  ;;  %v7457_v48 = vunpack.c.h.bf16 %v7624_v42  ;;  %v8076_v50 = vadd.low.f32.bf16 %v13386_v18, %v7784_v60  ;;  %vm13389_vm14 = vmmov %vm13385_vm9  ;;  %v2814_v4 = vmul.f32 %v9622_v9, %v2746_v39 }
 0x1c2   : > { %v2126_v22 = vsel %vm9592_vm11, %v1894_v24, 0.0  ;;  %7833 = vrot.lane.b32.xlu0 %v7832_v11, %s8172_s17  ;;  %2445 = vst.msk [vmem:[#allocation2 + $0x70] sm:$0xf] %vm13368_vm10, %v7242_v32  ;;  %v7460_v10 = vunpack.c.l.bf16 %v7625_v16  ;;  %vm13388_vm11 = vmmov %vm13385_vm9  ;;  %v9644_v21 = vld [vmem:[%s12975_s2 + $0xd] ss:$0 sm:$0xff]  ;;  %v7461_v44 = vunpack.c.h.bf16 %v7625_v16  ;;  %v2882_v24 = vmul.f32 %v9628_v46, %v2714_v36 }
 0x1c3   : > { %v2158_v8 = vadd.f32 %v2126_v22, %v1962_v5  ;;  %2673 = vst.msk [vmem:[#allocation3 + $0x18] sm:$0xff] %vm13385_vm9, %v8074_v55  ;;  %v9649_v63 = vld [vmem:[%s12975_s2 + $0xe] ss:$0 sm:$0xff]  ;;  %v9654_v42 = vld [vmem:[%s12975_s2 + $0xf] ss:$0 sm:$0xff]  ;;  %vm13394_vm12 = vmmov %vm13385_vm9 }
 0x1c4   : > { %2676 = vst.msk [vmem:[#allocation3 + $0x30] sm:$0xff] %vm13388_vm11, %v8075_v35  ;;  %v7837_v54 = vpack.i.bf16 %v7460_v10, %v7457_v48  ;;  %v2778_v34 = vld [vmem:[#allocation3 + $0x9] sm:$0xff]  ;;  %v9672_v11 = vld [vmem:[%s12975_s2 + $0x11] ss:$0 sm:$0xff]  ;;  %vm13393_vm11 = vmmov %vm13385_vm9 }
 0x1c5   : > { %v9613_v58 = vadd.f32 %v2158_v8, %v2030_v43  ;;  %2675 = vst.msk [vmem:[#allocation3 + $0x28] sm:$0xff] %vm13389_vm14, %v8076_v50  ;;  %vm13390_vm14 = vmmov %vm13368_vm10  ;;  %v9667_v5 = vld [vmem:[%s12975_s2 + $0x10] ss:$0 sm:$0xff]  ;;  %v2950_v16 = vmul.f32 %v9633_v2, %v2778_v34 }
 0x1c6   : > { %7838 = vrot.lane.b32.xlu1 %v7837_v54, %s8172_s17  ;;  %vm13395_vm10 = vmmov %vm13385_vm9 }
 0x1c7   : > { %13387 = vst [vmem:[#allocation39_spill] sm:$0xff] %v9613_v58  ;;  %v7244_v1 = vpack.c.bf16 %v9613_v58, %v9613_v58  ;;  %v13419_v58 = vld [vmem:[#allocation8_spill] sm:$0xff] }
 0x1c9   : > { %2447 = vst.msk [vmem:[#allocation2 + $0x78] sm:$0xf] %vm13390_vm14, %v7244_v1  ;;  %v7626_v17 = vld [vmem:[#allocation2 + $0x70] sm:$0xff]   ;;  %vm13398_vm14 = vmmov %vm13385_vm9 }
 0x1ca   : > { %v7464_v3 = vunpack.c.l.bf16 %v7626_v17  ;;  %v9657_v60 = vld [vmem:[#allocation3 + $0x18] sm:$0xff]  ;;  %v7465_v35 = vunpack.c.h.bf16 %v7626_v17 }
 0x1cb   : > { %v9659_v19 = vld [vmem:[#allocation3 + $0x17] sm:$0xff]  ;;  %v3092_v41 = vmul.f32 %v9644_v21, %v9657_v60 }
 0x1cc   : > { %v9661_v7 = vld [vmem:[#allocation3 + $0x19] sm:$0xff]  ;;  %v3024_v32 = vmul.f32 %v9639_v40, %v9659_v19  ;;  %v7842_v29 = vpack.i.bf16 %v7464_v3, %v7461_v44  ;;  %v9678_v22 = vld [vmem:[#allocation3 + $0x28] sm:$0xff] }
 0x1cd   : > { %v9680_v0 = vld [vmem:[#allocation3 + $0x27] sm:$0xff]  ;;  %v3160_v43 = vmul.f32 %v9649_v63, %v9661_v7  ;;  %v3124_v48 = vadd.f32 %v3092_v41, %v2882_v24  ;;  %v3302_v10 = vmul.f32 %v9667_v5, %v9678_v22 }
 0x1ce   : > { %v9682_v55 = vld [vmem:[#allocation3 + $0x29] sm:$0xff]  ;;  %v3056_v8 = vadd.f32 %v3024_v32, %v2814_v4  ;;  %v3234_v30 = vmul.f32 %v9654_v42, %v9680_v0  ;;  %7843 = vrot.lane.b32.xlu0 %v7842_v29, %s8172_s17  ;;  %v3026_v4 = vmul.f32 %v9639_v40, %v9680_v0 }
 0x1cf   : > { %v3370_v18 = vmul.f32 %v9672_v11, %v9682_v55  ;;  %v3192_v36 = vadd.f32 %v3160_v43, %v2950_v16  ;;  %v3334_v34 = vadd.f32 %v3302_v10, %v3124_v48  ;;  %v2715_v29 = vld [vmem:[#allocation3 + $0x10] sm:$0xff]  ;;  %v2749_v16 = vld [vmem:[#allocation3 + $0x1f] sm:$0xff] }
 0x1d0   : > { %v7627_v50 = vld [vmem:[#allocation2 + $0x78] sm:$0xff]   ;;  %v3266_v54 = vadd.f32 %v3234_v30, %v3056_v8  ;;  %v2717_v8 = vld [vmem:[#allocation3 + $0x20] sm:$0xff]  ;;  %v2747_v30 = vld [vmem:[#allocation3 + $0xf] sm:$0xff]  ;;  %v2883_v10 = vmul.f32 %v9628_v46, %v2715_v29 }
 0x1d1   : > { %v7468_v1 = vunpack.c.l.bf16 %v7627_v50  ;;  %v7469_v39 = vunpack.c.h.bf16 %v7627_v50  ;;  %v3402_v17 = vadd.f32 %v3370_v18, %v3192_v36  ;;  %v9703_v43 = vld [vmem:[#allocation3 + $0x30] sm:$0xff]  ;;  %v2815_v48 = vmul.f32 %v9622_v9, %v2747_v30 }
 0x1d2   : > { %v3434_v44 = vsel %vm8397_vm4, %v3266_v54, 0.0  ;;  %v3025_v18 = vmul.f32 %v9639_v40, %v2749_v16  ;;  %v3093_v50 = vmul.f32 %v9644_v21, %v2717_v8  ;;  %v7789_v54 = vpop.permute.xlu1 %7788  ;;  %v3303_v36 = vmul.f32 %v9667_v5, %v9703_v43 }
 0x1d3   : > { %v7847_v3 = vpack.i.bf16 %v7468_v1, %v7465_v35  ;;  %2607 = vrot.lane.b32.xlu0 %v7469_v39, %s8172_s17  ;;  %v3466_v24 = vadd.f32 %v3434_v44, %v3334_v34  ;;  %v9705_v35 = vld [vmem:[#allocation3 + $0x2f] sm:$0xff]  ;;  %v2781_v1 = vld [vmem:[#allocation3 + $0x21] sm:$0xff]  ;;  %v8077_v34 = vadd.high.f32.bf16 %v8955_v51, %v7789_v54  ;;  %v8078_v44 = vadd.low.f32.bf16 %v8945_v45, %v7789_v54 }
 0x1d4   : > { %v3235_v39 = vmul.f32 %v9654_v42, %v9705_v35  ;;  %v3094_v51 = vmul.f32 %v9644_v21, %v9678_v22  ;;  %v2816_v45 = vmul.f32 %v9622_v9, %v9659_v19  ;;  %v2885_v54 = vmul.f32 %v9628_v46, %v2717_v8 }
 0x1d5   : > { %7848 = vrot.lane.b32.xlu1 %v7847_v3, %s8172_s17  ;;  %v9698_v32 = vadd.f32 %v3466_v24, %v3402_v17  ;;  %v2779_v3 = vld [vmem:[#allocation3 + $0x11] sm:$0xff]  ;;  %v3057_v17 = vadd.f32 %v3025_v18, %v2815_v48  ;;  %v3125_v24 = vadd.f32 %v3093_v50, %v2883_v10  ;;  %2678 = vst.msk [vmem:[#allocation3 + $0x40] sm:$0xff] %vm13385_vm9, %v8077_v34  ;;  %s7181_s17 = sshll.u32 %s13697_s16, 8 }
 0x1d6   : > { %2677 = vst.msk [vmem:[#allocation3 + $0x38] sm:$0xff] %vm13393_vm11, %v8078_v44  ;;  %v3162_v48 = vmul.f32 %v9649_v63, %v9682_v55  ;;  %v3027_v10 = vmul.f32 %v9639_v40, %v9705_v35  ;;  %v2884_v50 = vmul.f32 %v9628_v46, %v9657_v60  ;;  %v2952_v19 = vmul.f32 %v9633_v2, %v9661_v7  ;;  %vm13400_vm11 = vmmov %vm13385_vm9 }
 0x1d7   : > { %13392 = vst [vmem:[#allocation38_spill] sm:$0xff] %v9698_v32  ;;  %v7246_v41 = vpack.c.bf16 %v9698_v32, %v9698_v32  ;;  %v3267_v29 = vadd.f32 %v3235_v39, %v3057_v17  ;;  %v3335_v30 = vadd.f32 %v3303_v36, %v3125_v24  ;;  %v2951_v32 = vmul.f32 %v9633_v2, %v2779_v3 }
 0x1d8   : > { %v3095_v39 = vmul.f32 %v9644_v21, %v9703_v43  ;;  %v3058_v44 = vadd.f32 %v3026_v4, %v2816_v45  ;;  %v2817_v3 = vmul.f32 %v9622_v9, %v2749_v16  ;;  %v3126_v17 = vadd.f32 %v3094_v51, %v2884_v50 }
 0x1d9   : > { %3658 = vrot.lane.b32.xlu1 %v7246_v41, %s8173_s5  ;;  %v3161_v41 = vmul.f32 %v9649_v63, %v2781_v1  ;;  %v3467_v34 = vadd.f32 %v3335_v30, %v3267_v29  ;;  %v2953_v24 = vmul.f32 %v9633_v2, %v2781_v1  ;;  %v2818_v60 = vmul.f32 %v9622_v9, %v9680_v0 }
 0x1da   : > { %v7794_v36 = vpop.permute.xlu1 %7793  ;;  %v2886_v8 = vmul.f32 %v9628_v46, %v9678_v22  ;;  %v3127_v16 = vadd.f32 %v3095_v39, %v2885_v54  ;;  %v2954_v1 = vmul.f32 %v9633_v2, %v9682_v55  ;;  %v2887_v38 = vmul.f32 %v9628_v46, %v9703_v43 }
 0x1db   : > { %v3193_v18 = vadd.f32 %v3161_v41, %v2951_v32  ;;  %v3194_v32 = vadd.f32 %v3162_v48, %v2952_v19  ;;  %v3059_v41 = vadd.f32 %v3027_v10, %v2817_v3  ;;  %v8079_v57 = vadd.high.f32.bf16 %v9050_v13, %v7794_v36 }
 0x1dc   : > { %v8080_v29 = vadd.low.f32.bf16 %v9048_v14, %v7794_v36  ;;  %v9756_v13 = vld [vmem:[#allocation3 + $0x40] sm:$0xff]  ;;  %v2819_v3 = vmul.f32 %v9622_v9, %v9705_v35 }
 0x1dd   : > { %v2783_v30 = vld [vmem:[#allocation3 + $0x31] sm:$0xff]  ;;  %v9751_v45 = vld [vmem:[#allocation3 + $0x39] sm:$0xff]  ;;  %2680 = vst.msk [vmem:[#allocation3 + $0x50] sm:$0xff] %vm13394_vm12, %v8079_v57  ;;  %v3305_v50 = vmul.f32 %v9667_v5, %v9756_v13  ;;  %vm13401_vm12 = vmmov %vm13385_vm9 }
 0x1de   : > { %v9746_v7 = vld [vmem:[#allocation3 + $0x38] sm:$0xff]  ;;  %v3371_v51 = vmul.f32 %v9672_v11, %v2783_v30  ;;  %v3163_v48 = vmul.f32 %v9649_v63, %v2783_v30  ;;  %2679 = vst.msk [vmem:[#allocation3 + $0x48] sm:$0xff] %vm13395_vm10, %v8080_v29  ;;  %v3372_v55 = vmul.f32 %v9672_v11, %v9751_v45  ;;  %v2955_v43 = vmul.f32 %v9633_v2, %v2783_v30  ;;  %vm13402_vm10 = vmmov %vm13385_vm9 }
 0x1df   : > { %v2752_v4 = vld [vmem:[#allocation3 + $0x37] sm:$0xff]  ;;  %v3304_v22 = vmul.f32 %v9667_v5, %v9746_v7  ;;  %v9758_v14 = vld [vmem:[#allocation3 + $0x3f] sm:$0xff]  ;;  %v3337_v29 = vadd.f32 %v3305_v50, %v3127_v16 }
 0x1e0   : > { %v3236_v0 = vmul.f32 %v9654_v42, %v2752_v4  ;;  %v3237_v10 = vmul.f32 %v9654_v42, %v9758_v14  ;;  %v3028_v54 = vmul.f32 %v9639_v40, %v2752_v4  ;;  %v3403_v39 = vadd.f32 %v3371_v51, %v3193_v18 }
 0x1e1   : > { %v3336_v19 = vadd.f32 %v3304_v22, %v3126_v17  ;;  %v3195_v57 = vadd.f32 %v3163_v48, %v2953_v24  ;;  %v3096_v18 = vmul.f32 %v9644_v21, %v9746_v7  ;;  %v3404_v35 = vadd.f32 %v3372_v55, %v3194_v32 }
 0x1e2   : > { %v3268_v36 = vadd.f32 %v3236_v0, %v3058_v44  ;;  %v3269_v37 = vadd.f32 %v3237_v10, %v3059_v41  ;;  %v3499_v53 = vsel %vm8473_vm5, %v3403_v39, 0.0  ;;  %v3164_v44 = vmul.f32 %v9649_v63, %v9751_v45 }
 0x1e3   : > { %v9782_v17 = vadd.f32 %v3499_v53, %v3467_v34  ;;  %v3060_v41 = vadd.f32 %v3028_v54, %v2818_v60  ;;  %v3029_v0 = vmul.f32 %v9639_v40, %v9758_v14  ;;  %v3097_v22 = vmul.f32 %v9644_v21, %v9756_v13 }
 0x1e4   : > { %v3436_v23 = vsel %vm8523_vm7, %v3268_v36, 0.0  ;;  %v3469_v51 = vadd.f32 %v3337_v29, %v3269_v37  ;;  %v3128_v32 = vadd.f32 %v3096_v18, %v2886_v8  ;;  %v3196_v37 = vadd.f32 %v3164_v44, %v2954_v1 }
 0x1e5   : > { %v3468_v24 = vadd.f32 %v3436_v23, %v3336_v19  ;;  %v7247_v48 = vpack.c.bf16 %v9782_v17, %v9782_v17  ;;  %v2785_v53 = vld [vmem:[#allocation3 + $0x41] sm:$0xff]  ;;  %v3061_v60 = vadd.f32 %v3029_v0, %v2819_v3  ;;  %v3129_v30 = vadd.f32 %v3097_v22, %v2887_v38  ;;  %v9803_v36 = vld [vmem:[#allocation3 + $0x49] sm:$0xff] }
 0x1e6   : > { %v7799_v16 = vpop.permute.xlu0 %7798  ;;  %v9793_v34 = vld [vmem:[#allocation3 + $0x48] sm:$0xff]  ;;  %v3373_v39 = vmul.f32 %v9672_v11, %v2785_v53  ;;  %v9805_v19 = vld [vmem:[#allocation3 + $0x50] sm:$0xff]  ;;  %v2820_v8 = vmul.f32 %v9622_v9, %v2752_v4  ;;  %v3165_v3 = vmul.f32 %v9649_v63, %v2785_v53  ;;  %v2888_v4 = vmul.f32 %v9628_v46, %v9746_v7 }
 0x1e7   : > { %v9791_v10 = vadd.f32 %v3468_v24, %v3404_v35  ;;  %v9795_v23 = vld [vmem:[#allocation3 + $0x47] sm:$0xff]  ;;  %v8081_v55 = vadd.high.f32.bf16 %v9123_v25, %v7799_v16  ;;  %v8082_v50 = vadd.low.f32.bf16 %v9121_v12, %v7799_v16  ;;  %3660 = vrot.lane.b32.xlu0 %v7247_v48, %s8173_s5  ;;  %v9807_v29 = vld [vmem:[#allocation3 + $0x4f] sm:$0xff]  ;;  %v3306_v25 = vmul.f32 %v9667_v5, %v9793_v34 }
 0x1e8   : > { %v3238_v38 = vmul.f32 %v9654_v42, %v9795_v23  ;;  %v3374_v12 = vmul.f32 %v9672_v11, %v9803_v36  ;;  %v3405_v1 = vadd.f32 %v3373_v39, %v3195_v57  ;;  %v3239_v18 = vmul.f32 %v9654_v42, %v9807_v29 }
 0x1e9   : > { %v7248_v54 = vpack.c.bf16 %v9791_v10, %v9791_v10  ;;  %2682 = vst.msk [vmem:[#allocation3 + $0x60] sm:$0xff] %vm13398_vm14, %v8081_v55  ;;  %v3307_v44 = vmul.f32 %v9667_v5, %v9805_v19  ;;  %v3338_v24 = vadd.f32 %v3306_v25, %v3128_v32  ;;  %v2956_v16 = vmul.f32 %v9633_v2, %v9751_v45  ;;  %vm13403_vm14 = vmmov %vm13385_vm9 }
 0x1ea   : > { %2681 = vst.msk [vmem:[#allocation3 + $0x58] sm:$0xff] %vm13385_vm9, %v8082_v50  ;;  %v3270_v35 = vadd.f32 %v3238_v38, %v3060_v41  ;;  %v3501_v22 = vsel %vm8550_vm8, %v3405_v1, 0.0  ;;  %v3271_v57 = vadd.f32 %v3239_v18, %v3061_v60  ;;  %v3030_v55 = vmul.f32 %v9639_v40, %v9795_v23 }
 0x1eb   : > { %3662 = vrot.lane.b32.xlu1 %v7248_v54, %s8173_s5  ;;  %v3339_v48 = vadd.f32 %v3307_v44, %v3129_v30  ;;  %v9832_v50 = vadd.f32 %v3501_v22, %v3469_v51  ;;  %v3098_v32 = vmul.f32 %v9644_v21, %v9793_v34  ;;  %v3166_v7 = vmul.f32 %v9649_v63, %v9803_v36 }
 0x1ec   : > { %v3438_v41 = vsel %vm8807_vm15, %v3270_v35, 0.0  ;;  %v3406_v45 = vadd.f32 %v3374_v12, %v3196_v37  ;;  %v3197_v39 = vadd.f32 %v3165_v3, %v2955_v43  ;;  %v3062_v30 = vadd.f32 %v3030_v55, %v2820_v8 }
 0x1ed   : > { %v3470_v54 = vadd.f32 %v3438_v41, %v3338_v24  ;;  %v3471_v38 = vadd.f32 %v3339_v48, %v3271_v57  ;;  %v7249_v60 = vpack.c.bf16 %v9832_v50, %v9832_v50  ;;  %v3130_v25 = vadd.f32 %v3098_v32, %v2888_v4 }
 0x1ee   : > { %v2821_v51 = vmul.f32 %v9622_v9, %v9758_v14  ;;  %v3198_v44 = vadd.f32 %v3166_v7, %v2956_v16  ;;  %v2889_v35 = vmul.f32 %v9628_v46, %v9756_v13  ;;  %v2957_v37 = vmul.f32 %v9633_v2, %v2785_v53 }
 0x1ef   : > { %v9844_v18 = vadd.f32 %v3470_v54, %v3406_v45  ;;  %3664 = vrot.lane.b32.xlu0 %v7249_v60, %s8173_s5  ;;  %v3031_v8 = vmul.f32 %v9639_v40, %v9807_v29  ;;  %v3099_v14 = vmul.f32 %v9644_v21, %v9805_v19  ;;  %v2822_v32 = vmul.f32 %v9622_v9, %v9795_v23 }
 0x1f0   : > { %v9864_v22 = vld [vmem:[#allocation3 + $0x60] sm:$0xff]  ;;  %v2890_v60 = vmul.f32 %v9628_v46, %v9793_v34 }
 0x1f1   : > { %v2787_v43 = vld [vmem:[#allocation3 + $0x51] sm:$0xff]  ;;  %v7250_v24 = vpack.c.bf16 %v9844_v18, %v9844_v18  ;;  %v9859_v13 = vld [vmem:[#allocation3 + $0x59] sm:$0xff]  ;;  %v3309_v23 = vmul.f32 %v9667_v5, %v9864_v22  ;;  %v3131_v34 = vadd.f32 %v3099_v14, %v2889_v35 }
 0x1f2   : > { %v9850_v12 = vld [vmem:[#allocation3 + $0x58] sm:$0xff]  ;;  %v3375_v4 = vmul.f32 %v9672_v11, %v2787_v43  ;;  %v3376_v41 = vmul.f32 %v9672_v11, %v9859_v13 }
 0x1f3   : > { %v7804_v1 = vpop.permute.xlu1 %7803  ;;  %v2756_v3 = vld [vmem:[#allocation3 + $0x57] sm:$0xff]  ;;  %v3308_v16 = vmul.f32 %v9667_v5, %v9850_v12  ;;  %v9866_v57 = vld [vmem:[#allocation3 + $0x5f] sm:$0xff]  ;;  %3666 = vrot.lane.b32.xlu1 %v7250_v24, %s8173_s5 }
 0x1f4   : > { %v3240_v53 = vmul.f32 %v9654_v42, %v2756_v3  ;;  %v8083_v48 = vadd.high.f32.bf16 %v9209_v31, %v7804_v1  ;;  %v8084_v55 = vadd.low.f32.bf16 %v9207_v49, %v7804_v1  ;;  %v3407_v7 = vadd.f32 %v3375_v4, %v3197_v39 }
 0x1f5   : > { %v3340_v54 = vadd.f32 %v3308_v16, %v3130_v25  ;;  %v3063_v31 = vadd.f32 %v3031_v8, %v2821_v51  ;;  %v3167_v49 = vmul.f32 %v9649_v63, %v2787_v43  ;;  %v3241_v1 = vmul.f32 %v9654_v42, %v9866_v57 }
 0x1f6   : > { %v3272_v45 = vadd.f32 %v3240_v53, %v3062_v30  ;;  %2684 = vst.msk [vmem:[#allocation3 + $0x70] sm:$0xff] %vm13400_vm11, %v8083_v48  ;;  %v3503_v39 = vsel %vm8833_vm0, %v3407_v7, 0.0  ;;  %v3032_v25 = vmul.f32 %v9639_v40, %v2756_v3  ;;  %v3408_v51 = vadd.f32 %v3376_v41, %v3198_v44 }
 0x1f7   : > { %2683 = vst.msk [vmem:[#allocation3 + $0x68] sm:$0xff] %vm13401_vm12, %v8084_v55  ;;  %v9889_v24 = vadd.f32 %v3503_v39, %v3471_v38  ;;  %v3273_v4 = vadd.f32 %v3241_v1, %v3063_v31  ;;  %v3341_v53 = vadd.f32 %v3309_v23, %v3131_v34  ;;  %v2958_v16 = vmul.f32 %v9633_v2, %v9803_v36  ;;  %vm13411_vm12 = vmmov %vm13385_vm9 }
 0x1f8   : > { %v3440_v30 = vsel %vm8900_vm1, %v3272_v45, 0.0  ;;  %v3100_v48 = vmul.f32 %v9644_v21, %v9850_v12  ;;  %v3168_v55 = vmul.f32 %v9649_v63, %v9859_v13  ;;  %v3199_v38 = vadd.f32 %v3167_v49, %v2957_v37 }
 0x1f9   : > { %v3472_v8 = vadd.f32 %v3440_v30, %v3340_v54  ;;  %v7251_v35 = vpack.c.bf16 %v9889_v24, %v9889_v24  ;;  %v3064_v7 = vadd.f32 %v3032_v25, %v2822_v32  ;;  %v3473_v41 = vadd.f32 %v3341_v53, %v3273_v4 }
 0x1fa   : > { %v3132_v45 = vadd.f32 %v3100_v48, %v2890_v60  ;;  %v2823_v54 = vmul.f32 %v9622_v9, %v9807_v29  ;;  %v2891_v36 = vmul.f32 %v9628_v46, %v9805_v19  ;;  %v3033_v1 = vmul.f32 %v9639_v40, %v9866_v57 }
 0x1fb   : > { %v9899_v14 = vadd.f32 %v3472_v8, %v3408_v51  ;;  %3668 = vrot.lane.b32.xlu0 %v7251_v35, %s8173_s5  ;;  %v3200_v60 = vadd.f32 %v3168_v55, %v2958_v16  ;;  %v2959_v49 = vmul.f32 %v9633_v2, %v2787_v43  ;;  %v3101_v29 = vmul.f32 %v9644_v21, %v9864_v22 }
 0x1fc   : > { %v2824_v19 = vmul.f32 %v9622_v9, %v2756_v3 }
 0x1fd   : > { %v7252_v31 = vpack.c.bf16 %v9899_v14, %v9899_v14  ;;  %v9926_v8 = vld [vmem:[#allocation3 + $0x70] sm:$0xff]  ;;  %v3133_v4 = vadd.f32 %v3101_v29, %v2891_v36 }
 0x1fe   : > { %v2789_v23 = vld [vmem:[#allocation3 + $0x61] sm:$0xff]  ;;  %v9922_v25 = vld [vmem:[#allocation3 + $0x69] sm:$0xff] }
 0x1ff   : > { %v7809_v44 = vpop.permute.xlu0 %7808  ;;  %v9910_v37 = vld [vmem:[#allocation3 + $0x68] sm:$0xff]  ;;  %3670 = vrot.lane.b32.xlu1 %v7252_v31, %s8173_s5  ;;  %v3377_v34 = vmul.f32 %v9672_v11, %v2789_v23  ;;  %v3169_v48 = vmul.f32 %v9649_v63, %v2789_v23  ;;  %v2892_v31 = vmul.f32 %v9628_v46, %v9850_v12 }
 0x200   : > { %v9912_v32 = vld [vmem:[#allocation3 + $0x67] sm:$0xff]  ;;  %v8085_v39 = vadd.high.f32.bf16 %v9277_v59, %v7809_v44  ;;  %v8086_v30 = vadd.low.f32.bf16 %v9275_v6, %v7809_v44  ;;  %v9928_v43 = vld [vmem:[#allocation3 + $0x6f] sm:$0xff]  ;;  %v3310_v3 = vmul.f32 %v9667_v5, %v9910_v37  ;;  %v3378_v59 = vmul.f32 %v9672_v11, %v9922_v25 }
 0x201   : > { %v3242_v51 = vmul.f32 %v9654_v42, %v9912_v32  ;;  %v3065_v6 = vadd.f32 %v3033_v1, %v2823_v54  ;;  %v3409_v53 = vadd.f32 %v3377_v34, %v3199_v38  ;;  %v3243_v55 = vmul.f32 %v9654_v42, %v9928_v43 }
 0x202   : > { %2686 = vst.msk [vmem:[#allocation3 + $0x80] sm:$0xff] %vm13402_vm10, %v8085_v39  ;;  %v3342_v35 = vadd.f32 %v3310_v3, %v3132_v45  ;;  %v3311_v44 = vmul.f32 %v9667_v5, %v9926_v8  ;;  %v3034_v54 = vmul.f32 %v9639_v40, %v9912_v32  ;;  %v2960_v1 = vmul.f32 %v9633_v2, %v9859_v13  ;;  %vm13412_vm10 = vmmov %vm13385_vm9 }
 0x203   : > { %2685 = vst.msk [vmem:[#allocation3 + $0x78] sm:$0xff] %vm13403_vm14, %v8086_v30  ;;  %v3274_v16 = vadd.f32 %v3242_v51, %v3064_v7  ;;  %v3505_v36 = vsel %vm8924_vm3, %v3409_v53, 0.0  ;;  %v3275_v7 = vadd.f32 %v3243_v55, %v3065_v6  ;;  %v3410_v29 = vadd.f32 %v3378_v59, %v3200_v60 }
 0x204   : > { %v9951_v45 = vadd.f32 %v3505_v36, %v3473_v41  ;;  %v3343_v30 = vadd.f32 %v3311_v44, %v3133_v4  ;;  %v3201_v12 = vadd.f32 %v3169_v48, %v2959_v49  ;;  %v3066_v51 = vadd.f32 %v3034_v54, %v2824_v19 }
 0x205   : > { %v3442_v38 = vsel %vm9008_vm2, %v3274_v16, 0.0  ;;  %v3102_v3 = vmul.f32 %v9644_v21, %v9910_v37  ;;  %v3170_v53 = vmul.f32 %v9649_v63, %v9922_v25  ;;  %v2825_v41 = vmul.f32 %v9622_v9, %v9866_v57 }
 0x206   : > { %v3474_v39 = vadd.f32 %v3442_v38, %v3342_v35  ;;  %v7253_v6 = vpack.c.bf16 %v9951_v45, %v9951_v45  ;;  %v3475_v60 = vadd.f32 %v3343_v30, %v3275_v7  ;;  %v2893_v49 = vmul.f32 %v9628_v46, %v9864_v22 }
 0x207   : > { %v3134_v59 = vadd.f32 %v3102_v3, %v2892_v31  ;;  %v3035_v19 = vmul.f32 %v9639_v40, %v9928_v43  ;;  %v3202_v57 = vadd.f32 %v3170_v53, %v2960_v1  ;;  %v2961_v35 = vmul.f32 %v9633_v2, %v2789_v23 }
 0x208   : > { %v9960_v13 = vadd.f32 %v3474_v39, %v3410_v29  ;;  %3672 = vrot.lane.b32.xlu0 %v7253_v6, %s8173_s5  ;;  %v3103_v22 = vmul.f32 %v9644_v21, %v9926_v8 }
 0x209   : > { %v2574_v34 = vpop.permute.xlu1 %2573  ;;  %v9986_v38 = vld [vmem:[#allocation3 + $0x80] sm:$0xff]  ;;  %v3067_v1 = vadd.f32 %v3035_v19, %v2825_v41  ;;  %v2826_v41 = vmul.f32 %v9622_v9, %v9912_v32  ;;  %v2894_v19 = vmul.f32 %v9628_v46, %v9910_v37 }
 0x20a   : > { %v2655_v16 = vadd.f32 %v2574_v34, %v9336_v56  ;;  %13404 = vst [vmem:[#allocation4_spill] sm:$0xff] %v9960_v13  ;;  %v7254_v56 = vpack.c.bf16 %v9960_v13, %v9960_v13  ;;  %v2791_v4 = vld [vmem:[#allocation3 + $0x71] sm:$0xff]  ;;  %v9980_v31 = vld [vmem:[#allocation3 + $0x79] sm:$0xff]  ;;  %v3135_v29 = vadd.f32 %v3103_v22, %v2893_v49 }
 0x20b   : > { %v9972_v48 = vld [vmem:[#allocation3 + $0x78] sm:$0xff]  ;;  %v3379_v44 = vmul.f32 %v9672_v11, %v2791_v4  ;;  %v3380_v23 = vmul.f32 %v9672_v11, %v9980_v31  ;;  %v3171_v39 = vmul.f32 %v9649_v63, %v2791_v4  ;;  %v13421_v13 = vld [vmem:[#allocation26_spill] sm:$0xff] }
 0x20c   : > { %2687 = vst.msk [vmem:[#allocation3 + $0x88] sm:$0xff] %vm13385_vm9, %v2655_v16  ;;  %v9974_v55 = vld [vmem:[#allocation3 + $0x77] sm:$0xff]  ;;  %v3312_v36 = vmul.f32 %v9667_v5, %v9972_v48  ;;  %v9988_v7 = vld [vmem:[#allocation3 + $0x7f] sm:$0xff]  ;;  %3674 = vrot.lane.b32.xlu1 %v7254_v56, %s8173_s5  ;;  %v3313_v16 = vmul.f32 %v9667_v5, %v9986_v38  ;;  %v3104_v32 = vmul.f32 %v9644_v21, %v9972_v48 }
 0x20d   : > { %v3244_v54 = vmul.f32 %v9654_v42, %v9974_v55  ;;  %v3245_v30 = vmul.f32 %v9654_v42, %v9988_v7  ;;  %v3411_v34 = vadd.f32 %v3379_v44, %v3201_v12  ;;  %v3412_v6 = vadd.f32 %v3380_v23, %v3202_v57 }
 0x20e   : > { %v3344_v53 = vadd.f32 %v3312_v36, %v3134_v59  ;;  %v3345_v12 = vadd.f32 %v3313_v16, %v3135_v29  ;;  %v3203_v44 = vadd.f32 %v3171_v39, %v2961_v35 }
 0x20f   : > { %v3276_v3 = vadd.f32 %v3244_v54, %v3066_v51  ;;  %v3277_v62 = vadd.f32 %v3245_v30, %v3067_v1  ;;  %v3507_v49 = vsel %vm9022_vm6, %v3411_v34, 0.0  ;;  %v3036_v51 = vmul.f32 %v9639_v40, %v9974_v55 }
 0x210   : > { %v10008_v59 = vadd.f32 %v3507_v49, %v3475_v60  ;;  %v3136_v34 = vadd.f32 %v3104_v32, %v2894_v19  ;;  %v2963_v49 = vmul.f32 %v9633_v2, %v2791_v4  ;;  %v3105_v32 = vmul.f32 %v9644_v21, %v9986_v38 }
 0x211   : > { %v3444_v22 = vsel %vm9097_vm13, %v3276_v3, 0.0  ;;  %v3068_v1 = vadd.f32 %v3036_v51, %v2826_v41  ;;  %v3477_v60 = vadd.f32 %v3345_v12, %v3277_v62  ;;  %v3172_v41 = vmul.f32 %v9649_v63, %v9980_v31 }
 0x212   : > { %13406 = vst [vmem:[#allocation48_spill] sm:$0xff] %v10008_v59  ;;  %v3476_v57 = vadd.f32 %v3444_v22, %v3344_v53  ;;  %v7255_v23 = vpack.c.bf16 %v10008_v59, %v10008_v59  ;;  %v13408_v22 = vld [vmem:[#allocation41_spill] sm:$0xff] }
 0x213   : > { %v2793_v54 = vld [vmem:[#allocation3 + $0x81] sm:$0xff]  ;;  %vm13409_vm11 = vnez %v13408_v22 }
 0x214   : > { %v2730_v36 = vld [vmem:[#allocation3 + $0x88] sm:$0xff]  ;;  %v10014_v30 = vadd.f32 %v3476_v57, %v3412_v6  ;;  %v3381_v29 = vmul.f32 %v9672_v11, %v2793_v54  ;;  %3676 = vrot.lane.b32.xlu0 %v7255_v23, %s8173_s5  ;;  %v3173_v4 = vmul.f32 %v9649_v63, %v2793_v54 }
 0x215   : > { %v2762_v37 = vld [vmem:[#allocation3 + $0x87] sm:$0xff]  ;;  %v7814_v3 = vpop.permute.xlu0 %7813  ;;  %v3314_v35 = vmul.f32 %v9667_v5, %v2730_v36 }
 0x216   : > { %13407 = vst [vmem:[#allocation46_spill] sm:$0xff] %v10014_v30  ;;  %v3246_v53 = vmul.f32 %v9654_v42, %v2762_v37  ;;  %v7256_v39 = vpack.c.bf16 %v10014_v30, %v10014_v30  ;;  %v3413_v16 = vadd.f32 %v3381_v29, %v3203_v44  ;;  %v8087_v19 = vadd.high.f32.bf16 %v9406_v26, %v7814_v3  ;;  %v13413_v26 = vld [vmem:[#allocation44_spill] sm:$0xff] }
 0x217   : > { %v8088_v62 = vadd.low.f32.bf16 %v9338_v28, %v7814_v3  ;;  %v3346_v51 = vadd.f32 %v3314_v35, %v3136_v34  ;;  %v3037_v44 = vmul.f32 %v9639_v40, %v9988_v7  ;;  %v2962_v28 = vmul.f32 %v9633_v2, %v9922_v25 }
 0x218   : > { %v3278_v6 = vadd.f32 %v3246_v53, %v3068_v1  ;;  %3678 = vrot.lane.b32.xlu1 %v7256_v39, %s8173_s5  ;;  %v3509_v12 = vsel %vm13409_vm11, %v3413_v16, 0.0  ;;  %2689 = vst.msk [vmem:[#allocation3 + $0x98] sm:$0xff] %vm13411_vm12, %v8087_v19  ;;  %vm13414_vm14 = vnez %v13413_v26  ;;  %v2827_v29 = vmul.f32 %v9622_v9, %v9928_v43  ;;  %vm13416_vm12 = vmmov %vm13385_vm9 }
 0x219   : > { %v10030_v57 = vadd.f32 %v3509_v12, %v3477_v60  ;;  %2688 = vst.msk [vmem:[#allocation3 + $0x90] sm:$0xff] %vm13412_vm10, %v8088_v62  ;;  %v2895_v34 = vmul.f32 %v9628_v46, %v9926_v8  ;;  %v3204_v3 = vadd.f32 %v3172_v41, %v2962_v28  ;;  %v2828_v60 = vmul.f32 %v9622_v9, %v9974_v55  ;;  %v3224_v41 = vld [vmem:[#allocation3 + $0x118] sm:$0xff] }
 0x21a   : > { %v3446_v1 = vsel %vm13414_vm14, %v3278_v6, 0.0  ;;  %v2896_v53 = vmul.f32 %v9628_v46, %v9972_v48  ;;  %v3038_v25 = vmul.f32 %v9639_v40, %v2762_v37  ;;  %v3069_v16 = vadd.f32 %v3037_v44, %v2827_v29  ;;  %v3228_v62 = vld [vmem:[#allocation3 + $0x119] sm:$0xff]  ;;  %vm13423_vm14 = vmmov %vm13416_vm12 }
 0x21b   : > { %13410 = vst [vmem:[#allocation27_spill] sm:$0xff] %v10030_v57  ;;  %v7257_v23 = vpack.c.bf16 %v10030_v57, %v10030_v57  ;;  %v3478_v39 = vadd.f32 %v3446_v1, %v3346_v51  ;;  %v3137_v6 = vadd.f32 %v3105_v32, %v2895_v34  ;;  %v3205_v19 = vadd.f32 %v3173_v4, %v2963_v49  ;;  %v3227_v55 = vld [vmem:[#allocation3 + $0x11f] sm:$0xff] }
 0x21c   : > { %v2964_v43 = vmul.f32 %v9633_v2, %v9980_v31  ;;  %v3106_v8 = vmul.f32 %v9644_v21, %v2730_v36  ;;  %v2829_v48 = vmul.f32 %v9622_v9, %v9988_v7  ;;  %v2897_v12 = vmul.f32 %v9628_v46, %v9986_v38  ;;  %v13415_v44 = vld [vmem:[#allocation18_spill] sm:$0xff] }
 0x21d   : > { %3680 = vrot.lane.b32.xlu0 %v7257_v23, %s8173_s5  ;;  %v2965_v28 = vmul.f32 %v9633_v2, %v2793_v54  ;;  %v10064_v51 = vmul.f32 %v9622_v9, %v2762_v37  ;;  %v3070_v32 = vadd.f32 %v3038_v25, %v2828_v60  ;;  %v10073_v7 = vmul.f32 %v9628_v46, %v2730_v36 }
 0x21e   : > { %v7819_v35 = vpop.permute.xlu1 %7818  ;;  %v3138_v4 = vadd.f32 %v3106_v8, %v2896_v53  ;;  %v10076_v38 = vmul.f32 %v9667_v5, %v3224_v41  ;;  %v10079_v54 = vmul.f32 %v9672_v11, %v3228_v62  ;;  %vm13420_vm10 = vnez %v13419_v58 }
 0x21f   : > { %v8089_v49 = vadd.high.f32.bf16 %v9455_v15, %v7819_v35  ;;  %v8090_v31 = vadd.low.f32.bf16 %v13415_v44, %v7819_v35  ;;  %v10082_v15 = vmul.f32 %v9654_v42, %v3227_v55  ;;  %v10093_v53 = vld [vmem:[#allocation3 + $0x98] sm:$0xff] }
 0x220   : > { %v2794_v1 = vld [vmem:[#allocation3 + $0x89] sm:$0xff]  ;;  %v10087_v34 = vld [vmem:[#allocation3 + $0x91] sm:$0xff]  ;;  %v3316_v55 = vmul.f32 %v9667_v5, %v10093_v53 }
 0x221   : > { %v10068_v23 = vld [vmem:[#allocation3 + $0x90] sm:$0xff]  ;;  %2691 = vst.msk [vmem:[#allocation3 + $0xa8] sm:$0xff] %vm13385_vm9, %v8089_v49  ;;  %v3382_v37 = vmul.f32 %v9672_v11, %v2794_v1  ;;  %v3174_v35 = vmul.f32 %v9649_v63, %v2794_v1  ;;  %v3383_v41 = vmul.f32 %v9672_v11, %v10087_v34  ;;  %vm13422_vm9 = vnez %v13421_v13 }
 0x222   : > { %v10070_v29 = vld [vmem:[#allocation3 + $0x8f] sm:$0xff]  ;;  %2690 = vst.msk [vmem:[#allocation3 + $0xa0] sm:$0xff] %vm13416_vm12, %v8090_v31  ;;  %v3315_v60 = vmul.f32 %v9667_v5, %v10068_v23  ;;  %v10095_v25 = vld [vmem:[#allocation3 + $0x97] sm:$0xff]  ;;  %v3348_v0 = vadd.f32 %v3316_v55, %v3138_v4 }
 0x223   : > { %v3247_v36 = vmul.f32 %v9654_v42, %v10070_v29  ;;  %v3248_v62 = vmul.f32 %v9654_v42, %v10095_v25  ;;  %v3039_v49 = vmul.f32 %v9639_v40, %v10070_v29  ;;  %v3414_v44 = vadd.f32 %v3382_v37, %v3204_v3  ;;  %v13424_v55 = vld [vmem:[#allocation16_spill] sm:$0xff] }
 0x224   : > { %v3347_v26 = vadd.f32 %v3315_v60, %v3137_v6  ;;  %v3415_v22 = vadd.f32 %v3383_v41, %v3205_v19  ;;  %v3206_v56 = vadd.f32 %v3174_v35, %v2964_v43 }
 0x225   : > { %v7824_v8 = vpop.permute.xlu0 %7823  ;;  %v3279_v31 = vadd.f32 %v3247_v36, %v3069_v16  ;;  %v3280_v61 = vadd.f32 %v3248_v62, %v3070_v32  ;;  %v10108_v47 = vadd.f32 %v3478_v39, %v3414_v44  ;;  %v3071_v3 = vadd.f32 %v3039_v49, %v2829_v48  ;;  %v13425_v44 = vld [vmem:[#allocation15_spill] sm:$0xff] }
 0x226   : > { %v8091_v20 = vadd.high.f32.bf16 %v13417_v27, %v7824_v8  ;;  %v8092_v57 = vadd.low.f32.bf16 %v13418_v33, %v7824_v8  ;;  %v3511_v30 = vsel %vm13420_vm10, %v3415_v22, 0.0  ;;  %v3107_v33 = vmul.f32 %v9644_v21, %v10068_v23 }
 0x227   : > { %v3479_v52 = vadd.f32 %v3347_v26, %v3279_v31  ;;  %v3448_v59 = vsel %vm13422_vm9, %v3280_v61, 0.0  ;;  %v7258_v27 = vpack.c.bf16 %v10108_v47, %v10108_v47  ;;  %v3175_v26 = vmul.f32 %v9649_v63, %v10087_v34  ;;  %vm13428_vm9 = vmmov %vm13416_vm12 }
 0x228   : > { %2693 = vst.msk [vmem:[#allocation3 + $0xb8] sm:$0xff] %vm13416_vm12, %v8091_v20  ;;  %v3480_v16 = vadd.f32 %v3448_v59, %v3348_v0  ;;  %v2966_v20 = vmul.f32 %v9633_v2, %v2794_v1  ;;  %v3108_v0 = vmul.f32 %v9644_v21, %v10093_v53 }
 0x229   : > { %2692 = vst.msk [vmem:[#allocation3 + $0xb0] sm:$0xff] %vm13423_vm14, %v8092_v57  ;;  %v10122_v39 = vadd.f32 %v3511_v30, %v3479_v52  ;;  %v10124_v22 = vld [vmem:[#allocation3 + $0x99] sm:$0xff]  ;;  %v3040_v57 = vmul.f32 %v9639_v40, %v10095_v25  ;;  %3682 = vrot.lane.b32.xlu1 %v7258_v27, %s8173_s5  ;;  %v10138_v59 = vld [vmem:[#allocation3 + $0xa1] sm:$0xff]  ;;  %v3139_v30 = vadd.f32 %v3107_v33, %v2897_v12 }
 0x22a   : > { %v10126_v61 = vld [vmem:[#allocation3 + $0xa0] sm:$0xff]  ;;  %v3384_v52 = vmul.f32 %v9672_v11, %v10124_v22  ;;  %v3207_v19 = vadd.f32 %v3175_v26, %v2965_v28  ;;  %v3385_v1 = vmul.f32 %v9672_v11, %v10138_v59  ;;  %v10151_v28 = vld [vmem:[#allocation3 + $0xa8] sm:$0xff]  ;;  %v3140_v41 = vadd.f32 %v3108_v0, %v10073_v7 }
 0x22b   : > { %v10128_v6 = vld [vmem:[#allocation3 + $0x9f] sm:$0xff]  ;;  %v7259_v32 = vpack.c.bf16 %v10122_v39, %v10122_v39  ;;  %v3317_v4 = vmul.f32 %v9667_v5, %v10126_v61  ;;  %v10148_v37 = vld [vmem:[#allocation3 + $0xa7] sm:$0xff]  ;;  %v3072_v36 = vadd.f32 %v3040_v57, %v10064_v51  ;;  %v3176_v62 = vmul.f32 %v9649_v63, %v10124_v22 }
 0x22c   : > { %v3249_v43 = vmul.f32 %v9654_v42, %v10128_v6  ;;  %v3416_v60 = vadd.f32 %v3384_v52, %v3206_v56  ;;  %v3417_v8 = vadd.f32 %v3385_v1, %v3207_v19  ;;  %v3250_v56 = vmul.f32 %v9654_v42, %v10148_v37 }
 0x22d   : > { %v7829_v48 = vpop.permute.xlu1 %7828  ;;  %3684 = vrot.lane.b32.xlu0 %v7259_v32, %s8173_s5  ;;  %v3349_v35 = vadd.f32 %v3317_v4, %v3139_v30  ;;  %v3208_v57 = vadd.f32 %v3176_v62, %v2966_v20  ;;  %v3318_v7 = vmul.f32 %v9667_v5, %v10151_v28  ;;  %v2831_v30 = vmul.f32 %v9622_v9, %v10070_v29 }
 0x22e   : > { %v3281_v12 = vadd.f32 %v3249_v43, %v3071_v3  ;;  %v8093_v49 = vadd.high.f32.bf16 %v13424_v55, %v7829_v48  ;;  %v8094_v31 = vadd.low.f32.bf16 %v13425_v44, %v7829_v48  ;;  %v10159_v27 = vadd.f32 %v3480_v16, %v3416_v60  ;;  %v13426_v3 = vld [vmem:[#allocation30_spill] sm:$0xff] }
 0x22f   : > { %vm13427_vm14 = vnez %v13426_v3  ;;  %v3282_v0 = vadd.f32 %v3250_v56, %v3072_v36  ;;  %v3350_v20 = vadd.f32 %v3318_v7, %v3140_v41  ;;  %v2899_v32 = vmul.f32 %v9628_v46, %v10068_v23  ;;  %v13429_v36 = vld [vmem:[#allocation29_spill] sm:$0xff]  ;;  %v13431_v23 = vld [vmem:[#allocation34_spill] sm:$0xff] }
 0x230   : > { %v3481_v51 = vadd.f32 %v3349_v35, %v3281_v12  ;;  %v3513_v33 = vsel %vm13427_vm14, %v3417_v8, 0.0  ;;  %v10165_v26 = vld [vmem:[#allocation3 + $0xa9] sm:$0xff]  ;;  %2695 = vst.msk [vmem:[#allocation3 + $0xc8] sm:$0xff] %vm13416_vm12, %v8093_v49  ;;  %v7260_v16 = vpack.c.bf16 %v10159_v27, %v10159_v27  ;;  %v2967_v4 = vmul.f32 %v9633_v2, %v10087_v34  ;;  %v10192_v35 = vld [vmem:[#allocation3 + $0xb1] sm:$0xff]  ;;  %vm13438_vm14 = vmmov %vm13416_vm12 }
 0x231   : > { %2694 = vst.msk [vmem:[#allocation3 + $0xc0] sm:$0xff] %vm13428_vm9, %v8094_v31  ;;  %v3386_v52 = vmul.f32 %v9672_v11, %v10165_v26  ;;  %v10179_v48 = vld [vmem:[#allocation3 + $0xaf] sm:$0xff]  ;;  %vm13430_vm9 = vnez %v13429_v36  ;;  %v3041_v46 = vmul.f32 %v9639_v40, %v10128_v6  ;;  %v3109_v2 = vmul.f32 %v9644_v21, %v10126_v61  ;;  %v10229_v7 = vld [vmem:[#allocation3 + $0xb7] sm:$0xff] }
 0x232   : > { %v10177_v43 = vadd.f32 %v3513_v33, %v3481_v51  ;;  %3686 = vrot.lane.b32.xlu1 %v7260_v16, %s8173_s5  ;;  %v3450_v60 = vsel %vm13430_vm9, %v3282_v0, 0.0  ;;  %v10188_v12 = vld [vmem:[#allocation3 + $0xb0] sm:$0xff]  ;;  %v13432_v8 = vld [vmem:[#allocation19_spill] sm:$0xff]  ;;  %v3177_v62 = vmul.f32 %v9649_v63, %v10138_v59  ;;  %v3251_v55 = vmul.f32 %v9654_v42, %v10179_v48  ;;  %vm13433_vm9 = vmmov %vm13416_vm12 }
 0x233   : > { %v3418_v1 = vadd.f32 %v3386_v52, %v3208_v57  ;;  %v3482_v29 = vadd.f32 %v3450_v60, %v3350_v20  ;;  %v3073_v44 = vadd.f32 %v3041_v46, %v2831_v30  ;;  %v3141_v31 = vadd.f32 %v3109_v2, %v2899_v32  ;;  %v10216_v42 = vld [vmem:[%s12975_s2 + $0x9] ss:$0 sm:$0xff]  ;;  %v10231_v52 = vld [vmem:[#allocation3 + $0xb8] sm:$0xff] }
 0x234   : > { %v7834_v19 = vpop.permute.xlu0 %7833  ;;  %v7261_v9 = vpack.c.bf16 %v10177_v43, %v10177_v43  ;;  %v3319_v40 = vmul.f32 %v9667_v5, %v10188_v12  ;;  %v3209_v56 = vadd.f32 %v3177_v62, %v2967_v4  ;;  %v3387_v63 = vmul.f32 %v9672_v11, %v10192_v35  ;;  %v10223_v5 = vld [vmem:[%s12975_s2 + $0xa] ss:$0 sm:$0xff] }
 0x235   : > { %v8095_v34 = vadd.high.f32.bf16 %v13431_v23, %v7834_v19  ;;  %v8096_v41 = vadd.low.f32.bf16 %v13432_v8, %v7834_v19  ;;  %v10205_v49 = vadd.f32 %v3482_v29, %v3418_v1  ;;  %v2832_v51 = vmul.f32 %v10216_v42, %v10095_v25  ;;  %v10238_v25 = vld [vmem:[%s12975_s2 + $0xb] ss:$0 sm:$0xff]  ;;  %v10245_v19 = vld [vmem:[%s12975_s2 + $0xc] ss:$0 sm:$0xff]  ;;  %v13435_v1 = vld [vmem:[#allocation5_spill] sm:$0xff] }
 0x236   : > { %3688 = vrot.lane.b32.xlu0 %v7261_v9, %s8173_s5  ;;  %v2900_v33 = vmul.f32 %v10223_v5, %v10093_v53  ;;  %v3283_v11 = vadd.f32 %v3251_v55, %v3073_v44  ;;  %v3351_v16 = vadd.f32 %v3319_v40, %v3141_v31  ;;  %v3419_v0 = vadd.f32 %v3387_v63, %v3209_v56  ;;  %v13434_v32 = vld [vmem:[#allocation43_spill] sm:$0xff]  ;;  %v13436_v23 = vld [vmem:[#allocation9_spill] sm:$0xff]  ;;  %v10280_v31 = vld [vmem:[%s12975_s2 + $0x10] ss:$0 sm:$0xff] }
 0x237   : > { %2697 = vst.msk [vmem:[#allocation3 + $0xd8] sm:$0xff] %vm13416_vm12, %v8095_v34  ;;  %v7262_v57 = vpack.c.bf16 %v10205_v49, %v10205_v49  ;;  %v2968_v53 = vmul.f32 %v10238_v25, %v10124_v22  ;;  %v3042_v20 = vmul.f32 %v10245_v19, %v10148_v37  ;;  %v10255_v9 = vld [vmem:[%s12975_s2 + $0xd] ss:$0 sm:$0xff]  ;;  %v10262_v29 = vld [vmem:[%s12975_s2 + $0xe] ss:$0 sm:$0xff]  ;;  %v3320_v40 = vmul.f32 %v10280_v31, %v10231_v52 }
 0x238   : > { %2696 = vst.msk [vmem:[#allocation3 + $0xd0] sm:$0xff] %vm13433_vm9, %v8096_v41  ;;  %v7839_v21 = vpop.permute.xlu1 %7838  ;;  %v10233_v30 = vld [vmem:[#allocation3 + $0xb9] sm:$0xff]  ;;  %v3110_v22 = vmul.f32 %v10255_v9, %v10151_v28  ;;  %v3178_v46 = vmul.f32 %v10262_v29, %v10165_v26  ;;  %v3483_v2 = vadd.f32 %v3351_v16, %v3283_v11  ;;  %vm13437_vm9 = vnez %v13436_v23  ;;  %v10271_v41 = vld [vmem:[%s12975_s2 + $0xf] ss:$0 sm:$0xff] }
 0x239   : > { %v8097_v4 = vadd.high.f32.bf16 %v13434_v32, %v7839_v21  ;;  %v8098_v60 = vadd.low.f32.bf16 %v13435_v1, %v7839_v21  ;;  %3690 = vrot.lane.b32.xlu1 %v7262_v57, %s8173_s5  ;;  %v3515_v34 = vsel %vm13437_vm9, %v3419_v0, 0.0  ;;  %v3074_v8 = vadd.f32 %v3042_v20, %v2832_v51  ;;  %v10287_v21 = vld [vmem:[%s12975_s2 + $0x11] ss:$0 sm:$0xff]  ;;  %v10299_v20 = vld [vmem:[#allocation3 + $0xbf] sm:$0xff] }
 0x23a   : > { %v3252_v62 = vmul.f32 %v10271_v41, %v10229_v7  ;;  %v3142_v55 = vadd.f32 %v3110_v22, %v2900_v33  ;;  %v3210_v44 = vadd.f32 %v3178_v46, %v2968_v53  ;;  %v3388_v56 = vmul.f32 %v10287_v21, %v10233_v30  ;;  %v10297_v53 = vld [vmem:[#allocation3 + $0xc0] sm:$0xff] }
 0x23b   : > { %2699 = vst.msk [vmem:[#allocation3 + $0xe8] sm:$0xff] %vm13416_vm12, %v8097_v4  ;;  %v10291_v63 = vadd.f32 %v3515_v34, %v3483_v2  ;;  %v2833_v33 = vmul.f32 %v10216_v42, %v10128_v6  ;;  %v2901_v57 = vmul.f32 %v10223_v5, %v10126_v61  ;;  %v2969_v32 = vmul.f32 %v10238_v25, %v10138_v59  ;;  %v13439_v1 = vld [vmem:[#allocation42_spill] sm:$0xff]  ;;  %v13441_v34 = vld [vmem:[#allocation21_spill] sm:$0xff] }
 0x23c   : > { %2698 = vst.msk [vmem:[#allocation3 + $0xe0] sm:$0xff] %vm13438_vm14, %v8098_v60  ;;  %v3284_v51 = vadd.f32 %v3252_v62, %v3074_v8  ;;  %v3352_v16 = vadd.f32 %v3320_v40, %v3142_v55  ;;  %v3420_v0 = vadd.f32 %v3388_v56, %v3210_v44  ;;  %v3043_v4 = vmul.f32 %v10245_v19, %v10179_v48  ;;  %v10309_v60 = vld [vmem:[#allocation3 + $0xc1] sm:$0xff] }
 0x23d   : > { %v7263_v6 = vpack.c.bf16 %v10291_v63, %v10291_v63  ;;  %vm13440_vm12 = vnez %v13439_v1  ;;  %v3111_v2 = vmul.f32 %v10255_v9, %v10188_v12  ;;  %v3179_v59 = vmul.f32 %v10262_v29, %v10192_v35  ;;  %v13442_v62 = vld [vmem:[#allocation55_spill] sm:$0xff] }
 0x23e   : > { %v3452_v61 = vsel %vm13440_vm12, %v3284_v51, 0.0  ;;  %v3075_v46 = vadd.f32 %v3043_v4, %v2833_v33  ;;  %v3253_v44 = vmul.f32 %v10271_v41, %v10299_v20  ;;  %v3321_v40 = vmul.f32 %v10280_v31, %v10297_v53  ;;  %vm13443_vm12 = vmmov %vm13438_vm14 }
 0x23f   : > { %v3484_v22 = vadd.f32 %v3452_v61, %v3352_v16  ;;  %3692 = vrot.lane.b32.xlu0 %v7263_v6, %s8173_s5  ;;  %v3143_v33 = vadd.f32 %v3111_v2, %v2901_v57  ;;  %v3211_v16 = vadd.f32 %v3179_v59, %v2969_v32  ;;  %v3389_v4 = vmul.f32 %v10287_v21, %v10309_v60 }
 0x240   : > { %v7844_v11 = vpop.permute.xlu0 %7843  ;;  %v3285_v61 = vadd.f32 %v3253_v44, %v3075_v46  ;;  %v2970_v59 = vmul.f32 %v10238_v25, %v10165_v26  ;;  %v10340_v46 = vld [vmem:[#allocation3 + $0xc8] sm:$0xff]  ;;  %v13446_v44 = vld [vmem:[#allocation49_spill] sm:$0xff]  ;;  %v3180_v26 = vmul.f32 %v10262_v29, %v10233_v30  ;;  %vm13451_vm9 = vcmask 27664  }
 0x241   : > { %v8099_v8 = vadd.high.f32.bf16 %v13441_v34, %v7844_v11  ;;  %v8100_v55 = vadd.low.f32.bf16 %v13442_v62, %v7844_v11  ;;  %v10322_v51 = vadd.f32 %v3484_v22, %v3420_v0  ;;  %v13444_v11 = vld [vmem:[#allocation57_spill] sm:$0xff]  ;;  %v10329_v34 = vld [vmem:[#allocation3 + $0xc7] sm:$0xff]  ;;  %v2834_v62 = vmul.f32 %v10216_v42, %v10148_v37 }
 0x242   : > { %v2902_v0 = vmul.f32 %v10223_v5, %v10151_v28  ;;  %v3353_v22 = vadd.f32 %v3321_v40, %v3143_v33  ;;  %v3421_v2 = vadd.f32 %v3389_v4, %v3211_v16  ;;  %v3044_v37 = vmul.f32 %v10245_v19, %v10229_v7  ;;  %v13448_v33 = vld [vmem:[#allocation39_spill] sm:$0xff]  ;;  %v13449_v4 = vld [vmem:[#allocation56_spill] sm:$0xff] }
 0x243   : > { %2701 = vst.msk [vmem:[#allocation3 + $0xf8] sm:$0xff] %vm13438_vm14, %v8099_v8  ;;  %v7264_v32 = vpack.c.bf16 %v10322_v51, %v10322_v51  ;;  %vm13445_vm14 = vmmov %vm13443_vm12  ;;  %v10342_v8 = vld [vmem:[#allocation3 + $0xc9] sm:$0xff]  ;;  %v3112_v28 = vmul.f32 %v10255_v9, %v10231_v52  ;;  %v3212_v36 = vadd.f32 %v3180_v26, %v2970_v59  ;;  %v2903_v59 = vmul.f32 %v10223_v5, %v10188_v12 }
 0x244   : > { %2700 = vst.msk [vmem:[#allocation3 + $0xf0] sm:$0xff] %vm13443_vm12, %v8100_v55  ;;  %v3485_v55 = vadd.f32 %v3353_v22, %v3285_v61  ;;  %vm13447_vm12 = vnez %v13446_v44  ;;  %v3322_v61 = vmul.f32 %v10280_v31, %v10340_v46  ;;  %v10363_v22 = vld [vmem:[#allocation3 + $0xcf] sm:$0xff]  ;;  %v3045_v26 = vmul.f32 %v10245_v19, %v10299_v20  ;;  %v10426_v44 = vld [vmem:[#allocation3 + $0xdf] sm:$0xff] }
 0x245   : > { %v2608_v56 = vpop.permute.xlu0 %2607  ;;  %3694 = vrot.lane.b32.xlu1 %v7264_v32, %s8173_s5  ;;  %v3517_v40 = vsel %vm13447_vm12, %v3421_v2, 0.0  ;;  %v3144_v1 = vadd.f32 %v3112_v28, %v2902_v0  ;;  %v3390_v32 = vmul.f32 %v10287_v21, %v10342_v8  ;;  %vm13450_vm12 = vmmov %vm13445_vm14  ;;  %v2835_v0 = vmul.f32 %v10216_v42, %v10179_v48 }
 0x246   : > { %v2672_v6 = vadd.f32 %v2608_v56, %v13444_v11  ;;  %v3254_v56 = vmul.f32 %v10271_v41, %v10329_v34  ;;  %v10357_v23 = vadd.f32 %v3517_v40, %v3485_v55  ;;  %v3113_v48 = vmul.f32 %v10255_v9, %v10297_v53 }
 0x247   : > { %v7849_v57 = vpop.permute.xlu1 %7848  ;;  %v3354_v55 = vadd.f32 %v3322_v61, %v3144_v1  ;;  %v3422_v40 = vadd.f32 %v3390_v32, %v3212_v36  ;;  %v3181_v12 = vmul.f32 %v10262_v29, %v10309_v60  ;;  %v3077_v1 = vadd.f32 %v3045_v26, %v2835_v0  ;;  %v10395_v32 = vld [vmem:[#allocation3 + $0xd8] sm:$0xff] }
 0x248   : > { %2704 = vst.msk [vmem:[#allocation3 + $0x110] sm:$0xff] %vm13445_vm14, %v2672_v6  ;;  %v8101_v16 = vadd.high.f32.bf16 %v13448_v33, %v7849_v57  ;;  %v8102_v11 = vadd.low.f32.bf16 %v13449_v4, %v7849_v57  ;;  %v3076_v6 = vadd.f32 %v3044_v37, %v2834_v62  ;;  %v10367_v57 = vld [vmem:[#allocation3 + $0xd0] sm:$0xff]  ;;  %v2971_v37 = vmul.f32 %v10238_v25, %v10192_v35 }
 0x249   : > { %v10369_v62 = vld [vmem:[#allocation3 + $0xd1] sm:$0xff]  ;;  %v7265_v28 = vpack.c.bf16 %v10357_v23, %v10357_v23  ;;  %v3255_v35 = vmul.f32 %v10271_v41, %v10363_v22  ;;  %v3323_v36 = vmul.f32 %v10280_v31, %v10367_v57  ;;  %v2972_v26 = vmul.f32 %v10238_v25, %v10233_v30 }
 0x24a   : > { %2703 = vst.msk [vmem:[#allocation3 + $0x108] sm:$0xff] %vm13445_vm14, %v8101_v16  ;;  %v3286_v33 = vadd.f32 %v3254_v56, %v3076_v6  ;;  %v13452_v56 = vld [vmem:[#allocation11_spill] sm:$0xff]  ;;  %v3145_v6 = vadd.f32 %v3113_v48, %v2903_v59  ;;  %v3213_v61 = vadd.f32 %v3181_v12, %v2971_v37  ;;  %v3046_v59 = vmul.f32 %v10245_v19, %v10329_v34  ;;  %v10409_v48 = vld [vmem:[#allocation3 + $0xd9] sm:$0xff] }
 0x24b   : > { %v3659_v2 = vpop.permute.xlu1 %3658  ;;  %2702 = vst.msk [vmem:[#allocation3 + $0x100] sm:$0xff] %vm13450_vm12, %v8102_v11  ;;  %vm13453_vm12 = vnez %v13452_v56  ;;  %3696 = vrot.lane.b32.xlu0 %v7265_v28, %s8173_s5  ;;  %v3391_v11 = vmul.f32 %v10287_v21, %v10369_v62  ;;  %v2904_v28 = vmul.f32 %v10223_v5, %v10231_v52  ;;  %v3287_v0 = vadd.f32 %v3255_v35, %v3077_v1  ;;  %v13454_v1 = vld [vmem:[#allocation50_spill] sm:$0xff]  ;;  %v10488_v3 = vld [vmem:[#allocation3 + $0xef] sm:$0xff] }
 0x24c   : > { %3755 = vst.msk [vmem:[#allocation2] sm:$0xf] %vm13451_vm9, %v3659_v2  ;;  %v3454_v16 = vsel %vm13453_vm12, %v3286_v33, 0.0  ;;  %v10397_v2 = vld [vmem:[#allocation3 + $0xd7] sm:$0xff]  ;;  %v2836_v33 = vmul.f32 %v10216_v42, %v10229_v7  ;;  %v3355_v37 = vadd.f32 %v3323_v36, %v3145_v6  ;;  %v3114_v12 = vmul.f32 %v10255_v9, %v10340_v46 }
 0x24d   : > { %v3486_v4 = vadd.f32 %v3454_v16, %v3354_v55  ;;  %v3423_v16 = vadd.f32 %v3391_v11, %v3213_v61  ;;  %v3182_v7 = vmul.f32 %v10262_v29, %v10342_v8  ;;  %v3256_v30 = vmul.f32 %v10271_v41, %v10397_v2 }
 0x24e   : > { %v3324_v35 = vmul.f32 %v10280_v31, %v10395_v32  ;;  %vm13455_vm9 = vnez %v13454_v1  ;;  %v3146_v11 = vadd.f32 %v3114_v12, %v2904_v28  ;;  %v3392_v56 = vmul.f32 %v10287_v21, %v10409_v48  ;;  %v10436_v28 = vld [vmem:[#allocation3 + $0xe1] sm:$0xff] }
 0x24f   : > { %v10403_v55 = vadd.f32 %v3486_v4, %v3422_v40  ;;  %v3078_v40 = vadd.f32 %v3046_v59, %v2836_v33  ;;  %v3487_v4 = vadd.f32 %v3355_v37, %v3287_v0  ;;  %v3519_v36 = vsel %vm13455_vm9, %v3423_v16, 0.0  ;;  %v10434_v16 = vld [vmem:[#allocation3 + $0xe0] sm:$0xff] }
 0x250   : > { %v3214_v6 = vadd.f32 %v3182_v7, %v2972_v26  ;;  %v2837_v33 = vmul.f32 %v10216_v42, %v10299_v20  ;;  %v2905_v59 = vmul.f32 %v10223_v5, %v10297_v53  ;;  %v3356_v37 = vadd.f32 %v3324_v35, %v3146_v11 }
 0x251   : > { %v7266_v52 = vpack.c.bf16 %v10403_v55, %v10403_v55  ;;  %v3288_v61 = vadd.f32 %v3256_v30, %v3078_v40  ;;  %v10432_v0 = vadd.f32 %v3519_v36, %v3487_v4  ;;  %v2973_v26 = vmul.f32 %v10238_v25, %v10309_v60  ;;  %v3017_v13 = vld [vmem:[#allocation3 + $0x10f] sm:$0xff] }
 0x252   : > { %v3047_v12 = vmul.f32 %v10245_v19, %v10363_v22  ;;  %v3424_v7 = vadd.f32 %v3392_v56, %v3214_v6  ;;  %v3115_v53 = vmul.f32 %v10255_v9, %v10367_v57  ;;  %v3183_v40 = vmul.f32 %v10262_v29, %v10369_v62 }
 0x253   : > { %3698 = vrot.lane.b32.xlu1 %v7266_v52, %s8173_s5  ;;  %13456 = vst [vmem:[#allocation24_spill] sm:$0xff] %v10432_v0  ;;  %v13457_v52 = vld [vmem:[#allocation13_spill] sm:$0xff]  ;;  %v7267_v30 = vpack.c.bf16 %v10432_v0, %v10432_v0  ;;  %v3257_v60 = vmul.f32 %v10271_v41, %v10426_v44  ;;  %v3325_v56 = vmul.f32 %v10280_v31, %v10434_v16 }
 0x254   : > { %vm13458_vm14 = vnez %v13457_v52  ;;  %v3079_v4 = vadd.f32 %v3047_v12, %v2837_v33  ;;  %v3147_v36 = vadd.f32 %v3115_v53, %v2905_v59  ;;  %v3215_v11 = vadd.f32 %v3183_v40, %v2973_v26 }
 0x255   : > { %v3456_v20 = vsel %vm13458_vm14, %v3288_v61, 0.0  ;;  %v3393_v6 = vmul.f32 %v10287_v21, %v10436_v28  ;;  %v10456_v61 = vld [vmem:[#allocation3 + $0xe7] sm:$0xff]  ;;  %3700 = vrot.lane.b32.xlu0 %v7267_v30, %s8173_s5  ;;  %v2838_v33 = vmul.f32 %v10216_v42, %v10329_v34  ;;  %v2906_v59 = vmul.f32 %v10223_v5, %v10340_v46 }
 0x256   : > { %v3488_v35 = vadd.f32 %v3456_v20, %v3356_v37  ;;  %v3289_v1 = vadd.f32 %v3257_v60, %v3079_v4  ;;  %v10461_v37 = vld [vmem:[#allocation3 + $0xe8] sm:$0xff]  ;;  %v3357_v26 = vadd.f32 %v3325_v56, %v3147_v36  ;;  %v2974_v53 = vmul.f32 %v10238_v25, %v10342_v8 }
 0x257   : > { %v3425_v12 = vadd.f32 %v3393_v6, %v3215_v11  ;;  %v10467_v20 = vld [vmem:[#allocation3 + $0xe9] sm:$0xff]  ;;  %v3116_v30 = vmul.f32 %v10255_v9, %v10395_v32  ;;  %v3184_v34 = vmul.f32 %v10262_v29, %v10409_v48  ;;  %v3258_v46 = vmul.f32 %v10271_v41, %v10456_v61 }
 0x258   : > { %v10459_v52 = vadd.f32 %v3488_v35, %v3424_v7  ;;  %v3048_v7 = vmul.f32 %v10245_v19, %v10397_v2  ;;  %v3489_v35 = vadd.f32 %v3357_v26, %v3289_v1  ;;  %v13460_v4 = vld [vmem:[#allocation51_spill] sm:$0xff]  ;;  %v3326_v36 = vmul.f32 %v10280_v31, %v10461_v37 }
 0x259   : > { %vm13461_vm14 = vnez %v13460_v4  ;;  %v3148_v11 = vadd.f32 %v3116_v30, %v2906_v59  ;;  %v3216_v56 = vadd.f32 %v3184_v34, %v2974_v53  ;;  %v3394_v6 = vmul.f32 %v10287_v21, %v10467_v20 }
 0x25a   : > { %13459 = vst [vmem:[#allocation37_spill] sm:$0xff] %v10459_v52  ;;  %v7268_v40 = vpack.c.bf16 %v10459_v52, %v10459_v52  ;;  %v3521_v60 = vsel %vm13461_vm14, %v3425_v12, 0.0  ;;  %v3080_v8 = vadd.f32 %v3048_v7, %v2838_v33  ;;  %v2839_v0 = vmul.f32 %v10216_v42, %v10363_v22  ;;  %v10494_v12 = vld [vmem:[#allocation3 + $0xf0] sm:$0xff] }
 0x25b   : > { %v10492_v1 = vadd.f32 %v3521_v60, %v3489_v35  ;;  %v2907_v33 = vmul.f32 %v10223_v5, %v10367_v57  ;;  %v2975_v59 = vmul.f32 %v10238_v25, %v10369_v62  ;;  %v3358_v53 = vadd.f32 %v3326_v36, %v3148_v11 }
 0x25c   : > { %3702 = vrot.lane.b32.xlu1 %v7268_v40, %s8173_s5  ;;  %v3290_v26 = vadd.f32 %v3258_v46, %v3080_v8  ;;  %v3426_v7 = vadd.f32 %v3394_v6, %v3216_v56  ;;  %v10500_v40 = vld [vmem:[#allocation3 + $0xf1] sm:$0xff]  ;;  %v3049_v30 = vmul.f32 %v10245_v19, %v10426_v44  ;;  %v3117_v22 = vmul.f32 %v10255_v9, %v10434_v16 }
 0x25d   : > { %13462 = vst [vmem:[#allocation36_spill] sm:$0xff] %v10492_v1  ;;  %v7269_v34 = vpack.c.bf16 %v10492_v1, %v10492_v1  ;;  %v13463_v46 = vld [vmem:[#allocation20_spill] sm:$0xff]  ;;  %v3185_v57 = vmul.f32 %v10262_v29, %v10436_v28  ;;  %v3259_v62 = vmul.f32 %v10271_v41, %v10488_v3  ;;  %v3327_v11 = vmul.f32 %v10280_v31, %v10494_v12 }
 0x25e   : > { %vm13464_vm14 = vnez %v13463_v46  ;;  %v3081_v8 = vadd.f32 %v3049_v30, %v2839_v0  ;;  %v3149_v36 = vadd.f32 %v3117_v22, %v2907_v33  ;;  %v3395_v6 = vmul.f32 %v10287_v21, %v10500_v40  ;;  %v10519_v46 = vld [vmem:[#allocation3 + $0xf8] sm:$0xff]  ;;  %v3661_v22 = vpop.permute.xlu0 %3660 }
 0x25f   : > { %v3458_v35 = vsel %vm13464_vm14, %v3290_v26, 0.0  ;;  %3704 = vrot.lane.b32.xlu0 %v7269_v34, %s8173_s5  ;;  %v3217_v56 = vadd.f32 %v3185_v57, %v2975_v59  ;;  %v10521_v26 = vld [vmem:[#allocation3 + $0xf7] sm:$0xff]  ;;  %v2840_v4 = vmul.f32 %v10216_v42, %v10397_v2  ;;  %v2908_v0 = vmul.f32 %v10223_v5, %v10395_v32 }
 0x260   : > { %v3490_v60 = vadd.f32 %v3458_v35, %v3358_v53  ;;  %v3291_v53 = vadd.f32 %v3259_v62, %v3081_v8  ;;  %v3359_v30 = vadd.f32 %v3327_v11, %v3149_v36  ;;  %v2976_v59 = vmul.f32 %v10238_v25, %v10409_v48  ;;  %v10531_v35 = vld [vmem:[#allocation3 + $0xf9] sm:$0xff]  ;;  %v3663_v8 = vpop.permute.xlu1 %3662  ;;  %v13467_v36 = vld [vmem:[#allocation52_spill] sm:$0xff] }
 0x261   : > { %v3427_v34 = vadd.f32 %v3395_v6, %v3217_v56  ;;  %v3050_v57 = vmul.f32 %v10245_v19, %v10456_v61  ;;  %v3118_v2 = vmul.f32 %v10255_v9, %v10461_v37  ;;  %v3186_v32 = vmul.f32 %v10262_v29, %v10467_v20 }
 0x262   : > { %v10527_v33 = vadd.f32 %v3490_v60, %v3426_v7  ;;  %vm13466_vm14 = vcmask 27664   ;;  %v3491_v62 = vadd.f32 %v3359_v30, %v3291_v53  ;;  %v3260_v48 = vmul.f32 %v10271_v41, %v10521_v26  ;;  %v10554_v30 = vld [vmem:[#allocation3 + $0x100] sm:$0xff] }
 0x263   : > { %3756 = vst.msk [vmem:[#allocation2 + $0x4] sm:$0xf] %vm13466_vm14, %v3661_v22  ;;  %v3328_v60 = vmul.f32 %v10280_v31, %v10519_v46  ;;  %vm13468_vm9 = vnez %v13467_v36  ;;  %v3082_v56 = vadd.f32 %v3050_v57, %v2840_v4  ;;  %v3150_v6 = vadd.f32 %v3118_v2, %v2908_v0  ;;  %vm13469_vm12 = vmmov %vm13466_vm14 }
 0x264   : > { %13465 = vst [vmem:[#allocation18_spill] sm:$0xff] %v10527_v33  ;;  %v7270_v7 = vpack.c.bf16 %v10527_v33, %v10527_v33  ;;  %v3523_v11 = vsel %vm13468_vm9, %v3427_v34, 0.0  ;;  %v3218_v1 = vadd.f32 %v3186_v32, %v2976_v59  ;;  %3757 = vst.msk [vmem:[#allocation2 + $0x8] sm:$0xf] %vm13469_vm12, %v3663_v8  ;;  %v3396_v53 = vmul.f32 %v10287_v21, %v10531_v35  ;;  %v10556_v33 = vld [vmem:[#allocation3 + $0xff] sm:$0xff] }
 0x265   : > { %v10550_v22 = vadd.f32 %v3523_v11, %v3491_v62  ;;  %v2841_v36 = vmul.f32 %v10216_v42, %v10426_v44  ;;  %v2909_v4 = vmul.f32 %v10223_v5, %v10434_v16  ;;  %v3292_v0 = vadd.f32 %v3260_v48, %v3082_v56  ;;  %v10562_v34 = vld [vmem:[#allocation3 + $0x101] sm:$0xff]  ;;  %v13471_v62 = vld [vmem:[#allocation33_spill] sm:$0xff] }
 0x266   : > { %3706 = vrot.lane.b32.xlu1 %v7270_v7, %s8173_s5  ;;  %v3360_v59 = vadd.f32 %v3328_v60, %v3150_v6  ;;  %v2977_v57 = vmul.f32 %v10238_v25, %v10436_v28  ;;  %v3051_v2 = vmul.f32 %v10245_v19, %v10488_v3  ;;  %v3428_v7 = vadd.f32 %v3396_v53, %v3218_v1  ;;  %v3014_v53 = vld [vmem:[#allocation3 + $0x108] sm:$0xff] }
 0x267   : > { %13470 = vst [vmem:[#allocation12_spill] sm:$0xff] %v10550_v22  ;;  %v7271_v32 = vpack.c.bf16 %v10550_v22, %v10550_v22  ;;  %v3119_v44 = vmul.f32 %v10255_v9, %v10494_v12  ;;  %v3187_v16 = vmul.f32 %v10262_v29, %v10500_v40  ;;  %vm13472_vm12 = vnez %v13471_v62  ;;  %v3016_v22 = vld [vmem:[#allocation3 + $0x107] sm:$0xff]  ;;  %v3665_v62 = vpop.permute.xlu0 %3664 }
 0x268   : > { %v3460_v48 = vsel %vm13472_vm12, %v3292_v0, 0.0  ;;  %v3083_v60 = vadd.f32 %v3051_v2, %v2841_v36  ;;  %v3261_v28 = vmul.f32 %v10271_v41, %v10556_v33  ;;  %v3329_v8 = vmul.f32 %v10280_v31, %v10554_v30  ;;  %3758 = vst.msk [vmem:[#allocation2 + $0xc] sm:$0xf] %vm13466_vm14, %v3665_v62 }
 0x269   : > { %3708 = vrot.lane.b32.xlu0 %v7271_v32, %s8173_s5  ;;  %v3492_v11 = vadd.f32 %v3460_v48, %v3360_v59  ;;  %v3151_v1 = vadd.f32 %v3119_v44, %v2909_v4  ;;  %v3219_v56 = vadd.f32 %v3187_v16, %v2977_v57  ;;  %v3397_v6 = vmul.f32 %v10287_v21, %v10562_v34  ;;  %v3018_v57 = vld [vmem:[#allocation3 + $0x109] sm:$0xff] }
 0x26a   : > { %v3293_v52 = vadd.f32 %v3261_v28, %v3083_v60  ;;  %v2842_v36 = vmul.f32 %v10216_v42, %v10456_v61  ;;  %v2910_v0 = vmul.f32 %v10223_v5, %v10461_v37  ;;  %v2978_v2 = vmul.f32 %v10238_v25, %v10467_v20  ;;  %v13473_v60 = vld [vmem:[#allocation53_spill] sm:$0xff] }
 0x26b   : > { %v10589_v32 = vadd.f32 %v3492_v11, %v3428_v7  ;;  %v3361_v4 = vadd.f32 %v3329_v8, %v3151_v1  ;;  %v3429_v59 = vadd.f32 %v3397_v6, %v3219_v56  ;;  %v3052_v44 = vmul.f32 %v10245_v19, %v10521_v26  ;;  %v3667_v11 = vpop.permute.xlu1 %3666 }
 0x26c   : > { %v3120_v61 = vmul.f32 %v10255_v9, %v10519_v46  ;;  %v3188_v37 = vmul.f32 %v10262_v29, %v10531_v35  ;;  %v3262_v16 = vmul.f32 %v10271_v41, %v3016_v22  ;;  %v3330_v20 = vmul.f32 %v10280_v31, %v3014_v53  ;;  %3759 = vst.msk [vmem:[#allocation2 + $0x10] sm:$0xf] %vm13466_vm14, %v3667_v11 }
 0x26d   : > { %v7272_v7 = vpack.c.bf16 %v10589_v32, %v10589_v32  ;;  %v3493_v48 = vadd.f32 %v3361_v4, %v3293_v52  ;;  %vm13474_vm12 = vnez %v13473_v60  ;;  %v3084_v8 = vadd.f32 %v3052_v44, %v2842_v36  ;;  %v3019_v44 = vld [vmem:[#allocation3 + $0x111] sm:$0xff] }
 0x26e   : > { %v3525_v28 = vsel %vm13474_vm12, %v3429_v59, 0.0  ;;  %v3152_v62 = vadd.f32 %v3120_v61, %v2910_v0  ;;  %v3220_v1 = vadd.f32 %v3188_v37, %v2978_v2  ;;  %v3398_v56 = vmul.f32 %v10287_v21, %v3018_v57  ;;  %v3015_v0 = vld [vmem:[#allocation3 + $0x110] sm:$0xff] }
 0x26f   : > { %v2843_v6 = vmul.f32 %v10216_v42, %v10488_v3  ;;  %3710 = vrot.lane.b32.xlu1 %v7272_v7, %s8173_s5  ;;  %v10609_v58 = vadd.f32 %v3525_v28, %v3493_v48  ;;  %v3294_v52 = vadd.f32 %v3262_v16, %v3084_v8  ;;  %v2911_v4 = vmul.f32 %v10223_v5, %v10494_v12  ;;  %v13475_v16 = vld [vmem:[#allocation35_spill] sm:$0xff] }
 0x270   : > { %v2979_v36 = vmul.f32 %v10238_v25, %v10500_v40  ;;  %v3362_v2 = vadd.f32 %v3330_v20, %v3152_v62  ;;  %v3430_v59 = vadd.f32 %v3398_v56, %v3220_v1  ;;  %v3053_v3 = vmul.f32 %v10245_v19, %v10556_v33 }
 0x271   : > { %v3121_v61 = vmul.f32 %v10255_v9, %v10554_v30  ;;  %v7273_v37 = vpack.c.bf16 %v10609_v58, %v10609_v58  ;;  %vm13476_vm14 = vnez %v13475_v16  ;;  %v3189_v12 = vmul.f32 %v10262_v29, %v10562_v34 }
 0x272   : > { %v3462_v7 = vsel %vm13476_vm14, %v3294_v52, 0.0  ;;  %v3263_v40 = vmul.f32 %v10271_v41, %v3017_v13  ;;  %v3085_v48 = vadd.f32 %v3053_v3, %v2843_v6  ;;  %v3331_v8 = vmul.f32 %v10280_v31, %v3015_v0  ;;  %v3226_v52 = vld [vmem:[#allocation3 + $0x117] sm:$0xff] }
 0x273   : > { %v3494_v20 = vadd.f32 %v3462_v7, %v3362_v2  ;;  %v3153_v28 = vadd.f32 %v3121_v61, %v2911_v4  ;;  %3712 = vrot.lane.b32.xlu0 %v7273_v37, %s8173_s5  ;;  %v3221_v11 = vadd.f32 %v3189_v12, %v2979_v36  ;;  %v3399_v62 = vmul.f32 %v10287_v21, %v3019_v44  ;;  %v3669_v4 = vpop.permute.xlu0 %3668  ;;  %v3671_v12 = vpop.permute.xlu1 %3670 }
 0x274   : > { %v2844_v1 = vmul.f32 %v10216_v42, %v10521_v26  ;;  %v2912_v56 = vmul.f32 %v10223_v5, %v10519_v46  ;;  %v3295_v60 = vadd.f32 %v3263_v40, %v3085_v48  ;;  %v2980_v6 = vmul.f32 %v10238_v25, %v10531_v35  ;;  %v3225_v35 = vld [vmem:[#allocation3 + $0x120] sm:$0xff] }
 0x275   : > { %v10633_v16 = vadd.f32 %v3494_v20, %v3430_v59  ;;  %v3363_v2 = vadd.f32 %v3331_v8, %v3153_v28  ;;  %v3431_v3 = vadd.f32 %v3399_v62, %v3221_v11  ;;  %v3054_v36 = vmul.f32 %v10245_v19, %v3016_v22  ;;  %v13478_v40 = vld [vmem:[#allocation54_spill] sm:$0xff] }
 0x276   : > { %v3122_v61 = vmul.f32 %v10255_v9, %v3014_v53  ;;  %v3190_v37 = vmul.f32 %v10262_v29, %v3018_v57  ;;  %vm13477_vm14 = vcmask 27664   ;;  %v3264_v59 = vmul.f32 %v10271_v41, %v3226_v52  ;;  %v3229_v57 = vld [vmem:[#allocation3 + $0x121] sm:$0xff] }
 0x277   : > { %3760 = vst.msk [vmem:[#allocation2 + $0x14] sm:$0xf] %vm13477_vm14, %v3669_v4  ;;  %v7274_v46 = vpack.c.bf16 %v10633_v16, %v10633_v16  ;;  %v3495_v26 = vadd.f32 %v3363_v2, %v3295_v60  ;;  %v2845_v7 = vmul.f32 %v10216_v42, %v10556_v33  ;;  %vm13479_vm12 = vnez %v13478_v40  ;;  %vm13480_vm9 = vmmov %vm13477_vm14 }
 0x278   : > { %v3527_v22 = vsel %vm13479_vm12, %v3431_v3, 0.0  ;;  %v3086_v20 = vadd.f32 %v3054_v36, %v2844_v1  ;;  %v3154_v53 = vadd.f32 %v3122_v61, %v2912_v56  ;;  %v3222_v48 = vadd.f32 %v3190_v37, %v2980_v6  ;;  %3761 = vst.msk [vmem:[#allocation2 + $0x18] sm:$0xf] %vm13480_vm9, %v3671_v12  ;;  %v13483_v37 = vld [vmem:[#allocation7_spill] sm:$0xff] }
 0x279   : > { %3714 = vrot.lane.b32.xlu1 %v7274_v46, %s8173_s5  ;;  %v10650_v28 = vadd.f32 %v3527_v22, %v3495_v26  ;;  %v2913_v41 = vmul.f32 %v10223_v5, %v10554_v30  ;;  %v2981_v42 = vmul.f32 %v10238_v25, %v10562_v34  ;;  %v3055_v33 = vmul.f32 %v10245_v19, %v3017_v13  ;;  %v13481_v30 = vld [vmem:[#allocation45_spill] sm:$0xff]  ;;  %v7471_v13 = vld [vmem:[#allocation2] sm:$0xff]  }
 0x27a   : > { %v3296_v60 = vadd.f32 %v3264_v59, %v3086_v20  ;;  %v3364_v8 = vadd.f32 %v10076_v38, %v3154_v53  ;;  %v3123_v11 = vmul.f32 %v10255_v9, %v3015_v0  ;;  %v3333_v62 = vmul.f32 %v10280_v31, %v3225_v35  ;;  %v3673_v3 = vpop.permute.xlu0 %3672 }
 0x27b   : > { %v7275_v1 = vpack.c.bf16 %v10650_v28, %v10650_v28  ;;  %v3087_v56 = vadd.f32 %v3055_v33, %v2845_v7  ;;  %v3191_v52 = vmul.f32 %v10262_v29, %v3019_v44  ;;  %v3401_v5 = vmul.f32 %v10287_v21, %v3229_v57  ;;  %v7628_v21 = vld [vmem:[#allocation2 + $0x8] sm:$0xff]  }
 0x27c   : > { %vm13482_vm9 = vnez %v13481_v30  ;;  %v3155_v34 = vadd.f32 %v3123_v11, %v2913_v41  ;;  %v3432_v38 = vadd.f32 %v10079_v54, %v3222_v48  ;;  %v7472_v29 = vunpack.c.l.bf16 %v7471_v13 }
 0x27d   : > { %v3464_v25 = vsel %vm13482_vm9, %v3296_v60, 0.0  ;;  %3716 = vrot.lane.b32.xlu0 %v7275_v1, %s8173_s5  ;;  %v3223_v9 = vadd.f32 %v3191_v52, %v2981_v42  ;;  %v3297_v31 = vadd.f32 %v10082_v15, %v3087_v56  ;;  %v7473_v44 = vunpack.c.h.bf16 %v7471_v13 }
 0x27e   : > { %v3496_v19 = vadd.f32 %v3464_v25, %v3364_v8  ;;  %v3365_v0 = vadd.f32 %v3333_v62, %v3155_v34  ;;  %v7629_v36 = vld [vmem:[#allocation2 + $0x10] sm:$0xff]   ;;  %vm13484_vm14 = vnez %v13483_v37  ;;  %vm13485_vm9 = vcmask 27664   ;;  %v3675_v15 = vpop.permute.xlu1 %3674 }
 0x27f   : > { %v3433_v6 = vadd.f32 %v3401_v5, %v3223_v9  ;;  %3762 = vst.msk [vmem:[#allocation2 + $0x1c] sm:$0xf] %vm13485_vm9, %v3673_v3  ;;  %v7476_v26 = vunpack.c.l.bf16 %v7628_v21  ;;  %v7477_v59 = vunpack.c.h.bf16 %v7628_v21  ;;  %v7852_v7 = vpack.i.bf16 %v7473_v44, %v7472_v29  ;;  %vm13486_vm12 = vmmov %vm13485_vm9 }
 0x280   : > { %v10669_v2 = vadd.f32 %v3496_v19, %v3432_v38  ;;  %v3497_v4 = vadd.f32 %v3365_v0, %v3297_v31  ;;  %3763 = vst.msk [vmem:[#allocation2 + $0x20] sm:$0xf] %vm13486_vm12, %v3675_v15  ;;  %v7480_v35 = vunpack.c.l.bf16 %v7629_v36  ;;  %v7481_v12 = vunpack.c.h.bf16 %v7629_v36  ;;  %vm13487_vm12 = vmmov %vm13485_vm9 }
 0x281   : > { %v3529_v54 = vsel %vm13484_vm14, %v3433_v6, 0.0  ;;  %v7857_v20 = vpack.i.bf16 %v7477_v59, %v7476_v26  ;;  %vm13488_vm14 = vmmov %vm13485_vm9 }
 0x282   : > { %v7276_v61 = vpack.c.bf16 %v10669_v2, %v10669_v2  ;;  %v10676_v46 = vadd.f32 %v3529_v54, %v3497_v4  ;;  %v7862_v53 = vpack.i.bf16 %v7481_v12, %v7480_v35  ;;  %vm13490_vm10 = vmmov %vm13485_vm9 }
 0x283   : > { %vm13492_vm11 = vmmov %vm13485_vm9 }
 0x284   : > { %3718 = vrot.lane.b32.xlu1 %v7276_v61, %s8173_s5  ;;  %v7277_v22 = vpack.c.bf16 %v10676_v46, %v10676_v46 }
 0x286   : > { %3720 = vrot.lane.b32.xlu0 %v7277_v22, %s8173_s5  ;;  %v7630_v48 = vld [vmem:[#allocation2 + $0x18] sm:$0xff]   ;;  %v3677_v42 = vpop.permute.xlu0 %3676 }
 0x287   : > { %v7484_v57 = vunpack.c.l.bf16 %v7630_v48  ;;  %v7485_v41 = vunpack.c.h.bf16 %v7630_v48  ;;  %3764 = vst.msk [vmem:[#allocation2 + $0x24] sm:$0xf] %vm13485_vm9, %v3677_v42 }
 0x288   : > { %7853 = vrot.lane.b32.xlu1 %v7852_v7, %s8174_s26 }
 0x289   : > { %v7867_v33 = vpack.i.bf16 %v7485_v41, %v7484_v57 }
 0x28a   : > { %7858 = vrot.lane.b32.xlu0 %v7857_v20, %s8174_s26  ;;  %v3679_v60 = vpop.permute.xlu1 %3678 }
 0x28b   : > { %3765 = vst.msk [vmem:[#allocation2 + $0x28] sm:$0xf] %vm13487_vm12, %v3679_v60  ;;  %vm13489_vm12 = vmmov %vm13485_vm9 }
 0x28c   : > { %7863 = vrot.lane.b32.xlu1 %v7862_v53, %s8174_s26 }
 0x28e   : > { %7868 = vrot.lane.b32.xlu0 %v7867_v33, %s8174_s26  ;;  %v7631_v11 = vld [vmem:[#allocation2 + $0x20] sm:$0xff]  }
 0x28f   : > { %v3681_v8 = vpop.permute.xlu0 %3680  ;;  %v7488_v62 = vunpack.c.l.bf16 %v7631_v11  ;;  %v7489_v1 = vunpack.c.h.bf16 %v7631_v11 }
 0x290   : > { %3766 = vst.msk [vmem:[#allocation2 + $0x2c] sm:$0xf] %vm13488_vm14, %v3681_v8  ;;  %vm13491_vm14 = vmmov %vm13485_vm9 }
 0x291   : > { %v7872_v56 = vpack.i.bf16 %v7489_v1, %v7488_v62 }
 0x293   : > { %7873 = vrot.lane.b32.xlu1 %v7872_v56, %s8174_s26 }
 0x297   : > { %v7632_v52 = vld [vmem:[#allocation2 + $0x28] sm:$0xff]  }
 0x298   : > { %v7492_v5 = vunpack.c.l.bf16 %v7632_v52  ;;  %v7493_v9 = vunpack.c.h.bf16 %v7632_v52 }
 0x29a   : > { %3903 = vrot.lane.b32.xlu0 %v7492_v5, %s8174_s26 }
 0x29b   : > { %v3683_v25 = vpop.permute.xlu1 %3682 }
 0x29c   : > { %3767 = vst.msk [vmem:[#allocation2 + $0x30] sm:$0xf] %vm13485_vm9, %v3683_v25 }
 0x29f   : > { %v3685_v34 = vpop.permute.xlu0 %3684 }
 0x2a0   : > { %3768 = vst.msk [vmem:[#allocation2 + $0x34] sm:$0xf] %vm13489_vm12, %v3685_v34  ;;  %vm13495_vm12 = vmmov %vm13485_vm9 }
 0x2a4   : > { %v3687_v13 = vpop.permute.xlu1 %3686 }
 0x2a5   : > { %3769 = vst.msk [vmem:[#allocation2 + $0x38] sm:$0xf] %vm13490_vm10, %v3687_v13  ;;  %vm13493_vm10 = vmmov %vm13485_vm9 }
 0x2a7   : > { %v7633_v19 = vld [vmem:[#allocation2 + $0x30] sm:$0xff]  }
 0x2a8   : > { %v3689_v38 = vpop.permute.xlu0 %3688  ;;  %v7496_v31 = vunpack.c.l.bf16 %v7633_v19  ;;  %v7497_v44 = vunpack.c.h.bf16 %v7633_v19 }
 0x2a9   : > { %3770 = vst.msk [vmem:[#allocation2 + $0x3c] sm:$0xf] %vm13491_vm14, %v3689_v38  ;;  %vm13496_vm14 = vmmov %vm13485_vm9 }
 0x2aa   : > { %v7877_v0 = vpack.i.bf16 %v7496_v31, %v7493_v9 }
 0x2ab   : > { %v3691_v6 = vpop.permute.xlu1 %3690 }
 0x2ac   : > { %3771 = vst.msk [vmem:[#allocation2 + $0x40] sm:$0xf] %vm13492_vm11, %v3691_v6  ;;  %7878 = vrot.lane.b32.xlu1 %v7877_v0, %s8174_s26  ;;  %vm13494_vm11 = vmmov %vm13485_vm9 }
 0x2b0   : > { %v7634_v29 = vld [vmem:[#allocation2 + $0x38] sm:$0xff]  }
 0x2b1   : > { %v7500_v21 = vunpack.c.l.bf16 %v7634_v29  ;;  %v3693_v4 = vpop.permute.xlu0 %3692  ;;  %v7501_v54 = vunpack.c.h.bf16 %v7634_v29 }
 0x2b2   : > { %3772 = vst.msk [vmem:[#allocation2 + $0x44] sm:$0xf] %vm13485_vm9, %v3693_v4 }
 0x2b3   : > { %v7882_v3 = vpack.i.bf16 %v7500_v21, %v7497_v44 }
 0x2b5   : > { %7883 = vrot.lane.b32.xlu0 %v7882_v3, %s8174_s26 }
 0x2b7   : > { %v3695_v36 = vpop.permute.xlu1 %3694 }
 0x2b8   : > { %3773 = vst.msk [vmem:[#allocation2 + $0x48] sm:$0xf] %vm13493_vm10, %v3695_v36  ;;  %vm13497_vm10 = vmmov %vm13485_vm9 }
 0x2b9   : > { %v7635_v61 = vld [vmem:[#allocation2 + $0x40] sm:$0xff]  }
 0x2ba   : > { %v7504_v15 = vunpack.c.l.bf16 %v7635_v61  ;;  %v7505_v12 = vunpack.c.h.bf16 %v7635_v61 }
 0x2bc   : > { %v7887_v59 = vpack.i.bf16 %v7504_v15, %v7501_v54 }
 0x2bd   : > { %v3697_v26 = vpop.permute.xlu0 %3696 }
 0x2be   : > { %3774 = vst.msk [vmem:[#allocation2 + $0x4c] sm:$0xf] %vm13494_vm11, %v3697_v26  ;;  %7888 = vrot.lane.b32.xlu1 %v7887_v59, %s8174_s26  ;;  %vm13498_vm11 = vmmov %vm13485_vm9  ;;  %v13505_v59 = vld [vmem:[#allocation38_spill] sm:$0xff] }
 0x2c5   : > { %v3699_v7 = vpop.permute.xlu1 %3698  ;;  %v7636_v35 = vld [vmem:[#allocation2 + $0x48] sm:$0xff]  }
 0x2c6   : > { %3775 = vst.msk [vmem:[#allocation2 + $0x50] sm:$0xf] %vm13495_vm12, %v3699_v7  ;;  %v7508_v22 = vunpack.c.l.bf16 %v7636_v35  ;;  %v7509_v42 = vunpack.c.h.bf16 %v7636_v35  ;;  %vm13499_vm12 = vmmov %vm13485_vm9 }
 0x2c7   : > { %v3701_v20 = vpop.permute.xlu0 %3700 }
 0x2c8   : > { %v7892_v53 = vpack.i.bf16 %v7508_v22, %v7505_v12  ;;  %3776 = vst.msk [vmem:[#allocation2 + $0x54] sm:$0xf] %vm13496_vm14, %v3701_v20  ;;  %vm13500_vm14 = vmmov %vm13485_vm9 }
 0x2ca   : > { %7893 = vrot.lane.b32.xlu0 %v7892_v53, %s8174_s26  ;;  %v10730_v53 = vld [vmem:[%s12975_s2 + $0x12] ss:$0 sm:$0xff] }
 0x2ce   : > { %v3703_v48 = vpop.permute.xlu1 %3702 }
 0x2cf   : > { %3777 = vst.msk [vmem:[#allocation2 + $0x58] sm:$0xf] %vm13485_vm9, %v3703_v48  ;;  %v7637_v57 = vld [vmem:[#allocation2 + $0x50] sm:$0xff]  }
 0x2d0   : > { %v7512_v33 = vunpack.c.l.bf16 %v7637_v57  ;;  %v7513_v1 = vunpack.c.h.bf16 %v7637_v57 }
 0x2d1   : > { %v3705_v41 = vpop.permute.xlu0 %3704 }
 0x2d2   : > { %3778 = vst.msk [vmem:[#allocation2 + $0x5c] sm:$0xf] %vm13497_vm10, %v3705_v41  ;;  %v7897_v60 = vpack.i.bf16 %v7512_v33, %v7509_v42  ;;  %vm13501_vm10 = vmmov %vm13485_vm9  ;;  %v10737_v33 = vld [vmem:[%s12975_s2 + $0x13] ss:$0 sm:$0xff] }
 0x2d4   : > { %7898 = vrot.lane.b32.xlu1 %v7897_v60, %s8174_s26 }
 0x2d8   : > { %v3707_v8 = vpop.permute.xlu1 %3706 }
 0x2d9   : > { %3779 = vst.msk [vmem:[#allocation2 + $0x60] sm:$0xf] %vm13498_vm11, %v3707_v8  ;;  %v7638_v11 = vld [vmem:[#allocation2 + $0x58] sm:$0xff]   ;;  %vm13502_vm11 = vmmov %vm13485_vm9  ;;  %v4084_v8 = vld [vmem:[#allocation3 + $0x7] sm:$0xff] }
 0x2da   : > { %v7516_v56 = vunpack.c.l.bf16 %v7638_v11  ;;  %v7517_v34 = vunpack.c.h.bf16 %v7638_v11  ;;  %v4053_v11 = vld [vmem:[#allocation3 + $0x10] sm:$0xff] }
 0x2db   : > { %v3709_v62 = vpop.permute.xlu0 %3708 }
 0x2dc   : > { %3780 = vst.msk [vmem:[#allocation2 + $0x64] sm:$0xf] %vm13499_vm12, %v3709_v62  ;;  %v7902_v52 = vpack.i.bf16 %v7516_v56, %v7513_v1  ;;  %vm13503_vm12 = vmmov %vm13485_vm9  ;;  %v4085_v62 = vld [vmem:[#allocation3 + $0xf] sm:$0xff] }
 0x2de   : > { %7903 = vrot.lane.b32.xlu0 %v7902_v52, %s8174_s26 }
 0x2e1   : > { %v3711_v5 = vpop.permute.xlu1 %3710 }
 0x2e2   : > { %3781 = vst.msk [vmem:[#allocation2 + $0x68] sm:$0xf] %vm13500_vm14, %v3711_v5  ;;  %vm13504_vm14 = vmmov %vm13485_vm9  ;;  %v10754_v5 = vld [vmem:[%s12975_s2 + $0x15] ss:$0 sm:$0xff] }
 0x2e3   : > { %v7639_v25 = vld [vmem:[#allocation2 + $0x60] sm:$0xff]  }
 0x2e4   : > { %v7520_v13 = vunpack.c.l.bf16 %v7639_v25  ;;  %v7521_v6 = vunpack.c.h.bf16 %v7639_v25  ;;  %v10759_v25 = vld [vmem:[%s12975_s2 + $0x16] ss:$0 sm:$0xff] }
 0x2e5   : > { %v3713_v38 = vpop.permute.xlu0 %3712 }
 0x2e6   : > { %3782 = vst.msk [vmem:[#allocation2 + $0x6c] sm:$0xf] %vm13485_vm9, %v3713_v38  ;;  %v7907_v19 = vpack.i.bf16 %v7520_v13, %v7517_v34  ;;  %vm13506_vm9 = vcmask 15360   ;;  %v10764_v34 = vld [vmem:[%s12975_s2 + $0x17] ss:$0 sm:$0xff]  ;;  %v4152_v38 = vmul.f32 %v10730_v53, %v4084_v8 }
 0x2e7   : > { %v10779_v13 = vld [vmem:[%s12975_s2 + $0x1a] ss:$0 sm:$0xff] }
 0x2e8   : > { %7908 = vrot.lane.b32.xlu1 %v7907_v19, %s8174_s26 }
 0x2eb   : > { %v3715_v9 = vpop.permute.xlu1 %3714 }
 0x2ec   : > { %3783 = vst.msk [vmem:[#allocation2 + $0x70] sm:$0xf] %vm13501_vm10, %v3715_v9  ;;  %vm13507_vm10 = vmmov %vm13506_vm9 }
 0x2ed   : > { %v7640_v31 = vld [vmem:[#allocation2 + $0x68] sm:$0xff]  }
 0x2ee   : > { %v7524_v29 = vunpack.c.l.bf16 %v7640_v31  ;;  %v7525_v36 = vunpack.c.h.bf16 %v7640_v31 }
 0x2ef   : > { %v3717_v0 = vpop.permute.xlu0 %3716 }
 0x2f0   : > { %3784 = vst.msk [vmem:[#allocation2 + $0x74] sm:$0xf] %vm13502_vm11, %v3717_v0  ;;  %v7912_v44 = vpack.i.bf16 %v7524_v29, %v7521_v6  ;;  %vm13508_vm11 = vmmov %vm13506_vm9  ;;  %v4153_v29 = vmul.f32 %v10730_v53, %v4085_v62 }
 0x2f2   : > { %7913 = vrot.lane.b32.xlu0 %v7912_v44, %s8174_s26  ;;  %v4221_v44 = vmul.f32 %v10737_v33, %v4053_v11 }
 0x2f6   : > { %v3719_v21 = vpop.permute.xlu1 %3718 }
 0x2f7   : > { %3785 = vst.msk [vmem:[#allocation2 + $0x78] sm:$0xf] %vm13503_vm12, %v3719_v21  ;;  %v7641_v4 = vld [vmem:[#allocation2 + $0x70] sm:$0xff]   ;;  %vm13509_vm12 = vmmov %vm13506_vm9 }
 0x2f8   : > { %v3721_v3 = vpop.permute.xlu0 %3720  ;;  %v7528_v61 = vunpack.c.l.bf16 %v7641_v4  ;;  %v7529_v57 = vunpack.c.h.bf16 %v7641_v4 }
 0x2f9   : > { %3786 = vst.msk [vmem:[#allocation2 + $0x7c] sm:$0xf] %vm13504_vm14, %v3721_v3  ;;  %vm13510_vm14 = vmmov %vm13506_vm9 }
 0x2fa   : > { %v7854_v54 = vpop.permute.xlu1 %7853  ;;  %v7917_v15 = vpack.i.bf16 %v7528_v61, %v7525_v36 }
 0x2fb   : > { %v8103_v26 = vadd.high.f32.bf16 %v9782_v17, %v7854_v54  ;;  %v8104_v7 = vadd.low.f32.bf16 %v13505_v59, %v7854_v54 }
 0x2fc   : > { %7918 = vrot.lane.b32.xlu1 %v7917_v15, %s8174_s26  ;;  %v7859_v35 = vpop.permute.xlu0 %7858 }
 0x2fd   : > { %4011 = vst.msk [vmem:[#allocation3 + $0x18] sm:$0xff] %vm13506_vm9, %v8104_v7  ;;  %v8105_v22 = vadd.high.f32.bf16 %v9832_v50, %v7859_v35  ;;  %v8106_v20 = vadd.low.f32.bf16 %v9791_v10, %v7859_v35  ;;  %v10742_v10 = vld [vmem:[%s12975_s2 + $0x14] ss:$0 sm:$0xff] }
 0x2fe   : > { %v7864_v12 = vpop.permute.xlu1 %7863  ;;  %4012 = vst.msk [vmem:[#allocation3 + $0x20] sm:$0xff] %vm13507_vm10, %v8103_v26  ;;  %vm13511_vm10 = vmmov %vm13506_vm9 }
 0x2ff   : > { %v8107_v17 = vadd.high.f32.bf16 %v9889_v24, %v7864_v12  ;;  %v8108_v41 = vadd.low.f32.bf16 %v9844_v18, %v7864_v12  ;;  %4013 = vst.msk [vmem:[#allocation3 + $0x28] sm:$0xff] %vm13508_vm11, %v8106_v20  ;;  %v4052_v24 = vld [vmem:[#allocation3 + $0x8] sm:$0xff]  ;;  %vm13512_vm11 = vmmov %vm13506_vm9 }
 0x300   : > { %v7642_v48 = vld [vmem:[#allocation2 + $0x78] sm:$0xff]   ;;  %v7869_v42 = vpop.permute.xlu0 %7868  ;;  %4014 = vst.msk [vmem:[#allocation3 + $0x30] sm:$0xff] %vm13509_vm12, %v8105_v22  ;;  %v4116_v18 = vld [vmem:[#allocation3 + $0x9] sm:$0xff]  ;;  %v4220_v19 = vmul.f32 %v10737_v33, %v4052_v24  ;;  %vm13516_vm12 = vmmov %vm13506_vm9 }
 0x301   : > { %v7533_v50 = vunpack.c.h.bf16 %v7642_v48  ;;  %v7532_v60 = vunpack.c.l.bf16 %v7642_v48  ;;  %4015 = vst.msk [vmem:[#allocation3 + $0x38] sm:$0xff] %vm13510_vm14, %v8108_v41  ;;  %v8109_v56 = vadd.high.f32.bf16 %v9951_v45, %v7869_v42  ;;  %v8110_v52 = vadd.low.f32.bf16 %v9899_v14, %v7869_v42  ;;  %v10769_v45 = vld [vmem:[%s12975_s2 + $0x18] ss:$0 sm:$0xff]  ;;  %v10774_v14 = vld [vmem:[%s12975_s2 + $0x19] ss:$0 sm:$0xff]  ;;  %vm13517_vm14 = vmmov %vm13506_vm9 }
 0x302   : > { %4016 = vst.msk [vmem:[#allocation3 + $0x40] sm:$0xff] %vm13506_vm9, %v8107_v17  ;;  %v4288_v9 = vmul.f32 %v10742_v10, %v4116_v18 }
 0x303   : > { %3945 = vrot.lane.b32.xlu1 %v7533_v50, %s8174_s26  ;;  %v7922_v1 = vpack.i.bf16 %v7532_v60, %v7529_v57  ;;  %4017 = vst.msk [vmem:[#allocation3 + $0x48] sm:$0xff] %vm13511_vm10, %v8110_v52  ;;  %vm13525_vm10 = vmmov %vm13506_vm9 }
 0x304   : > { %4018 = vst.msk [vmem:[#allocation3 + $0x50] sm:$0xff] %vm13512_vm11, %v8109_v56  ;;  %v4054_v31 = vld [vmem:[#allocation3 + $0x18] sm:$0xff]  ;;  %vm13526_vm11 = vmmov %vm13506_vm9 }
 0x305   : > { %7923 = vrot.lane.b32.xlu0 %v7922_v1, %s8174_s26  ;;  %v4086_v0 = vld [vmem:[#allocation3 + $0x17] sm:$0xff]  ;;  %v4430_v4 = vmul.f32 %v10759_v25, %v4054_v31  ;;  %v10792_v36 = vld [vmem:[#allocation3 + $0x20] sm:$0xff]  ;;  %v4222_v35 = vmul.f32 %v10737_v33, %v4054_v31  ;;  %v7874_v42 = vpop.permute.xlu1 %7873 }
 0x306   : > { %v4118_v6 = vld [vmem:[#allocation3 + $0x19] sm:$0xff]  ;;  %v4362_v21 = vmul.f32 %v10754_v5, %v4086_v0  ;;  %v4117_v54 = vld [vmem:[#allocation3 + $0x11] sm:$0xff]  ;;  %v4154_v15 = vmul.f32 %v10730_v53, %v4086_v0  ;;  %v4431_v7 = vmul.f32 %v10759_v25, %v10792_v36  ;;  %v10803_v12 = vld [vmem:[#allocation3 + $0x28] sm:$0xff] }
 0x307   : > { %v4498_v3 = vmul.f32 %v10764_v34, %v4118_v6  ;;  %v10794_v61 = vld [vmem:[#allocation3 + $0x1f] sm:$0xff]  ;;  %v4289_v26 = vmul.f32 %v10742_v10, %v4117_v54  ;;  %v10805_v22 = vld [vmem:[#allocation3 + $0x27] sm:$0xff]  ;;  %v4462_v57 = vadd.f32 %v4430_v4, %v4220_v19  ;;  %v4290_v41 = vmul.f32 %v10742_v10, %v4118_v6  ;;  %v10816_v8 = vld [vmem:[#allocation3 + $0x30] sm:$0xff] }
 0x308   : > { %v4363_v59 = vmul.f32 %v10754_v5, %v10794_v61  ;;  %v10807_v20 = vld [vmem:[#allocation3 + $0x29] sm:$0xff]  ;;  %v4394_v48 = vadd.f32 %v4362_v21, %v4152_v38  ;;  %v4572_v50 = vmul.f32 %v10769_v45, %v10805_v22  ;;  %v4640_v60 = vmul.f32 %v10774_v14, %v10803_v12  ;;  %v4119_v11 = vld [vmem:[#allocation3 + $0x21] sm:$0xff]  ;;  %v10820_v1 = vld [vmem:[#allocation3 + $0x31] sm:$0xff] }
 0x309   : > { %v4530_v17 = vadd.f32 %v4498_v3, %v4288_v9  ;;  %v4708_v24 = vmul.f32 %v10779_v13, %v10807_v20  ;;  %v10818_v18 = vld [vmem:[#allocation3 + $0x2f] sm:$0xff]  ;;  %v4463_v56 = vadd.f32 %v4431_v7, %v4221_v44  ;;  %v4499_v52 = vmul.f32 %v10764_v34, %v4119_v11 }
 0x30a   : > { %v4395_v62 = vadd.f32 %v4363_v59, %v4153_v29  ;;  %v4604_v38 = vadd.f32 %v4572_v50, %v4394_v48  ;;  %v4672_v19 = vadd.f32 %v4640_v60, %v4462_v57  ;;  %v4573_v31 = vmul.f32 %v10769_v45, %v10818_v18  ;;  %v13513_v0 = vld [vmem:[#allocation48_spill] sm:$0xff]  ;;  %v10839_v50 = vld [vmem:[#allocation3 + $0x38] sm:$0xff] }
 0x30b   : > { %v4740_v9 = vadd.f32 %v4708_v24, %v4530_v17  ;;  %v8111_v6 = vadd.high.f32.bf16 %v13513_v0, %v7874_v42  ;;  %v13514_v21 = vld [vmem:[#allocation4_spill] sm:$0xff]  ;;  %v4531_v3 = vadd.f32 %v4499_v52, %v4289_v26  ;;  %v4641_v54 = vmul.f32 %v10774_v14, %v10816_v8  ;;  %v10841_v60 = vld [vmem:[#allocation3 + $0x39] sm:$0xff] }
 0x30c   : > { %v8112_v4 = vadd.low.f32.bf16 %v13514_v21, %v7874_v42  ;;  %v10829_v29 = vld [vmem:[#allocation3 + $0x37] sm:$0xff]  ;;  %v4772_v44 = vsel %vm8397_vm4, %v4604_v38, 0.0  ;;  %v4605_v7 = vadd.f32 %v4573_v31, %v4395_v62  ;;  %v4709_v48 = vmul.f32 %v10779_v13, %v10820_v1  ;;  %v3904_v26 = vpop.permute.xlu0 %3903  ;;  %v13518_v52 = vld [vmem:[#allocation46_spill] sm:$0xff] }
 0x30d   : > { %v4364_v57 = vmul.f32 %v10754_v5, %v10805_v22  ;;  %4020 = vst.msk [vmem:[#allocation3 + $0x60] sm:$0xff] %vm13517_vm14, %v8111_v6  ;;  %v4804_v17 = vadd.f32 %v4772_v44, %v4672_v19  ;;  %v4673_v42 = vadd.f32 %v4641_v54, %v4463_v56  ;;  %v4432_v24 = vmul.f32 %v10759_v25, %v10803_v12  ;;  %vm13529_vm14 = vmmov %vm13506_vm9 }
 0x30e   : > { %4019 = vst.msk [vmem:[#allocation3 + $0x58] sm:$0xff] %vm13516_vm12, %v8112_v4  ;;  %v4500_v62 = vmul.f32 %v10764_v34, %v10807_v20  ;;  %v3989_v38 = vadd.f32 %v3904_v26, %v13518_v52  ;;  %v4741_v31 = vadd.f32 %v4709_v48, %v4531_v3  ;;  %v4574_v6 = vmul.f32 %v10769_v45, %v10829_v29  ;;  %vm13528_vm12 = vmmov %vm13506_vm9 }
 0x30f   : > { %v4396_v0 = vadd.f32 %v4364_v57, %v4154_v15  ;;  %v10850_v21 = vadd.f32 %v4804_v17, %v4740_v9  ;;  %v4805_v56 = vadd.f32 %v4673_v42, %v4605_v7  ;;  %v4464_v19 = vadd.f32 %v4432_v24, %v4222_v35  ;;  %v10863_v7 = vld [vmem:[#allocation3 + $0x40] sm:$0xff] }
 0x310   : > { %v4532_v4 = vadd.f32 %v4500_v62, %v4290_v41  ;;  %4021 = vst.msk [vmem:[#allocation3 + $0x68] sm:$0xff] %vm13506_vm9, %v3989_v38  ;;  %v4837_v44 = vsel %vm8473_vm5, %v4741_v31, 0.0  ;;  %v4642_v37 = vmul.f32 %v10774_v14, %v10839_v50  ;;  %v4710_v15 = vmul.f32 %v10779_v13, %v10841_v60  ;;  %v10865_v35 = vld [vmem:[#allocation3 + $0x3f] sm:$0xff] }
 0x311   : > { %v4606_v59 = vadd.f32 %v4574_v6, %v4396_v0  ;;  %v7278_v3 = vpack.c.bf16 %v10850_v21, %v10850_v21  ;;  %v10861_v9 = vadd.f32 %v4837_v44, %v4805_v56  ;;  %v10867_v41 = vld [vmem:[#allocation3 + $0x41] sm:$0xff]  ;;  %v4155_v48 = vmul.f32 %v10730_v53, %v10794_v61 }
 0x312   : > { %v4223_v57 = vmul.f32 %v10737_v33, %v10792_v36  ;;  %v4674_v26 = vadd.f32 %v4642_v37, %v4464_v19  ;;  %v4742_v17 = vadd.f32 %v4710_v15, %v4532_v4  ;;  %v4291_v62 = vmul.f32 %v10742_v10, %v4119_v11  ;;  %v10892_v19 = vld [vmem:[#allocation3 + $0x47] sm:$0xff] }
 0x313   : > { %v4774_v24 = vsel %vm8523_vm7, %v4606_v59, 0.0  ;;  %4996 = vrot.lane.b32.xlu0 %v7278_v3, %s8175_s21  ;;  %v7279_v52 = vpack.c.bf16 %v10861_v9, %v10861_v9  ;;  %v4365_v38 = vmul.f32 %v10754_v5, %v10818_v18  ;;  %v4433_v61 = vmul.f32 %v10759_v25, %v10816_v8  ;;  %v10898_v15 = vld [vmem:[#allocation3 + $0x48] sm:$0xff] }
 0x314   : > { %v4501_v37 = vmul.f32 %v10764_v34, %v10820_v1  ;;  %v4806_v36 = vadd.f32 %v4774_v24, %v4674_v26  ;;  %v4575_v59 = vmul.f32 %v10769_v45, %v10865_v35  ;;  %v4643_v11 = vmul.f32 %v10774_v14, %v10863_v7 }
 0x315   : > { %v4711_v31 = vmul.f32 %v10779_v13, %v10867_v41  ;;  %4998 = vrot.lane.b32.xlu1 %v7279_v52, %s8175_s21  ;;  %v4397_v0 = vadd.f32 %v4365_v38, %v4155_v48  ;;  %v4465_v6 = vadd.f32 %v4433_v61, %v4223_v57  ;;  %v4156_v4 = vmul.f32 %v10730_v53, %v10805_v22  ;;  %v10906_v52 = vld [vmem:[#allocation3 + $0x49] sm:$0xff]  ;;  %v10964_v42 = vld [vmem:[#allocation3 + $0x58] sm:$0xff] }
 0x316   : > { %v4533_v56 = vadd.f32 %v4501_v37, %v4291_v62  ;;  %v10896_v44 = vadd.f32 %v4806_v36, %v4742_v17  ;;  %v4224_v3 = vmul.f32 %v10737_v33, %v10803_v12  ;;  %v4292_v26 = vmul.f32 %v10742_v10, %v10807_v20 }
 0x317   : > { %v4366_v48 = vmul.f32 %v10754_v5, %v10829_v29  ;;  %v4607_v57 = vadd.f32 %v4575_v59, %v4397_v0  ;;  %v4675_v24 = vadd.f32 %v4643_v11, %v4465_v6  ;;  %v4434_v22 = vmul.f32 %v10759_v25, %v10839_v50 }
 0x318   : > { %v4743_v62 = vadd.f32 %v4711_v31, %v4533_v56  ;;  %v7280_v17 = vpack.c.bf16 %v10896_v44, %v10896_v44  ;;  %v4502_v12 = vmul.f32 %v10764_v34, %v10841_v60  ;;  %v4576_v20 = vmul.f32 %v10769_v45, %v10892_v19  ;;  %v10923_v56 = vld [vmem:[#allocation3 + $0x4f] sm:$0xff] }
 0x319   : > { %v4398_v38 = vadd.f32 %v4366_v48, %v4156_v4  ;;  %v4807_v61 = vadd.f32 %v4675_v24, %v4607_v57  ;;  %v4466_v59 = vadd.f32 %v4434_v22, %v4224_v3  ;;  %v4644_v11 = vmul.f32 %v10774_v14, %v10898_v15  ;;  %v10929_v24 = vld [vmem:[#allocation3 + $0x50] sm:$0xff] }
 0x31a   : > { %v4839_v36 = vsel %vm8550_vm8, %v4743_v62, 0.0  ;;  %5000 = vrot.lane.b32.xlu0 %v7280_v17, %s8175_s21  ;;  %v4534_v31 = vadd.f32 %v4502_v12, %v4292_v26  ;;  %v4712_v6 = vmul.f32 %v10779_v13, %v10906_v52  ;;  %v4157_v4 = vmul.f32 %v10730_v53, %v10818_v18  ;;  %v10931_v3 = vld [vmem:[#allocation3 + $0x51] sm:$0xff] }
 0x31b   : > { %v4608_v0 = vadd.f32 %v4576_v20, %v4398_v38  ;;  %v10927_v48 = vadd.f32 %v4839_v36, %v4807_v61  ;;  %v4676_v57 = vadd.f32 %v4644_v11, %v4466_v59  ;;  %v4225_v62 = vmul.f32 %v10737_v33, %v10816_v8 }
 0x31c   : > { %v4293_v26 = vmul.f32 %v10742_v10, %v10820_v1  ;;  %v4744_v22 = vadd.f32 %v4712_v6, %v4534_v31  ;;  %v4367_v18 = vmul.f32 %v10754_v5, %v10865_v35  ;;  %v4435_v12 = vmul.f32 %v10759_v25, %v10863_v7 }
 0x31d   : > { %v4776_v38 = vsel %vm8807_vm15, %v4608_v0, 0.0  ;;  %v7281_v20 = vpack.c.bf16 %v10927_v48, %v10927_v48  ;;  %v4503_v8 = vmul.f32 %v10764_v34, %v10867_v41  ;;  %v4577_v1 = vmul.f32 %v10769_v45, %v10923_v56 }
 0x31e   : > { %v4808_v61 = vadd.f32 %v4776_v38, %v4676_v57  ;;  %v4399_v36 = vadd.f32 %v4367_v18, %v4157_v4  ;;  %v4467_v59 = vadd.f32 %v4435_v12, %v4225_v62  ;;  %v4645_v11 = vmul.f32 %v10774_v14, %v10929_v24  ;;  %v7879_v0 = vpop.permute.xlu1 %7878  ;;  %v10960_v18 = vld [vmem:[#allocation3 + $0x57] sm:$0xff] }
 0x31f   : > { %v4713_v31 = vmul.f32 %v10779_v13, %v10931_v3  ;;  %5002 = vrot.lane.b32.xlu1 %v7281_v20, %s8175_s21  ;;  %v4535_v57 = vadd.f32 %v4503_v8, %v4293_v26  ;;  %v4158_v38 = vmul.f32 %v10730_v53, %v10829_v29  ;;  %v4226_v17 = vmul.f32 %v10737_v33, %v10839_v50  ;;  %v10966_v20 = vld [vmem:[#allocation3 + $0x59] sm:$0xff] }
 0x320   : > { %v10954_v6 = vadd.f32 %v4808_v61, %v4744_v22  ;;  %v4609_v4 = vadd.f32 %v4577_v1, %v4399_v36  ;;  %v4677_v62 = vadd.f32 %v4645_v11, %v4467_v59  ;;  %v4294_v26 = vmul.f32 %v10742_v10, %v10841_v60  ;;  %v13523_v22 = vld [vmem:[#allocation27_spill] sm:$0xff] }
 0x321   : > { %v4745_v37 = vadd.f32 %v4713_v31, %v4535_v57  ;;  %v4368_v29 = vmul.f32 %v10754_v5, %v10892_v19  ;;  %v8113_v50 = vadd.high.f32.bf16 %v10108_v47, %v7879_v0  ;;  %v8114_v61 = vadd.low.f32.bf16 %v13523_v22, %v7879_v0  ;;  %v10997_v22 = vld [vmem:[#allocation3 + $0x60] sm:$0xff] }
 0x322   : > { %v7282_v12 = vpack.c.bf16 %v10954_v6, %v10954_v6  ;;  %v4809_v8 = vadd.f32 %v4677_v62, %v4609_v4  ;;  %v4436_v1 = vmul.f32 %v10759_v25, %v10898_v15  ;;  %v4504_v60 = vmul.f32 %v10764_v34, %v10906_v52 }
 0x323   : > { %v4841_v59 = vsel %vm8833_vm0, %v4745_v37, 0.0  ;;  %v4400_v11 = vadd.f32 %v4368_v29, %v4158_v38  ;;  %v4578_v31 = vmul.f32 %v10769_v45, %v10960_v18  ;;  %4022 = vst.msk [vmem:[#allocation3 + $0x70] sm:$0xff] %vm13525_vm10, %v8114_v61  ;;  %v4646_v57 = vmul.f32 %v10774_v14, %v10964_v42  ;;  %vm13534_vm10 = vmmov %vm13506_vm9 }
 0x324   : > { %5004 = vrot.lane.b32.xlu0 %v7282_v12, %s8175_s21  ;;  %4023 = vst.msk [vmem:[#allocation3 + $0x78] sm:$0xff] %vm13526_vm11, %v8113_v50  ;;  %v10985_v47 = vadd.f32 %v4841_v59, %v4809_v8  ;;  %v4468_v0 = vadd.f32 %v4436_v1, %v4226_v17  ;;  %v4714_v37 = vmul.f32 %v10779_v13, %v10966_v20  ;;  %v10999_v17 = vld [vmem:[#allocation3 + $0x5f] sm:$0xff]  ;;  %vm13538_vm11 = vmmov %vm13506_vm9 }
 0x325   : > { %v4536_v38 = vadd.f32 %v4504_v60, %v4294_v26  ;;  %v4610_v4 = vadd.f32 %v4578_v31, %v4400_v11  ;;  %v4159_v62 = vmul.f32 %v10730_v53, %v10865_v35  ;;  %v4227_v12 = vmul.f32 %v10737_v33, %v10863_v7  ;;  %v11007_v7 = vld [vmem:[#allocation3 + $0x61] sm:$0xff] }
 0x326   : > { %v7283_v29 = vpack.c.bf16 %v10985_v47, %v10985_v47  ;;  %v4678_v50 = vadd.f32 %v4646_v57, %v4468_v0  ;;  %v4295_v61 = vmul.f32 %v10742_v10, %v10867_v41  ;;  %v4369_v26 = vmul.f32 %v10754_v5, %v10923_v56 }
 0x327   : > { %v7884_v8 = vpop.permute.xlu0 %7883  ;;  %v4746_v1 = vadd.f32 %v4714_v37, %v4536_v38  ;;  %v4778_v59 = vsel %vm8900_vm1, %v4610_v4, 0.0  ;;  %v4437_v11 = vmul.f32 %v10759_v25, %v10929_v24  ;;  %v4505_v60 = vmul.f32 %v10764_v34, %v10931_v3 }
 0x328   : > { %5006 = vrot.lane.b32.xlu1 %v7283_v29, %s8175_s21  ;;  %v4810_v31 = vadd.f32 %v4778_v59, %v4678_v50  ;;  %v4401_v41 = vadd.f32 %v4369_v26, %v4159_v62  ;;  %v4579_v37 = vmul.f32 %v10769_v45, %v10999_v17  ;;  %v4647_v38 = vmul.f32 %v10774_v14, %v10997_v22  ;;  %v11024_v29 = vld [vmem:[#allocation3 + $0x67] sm:$0xff] }
 0x329   : > { %v4469_v0 = vadd.f32 %v4437_v11, %v4227_v12  ;;  %v4537_v57 = vadd.f32 %v4505_v60, %v4295_v61  ;;  %v8115_v4 = vadd.high.f32.bf16 %v10159_v27, %v7884_v8  ;;  %v8116_v35 = vadd.low.f32.bf16 %v10122_v39, %v7884_v8  ;;  %v11026_v50 = vld [vmem:[#allocation3 + $0x68] sm:$0xff] }
 0x32a   : > { %v11020_v36 = vadd.f32 %v4810_v31, %v4746_v1  ;;  %v4715_v54 = vmul.f32 %v10779_v13, %v11007_v7  ;;  %v4611_v62 = vadd.f32 %v4579_v37, %v4401_v41  ;;  %v11028_v61 = vld [vmem:[#allocation3 + $0x69] sm:$0xff]  ;;  %v4160_v26 = vmul.f32 %v10730_v53, %v10892_v19 }
 0x32b   : > { %v4679_v12 = vadd.f32 %v4647_v38, %v4469_v0  ;;  %v4228_v27 = vmul.f32 %v10737_v33, %v10898_v15  ;;  %4024 = vst.msk [vmem:[#allocation3 + $0x80] sm:$0xff] %vm13528_vm12, %v8116_v35  ;;  %v4296_v1 = vmul.f32 %v10742_v10, %v10906_v52  ;;  %v4370_v59 = vmul.f32 %v10754_v5, %v10960_v18  ;;  %v11057_v38 = vld [vmem:[#allocation3 + $0x6f] sm:$0xff]  ;;  %v11090_v60 = vld [vmem:[#allocation3 + $0x78] sm:$0xff]  ;;  %vm13539_vm12 = vmmov %vm13506_vm9 }
 0x32c   : > { %4025 = vst.msk [vmem:[#allocation3 + $0x88] sm:$0xff] %vm13529_vm14, %v8115_v4  ;;  %v7284_v39 = vpack.c.bf16 %v11020_v36, %v11020_v36  ;;  %v4747_v8 = vadd.f32 %v4715_v54, %v4537_v57  ;;  %v4438_v19 = vmul.f32 %v10759_v25, %v10964_v42  ;;  %v4506_v15 = vmul.f32 %v10764_v34, %v10966_v20 }
 0x32d   : > { %v4811_v11 = vadd.f32 %v4679_v12, %v4611_v62  ;;  %v4580_v35 = vmul.f32 %v10769_v45, %v11024_v29  ;;  %v4402_v31 = vadd.f32 %v4370_v59, %v4160_v26  ;;  %v4648_v52 = vmul.f32 %v10774_v14, %v11026_v50  ;;  %v11069_v59 = vld [vmem:[#allocation3 + $0x70] sm:$0xff] }
 0x32e   : > { %5008 = vrot.lane.b32.xlu0 %v7284_v39, %s8175_s21  ;;  %v4843_v54 = vsel %vm8924_vm3, %v4747_v8, 0.0  ;;  %v4716_v41 = vmul.f32 %v10779_v13, %v11028_v61  ;;  %v4470_v57 = vadd.f32 %v4438_v19, %v4228_v27  ;;  %v4538_v37 = vadd.f32 %v4506_v15, %v4296_v1 }
 0x32f   : > { %v11055_v0 = vadd.f32 %v4843_v54, %v4811_v11  ;;  %v4161_v4 = vmul.f32 %v10730_v53, %v10923_v56  ;;  %v4612_v62 = vadd.f32 %v4580_v35, %v4402_v31  ;;  %v4229_v12 = vmul.f32 %v10737_v33, %v10929_v24  ;;  %v11071_v11 = vld [vmem:[#allocation3 + $0x71] sm:$0xff] }
 0x330   : > { %v4297_v26 = vmul.f32 %v10742_v10, %v10931_v3  ;;  %v4371_v39 = vmul.f32 %v10754_v5, %v10999_v17  ;;  %v4680_v27 = vadd.f32 %v4648_v52, %v4470_v57  ;;  %v4748_v1 = vadd.f32 %v4716_v41, %v4538_v37  ;;  %v7889_v19 = vpop.permute.xlu1 %7888 }
 0x331   : > { %13531 = vst [vmem:[#allocation10_spill] sm:$0xff] %v11055_v0  ;;  %v7285_v8 = vpack.c.bf16 %v11055_v0, %v11055_v0  ;;  %v4439_v56 = vmul.f32 %v10759_v25, %v10997_v22  ;;  %v4780_v15 = vsel %vm9008_vm2, %v4612_v62, 0.0  ;;  %v4507_v35 = vmul.f32 %v10764_v34, %v11007_v7  ;;  %v11092_v0 = vld [vmem:[#allocation3 + $0x77] sm:$0xff] }
 0x332   : > { %v4403_v3 = vadd.f32 %v4371_v39, %v4161_v4  ;;  %v4581_v54 = vmul.f32 %v10769_v45, %v11057_v38  ;;  %v4812_v31 = vadd.f32 %v4780_v15, %v4680_v27  ;;  %v4649_v37 = vmul.f32 %v10774_v14, %v11069_v59  ;;  %v11096_v27 = vld [vmem:[#allocation3 + $0x79] sm:$0xff] }
 0x333   : > { %5010 = vrot.lane.b32.xlu1 %v7285_v8, %s8175_s21  ;;  %v4471_v52 = vadd.f32 %v4439_v56, %v4229_v12  ;;  %v4539_v41 = vadd.f32 %v4507_v35, %v4297_v26  ;;  %v4717_v24 = vmul.f32 %v10779_v13, %v11071_v11  ;;  %v8117_v4 = vadd.high.f32.bf16 %v10205_v49, %v7889_v19 }
 0x334   : > { %v4613_v57 = vadd.f32 %v4581_v54, %v4403_v3  ;;  %v8118_v62 = vadd.low.f32.bf16 %v10177_v43, %v7889_v19  ;;  %v11088_v39 = vadd.f32 %v4812_v31, %v4748_v1  ;;  %v4162_v12 = vmul.f32 %v10730_v53, %v10960_v18 }
 0x335   : > { %v4681_v26 = vadd.f32 %v4649_v37, %v4471_v52  ;;  %v4749_v8 = vadd.f32 %v4717_v24, %v4539_v41  ;;  %v4230_v56 = vmul.f32 %v10737_v33, %v10964_v42  ;;  %v4298_v49 = vmul.f32 %v10742_v10, %v10966_v20  ;;  %4027 = vst.msk [vmem:[#allocation3 + $0x98] sm:$0xff] %vm13534_vm10, %v8117_v4  ;;  %v11121_v41 = vld [vmem:[#allocation3 + $0x7f] sm:$0xff]  ;;  %v11152_v24 = vld [vmem:[#allocation3 + $0x87] sm:$0xff] }
 0x336   : > { %13533 = vst [vmem:[#allocation16_spill] sm:$0xff] %v11088_v39  ;;  %4026 = vst.msk [vmem:[#allocation3 + $0x90] sm:$0xff] %vm13506_vm9, %v8118_v62  ;;  %v7286_v43 = vpack.c.bf16 %v11088_v39, %v11088_v39  ;;  %v4372_v18 = vmul.f32 %v10754_v5, %v11024_v29  ;;  %v4440_v1 = vmul.f32 %v10759_v25, %v11026_v50  ;;  %v11125_v37 = vld [vmem:[#allocation3 + $0x80] sm:$0xff] }
 0x337   : > { %v4508_v19 = vmul.f32 %v10764_v34, %v11028_v61  ;;  %v4813_v42 = vadd.f32 %v4681_v26, %v4613_v57  ;;  %v4845_v20 = vsel %vm9022_vm6, %v4749_v8, 0.0  ;;  %v4582_v15 = vmul.f32 %v10769_v45, %v11092_v0  ;;  %v11127_v4 = vld [vmem:[#allocation3 + $0x81] sm:$0xff] }
 0x338   : > { %v4650_v3 = vmul.f32 %v10774_v14, %v11090_v60  ;;  %5012 = vrot.lane.b32.xlu0 %v7286_v43, %s8175_s21  ;;  %v4404_v35 = vadd.f32 %v4372_v18, %v4162_v12  ;;  %v4472_v54 = vadd.f32 %v4440_v1, %v4230_v56  ;;  %v4718_v52 = vmul.f32 %v10779_v13, %v11096_v27 }
 0x339   : > { %v4540_v31 = vadd.f32 %v4508_v19, %v4298_v49  ;;  %v11123_v57 = vadd.f32 %v4845_v20, %v4813_v42  ;;  %v4163_v62 = vmul.f32 %v10730_v53, %v10999_v17  ;;  %v4231_v26 = vmul.f32 %v10737_v33, %v10997_v22 }
 0x33a   : > { %v4299_v12 = vmul.f32 %v10742_v10, %v11007_v7  ;;  %v4614_v8 = vadd.f32 %v4582_v15, %v4404_v35  ;;  %v4682_v56 = vadd.f32 %v4650_v3, %v4472_v54  ;;  %v4373_v43 = vmul.f32 %v10754_v5, %v11057_v38 }
 0x33b   : > { %13536 = vst [vmem:[#allocation15_spill] sm:$0xff] %v11123_v57  ;;  %v4750_v49 = vadd.f32 %v4718_v52, %v4540_v31  ;;  %v7287_v18 = vpack.c.bf16 %v11123_v57, %v11123_v57  ;;  %v4441_v1 = vmul.f32 %v10759_v25, %v11069_v59  ;;  %v4509_v17 = vmul.f32 %v10764_v34, %v11071_v11 }
 0x33c   : > { %v4583_v22 = vmul.f32 %v10769_v45, %v11121_v41  ;;  %v7894_v19 = vpop.permute.xlu0 %7893  ;;  %v4782_v42 = vsel %vm9097_vm13, %v4614_v8, 0.0  ;;  %v4405_v20 = vadd.f32 %v4373_v43, %v4163_v62  ;;  %v4651_v15 = vmul.f32 %v10774_v14, %v11125_v37 }
 0x33d   : > { %v4719_v3 = vmul.f32 %v10779_v13, %v11127_v4  ;;  %5014 = vrot.lane.b32.xlu1 %v7287_v18, %s8175_s21  ;;  %v4814_v35 = vadd.f32 %v4782_v42, %v4682_v56  ;;  %v4473_v54 = vadd.f32 %v4441_v1, %v4231_v26  ;;  %v4541_v31 = vadd.f32 %v4509_v17, %v4299_v12  ;;  %v11162_v18 = vld [vmem:[#allocation3 + $0x88] sm:$0xff]  ;;  %v13540_v1 = vld [vmem:[#allocation41_spill] sm:$0xff] }
 0x33e   : > { %v4615_v52 = vadd.f32 %v4583_v22, %v4405_v20  ;;  %v4164_v57 = vmul.f32 %v10730_v53, %v11024_v29  ;;  %v4232_v62 = vmul.f32 %v10737_v33, %v11026_v50  ;;  %v8119_v8 = vadd.high.f32.bf16 %v10322_v51, %v7894_v19  ;;  %v11164_v12 = vld [vmem:[#allocation3 + $0x89] sm:$0xff] }
 0x33f   : > { %v8120_v43 = vadd.low.f32.bf16 %v10291_v63, %v7894_v19  ;;  %v11160_v7 = vadd.f32 %v4814_v35, %v4750_v49  ;;  %v4683_v39 = vadd.f32 %v4651_v15, %v4473_v54  ;;  %v4751_v26 = vadd.f32 %v4719_v3, %v4541_v31  ;;  %v11189_v3 = vld [vmem:[#allocation3 + $0x90] sm:$0xff] }
 0x340   : > { %v4300_v56 = vmul.f32 %v10742_v10, %v11028_v61  ;;  %v4374_v29 = vmul.f32 %v10754_v5, %v11092_v0  ;;  %v4442_v50 = vmul.f32 %v10759_v25, %v11090_v60  ;;  %4029 = vst.msk [vmem:[#allocation3 + $0xa8] sm:$0xff] %vm13539_vm12, %v8119_v8  ;;  %v4510_v49 = vmul.f32 %v10764_v34, %v11096_v27  ;;  %v11191_v35 = vld [vmem:[#allocation3 + $0x8f] sm:$0xff] }
 0x341   : > { %4028 = vst.msk [vmem:[#allocation3 + $0xa0] sm:$0xff] %vm13538_vm11, %v8120_v43  ;;  %v7288_v63 = vpack.c.bf16 %v11160_v7, %v11160_v7  ;;  %v4815_v51 = vadd.f32 %v4683_v39, %v4615_v52  ;;  %v4584_v61 = vmul.f32 %v10769_v45, %v11152_v24  ;;  %vm13541_vm14 = vnez %v13540_v1  ;;  %v11195_v52 = vld [vmem:[#allocation3 + $0x91] sm:$0xff]  ;;  %vm13545_vm11 = vmmov %vm13534_vm10 }
 0x342   : > { %v4847_v17 = vsel %vm13541_vm14, %v4751_v26, 0.0  ;;  %v4406_v22 = vadd.f32 %v4374_v29, %v4164_v57  ;;  %v4474_v19 = vadd.f32 %v4442_v50, %v4232_v62  ;;  %v4652_v42 = vmul.f32 %v10774_v14, %v11162_v18  ;;  %v13543_v29 = vld [vmem:[#allocation44_spill] sm:$0xff] }
 0x343   : > { %5016 = vrot.lane.b32.xlu0 %v7288_v63, %s8175_s21  ;;  %v11185_v20 = vadd.f32 %v4847_v17, %v4815_v51  ;;  %v4542_v15 = vadd.f32 %v4510_v49, %v4300_v56  ;;  %v4720_v39 = vmul.f32 %v10779_v13, %v11164_v12  ;;  %v4165_v54 = vmul.f32 %v10730_v53, %v11057_v38  ;;  %v11224_v1 = vld [vmem:[#allocation3 + $0x97] sm:$0xff] }
 0x344   : > { %v4616_v57 = vadd.f32 %v4584_v61, %v4406_v22  ;;  %v4684_v31 = vadd.f32 %v4652_v42, %v4474_v19  ;;  %v4233_v62 = vmul.f32 %v10737_v33, %v11069_v59  ;;  %v4301_v8 = vmul.f32 %v10742_v10, %v11071_v11 }
 0x345   : > { %13542 = vst [vmem:[#allocation34_spill] sm:$0xff] %v11185_v20  ;;  %v7289_v43 = vpack.c.bf16 %v11185_v20, %v11185_v20  ;;  %v4752_v26 = vadd.f32 %v4720_v39, %v4542_v15  ;;  %v4375_v56 = vmul.f32 %v10754_v5, %v11121_v41  ;;  %v4443_v38 = vmul.f32 %v10759_v25, %v11125_v37 }
 0x346   : > { %vm13544_vm9 = vnez %v13543_v29  ;;  %v4511_v63 = vmul.f32 %v10764_v34, %v11127_v4  ;;  %v4585_v59 = vmul.f32 %v10769_v45, %v11191_v35  ;;  %v4653_v11 = vmul.f32 %v10774_v14, %v11189_v3  ;;  %v7899_v51 = vpop.permute.xlu1 %7898  ;;  %v11222_v29 = vld [vmem:[#allocation3 + $0x98] sm:$0xff] }
 0x347   : > { %v4784_v50 = vsel %vm13544_vm9, %v4616_v57, 0.0  ;;  %5018 = vrot.lane.b32.xlu1 %v7289_v43, %s8175_s21  ;;  %v4407_v61 = vadd.f32 %v4375_v56, %v4165_v54  ;;  %v4475_v17 = vadd.f32 %v4443_v38, %v4233_v62  ;;  %v4721_v22 = vmul.f32 %v10779_v13, %v11195_v52 }
 0x348   : > { %v4816_v49 = vadd.f32 %v4784_v50, %v4684_v31  ;;  %v4543_v19 = vadd.f32 %v4511_v63, %v4301_v8  ;;  %v4166_v42 = vmul.f32 %v10730_v53, %v11092_v0  ;;  %v4234_v31 = vmul.f32 %v10737_v33, %v11090_v60  ;;  %v11230_v8 = vld [vmem:[#allocation3 + $0x99] sm:$0xff]  ;;  %v11286_v20 = vld [vmem:[#allocation3 + $0xa7] sm:$0xff] }
 0x349   : > { %v4617_v39 = vadd.f32 %v4585_v59, %v4407_v61  ;;  %v4685_v57 = vadd.f32 %v4653_v11, %v4475_v17  ;;  %v8121_v54 = vadd.high.f32.bf16 %v10403_v55, %v7899_v51  ;;  %v8122_v62 = vadd.low.f32.bf16 %v10357_v23, %v7899_v51  ;;  %v13546_v23 = vld [vmem:[#allocation8_spill] sm:$0xff]  ;;  %v11255_v61 = vld [vmem:[#allocation3 + $0x9f] sm:$0xff] }
 0x34a   : > { %v11220_v15 = vadd.f32 %v4816_v49, %v4752_v26  ;;  %v4753_v43 = vadd.f32 %v4721_v22, %v4543_v19  ;;  %v4302_v0 = vmul.f32 %v10742_v10, %v11096_v27  ;;  %v4376_v38 = vmul.f32 %v10754_v5, %v11152_v24 }
 0x34b   : > { %v4817_v56 = vadd.f32 %v4685_v57, %v4617_v39  ;;  %v4444_v60 = vmul.f32 %v10759_v25, %v11162_v18  ;;  %4030 = vst.msk [vmem:[#allocation3 + $0xb0] sm:$0xff] %vm13534_vm10, %v8122_v62  ;;  %vm13547_vm12 = vnez %v13546_v23  ;;  %v4512_v27 = vmul.f32 %v10764_v34, %v11164_v12 }
 0x34c   : > { %v7290_v26 = vpack.c.bf16 %v11220_v15, %v11220_v15  ;;  %4031 = vst.msk [vmem:[#allocation3 + $0xb8] sm:$0xff] %vm13545_vm11, %v8121_v54  ;;  %v4849_v55 = vsel %vm13547_vm12, %v4753_v43, 0.0  ;;  %v4586_v50 = vmul.f32 %v10769_v45, %v11224_v1  ;;  %v4654_v63 = vmul.f32 %v10774_v14, %v11222_v29  ;;  %v11265_v54 = vld [vmem:[#allocation3 + $0xa0] sm:$0xff] }
 0x34d   : > { %v11251_v59 = vadd.f32 %v4849_v55, %v4817_v56  ;;  %v4408_v11 = vadd.f32 %v4376_v38, %v4166_v42  ;;  %v4476_v51 = vadd.f32 %v4444_v60, %v4234_v31  ;;  %v4722_v49 = vmul.f32 %v10779_v13, %v11230_v8  ;;  %v13549_v56 = vld [vmem:[#allocation26_spill] sm:$0xff] }
 0x34e   : > { %5020 = vrot.lane.b32.xlu0 %v7290_v26, %s8175_s21  ;;  %v4544_v17 = vadd.f32 %v4512_v27, %v4302_v0  ;;  %v4167_v22 = vmul.f32 %v10730_v53, %v11121_v41  ;;  %v4235_v19 = vmul.f32 %v10737_v33, %v11125_v37  ;;  %v4303_v39 = vmul.f32 %v10742_v10, %v11127_v4  ;;  %v11269_v26 = vld [vmem:[#allocation3 + $0xa1] sm:$0xff] }
 0x34f   : > { %13548 = vst [vmem:[#allocation19_spill] sm:$0xff] %v11251_v59  ;;  %v7291_v57 = vpack.c.bf16 %v11251_v59, %v11251_v59  ;;  %v4618_v42 = vadd.f32 %v4586_v50, %v4408_v11  ;;  %v4686_v31 = vadd.f32 %v4654_v63, %v4476_v51  ;;  %v4377_v62 = vmul.f32 %v10754_v5, %v11191_v35  ;;  %v13551_v11 = vld [vmem:[#allocation37_spill] sm:$0xff] }
 0x350   : > { %v7904_v43 = vpop.permute.xlu0 %7903  ;;  %v4754_v0 = vadd.f32 %v4722_v49, %v4544_v17  ;;  %v4445_v41 = vmul.f32 %v10759_v25, %v11189_v3  ;;  %v4513_v37 = vmul.f32 %v10764_v34, %v11195_v52  ;;  %v4587_v4 = vmul.f32 %v10769_v45, %v11255_v61  ;;  %v13552_v49 = vld [vmem:[#allocation24_spill] sm:$0xff] }
 0x351   : > { %5022 = vrot.lane.b32.xlu1 %v7291_v57, %s8175_s21  ;;  %vm13550_vm10 = vnez %v13549_v56  ;;  %v4409_v60 = vadd.f32 %v4377_v62, %v4167_v22  ;;  %v4655_v63 = vmul.f32 %v10774_v14, %v11265_v54  ;;  %v8123_v51 = vadd.high.f32.bf16 %v13551_v11, %v7904_v43  ;;  %v11290_v22 = vld [vmem:[#allocation3 + $0xa8] sm:$0xff] }
 0x352   : > { %v4786_v38 = vsel %vm13550_vm10, %v4618_v42, 0.0  ;;  %v4477_v27 = vadd.f32 %v4445_v41, %v4235_v19  ;;  %v4545_v50 = vadd.f32 %v4513_v37, %v4303_v39  ;;  %v8124_v17 = vadd.low.f32.bf16 %v13552_v49, %v7904_v43  ;;  %vm13553_vm10 = vmmov %vm13545_vm11  ;;  %v11298_v62 = vld [vmem:[#allocation3 + $0xa9] sm:$0xff] }
 0x353   : > { %v4818_v55 = vadd.f32 %v4786_v38, %v4686_v31  ;;  %v4619_v23 = vadd.f32 %v4587_v4, %v4409_v60  ;;  %v4723_v59 = vmul.f32 %v10779_v13, %v11269_v26  ;;  %v4168_v19 = vmul.f32 %v10730_v53, %v11152_v24  ;;  %4033 = vst.msk [vmem:[#allocation3 + $0xc8] sm:$0xff] %vm13553_vm10, %v8123_v51  ;;  %v13554_v4 = vld [vmem:[#allocation30_spill] sm:$0xff] }
 0x354   : > { %v4687_v42 = vadd.f32 %v4655_v63, %v4477_v27  ;;  %v4236_v39 = vmul.f32 %v10737_v33, %v11162_v18  ;;  %4032 = vst.msk [vmem:[#allocation3 + $0xc0] sm:$0xff] %vm13545_vm11, %v8124_v17  ;;  %v4304_v43 = vmul.f32 %v10742_v10, %v11164_v12  ;;  %v4446_v41 = vmul.f32 %v10759_v25, %v11222_v29  ;;  %v11323_v17 = vld [vmem:[#allocation3 + $0xaf] sm:$0xff] }
 0x355   : > { %v11288_v57 = vadd.f32 %v4818_v55, %v4754_v0  ;;  %v4755_v31 = vadd.f32 %v4723_v59, %v4545_v50  ;;  %v4378_v0 = vmul.f32 %v10754_v5, %v11224_v1  ;;  %v4514_v37 = vmul.f32 %v10764_v34, %v11230_v8 }
 0x356   : > { %v4819_v18 = vadd.f32 %v4687_v42, %v4619_v23  ;;  %v4588_v59 = vmul.f32 %v10769_v45, %v11286_v20  ;;  %vm13555_vm10 = vnez %v13554_v4  ;;  %v4478_v60 = vadd.f32 %v4446_v41, %v4236_v39  ;;  %v11335_v41 = vld [vmem:[#allocation3 + $0xb1] sm:$0xff] }
 0x357   : > { %v7292_v24 = vpack.c.bf16 %v11288_v57, %v11288_v57  ;;  %v4851_v38 = vsel %vm13555_vm10, %v4755_v31, 0.0  ;;  %v4410_v12 = vadd.f32 %v4378_v0, %v4168_v19  ;;  %v4656_v55 = vmul.f32 %v10774_v14, %v11290_v22  ;;  %v13557_v0 = vld [vmem:[#allocation29_spill] sm:$0xff] }
 0x358   : > { %v11317_v27 = vadd.f32 %v4851_v38, %v4819_v18  ;;  %v4546_v50 = vadd.f32 %v4514_v37, %v4304_v43  ;;  %v4724_v23 = vmul.f32 %v10779_v13, %v11298_v62  ;;  %v4169_v63 = vmul.f32 %v10730_v53, %v11191_v35  ;;  %v11331_v43 = vld [vmem:[#allocation3 + $0xb0] sm:$0xff]  ;;  %v13559_v18 = vld [vmem:[#allocation18_spill] sm:$0xff] }
 0x359   : > { %5024 = vrot.lane.b32.xlu0 %v7292_v24, %s8175_s21  ;;  %v4620_v51 = vadd.f32 %v4588_v59, %v4410_v12  ;;  %v4688_v49 = vadd.f32 %v4656_v55, %v4478_v60  ;;  %v4237_v42 = vmul.f32 %v10737_v33, %v11189_v3  ;;  %v4305_v19 = vmul.f32 %v10742_v10, %v11195_v52  ;;  %v13560_v59 = vld [vmem:[#allocation36_spill] sm:$0xff] }
 0x35a   : > { %13556 = vst [vmem:[#allocation43_spill] sm:$0xff] %v11317_v27  ;;  %v7909_v11 = vpop.permute.xlu1 %7908  ;;  %v7293_v39 = vpack.c.bf16 %v11317_v27, %v11317_v27  ;;  %v4756_v31 = vadd.f32 %v4724_v23, %v4546_v50  ;;  %vm13558_vm11 = vnez %v13557_v0  ;;  %v4379_v24 = vmul.f32 %v10754_v5, %v11255_v61 }
 0x35b   : > { %v4788_v35 = vsel %vm13558_vm11, %v4620_v51, 0.0  ;;  %v4447_v3 = vmul.f32 %v10759_v25, %v11265_v54  ;;  %v4515_v52 = vmul.f32 %v10764_v34, %v11269_v26  ;;  %v8125_v37 = vadd.high.f32.bf16 %v13559_v18, %v7909_v11 }
 0x35c   : > { %v8126_v38 = vadd.low.f32.bf16 %v13560_v59, %v7909_v11  ;;  %5026 = vrot.lane.b32.xlu1 %v7293_v39, %s8175_s21  ;;  %v4820_v12 = vadd.f32 %v4788_v35, %v4688_v49  ;;  %v4589_v60 = vmul.f32 %v10769_v45, %v11323_v17  ;;  %v4411_v55 = vadd.f32 %v4379_v24, %v4169_v63  ;;  %v11356_v39 = vld [vmem:[#allocation3 + $0xb8] sm:$0xff] }
 0x35d   : > { %v4479_v50 = vadd.f32 %v4447_v3, %v4237_v42  ;;  %v4547_v23 = vadd.f32 %v4515_v52, %v4305_v19  ;;  %v4657_v51 = vmul.f32 %v10774_v14, %v11331_v43  ;;  %vm13561_vm11 = vcmask 15360   ;;  %v11358_v49 = vld [vmem:[#allocation3 + $0xb7] sm:$0xff] }
 0x35e   : > { %4034 = vst.msk [vmem:[#allocation3 + $0xd0] sm:$0xff] %vm13561_vm11, %v8126_v38  ;;  %vm13562_vm10 = vmmov %vm13561_vm11  ;;  %v11352_v0 = vadd.f32 %v4820_v12, %v4756_v31  ;;  %v4725_v11 = vmul.f32 %v10779_v13, %v11335_v41  ;;  %v4170_v63 = vmul.f32 %v10730_v53, %v11224_v1  ;;  %v4238_v42 = vmul.f32 %v10737_v33, %v11222_v29  ;;  %v11364_v24 = vld [vmem:[#allocation3 + $0xb9] sm:$0xff] }
 0x35f   : > { %4035 = vst.msk [vmem:[#allocation3 + $0xd8] sm:$0xff] %vm13562_vm10, %v8125_v37  ;;  %v4621_v19 = vadd.f32 %v4589_v60, %v4411_v55  ;;  %v4689_v35 = vadd.f32 %v4657_v51, %v4479_v50  ;;  %v4306_v31 = vmul.f32 %v10742_v10, %v11230_v8  ;;  %v4380_v3 = vmul.f32 %v10754_v5, %v11286_v20  ;;  %v13563_v5 = vld [vmem:[#allocation9_spill] sm:$0xff]  ;;  %v11397_v55 = vld [vmem:[%s12975_s2 + $0x13] ss:$0 sm:$0xff]  ;;  %v11401_v51 = vld [vmem:[#allocation3 + $0xc0] sm:$0xff] }
 0x360   : > { %v7294_v52 = vpack.c.bf16 %v11352_v0, %v11352_v0  ;;  %v4757_v18 = vadd.f32 %v4725_v11, %v4547_v23  ;;  %v4448_v53 = vmul.f32 %v10759_v25, %v11290_v22  ;;  %v4516_v33 = vmul.f32 %v10764_v34, %v11298_v62  ;;  %v11403_v11 = vld [vmem:[#allocation3 + $0xbf] sm:$0xff] }
 0x361   : > { %v4821_v1 = vadd.f32 %v4689_v35, %v4621_v19  ;;  %v4412_v29 = vadd.f32 %v4380_v3, %v4170_v63  ;;  %v4590_v37 = vmul.f32 %v10769_v45, %v11358_v49  ;;  %v4658_v10 = vmul.f32 %v10774_v14, %v11356_v39  ;;  %v11390_v45 = vld [vmem:[%s12975_s2 + $0x12] ss:$0 sm:$0xff]  ;;  %v11409_v19 = vld [vmem:[#allocation3 + $0xc1] sm:$0xff]  ;;  %v11414_v35 = vld [vmem:[%s12975_s2 + $0x14] ss:$0 sm:$0xff] }
 0x362   : > { %5028 = vrot.lane.b32.xlu0 %v7294_v52, %s8175_s21  ;;  %vm13564_vm10 = vnez %v13563_v5  ;;  %v4480_v59 = vadd.f32 %v4448_v53, %v4238_v42  ;;  %v4548_v38 = vadd.f32 %v4516_v33, %v4306_v31  ;;  %v4726_v25 = vmul.f32 %v10779_v13, %v11364_v24  ;;  %v13566_v42 = vld [vmem:[#allocation42_spill] sm:$0xff]  ;;  %v11421_v31 = vld [vmem:[%s12975_s2 + $0x15] ss:$0 sm:$0xff]  ;;  %v13572_v5 = vld [vmem:[#allocation49_spill] sm:$0xff] }
 0x363   : > { %v4853_v8 = vsel %vm13564_vm10, %v4757_v18, 0.0  ;;  %v4622_v60 = vadd.f32 %v4590_v37, %v4412_v29  ;;  %v4171_v14 = vmul.f32 %v11390_v45, %v11255_v61  ;;  %v4239_v13 = vmul.f32 %v11397_v55, %v11265_v54  ;;  %v13568_v18 = vld [vmem:[#allocation12_spill] sm:$0xff] }
 0x364   : > { %v7914_v12 = vpop.permute.xlu0 %7913  ;;  %v11385_v34 = vadd.f32 %v4853_v8, %v4821_v1  ;;  %v4690_v50 = vadd.f32 %v4658_v10, %v4480_v59  ;;  %v4758_v23 = vadd.f32 %v4726_v25, %v4548_v38  ;;  %vm13567_vm11 = vnez %v13566_v42  ;;  %v11430_v1 = vld [vmem:[%s12975_s2 + $0x16] ss:$0 sm:$0xff]  ;;  %v11438_v37 = vld [vmem:[%s12975_s2 + $0x17] ss:$0 sm:$0xff]  ;;  %v11445_v10 = vld [vmem:[%s12975_s2 + $0x18] ss:$0 sm:$0xff] }
 0x365   : > { %v4790_v61 = vsel %vm13567_vm11, %v4622_v60, 0.0  ;;  %v4307_v54 = vmul.f32 %v11414_v35, %v11269_v26  ;;  %v4381_v3 = vmul.f32 %v11421_v31, %v11323_v17  ;;  %v8127_v52 = vadd.high.f32.bf16 %v10589_v32, %v7914_v12  ;;  %v11452_v59 = vld [vmem:[%s12975_s2 + $0x19] ss:$0 sm:$0xff]  ;;  %v11463_v60 = vld [vmem:[%s12975_s2 + $0x1a] ss:$0 sm:$0xff] }
 0x366   : > { %13565 = vst [vmem:[#allocation5_spill] sm:$0xff] %v11385_v34  ;;  %v7295_v63 = vpack.c.bf16 %v11385_v34, %v11385_v34  ;;  %v8128_v53 = vadd.low.f32.bf16 %v13568_v18, %v7914_v12  ;;  %v4822_v33 = vadd.f32 %v4790_v61, %v4690_v50  ;;  %v4449_v26 = vmul.f32 %v11430_v1, %v11331_v43  ;;  %v11467_v50 = vld [vmem:[#allocation3 + $0xc8] sm:$0xff] }
 0x367   : > { %v4413_v29 = vadd.f32 %v4381_v3, %v4171_v14  ;;  %v4517_v32 = vmul.f32 %v11438_v37, %v11335_v41  ;;  %v4591_v8 = vmul.f32 %v11445_v10, %v11403_v11  ;;  %v4659_v38 = vmul.f32 %v11452_v59, %v11401_v51 }
 0x368   : > { %5030 = vrot.lane.b32.xlu1 %v7295_v63, %s8175_s21  ;;  %vm13569_vm11 = vcmask 15360   ;;  %v11458_v25 = vadd.f32 %v4822_v33, %v4758_v23  ;;  %v4481_v12 = vadd.f32 %v4449_v26, %v4239_v13  ;;  %v4727_v14 = vmul.f32 %v11463_v60, %v11409_v19  ;;  %v11469_v63 = vld [vmem:[#allocation3 + $0xc7] sm:$0xff] }
 0x369   : > { %4036 = vst.msk [vmem:[#allocation3 + $0xe0] sm:$0xff] %vm13569_vm11, %v8128_v53  ;;  %vm13570_vm10 = vmmov %vm13569_vm11  ;;  %v4172_v61 = vmul.f32 %v11390_v45, %v11286_v20  ;;  %v4549_v3 = vadd.f32 %v4517_v32, %v4307_v54  ;;  %v11473_v23 = vld [vmem:[#allocation3 + $0xc9] sm:$0xff]  ;;  %v4240_v13 = vmul.f32 %v11397_v55, %v11290_v22  ;;  %v4308_v18 = vmul.f32 %v11414_v35, %v11298_v62 }
 0x36a   : > { %4037 = vst.msk [vmem:[#allocation3 + $0xe8] sm:$0xff] %vm13570_vm10, %v8127_v52  ;;  %13571 = vst [vmem:[#allocation21_spill] sm:$0xff] %v11458_v25  ;;  %v4623_v52 = vadd.f32 %v4591_v8, %v4413_v29  ;;  %v7296_v53 = vpack.c.bf16 %v11458_v25, %v11458_v25  ;;  %v4691_v33 = vadd.f32 %v4659_v38, %v4481_v12  ;;  %vm13573_vm10 = vnez %v13572_v5  ;;  %v11498_v25 = vld [vmem:[#allocation3 + $0xcf] sm:$0xff] }
 0x36b   : > { %v4382_v26 = vmul.f32 %v11421_v31, %v11358_v49  ;;  %v4450_v20 = vmul.f32 %v11430_v1, %v11356_v39  ;;  %v4759_v54 = vadd.f32 %v4727_v14, %v4549_v3  ;;  %v4518_v29 = vmul.f32 %v11438_v37, %v11364_v24 }
 0x36c   : > { %v4592_v22 = vmul.f32 %v11445_v10, %v11469_v63  ;;  %v4660_v62 = vmul.f32 %v11452_v59, %v11467_v50  ;;  %5032 = vrot.lane.b32.xlu0 %v7296_v53, %s8175_s21  ;;  %v4823_v8 = vadd.f32 %v4691_v33, %v4623_v52  ;;  %v4728_v42 = vmul.f32 %v11463_v60, %v11473_v23  ;;  %v11504_v53 = vld [vmem:[#allocation3 + $0xd0] sm:$0xff] }
 0x36d   : > { %v4414_v38 = vadd.f32 %v4382_v26, %v4172_v61  ;;  %v4482_v12 = vadd.f32 %v4450_v20, %v4240_v13  ;;  %v4855_v14 = vsel %vm13573_vm10, %v4759_v54, 0.0  ;;  %v4550_v3 = vadd.f32 %v4518_v29, %v4308_v18  ;;  %v11506_v33 = vld [vmem:[#allocation3 + $0xd1] sm:$0xff]  ;;  %v13574_v20 = vld [vmem:[#allocation11_spill] sm:$0xff] }
 0x36e   : > { %v7919_v32 = vpop.permute.xlu1 %7918  ;;  %v11496_v4 = vadd.f32 %v4855_v14, %v4823_v8  ;;  %v4173_v27 = vmul.f32 %v11390_v45, %v11323_v17  ;;  %v4241_v18 = vmul.f32 %v11397_v55, %v11331_v43  ;;  %vm13575_vm11 = vnez %v13574_v20 }
 0x36f   : > { %v4624_v56 = vadd.f32 %v4592_v22, %v4414_v38  ;;  %v4692_v34 = vadd.f32 %v4660_v62, %v4482_v12  ;;  %v8129_v52 = vadd.high.f32.bf16 %v10633_v16, %v7919_v32  ;;  %v8130_v61 = vadd.low.f32.bf16 %v10609_v58, %v7919_v32 }
 0x370   : > { %v4760_v13 = vadd.f32 %v4728_v42, %v4550_v3  ;;  %v7297_v26 = vpack.c.bf16 %v11496_v4, %v11496_v4  ;;  %v4309_v17 = vmul.f32 %v11414_v35, %v11335_v41  ;;  %v4383_v58 = vmul.f32 %v11421_v31, %v11403_v11  ;;  %v11538_v3 = vld [vmem:[#allocation3 + $0xd7] sm:$0xff] }
 0x371   : > { %v4792_v54 = vsel %vm13575_vm11, %v4624_v56, 0.0  ;;  %vm13576_vm10 = vcmask 15360   ;;  %v4451_v43 = vmul.f32 %v11430_v1, %v11401_v51  ;;  %v4519_v42 = vmul.f32 %v11438_v37, %v11409_v19 }
 0x372   : > { %4038 = vst.msk [vmem:[#allocation3 + $0xf0] sm:$0xff] %vm13576_vm10, %v8130_v61  ;;  %vm13577_vm12 = vmmov %vm13576_vm10  ;;  %v4824_v16 = vadd.f32 %v4792_v54, %v4692_v34  ;;  %v4593_v56 = vmul.f32 %v11445_v10, %v11498_v25  ;;  %5034 = vrot.lane.b32.xlu1 %v7297_v26, %s8175_s21  ;;  %v4415_v41 = vadd.f32 %v4383_v58, %v4173_v27  ;;  %v11546_v54 = vld [vmem:[#allocation3 + $0xd8] sm:$0xff] }
 0x373   : > { %4039 = vst.msk [vmem:[#allocation3 + $0xf8] sm:$0xff] %vm13577_vm12, %v8129_v52  ;;  %v4661_v29 = vmul.f32 %v11452_v59, %v11504_v53  ;;  %v4729_v22 = vmul.f32 %v11463_v60, %v11506_v33  ;;  %v4174_v34 = vmul.f32 %v11390_v45, %v11358_v49  ;;  %v4483_v8 = vadd.f32 %v4451_v43, %v4241_v18  ;;  %vm13578_vm12 = vmmov %vm13576_vm10 }
 0x374   : > { %v11533_v32 = vadd.f32 %v4824_v16, %v4760_v13  ;;  %v4551_v38 = vadd.f32 %v4519_v42, %v4309_v17  ;;  %v4242_v12 = vmul.f32 %v11397_v55, %v11356_v39  ;;  %v4625_v27 = vadd.f32 %v4593_v56, %v4415_v41  ;;  %v11551_v39 = vld [vmem:[#allocation3 + $0xd9] sm:$0xff] }
 0x375   : > { %v3946_v62 = vpop.permute.xlu1 %3945  ;;  %v4310_v52 = vmul.f32 %v11414_v35, %v11364_v24  ;;  %v4384_v61 = vmul.f32 %v11421_v31, %v11469_v63  ;;  %v4693_v18 = vadd.f32 %v4661_v29, %v4483_v8  ;;  %v4520_v24 = vmul.f32 %v11438_v37, %v11473_v23  ;;  %v13579_v16 = vld [vmem:[#allocation50_spill] sm:$0xff] }
 0x376   : > { %v4010_v14 = vadd.f32 %v3946_v62, %v10676_v46  ;;  %v7298_v13 = vpack.c.bf16 %v11533_v32, %v11533_v32  ;;  %v4761_v26 = vadd.f32 %v4729_v22, %v4551_v38  ;;  %v4452_v46 = vmul.f32 %v11430_v1, %v11467_v50 }
 0x377   : > { %v7924_v49 = vpop.permute.xlu0 %7923  ;;  %v4416_v17 = vadd.f32 %v4384_v61, %v4174_v34  ;;  %v4825_v58 = vadd.f32 %v4693_v18, %v4625_v27  ;;  %vm13580_vm10 = vnez %v13579_v16  ;;  %v4594_v56 = vmul.f32 %v11445_v10, %v11538_v3  ;;  %v11576_v27 = vld [vmem:[#allocation3 + $0xe1] sm:$0xff]  ;;  %v13582_v18 = vld [vmem:[#allocation13_spill] sm:$0xff] }
 0x378   : > { %4042 = vst.msk [vmem:[#allocation3 + $0x110] sm:$0xff] %vm13578_vm12, %v4010_v14  ;;  %5036 = vrot.lane.b32.xlu0 %v7298_v13, %s8175_s21  ;;  %v4857_v43 = vsel %vm13580_vm10, %v4761_v26, 0.0  ;;  %v4484_v42 = vadd.f32 %v4452_v46, %v4242_v12  ;;  %v8131_v41 = vadd.high.f32.bf16 %v10669_v2, %v7924_v49  ;;  %v8132_v29 = vadd.low.f32.bf16 %v10650_v28, %v7924_v49  ;;  %v11568_v14 = vld [vmem:[#allocation3 + $0xdf] sm:$0xff]  ;;  %vm13581_vm10 = vmmov %vm13578_vm12 }
 0x379   : > { %v4552_v22 = vadd.f32 %v4520_v24, %v4310_v52  ;;  %v4662_v34 = vmul.f32 %v11452_v59, %v11546_v54  ;;  %v11564_v62 = vadd.f32 %v4857_v43, %v4825_v58  ;;  %v4626_v8 = vadd.f32 %v4594_v56, %v4416_v17  ;;  %v11574_v2 = vld [vmem:[#allocation3 + $0xe0] sm:$0xff] }
 0x37a   : > { %v4730_v38 = vmul.f32 %v11463_v60, %v11551_v39  ;;  %v4175_v12 = vmul.f32 %v11390_v45, %v11403_v11  ;;  %4040 = vst.msk [vmem:[#allocation3 + $0x100] sm:$0xff] %vm13578_vm12, %v8132_v29  ;;  %v4243_v52 = vmul.f32 %v11397_v55, %v11401_v51  ;;  %v4311_v61 = vmul.f32 %v11414_v35, %v11409_v19  ;;  %v11599_v56 = vld [vmem:[#allocation3 + $0xe7] sm:$0xff] }
 0x37b   : > { %4041 = vst.msk [vmem:[#allocation3 + $0x108] sm:$0xff] %vm13581_vm10, %v8131_v41  ;;  %v4694_v28 = vadd.f32 %v4662_v34, %v4484_v42  ;;  %v4385_v49 = vmul.f32 %v11421_v31, %v11498_v25  ;;  %v7299_v11 = vpack.c.bf16 %v11564_v62, %v11564_v62  ;;  %vm13583_vm10 = vnez %v13582_v18 }
 0x37c   : > { %v4762_v13 = vadd.f32 %v4730_v38, %v4552_v22  ;;  %v4794_v26 = vsel %vm13583_vm10, %v4626_v8, 0.0  ;;  %v4453_v46 = vmul.f32 %v11430_v1, %v11504_v53  ;;  %v4521_v51 = vmul.f32 %v11438_v37, %v11506_v33  ;;  %v11605_v8 = vld [vmem:[#allocation3 + $0xe8] sm:$0xff] }
 0x37d   : > { %v4826_v17 = vadd.f32 %v4794_v26, %v4694_v28  ;;  %v4417_v24 = vadd.f32 %v4385_v49, %v4175_v12  ;;  %v4595_v19 = vmul.f32 %v11445_v10, %v11568_v14  ;;  %5038 = vrot.lane.b32.xlu1 %v7299_v11, %s8175_s21  ;;  %v4663_v43 = vmul.f32 %v11452_v59, %v11574_v2  ;;  %v11609_v28 = vld [vmem:[#allocation3 + $0xe9] sm:$0xff] }
 0x37e   : > { %v4485_v58 = vadd.f32 %v4453_v46, %v4243_v52  ;;  %v4731_v42 = vmul.f32 %v11463_v60, %v11576_v27  ;;  %v4176_v41 = vmul.f32 %v11390_v45, %v11469_v63  ;;  %v4553_v22 = vadd.f32 %v4521_v51, %v4311_v61 }
 0x37f   : > { %v11603_v29 = vadd.f32 %v4826_v17, %v4762_v13  ;;  %v4627_v34 = vadd.f32 %v4595_v19, %v4417_v24  ;;  %v4244_v38 = vmul.f32 %v11397_v55, %v11467_v50  ;;  %v4312_v52 = vmul.f32 %v11414_v35, %v11473_v23  ;;  %v13584_v24 = vld [vmem:[#allocation51_spill] sm:$0xff] }
 0x380   : > { %v4695_v12 = vadd.f32 %v4663_v43, %v4485_v58  ;;  %v4386_v49 = vmul.f32 %v11421_v31, %v11538_v3  ;;  %v4454_v63 = vmul.f32 %v11430_v1, %v11546_v54  ;;  %v4763_v11 = vadd.f32 %v4731_v42, %v4553_v22  ;;  %v11630_v43 = vld [vmem:[#allocation3 + $0xef] sm:$0xff] }
 0x381   : > { %v7300_v61 = vpack.c.bf16 %v11603_v29, %v11603_v29  ;;  %v4522_v13 = vmul.f32 %v11438_v37, %v11551_v39  ;;  %v4596_v50 = vmul.f32 %v11445_v10, %v11599_v56  ;;  %v4664_v23 = vmul.f32 %v11452_v59, %v11605_v8 }
 0x382   : > { %v4827_v26 = vadd.f32 %v4695_v12, %v4627_v34  ;;  %v4418_v46 = vadd.f32 %v4386_v49, %v4176_v41  ;;  %v4486_v17 = vadd.f32 %v4454_v63, %v4244_v38  ;;  %vm13585_vm12 = vnez %v13584_v24  ;;  %v11636_v38 = vld [vmem:[#allocation3 + $0xf0] sm:$0xff]  ;;  %v4354_v16 = vld [vmem:[#allocation3 + $0x107] sm:$0xff] }
 0x383   : > { %5040 = vrot.lane.b32.xlu0 %v7300_v61, %s8175_s21  ;;  %v4859_v51 = vsel %vm13585_vm12, %v4763_v11, 0.0  ;;  %v4554_v19 = vadd.f32 %v4522_v13, %v4312_v52  ;;  %v4732_v58 = vmul.f32 %v11463_v60, %v11609_v28  ;;  %v4177_v42 = vmul.f32 %v11390_v45, %v11498_v25  ;;  %v11640_v63 = vld [vmem:[#allocation3 + $0xf1] sm:$0xff] }
 0x384   : > { %v11634_v22 = vadd.f32 %v4859_v51, %v4827_v26  ;;  %v4628_v41 = vadd.f32 %v4596_v50, %v4418_v46  ;;  %v4696_v34 = vadd.f32 %v4664_v23, %v4486_v17  ;;  %v4245_v12 = vmul.f32 %v11397_v55, %v11504_v53  ;;  %v13587_v13 = vld [vmem:[#allocation20_spill] sm:$0xff] }
 0x385   : > { %v4764_v49 = vadd.f32 %v4732_v58, %v4554_v19  ;;  %v4313_v52 = vmul.f32 %v11414_v35, %v11506_v33  ;;  %v4387_v61 = vmul.f32 %v11421_v31, %v11568_v14  ;;  %v4455_v25 = vmul.f32 %v11430_v1, %v11574_v2  ;;  %v11661_v58 = vld [vmem:[#allocation3 + $0xf8] sm:$0xff]  ;;  %v11723_v20 = vpop.permute.xlu0 %4996 }
 0x386   : > { %13586 = vst [vmem:[#allocation55_spill] sm:$0xff] %v11634_v22  ;;  %v7301_v11 = vpack.c.bf16 %v11634_v22, %v11634_v22  ;;  %vm13588_vm12 = vnez %v13587_v13  ;;  %v4523_v53 = vmul.f32 %v11438_v37, %v11576_v27  ;;  %v4597_v26 = vmul.f32 %v11445_v10, %v11630_v43 }
 0x387   : > { %v4796_v50 = vsel %vm13588_vm12, %v4628_v41, 0.0  ;;  %v4419_v33 = vadd.f32 %v4387_v61, %v4177_v42  ;;  %v4487_v17 = vadd.f32 %v4455_v25, %v4245_v12  ;;  %v4665_v23 = vmul.f32 %v11452_v59, %v11636_v38  ;;  %v11663_v41 = vld [vmem:[#allocation3 + $0xf7] sm:$0xff] }
 0x388   : > { %v4828_v46 = vadd.f32 %v4796_v50, %v4696_v34  ;;  %5042 = vrot.lane.b32.xlu1 %v7301_v11, %s8175_s21  ;;  %v4555_v51 = vadd.f32 %v4523_v53, %v4313_v52  ;;  %v4733_v19 = vmul.f32 %v11463_v60, %v11640_v63  ;;  %v4178_v13 = vmul.f32 %v11390_v45, %v11538_v3  ;;  %v11673_v11 = vld [vmem:[#allocation3 + $0xf9] sm:$0xff] }
 0x389   : > { %v4246_v42 = vmul.f32 %v11397_v55, %v11546_v54  ;;  %v4629_v12 = vadd.f32 %v4597_v26, %v4419_v33  ;;  %v4697_v61 = vadd.f32 %v4665_v23, %v4487_v17  ;;  %v4314_v52 = vmul.f32 %v11414_v35, %v11551_v39 }
 0x38a   : > { %v11669_v34 = vadd.f32 %v4828_v46, %v4764_v49  ;;  %v4765_v25 = vadd.f32 %v4733_v19, %v4555_v51  ;;  %v4388_v50 = vmul.f32 %v11421_v31, %v11599_v56  ;;  %v4456_v53 = vmul.f32 %v11430_v1, %v11605_v8  ;;  %v13590_v46 = vld [vmem:[#allocation52_spill] sm:$0xff] }
 0x38b   : > { %v4524_v3 = vmul.f32 %v11438_v37, %v11609_v28  ;;  %v4829_v49 = vadd.f32 %v4697_v61, %v4629_v12  ;;  %v4598_v26 = vmul.f32 %v11445_v10, %v11663_v41  ;;  %v4666_v39 = vmul.f32 %v11452_v59, %v11661_v58  ;;  %v11694_v12 = vld [vmem:[#allocation3 + $0x100] sm:$0xff] }
 0x38c   : > { %13589 = vst [vmem:[#allocation57_spill] sm:$0xff] %v11669_v34  ;;  %v7302_v54 = vpack.c.bf16 %v11669_v34, %v11669_v34  ;;  %vm13591_vm12 = vnez %v13590_v46  ;;  %v4420_v17 = vadd.f32 %v4388_v50, %v4178_v13  ;;  %v4488_v23 = vadd.f32 %v4456_v53, %v4246_v42  ;;  %v11696_v61 = vld [vmem:[#allocation3 + $0xff] sm:$0xff]  ;;  %v4352_v46 = vld [vmem:[#allocation3 + $0x108] sm:$0xff] }
 0x38d   : > { %v4861_v33 = vsel %vm13591_vm12, %v4765_v25, 0.0  ;;  %v4556_v51 = vadd.f32 %v4524_v3, %v4314_v52  ;;  %v4734_v24 = vmul.f32 %v11463_v60, %v11673_v11  ;;  %v4179_v18 = vmul.f32 %v11390_v45, %v11568_v14  ;;  %v11702_v52 = vld [vmem:[#allocation3 + $0x101] sm:$0xff] }
 0x38e   : > { %5044 = vrot.lane.b32.xlu0 %v7302_v54, %s8175_s21  ;;  %v11690_v19 = vadd.f32 %v4861_v33, %v4829_v49  ;;  %v4247_v25 = vmul.f32 %v11397_v55, %v11574_v2  ;;  %v4630_v13 = vadd.f32 %v4598_v26, %v4420_v17  ;;  %v4698_v42 = vadd.f32 %v4666_v39, %v4488_v23  ;;  %v13593_v49 = vld [vmem:[#allocation33_spill] sm:$0xff] }
 0x38f   : > { %v4315_v50 = vmul.f32 %v11414_v35, %v11576_v27  ;;  %v4389_v53 = vmul.f32 %v11421_v31, %v11630_v43  ;;  %v4766_v54 = vadd.f32 %v4734_v24, %v4556_v51  ;;  %v4457_v14 = vmul.f32 %v11430_v1, %v11636_v38 }
 0x390   : > { %13592 = vst [vmem:[#allocation39_spill] sm:$0xff] %v11690_v19  ;;  %v7303_v3 = vpack.c.bf16 %v11690_v19, %v11690_v19  ;;  %v4525_v2 = vmul.f32 %v11438_v37, %v11640_v63  ;;  %vm13594_vm12 = vnez %v13593_v49  ;;  %v4599_v27 = vmul.f32 %v11445_v10, %v11696_v61  ;;  %v4355_v19 = vld [vmem:[#allocation3 + $0x10f] sm:$0xff] }
 0x391   : > { %v4798_v26 = vsel %vm13594_vm12, %v4630_v13, 0.0  ;;  %v4421_v39 = vadd.f32 %v4389_v53, %v4179_v18  ;;  %v4667_v33 = vmul.f32 %v11452_v59, %v11694_v12  ;;  %v4489_v24 = vadd.f32 %v4457_v14, %v4247_v25  ;;  %v4356_v14 = vld [vmem:[#allocation3 + $0x109] sm:$0xff] }
 0x392   : > { %5046 = vrot.lane.b32.xlu1 %v7303_v3, %s8175_s21  ;;  %v4830_v17 = vadd.f32 %v4798_v26, %v4698_v42  ;;  %v4557_v23 = vadd.f32 %v4525_v2, %v4315_v50  ;;  %v4735_v51 = vmul.f32 %v11463_v60, %v11702_v52  ;;  %v4180_v18 = vmul.f32 %v11390_v45, %v11599_v56  ;;  %v11735_v26 = vpop.permute.xlu1 %4998 }
 0x393   : > { %v4631_v13 = vadd.f32 %v4599_v27, %v4421_v39  ;;  %v4248_v53 = vmul.f32 %v11397_v55, %v11605_v8  ;;  %v4316_v3 = vmul.f32 %v11414_v35, %v11609_v28  ;;  %v4699_v25 = vadd.f32 %v4667_v33, %v4489_v24  ;;  %v13596_v33 = vld [vmem:[#allocation53_spill] sm:$0xff] }
 0x394   : > { %v11731_v42 = vadd.f32 %v4830_v17, %v4766_v54  ;;  %v4767_v50 = vadd.f32 %v4735_v51, %v4557_v23  ;;  %v4390_v2 = vmul.f32 %v11421_v31, %v11663_v41  ;;  %v4458_v39 = vmul.f32 %v11430_v1, %v11661_v58 }
 0x395   : > { %v4526_v56 = vmul.f32 %v11438_v37, %v11673_v11  ;;  %v4600_v8 = vmul.f32 %v11445_v10, %v4354_v16  ;;  %v4668_v28 = vmul.f32 %v11452_v59, %v4352_v46  ;;  %v4831_v27 = vadd.f32 %v4699_v25, %v4631_v13 }
 0x396   : > { %13595 = vst [vmem:[#allocation56_spill] sm:$0xff] %v11731_v42  ;;  %v7304_v54 = vpack.c.bf16 %v11731_v42, %v11731_v42  ;;  %vm13597_vm12 = vnez %v13596_v33  ;;  %v4422_v24 = vadd.f32 %v4390_v2, %v4180_v18  ;;  %v4490_v23 = vadd.f32 %v4458_v39, %v4248_v53  ;;  %v4353_v18 = vld [vmem:[#allocation3 + $0x110] sm:$0xff]  ;;  %v11757_v53 = vpop.permute.xlu0 %5000  ;;  %v4562_v33 = vld [vmem:[#allocation3 + $0x118] sm:$0xff] }
 0x397   : > { %v4863_v17 = vsel %vm13597_vm12, %v4767_v50, 0.0  ;;  %v4558_v51 = vadd.f32 %v4526_v56, %v4316_v3  ;;  %v4736_v49 = vmul.f32 %v11463_v60, %v4356_v14  ;;  %v4181_v5 = vmul.f32 %v11390_v45, %v11630_v43  ;;  %v4357_v2 = vld [vmem:[#allocation3 + $0x111] sm:$0xff] }
 0x398   : > { %5048 = vrot.lane.b32.xlu0 %v7304_v54, %s8175_s21  ;;  %v11751_v22 = vadd.f32 %v4863_v17, %v4831_v27  ;;  %v4632_v34 = vadd.f32 %v4600_v8, %v4422_v24  ;;  %v4249_v13 = vmul.f32 %v11397_v55, %v11636_v38  ;;  %v4317_v25 = vmul.f32 %v11414_v35, %v11640_v63  ;;  %v13599_v8 = vld [vmem:[#allocation35_spill] sm:$0xff] }
 0x399   : > { %v4700_v3 = vadd.f32 %v4668_v28, %v4490_v23  ;;  %v4768_v50 = vadd.f32 %v4736_v49, %v4558_v51  ;;  %v4391_v43 = vmul.f32 %v11421_v31, %v11696_v61  ;;  %v4459_v39 = vmul.f32 %v11430_v1, %v11694_v12  ;;  %v11770_v28 = vpop.permute.xlu1 %5002 }
 0x39a   : > { %13598 = vst [vmem:[#allocation54_spill] sm:$0xff] %v11751_v22  ;;  %v7305_v56 = vpack.c.bf16 %v11751_v22, %v11751_v22  ;;  %vm13600_vm12 = vnez %v13599_v8  ;;  %v4527_v63 = vmul.f32 %v11438_v37, %v11702_v52  ;;  %v4601_v54 = vmul.f32 %v11445_v10, %v4355_v19  ;;  %v4564_v22 = vld [vmem:[#allocation3 + $0x117] sm:$0xff] }
 0x39b   : > { %v4800_v38 = vsel %vm13600_vm12, %v4632_v34, 0.0  ;;  %v4423_v27 = vadd.f32 %v4391_v43, %v4181_v5  ;;  %v4491_v17 = vadd.f32 %v4459_v39, %v4249_v13  ;;  %v4669_v24 = vmul.f32 %v11452_v59, %v4353_v18 }
 0x39c   : > { %v4832_v49 = vadd.f32 %v4800_v38, %v4700_v3  ;;  %5050 = vrot.lane.b32.xlu1 %v7305_v56, %s8175_s21  ;;  %v4559_v23 = vadd.f32 %v4527_v63, %v4317_v25  ;;  %v4737_v51 = vmul.f32 %v11463_v60, %v4357_v2  ;;  %v4182_v34 = vmul.f32 %v11390_v45, %v11663_v41  ;;  %v4566_v41 = vld [vmem:[#allocation3 + $0x119] sm:$0xff]  ;;  %v5005_v38 = vpop.permute.xlu0 %5004 }
 0x39d   : > { %v4250_v8 = vmul.f32 %v11397_v55, %v11661_v58  ;;  %v4633_v3 = vadd.f32 %v4601_v54, %v4423_v27  ;;  %v4701_v5 = vadd.f32 %v4669_v24, %v4491_v17  ;;  %v4318_v13 = vmul.f32 %v11414_v35, %v11673_v11  ;;  %v5007_v17 = vpop.permute.xlu1 %5006 }
 0x39e   : > { %v11779_v42 = vadd.f32 %v4832_v49, %v4768_v50  ;;  %v4769_v43 = vadd.f32 %v4737_v51, %v4559_v23  ;;  %v4392_v25 = vmul.f32 %v11421_v31, %v4354_v16  ;;  %v4460_v39 = vmul.f32 %v11430_v1, %v4352_v46  ;;  %v4565_v23 = vld [vmem:[#allocation3 + $0x11f] sm:$0xff] }
 0x39f   : > { %v4528_v56 = vmul.f32 %v11438_v37, %v4356_v14  ;;  %v4833_v63 = vadd.f32 %v4701_v5, %v4633_v3  ;;  %v4602_v50 = vmul.f32 %v11445_v10, %v4564_v22  ;;  %v4670_v54 = vmul.f32 %v11452_v59, %v4562_v33  ;;  %v4563_v33 = vld [vmem:[#allocation3 + $0x120] sm:$0xff] }
 0x3a0   : > { %v7306_v58 = vpack.c.bf16 %v11779_v42, %v11779_v42  ;;  %vm13601_vm12 = vnez %v13478_v40  ;;  %v4424_v49 = vadd.f32 %v4392_v25, %v4182_v34  ;;  %v4492_v27 = vadd.f32 %v4460_v39, %v4250_v8  ;;  %v4567_v5 = vld [vmem:[#allocation3 + $0x121] sm:$0xff] }
 0x3a1   : > { %v4865_v11 = vsel %vm13601_vm12, %v4769_v43, 0.0  ;;  %v4560_v16 = vadd.f32 %v4528_v56, %v4318_v13  ;;  %v4738_v14 = vmul.f32 %v11463_v60, %v4566_v41  ;;  %v4183_v24 = vmul.f32 %v11390_v45, %v11696_v61 }
 0x3a2   : > { %5052 = vrot.lane.b32.xlu0 %v7306_v58, %s8175_s21  ;;  %v11793_v46 = vadd.f32 %v4865_v11, %v4833_v63  ;;  %v4251_v22 = vmul.f32 %v11397_v55, %v11694_v12  ;;  %v4634_v51 = vadd.f32 %v4602_v50, %v4424_v49  ;;  %v4702_v3 = vadd.f32 %v4670_v54, %v4492_v27 }
 0x3a3   : > { %v4319_v8 = vmul.f32 %v11414_v35, %v11702_v52  ;;  %v4393_v34 = vmul.f32 %v11421_v31, %v4355_v19  ;;  %v4770_v43 = vadd.f32 %v4738_v14, %v4560_v16  ;;  %v4461_v25 = vmul.f32 %v11430_v1, %v4353_v18  ;;  %v5009_v35 = vpop.permute.xlu0 %5008 }
 0x3a4   : > { %v7307_v13 = vpack.c.bf16 %v11793_v46, %v11793_v46  ;;  %v4529_v45 = vmul.f32 %v11438_v37, %v4357_v2  ;;  %vm13602_vm12 = vnez %v13481_v30  ;;  %v4603_v61 = vmul.f32 %v11445_v10, %v4565_v23 }
 0x3a5   : > { %v4802_v55 = vsel %vm13602_vm12, %v4634_v51, 0.0  ;;  %v4425_v12 = vadd.f32 %v4393_v34, %v4183_v24  ;;  %v4671_v39 = vmul.f32 %v11452_v59, %v4563_v33  ;;  %v4493_v19 = vadd.f32 %v4461_v25, %v4251_v22  ;;  %v5011_v1 = vpop.permute.xlu1 %5010 }
 0x3a6   : > { %5054 = vrot.lane.b32.xlu1 %v7307_v13, %s8175_s21  ;;  %v4834_v31 = vadd.f32 %v4802_v55, %v4702_v3  ;;  %v4561_v52 = vadd.f32 %v4529_v45, %v4319_v8  ;;  %v4739_v56 = vmul.f32 %v11463_v60, %v4567_v5  ;;  %vm5092_vm10 = vcmask 44064   ;;  %v13603_v60 = vld [vmem:[#allocation7_spill] sm:$0xff] }
 0x3a7   : > { %v4635_v41 = vadd.f32 %v4603_v61, %v4425_v12  ;;  %v4703_v18 = vadd.f32 %v4671_v39, %v4493_v19  ;;  %5093 = vst.msk [vmem:[#allocation2] sm:$0xf] %vm5092_vm10, %v11723_v20  ;;  %5094 = vst.msk [vmem:[#allocation2 + $0x4] sm:$0xf] %vm5092_vm10, %v11735_v26  ;;  %vm13604_vm12 = vnez %v13603_v60 }
 0x3a8   : > { %v11813_v37 = vadd.f32 %v4834_v31, %v4770_v43  ;;  %v4771_v2 = vadd.f32 %v4739_v56, %v4561_v52  ;;  %5095 = vst.msk [vmem:[#allocation2 + $0x8] sm:$0xf] %vm5092_vm10, %v11757_v53  ;;  %5096 = vst.msk [vmem:[#allocation2 + $0xc] sm:$0xf] %vm5092_vm10, %v11770_v28 }
 0x3a9   : > { %5097 = vst.msk [vmem:[#allocation2 + $0x10] sm:$0xf] %vm5092_vm10, %v5005_v38  ;;  %5098 = vst.msk [vmem:[#allocation2 + $0x14] sm:$0xf] %vm5092_vm10, %v5007_v17  ;;  %v4835_v59 = vadd.f32 %v4703_v18, %v4635_v41 }
 0x3aa   : > { %5099 = vst.msk [vmem:[#allocation2 + $0x18] sm:$0xf] %vm5092_vm10, %v5009_v35  ;;  %5100 = vst.msk [vmem:[#allocation2 + $0x1c] sm:$0xf] %vm5092_vm10, %v5011_v1  ;;  %v7308_v10 = vpack.c.bf16 %v11813_v37, %v11813_v37  ;;  %v4867_v20 = vsel %vm13604_vm12, %v4771_v2, 0.0  ;;  %v5013_v53 = vpop.permute.xlu0 %5012 }
 0x3ab   : > { %v11832_v26 = vadd.f32 %v4867_v20, %v4835_v59  ;;  %5101 = vst.msk [vmem:[#allocation2 + $0x20] sm:$0xf] %vm5092_vm10, %v5013_v53 }
 0x3ac   : > { %5056 = vrot.lane.b32.xlu0 %v7308_v10, %s8175_s21 }
 0x3ad   : > { %v7309_v28 = vpack.c.bf16 %v11832_v26, %v11832_v26 }
 0x3ae   : > { %v7535_v38 = vld [vmem:[#allocation2] sm:$0xff]  }
 0x3af   : > { %v7643_v58 = vld [vmem:[#allocation2 + $0x8] sm:$0xff]   ;;  %5058 = vrot.lane.b32.xlu1 %v7309_v28, %s8175_s21  ;;  %v7536_v50 = vunpack.c.l.bf16 %v7535_v38  ;;  %v7537_v54 = vunpack.c.h.bf16 %v7535_v38  ;;  %v5015_v22 = vpop.permute.xlu1 %5014 }
 0x3b0   : > { %v7644_v63 = vld [vmem:[#allocation2 + $0x10] sm:$0xff]   ;;  %v7540_v11 = vunpack.c.l.bf16 %v7643_v58  ;;  %v7541_v49 = vunpack.c.h.bf16 %v7643_v58  ;;  %5102 = vst.msk [vmem:[#allocation2 + $0x24] sm:$0xf] %vm5092_vm10, %v5015_v22 }
 0x3b1   : > { %v7544_v27 = vunpack.c.l.bf16 %v7644_v63  ;;  %v7545_v16 = vunpack.c.h.bf16 %v7644_v63  ;;  %v7645_v17 = vld [vmem:[#allocation2 + $0x18] sm:$0xff]   ;;  %v7927_v14 = vpack.i.bf16 %v7537_v54, %v7536_v50 }
 0x3b2   : > { %v7932_v24 = vpack.i.bf16 %v7541_v49, %v7540_v11  ;;  %v7548_v23 = vunpack.c.l.bf16 %v7645_v17  ;;  %v7549_v8 = vunpack.c.h.bf16 %v7645_v17 }
 0x3b3   : > { %7928 = vrot.lane.b32.xlu0 %v7927_v14, %s8176_s13  ;;  %v7937_v33 = vpack.i.bf16 %v7545_v16, %v7544_v27 }
 0x3b4   : > { %7933 = vrot.lane.b32.xlu1 %v7932_v24, %s8176_s13 }
 0x3b5   : > { %v5017_v51 = vpop.permute.xlu0 %5016 }
 0x3b6   : > { %5103 = vst.msk [vmem:[#allocation2 + $0x28] sm:$0xf] %vm5092_vm10, %v5017_v51 }
 0x3b7   : > { %7938 = vrot.lane.b32.xlu0 %v7937_v33, %s8176_s13  ;;  %v7646_v3 = vld [vmem:[#allocation2 + $0x20] sm:$0xff]  }
 0x3b8   : > { %5233 = vrot.lane.b32.xlu1 %v7548_v23, %s8176_s13  ;;  %v7552_v34 = vunpack.c.l.bf16 %v7646_v3  ;;  %v7553_v45 = vunpack.c.h.bf16 %v7646_v3 }
 0x3b9   : > { %v5019_v5 = vpop.permute.xlu1 %5018 }
 0x3ba   : > { %5104 = vst.msk [vmem:[#allocation2 + $0x2c] sm:$0xf] %vm5092_vm10, %v5019_v5  ;;  %v7942_v13 = vpack.i.bf16 %v7552_v34, %v7549_v8 }
 0x3bc   : > { %7943 = vrot.lane.b32.xlu0 %v7942_v13, %s8176_s13 }
 0x3c0   : > { %v5021_v43 = vpop.permute.xlu0 %5020 }
 0x3c1   : > { %5105 = vst.msk [vmem:[#allocation2 + $0x30] sm:$0xf] %vm5092_vm10, %v5021_v43  ;;  %v7647_v25 = vld [vmem:[#allocation2 + $0x28] sm:$0xff]  }
 0x3c2   : > { %v7556_v55 = vunpack.c.l.bf16 %v7647_v25  ;;  %v7557_v31 = vunpack.c.h.bf16 %v7647_v25 }
 0x3c3   : > { %v5023_v12 = vpop.permute.xlu1 %5022 }
 0x3c4   : > { %5106 = vst.msk [vmem:[#allocation2 + $0x34] sm:$0xf] %vm5092_vm10, %v5023_v12  ;;  %v7947_v61 = vpack.i.bf16 %v7556_v55, %v7553_v45 }
 0x3c6   : > { %7948 = vrot.lane.b32.xlu1 %v7947_v61, %s8176_s13 }
 0x3cb   : > { %v5025_v39 = vpop.permute.xlu0 %5024  ;;  %v7648_v35 = vld [vmem:[#allocation2 + $0x30] sm:$0xff]  }
 0x3cc   : > { %5107 = vst.msk [vmem:[#allocation2 + $0x38] sm:$0xf] %vm5092_vm10, %v5025_v39  ;;  %v7560_v19 = vunpack.c.l.bf16 %v7648_v35  ;;  %v7561_v18 = vunpack.c.h.bf16 %v7648_v35 }
 0x3ce   : > { %v5027_v52 = vpop.permute.xlu1 %5026  ;;  %v7952_v56 = vpack.i.bf16 %v7560_v19, %v7557_v31 }
 0x3cf   : > { %5108 = vst.msk [vmem:[#allocation2 + $0x3c] sm:$0xf] %vm5092_vm10, %v5027_v52 }
 0x3d0   : > { %7953 = vrot.lane.b32.xlu0 %v7952_v56, %s8176_s13 }
 0x3d4   : > { %v5029_v41 = vpop.permute.xlu0 %5028 }
 0x3d5   : > { %5109 = vst.msk [vmem:[#allocation2 + $0x40] sm:$0xf] %vm5092_vm10, %v5029_v41 }
 0x3d6   : > { %v7649_v1 = vld [vmem:[#allocation2 + $0x38] sm:$0xff]  }
 0x3d7   : > { %v7564_v2 = vunpack.c.l.bf16 %v7649_v1  ;;  %v7565_v28 = vunpack.c.h.bf16 %v7649_v1 }
 0x3d9   : > { %v7957_v59 = vpack.i.bf16 %v7564_v2, %v7561_v18 }
 0x3da   : > { %v5031_v10 = vpop.permute.xlu1 %5030 }
 0x3db   : > { %5110 = vst.msk [vmem:[#allocation2 + $0x44] sm:$0xf] %vm5092_vm10, %v5031_v10  ;;  %7958 = vrot.lane.b32.xlu1 %v7957_v59, %s8176_s13 }
 0x3de   : > { %v5033_v20 = vpop.permute.xlu0 %5032 }
 0x3df   : > { %5111 = vst.msk [vmem:[#allocation2 + $0x48] sm:$0xf] %vm5092_vm10, %v5033_v20 }
 0x3e2   : > { %v7650_v53 = vld [vmem:[#allocation2 + $0x40] sm:$0xff]  }
 0x3e3   : > { %v7568_v38 = vunpack.c.l.bf16 %v7650_v53  ;;  %v7569_v11 = vunpack.c.h.bf16 %v7650_v53 }
 0x3e4   : > { %v5035_v58 = vpop.permute.xlu1 %5034 }
 0x3e5   : > { %v7962_v63 = vpack.i.bf16 %v7568_v38, %v7565_v28  ;;  %5112 = vst.msk [vmem:[#allocation2 + $0x4c] sm:$0xf] %vm5092_vm10, %v5035_v58 }
 0x3e7   : > { %7963 = vrot.lane.b32.xlu0 %v7962_v63, %s8176_s13 }
 0x3ea   : > { %v5037_v50 = vpop.permute.xlu0 %5036 }
 0x3eb   : > { %5113 = vst.msk [vmem:[#allocation2 + $0x50] sm:$0xf] %vm5092_vm10, %v5037_v50 }
 0x3ec   : > { %v7651_v54 = vld [vmem:[#allocation2 + $0x48] sm:$0xff]  }
 0x3ed   : > { %v7572_v49 = vunpack.c.l.bf16 %v7651_v54  ;;  %v7573_v24 = vunpack.c.h.bf16 %v7651_v54 }
 0x3ef   : > { %v5039_v27 = vpop.permute.xlu1 %5038  ;;  %v7967_v16 = vpack.i.bf16 %v7572_v49, %v7569_v11 }
 0x3f0   : > { %5114 = vst.msk [vmem:[#allocation2 + $0x54] sm:$0xf] %vm5092_vm10, %v5039_v27 }
 0x3f1   : > { %7968 = vrot.lane.b32.xlu1 %v7967_v16, %s8176_s13 }
 0x3f5   : > { %v5041_v17 = vpop.permute.xlu0 %5040 }
 0x3f6   : > { %5115 = vst.msk [vmem:[#allocation2 + $0x58] sm:$0xf] %vm5092_vm10, %v5041_v17  ;;  %v11891_v17 = vld [vmem:[%s12975_s2 + $0x1b] ss:$0 sm:$0xff] }
 0x3f7   : > { %v7652_v14 = vld [vmem:[#allocation2 + $0x50] sm:$0xff]  }
 0x3f8   : > { %v7576_v22 = vunpack.c.l.bf16 %v7652_v14  ;;  %v7577_v34 = vunpack.c.h.bf16 %v7652_v14  ;;  %v11896_v14 = vld [vmem:[%s12975_s2 + $0x1c] ss:$0 sm:$0xff] }
 0x3fa   : > { %v5043_v33 = vpop.permute.xlu1 %5042  ;;  %v7972_v23 = vpack.i.bf16 %v7576_v22, %v7573_v24  ;;  %v5422_v24 = vld [vmem:[#allocation3 + $0x7] sm:$0xff]  ;;  %v5391_v22 = vld [vmem:[#allocation3 + $0x10] sm:$0xff] }
 0x3fb   : > { %5116 = vst.msk [vmem:[#allocation2 + $0x5c] sm:$0xf] %vm5092_vm10, %v5043_v33  ;;  %v5423_v33 = vld [vmem:[#allocation3 + $0xf] sm:$0xff] }
 0x3fc   : > { %7973 = vrot.lane.b32.xlu0 %v7972_v23, %s8176_s13  ;;  %v11910_v23 = vld [vmem:[%s12975_s2 + $0x1e] ss:$0 sm:$0xff] }
 0x400   : > { %v5045_v51 = vpop.permute.xlu0 %5044 }
 0x401   : > { %5117 = vst.msk [vmem:[#allocation2 + $0x60] sm:$0xf] %vm5092_vm10, %v5045_v51  ;;  %v11915_v51 = vld [vmem:[%s12975_s2 + $0x1f] ss:$0 sm:$0xff] }
 0x402   : > { %v7653_v3 = vld [vmem:[#allocation2 + $0x58] sm:$0xff]  }
 0x403   : > { %v7580_v5 = vunpack.c.l.bf16 %v7653_v3  ;;  %v7581_v45 = vunpack.c.h.bf16 %v7653_v3  ;;  %v11920_v3 = vld [vmem:[%s12975_s2 + $0x22] ss:$0 sm:$0xff] }
 0x404   : > { %v5047_v8 = vpop.permute.xlu1 %5046 }
 0x405   : > { %5118 = vst.msk [vmem:[#allocation2 + $0x64] sm:$0xf] %vm5092_vm10, %v5047_v8  ;;  %v7977_v13 = vpack.i.bf16 %v7580_v5, %v7577_v34  ;;  %v11925_v34 = vld [vmem:[%s12975_s2 + $0x20] ss:$0 sm:$0xff]  ;;  %v11930_v5 = vld [vmem:[%s12975_s2 + $0x21] ss:$0 sm:$0xff] }
 0x407   : > { %7978 = vrot.lane.b32.xlu1 %v7977_v13, %s8176_s13  ;;  %v11935_v13 = vld [vmem:[%s12975_s2 + $0x23] ss:$0 sm:$0xff] }
 0x40a   : > { %v5049_v43 = vpop.permute.xlu0 %5048 }
 0x40b   : > { %5119 = vst.msk [vmem:[#allocation2 + $0x68] sm:$0xf] %vm5092_vm10, %v5049_v43  ;;  %v5490_v43 = vmul.f32 %v11891_v17, %v5422_v24 }
 0x40c   : > { %v7654_v25 = vld [vmem:[#allocation2 + $0x60] sm:$0xff]  }
 0x40d   : > { %v7584_v55 = vunpack.c.l.bf16 %v7654_v25  ;;  %v7585_v19 = vunpack.c.h.bf16 %v7654_v25 }
 0x40e   : > { %v5051_v12 = vpop.permute.xlu1 %5050 }
 0x40f   : > { %5120 = vst.msk [vmem:[#allocation2 + $0x6c] sm:$0xf] %vm5092_vm10, %v5051_v12  ;;  %v7982_v61 = vpack.i.bf16 %v7584_v55, %v7581_v45 }
 0x411   : > { %7983 = vrot.lane.b32.xlu0 %v7982_v61, %s8176_s13 }
 0x414   : > { %v5053_v39 = vpop.permute.xlu0 %5052 }
 0x415   : > { %5121 = vst.msk [vmem:[#allocation2 + $0x70] sm:$0xf] %vm5092_vm10, %v5053_v39  ;;  %v5491_v39 = vmul.f32 %v11891_v17, %v5423_v33 }
 0x416   : > { %v7655_v35 = vld [vmem:[#allocation2 + $0x68] sm:$0xff]  }
 0x417   : > { %v7588_v52 = vunpack.c.l.bf16 %v7655_v35  ;;  %v7589_v18 = vunpack.c.h.bf16 %v7655_v35  ;;  %v5559_v35 = vmul.f32 %v11896_v14, %v5391_v22 }
 0x418   : > { %v5055_v31 = vpop.permute.xlu1 %5054 }
 0x419   : > { %5122 = vst.msk [vmem:[#allocation2 + $0x74] sm:$0xf] %vm5092_vm10, %v5055_v31  ;;  %v7987_v56 = vpack.i.bf16 %v7588_v52, %v7585_v19 }
 0x41b   : > { %7988 = vrot.lane.b32.xlu1 %v7987_v56, %s8176_s13 }
 0x41e   : > { %v5057_v41 = vpop.permute.xlu0 %5056 }
 0x41f   : > { %5123 = vst.msk [vmem:[#allocation2 + $0x78] sm:$0xf] %vm5092_vm10, %v5057_v41 }
 0x420   : > { %v7656_v1 = vld [vmem:[#allocation2 + $0x70] sm:$0xff]  }
 0x421   : > { %v7592_v2 = vunpack.c.l.bf16 %v7656_v1  ;;  %v5059_v10 = vpop.permute.xlu1 %5058  ;;  %v7593_v54 = vunpack.c.h.bf16 %v7656_v1 }
 0x422   : > { %5124 = vst.msk [vmem:[#allocation2 + $0x7c] sm:$0xf] %vm5092_vm10, %v5059_v10  ;;  %vm13605_vm10 = vcmask 15360  }
 0x423   : > { %v7992_v59 = vpack.i.bf16 %v7592_v2, %v7589_v18  ;;  %vm13606_vm12 = vmmov %vm13605_vm10  ;;  %v13611_v2 = vld [vmem:[#allocation16_spill] sm:$0xff] }
 0x424   : > { %vm13607_vm11 = vmmov %vm13605_vm10 }
 0x425   : > { %7993 = vrot.lane.b32.xlu0 %v7992_v59, %s8176_s13  ;;  %v7929_v20 = vpop.permute.xlu0 %7928  ;;  %vm13608_vm9 = vmmov %vm13605_vm10  ;;  %v13612_v59 = vld [vmem:[#allocation10_spill] sm:$0xff] }
 0x426   : > { %v7934_v53 = vpop.permute.xlu1 %7933  ;;  %v8133_v28 = vadd.high.f32.bf16 %v10861_v9, %v7929_v20  ;;  %v8134_v38 = vadd.low.f32.bf16 %v10850_v21, %v7929_v20 }
 0x427   : > { %v8135_v58 = vadd.high.f32.bf16 %v10927_v48, %v7934_v53  ;;  %v8136_v63 = vadd.low.f32.bf16 %v10896_v44, %v7934_v53 }
 0x428   : > { %5349 = vst.msk [vmem:[#allocation3 + $0x18] sm:$0xff] %vm13605_vm10, %v8134_v38  ;;  %vm13613_vm10 = vmmov %vm13608_vm9 }
 0x429   : > { %v7657_v50 = vld [vmem:[#allocation2 + $0x78] sm:$0xff]   ;;  %v7939_v11 = vpop.permute.xlu0 %7938  ;;  %5350 = vst.msk [vmem:[#allocation3 + $0x20] sm:$0xff] %vm13606_vm12, %v8133_v28  ;;  %vm13610_vm12 = vmmov %vm13608_vm9 }
 0x42a   : > { %v5234_v49 = vpop.permute.xlu1 %5233  ;;  %v7597_v27 = vunpack.c.h.bf16 %v7657_v50  ;;  %v7596_v16 = vunpack.c.l.bf16 %v7657_v50  ;;  %5351 = vst.msk [vmem:[#allocation3 + $0x28] sm:$0xff] %vm13607_vm11, %v8136_v63  ;;  %v8137_v44 = vadd.high.f32.bf16 %v10985_v47, %v7939_v11  ;;  %v8138_v48 = vadd.low.f32.bf16 %v10954_v6, %v7939_v11  ;;  %v5390_v47 = vld [vmem:[#allocation3 + $0x8] sm:$0xff]  ;;  %vm13609_vm11 = vmmov %vm13608_vm9 }
 0x42b   : > { %5352 = vst.msk [vmem:[#allocation3 + $0x30] sm:$0xff] %vm13608_vm9, %v8135_v58  ;;  %v5323_v21 = vadd.f32 %v5234_v49, %v11020_v36  ;;  %v11901_v36 = vld [vmem:[%s12975_s2 + $0x1d] ss:$0 sm:$0xff]  ;;  %v5454_v6 = vld [vmem:[#allocation3 + $0x9] sm:$0xff]  ;;  %v5558_v25 = vmul.f32 %v11896_v14, %v5390_v47 }
 0x42c   : > { %5283 = vrot.lane.b32.xlu0 %v7597_v27, %s8176_s13  ;;  %v7997_v9 = vpack.i.bf16 %v7596_v16, %v7593_v54  ;;  %5353 = vst.msk [vmem:[#allocation3 + $0x38] sm:$0xff] %vm13609_vm11, %v8138_v48  ;;  %v5626_v45 = vmul.f32 %v11901_v36, %v5454_v6 }
 0x42d   : > { %5355 = vst.msk [vmem:[#allocation3 + $0x48] sm:$0xff] %vm13608_vm9, %v5323_v21 }
 0x42e   : > { %7998 = vrot.lane.b32.xlu1 %v7997_v9, %s8176_s13  ;;  %5354 = vst.msk [vmem:[#allocation3 + $0x40] sm:$0xff] %vm13610_vm12, %v8137_v44  ;;  %v7944_v8 = vpop.permute.xlu0 %7943 }
 0x42f   : > { %v5392_v55 = vld [vmem:[#allocation3 + $0x18] sm:$0xff]  ;;  %v8139_v10 = vadd.high.f32.bf16 %v13611_v2, %v7944_v8  ;;  %v8140_v20 = vadd.low.f32.bf16 %v13612_v59, %v7944_v8 }
 0x430   : > { %v5424_v61 = vld [vmem:[#allocation3 + $0x17] sm:$0xff]  ;;  %v5768_v41 = vmul.f32 %v11915_v51, %v5392_v55  ;;  %v11958_v38 = vld [vmem:[#allocation3 + $0x20] sm:$0xff] }
 0x431   : > { %v11940_v12 = vld [vmem:[#allocation3 + $0x28] sm:$0xff]  ;;  %v5456_v19 = vld [vmem:[#allocation3 + $0x19] sm:$0xff]  ;;  %v5700_v56 = vmul.f32 %v11910_v23, %v5424_v61  ;;  %v5492_v18 = vmul.f32 %v11891_v17, %v5424_v61  ;;  %v5455_v27 = vld [vmem:[#allocation3 + $0x11] sm:$0xff]  ;;  %5356 = vst.msk [vmem:[#allocation3 + $0x50] sm:$0xff] %vm13613_vm10, %v8140_v20  ;;  %v5769_v47 = vmul.f32 %v11915_v51, %v11958_v38 }
 0x432   : > { %v11944_v31 = vld [vmem:[#allocation3 + $0x27] sm:$0xff]  ;;  %v5978_v1 = vmul.f32 %v11920_v3, %v11940_v12  ;;  %v5836_v53 = vmul.f32 %v11925_v34, %v5456_v19  ;;  %v11960_v58 = vld [vmem:[#allocation3 + $0x30] sm:$0xff]  ;;  %v5425_v63 = vld [vmem:[#allocation3 + $0x1f] sm:$0xff]  ;;  %v5800_v54 = vadd.f32 %v5768_v41, %v5558_v25  ;;  %5357 = vst.msk [vmem:[#allocation3 + $0x58] sm:$0xff] %vm13608_vm9, %v8139_v10  ;;  %v5627_v48 = vmul.f32 %v11901_v36, %v5455_v27 }
 0x433   : > { %v11946_v52 = vld [vmem:[#allocation3 + $0x29] sm:$0xff]  ;;  %v5910_v28 = vmul.f32 %v11930_v5, %v11944_v31  ;;  %v5732_v50 = vadd.f32 %v5700_v56, %v5490_v43  ;;  %v5457_v16 = vld [vmem:[#allocation3 + $0x21] sm:$0xff]  ;;  %v5701_v21 = vmul.f32 %v11910_v23, %v5425_v63  ;;  %v11969_v44 = vld [vmem:[#allocation3 + $0x31] sm:$0xff]  ;;  %v5801_v25 = vadd.f32 %v5769_v47, %v5559_v35 }
 0x434   : > { %v6046_v11 = vmul.f32 %v11935_v13, %v11946_v52  ;;  %v11964_v49 = vld [vmem:[#allocation3 + $0x2f] sm:$0xff]  ;;  %v5868_v9 = vadd.f32 %v5836_v53, %v5626_v45  ;;  %v5837_v24 = vmul.f32 %v11925_v34, %v5457_v16  ;;  %v6010_v22 = vadd.f32 %v5978_v1, %v5800_v54  ;;  %v11979_v56 = vld [vmem:[#allocation3 + $0x37] sm:$0xff] }
 0x435   : > { %v5942_v6 = vadd.f32 %v5910_v28, %v5732_v50  ;;  %v5733_v33 = vadd.f32 %v5701_v21, %v5491_v39  ;;  %v5911_v8 = vmul.f32 %v11930_v5, %v11964_v49  ;;  %v5979_v45 = vmul.f32 %v11920_v3, %v11960_v58 }
 0x436   : > { %v6078_v43 = vadd.f32 %v6046_v11, %v5868_v9  ;;  %v5869_v61 = vadd.f32 %v5837_v24, %v5627_v48  ;;  %v6047_v59 = vmul.f32 %v11935_v13, %v11969_v44  ;;  %v5560_v39 = vmul.f32 %v11896_v14, %v5392_v55  ;;  %v11995_v9 = vld [vmem:[#allocation3 + $0x38] sm:$0xff] }
 0x437   : > { %v6110_v2 = vsel %vm8397_vm4, %v5942_v6, 0.0  ;;  %v5943_v10 = vadd.f32 %v5911_v8, %v5733_v33  ;;  %v6011_v20 = vadd.f32 %v5979_v45, %v5801_v25  ;;  %v5628_v53 = vmul.f32 %v11901_v36, %v5456_v19  ;;  %v11997_v48 = vld [vmem:[#allocation3 + $0x39] sm:$0xff]  ;;  %v13616_v8 = vld [vmem:[#allocation15_spill] sm:$0xff]  ;;  %vm13617_vm4 = vmmov %vm13608_vm9 }
 0x438   : > { %v6142_v1 = vadd.f32 %v6110_v2, %v6010_v22  ;;  %v5702_v35 = vmul.f32 %v11910_v23, %v11944_v31  ;;  %v7949_v28 = vpop.permute.xlu1 %7948  ;;  %v6079_v50 = vadd.f32 %v6047_v59, %v5869_v61  ;;  %v5770_v54 = vmul.f32 %v11915_v51, %v11940_v12  ;;  %v12009_v59 = vld [vmem:[#allocation3 + $0x3f] sm:$0xff]  ;;  %vm13623_vm11 = vmmov %vm13617_vm4 }
 0x439   : > { %v5838_v11 = vmul.f32 %v11925_v34, %v11946_v52  ;;  %v5912_v27 = vmul.f32 %v11930_v5, %v11979_v56  ;;  %v6143_v55 = vadd.f32 %v6011_v20, %v5943_v10  ;;  %v8141_v33 = vadd.high.f32.bf16 %v11160_v7, %v7949_v28  ;;  %v12007_v10 = vld [vmem:[#allocation3 + $0x40] sm:$0xff] }
 0x43a   : > { %v6206_v21 = vadd.f32 %v6142_v1, %v6078_v43  ;;  %v6175_v47 = vsel %vm8473_vm5, %v6079_v50, 0.0  ;;  %v5734_v24 = vadd.f32 %v5702_v35, %v5492_v18  ;;  %v5802_v6 = vadd.f32 %v5770_v54, %v5560_v39  ;;  %vm13618_vm5 = vmmov %vm13617_vm4  ;;  %v12015_v39 = vld [vmem:[#allocation3 + $0x41] sm:$0xff] }
 0x43b   : > { %v5870_v22 = vadd.f32 %v5838_v11, %v5628_v53  ;;  %v8142_v25 = vadd.low.f32.bf16 %v13616_v8, %v7949_v28  ;;  %v6207_v45 = vadd.f32 %v6175_v47, %v6143_v55  ;;  %v5980_v43 = vmul.f32 %v11920_v3, %v11995_v9  ;;  %5359 = vst.msk [vmem:[#allocation3 + $0x68] sm:$0xff] %vm13618_vm5, %v8141_v33 }
 0x43c   : > { %v7310_v61 = vpack.c.bf16 %v6206_v21, %v6206_v21  ;;  %v5944_v41 = vadd.f32 %v5912_v27, %v5734_v24  ;;  %v6048_v2 = vmul.f32 %v11935_v13, %v11997_v48  ;;  %v5493_v18 = vmul.f32 %v11891_v17, %v5425_v63 }
 0x43d   : > { %5358 = vst.msk [vmem:[#allocation3 + $0x60] sm:$0xff] %vm13617_vm4, %v8142_v25  ;;  %v7311_v7 = vpack.c.bf16 %v6207_v45, %v6207_v45  ;;  %v5561_v1 = vmul.f32 %v11896_v14, %v11958_v38  ;;  %v5629_v20 = vmul.f32 %v11901_v36, %v5457_v16  ;;  %v5703_v53 = vmul.f32 %v11910_v23, %v11964_v49 }
 0x43e   : > { %6334 = vrot.lane.b32.xlu1 %v7310_v61, %s8177_s8  ;;  %v6012_v35 = vadd.f32 %v5980_v43, %v5802_v6  ;;  %v6080_v63 = vadd.f32 %v6048_v2, %v5870_v22  ;;  %v6112_v50 = vsel %vm8523_vm7, %v5944_v41, 0.0  ;;  %v5771_v54 = vmul.f32 %v11915_v51, %v11960_v58  ;;  %v12045_v2 = vld [vmem:[#allocation3 + $0x48] sm:$0xff]  ;;  %vm13622_vm7 = vmmov %vm13617_vm4 }
 0x43f   : > { %6336 = vrot.lane.b32.xlu0 %v7311_v7, %s8177_s8  ;;  %v5735_v11 = vadd.f32 %v5703_v53, %v5493_v18  ;;  %v5839_v27 = vmul.f32 %v11925_v34, %v11969_v44  ;;  %v5913_v38 = vmul.f32 %v11930_v5, %v12009_v59  ;;  %v5981_v16 = vmul.f32 %v11920_v3, %v12007_v10  ;;  %v12049_v18 = vld [vmem:[#allocation3 + $0x49] sm:$0xff] }
 0x440   : > { %v6144_v21 = vadd.f32 %v6112_v50, %v6012_v35  ;;  %v5803_v55 = vadd.f32 %v5771_v54, %v5561_v1  ;;  %v6049_v19 = vmul.f32 %v11935_v13, %v12015_v39  ;;  %v5494_v47 = vmul.f32 %v11891_v17, %v11944_v31  ;;  %v12047_v31 = vld [vmem:[#allocation3 + $0x47] sm:$0xff] }
 0x441   : > { %v5871_v24 = vadd.f32 %v5839_v27, %v5629_v20  ;;  %v5945_v6 = vadd.f32 %v5913_v38, %v5735_v11  ;;  %v5562_v22 = vmul.f32 %v11896_v14, %v11940_v12  ;;  %v5630_v33 = vmul.f32 %v11901_v36, %v11946_v52  ;;  %v13620_v35 = vld [vmem:[#allocation34_spill] sm:$0xff] }
 0x442   : > { %v7954_v8 = vpop.permute.xlu0 %7953  ;;  %v6208_v25 = vadd.f32 %v6144_v21, %v6080_v63  ;;  %v6013_v61 = vadd.f32 %v5981_v16, %v5803_v55  ;;  %v5704_v45 = vmul.f32 %v11910_v23, %v11979_v56  ;;  %v5772_v41 = vmul.f32 %v11915_v51, %v11995_v9  ;;  %v12064_v21 = vld [vmem:[#allocation3 + $0x4f] sm:$0xff] }
 0x443   : > { %v6081_v43 = vadd.f32 %v6049_v19, %v5871_v24  ;;  %v5840_v12 = vmul.f32 %v11925_v34, %v11997_v48  ;;  %v8143_v53 = vadd.high.f32.bf16 %v11220_v15, %v7954_v8  ;;  %v8144_v63 = vadd.low.f32.bf16 %v13620_v35, %v7954_v8  ;;  %v12068_v15 = vld [vmem:[#allocation3 + $0x50] sm:$0xff] }
 0x444   : > { %v7312_v52 = vpack.c.bf16 %v6208_v25, %v6208_v25  ;;  %v6145_v7 = vadd.f32 %v6013_v61, %v5945_v6  ;;  %v5736_v1 = vadd.f32 %v5704_v45, %v5494_v47  ;;  %v5804_v20 = vadd.f32 %v5772_v41, %v5562_v22  ;;  %v12070_v55 = vld [vmem:[#allocation3 + $0x51] sm:$0xff] }
 0x445   : > { %v6177_v50 = vsel %vm8550_vm8, %v6081_v43, 0.0  ;;  %v5872_v54 = vadd.f32 %v5840_v12, %v5630_v33  ;;  %v5914_v27 = vmul.f32 %v11930_v5, %v12047_v31  ;;  %v5982_v38 = vmul.f32 %v11920_v3, %v12045_v2  ;;  %5360 = vst.msk [vmem:[#allocation3 + $0x70] sm:$0xff] %vm13622_vm7, %v8144_v63  ;;  %vm13627_vm8 = vmmov %vm13617_vm4 }
 0x446   : > { %6338 = vrot.lane.b32.xlu1 %v7312_v52, %s8177_s8  ;;  %v6209_v11 = vadd.f32 %v6177_v50, %v6145_v7  ;;  %v6050_v16 = vmul.f32 %v11935_v13, %v12049_v18  ;;  %5361 = vst.msk [vmem:[#allocation3 + $0x78] sm:$0xff] %vm13623_vm11, %v8143_v53  ;;  %v5495_v19 = vmul.f32 %v11891_v17, %v11964_v49 }
 0x447   : > { %v5563_v47 = vmul.f32 %v11896_v14, %v11960_v58  ;;  %v5631_v24 = vmul.f32 %v11901_v36, %v11969_v44  ;;  %v5705_v6 = vmul.f32 %v11910_v23, %v12009_v59  ;;  %v5946_v33 = vadd.f32 %v5914_v27, %v5736_v1 }
 0x448   : > { %v7313_v22 = vpack.c.bf16 %v6209_v11, %v6209_v11  ;;  %v6014_v8 = vadd.f32 %v5982_v38, %v5804_v20  ;;  %v6082_v25 = vadd.f32 %v6050_v16, %v5872_v54  ;;  %v5773_v45 = vmul.f32 %v11915_v51, %v12007_v10  ;;  %v12103_v38 = vld [vmem:[#allocation3 + $0x58] sm:$0xff] }
 0x449   : > { %v5737_v61 = vadd.f32 %v5705_v6, %v5495_v19  ;;  %v5841_v49 = vmul.f32 %v11925_v34, %v12015_v39  ;;  %v5915_v58 = vmul.f32 %v11930_v5, %v12064_v21  ;;  %v6114_v41 = vsel %vm8807_vm15, %v5946_v33, 0.0  ;;  %v12105_v16 = vld [vmem:[#allocation3 + $0x57] sm:$0xff]  ;;  %vm13628_vm15 = vmmov %vm13617_vm4 }
 0x44a   : > { %6340 = vrot.lane.b32.xlu0 %v7313_v22, %s8177_s8  ;;  %v5983_v43 = vmul.f32 %v11920_v3, %v12068_v15  ;;  %v6051_v12 = vmul.f32 %v11935_v13, %v12070_v55  ;;  %v5496_v52 = vmul.f32 %v11891_v17, %v11979_v56  ;;  %v6146_v7 = vadd.f32 %v6114_v41, %v6014_v8  ;;  %v12109_v19 = vld [vmem:[#allocation3 + $0x59] sm:$0xff] }
 0x44b   : > { %v5805_v1 = vadd.f32 %v5773_v45, %v5563_v47  ;;  %v5873_v20 = vadd.f32 %v5841_v49, %v5631_v24  ;;  %v5947_v53 = vadd.f32 %v5915_v58, %v5737_v61  ;;  %v5564_v35 = vmul.f32 %v11896_v14, %v11995_v9  ;;  %v13626_v61 = vld [vmem:[#allocation19_spill] sm:$0xff] }
 0x44c   : > { %v5632_v63 = vmul.f32 %v11901_v36, %v11997_v48  ;;  %v5706_v28 = vmul.f32 %v11910_v23, %v12047_v31  ;;  %v5774_v50 = vmul.f32 %v11915_v51, %v12045_v2  ;;  %v6210_v11 = vadd.f32 %v6146_v7, %v6082_v25 }
 0x44d   : > { %v7959_v54 = vpop.permute.xlu1 %7958  ;;  %v6015_v27 = vadd.f32 %v5983_v43, %v5805_v1  ;;  %v6083_v56 = vadd.f32 %v6051_v12, %v5873_v20  ;;  %v5842_v9 = vmul.f32 %v11925_v34, %v12049_v18  ;;  %v5916_v49 = vmul.f32 %v11930_v5, %v12105_v16  ;;  %v12122_v43 = vld [vmem:[#allocation3 + $0x60] sm:$0xff] }
 0x44e   : > { %v5738_v48 = vadd.f32 %v5706_v28, %v5496_v52  ;;  %v5806_v47 = vadd.f32 %v5774_v50, %v5564_v35  ;;  %v7314_v24 = vpack.c.bf16 %v6210_v11, %v6210_v11  ;;  %v8145_v25 = vadd.high.f32.bf16 %v11288_v57, %v7959_v54  ;;  %v12124_v12 = vld [vmem:[#allocation3 + $0x5f] sm:$0xff] }
 0x44f   : > { %v6147_v6 = vadd.f32 %v6015_v27, %v5947_v53  ;;  %v6179_v33 = vsel %vm8833_vm0, %v6083_v56, 0.0  ;;  %v5874_v8 = vadd.f32 %v5842_v9, %v5632_v63  ;;  %v8146_v45 = vadd.low.f32.bf16 %v13626_v61, %v7959_v54  ;;  %v12132_v20 = vld [vmem:[#allocation3 + $0x61] sm:$0xff]  ;;  %vm13632_vm0 = vmmov %vm13617_vm4 }
 0x450   : > { %v5984_v58 = vmul.f32 %v11920_v3, %v12103_v38  ;;  %6342 = vrot.lane.b32.xlu1 %v7314_v24, %s8177_s8  ;;  %v6052_v41 = vmul.f32 %v11935_v13, %v12109_v19  ;;  %v5497_v57 = vmul.f32 %v11891_v17, %v12009_v59  ;;  %v5565_v52 = vmul.f32 %v11896_v14, %v12007_v10  ;;  %v12151_v24 = vld [vmem:[#allocation3 + $0x68] sm:$0xff]  ;;  %vm13650_vm9 = vmmov %vm13632_vm0 }
 0x451   : > { %v6211_v44 = vadd.f32 %v6179_v33, %v6147_v6  ;;  %5362 = vst.msk [vmem:[#allocation3 + $0x80] sm:$0xff] %vm13627_vm8, %v8146_v45  ;;  %v5948_v7 = vadd.f32 %v5916_v49, %v5738_v48  ;;  %v5633_v53 = vmul.f32 %v11901_v36, %v12015_v39  ;;  %v5707_v35 = vmul.f32 %v11910_v23, %v12064_v21  ;;  %v12153_v6 = vld [vmem:[#allocation3 + $0x67] sm:$0xff]  ;;  %vm13651_vm4 = vmmov %vm13632_vm0 }
 0x452   : > { %5363 = vst.msk [vmem:[#allocation3 + $0x88] sm:$0xff] %vm13628_vm15, %v8145_v25  ;;  %v6016_v1 = vadd.f32 %v5984_v58, %v5806_v47  ;;  %v6084_v28 = vadd.f32 %v6052_v41, %v5874_v8  ;;  %v5775_v59 = vmul.f32 %v11915_v51, %v12068_v15  ;;  %v5843_v10 = vmul.f32 %v11925_v34, %v12070_v55  ;;  %v12163_v41 = vld [vmem:[#allocation3 + $0x69] sm:$0xff]  ;;  %vm13656_vm7 = vmmov %vm13632_vm0 }
 0x453   : > { %v7315_v63 = vpack.c.bf16 %v6211_v44, %v6211_v44  ;;  %v6116_v54 = vsel %vm8900_vm1, %v5948_v7, 0.0  ;;  %v5739_v11 = vadd.f32 %v5707_v35, %v5497_v57  ;;  %v5917_v27 = vmul.f32 %v11930_v5, %v12124_v12  ;;  %vm13633_vm1 = vmmov %vm13632_vm0 }
 0x454   : > { %v5985_v39 = vmul.f32 %v11920_v3, %v12122_v43  ;;  %v6148_v56 = vadd.f32 %v6116_v54, %v6016_v1  ;;  %v5807_v9 = vadd.f32 %v5775_v59, %v5565_v52  ;;  %v5875_v48 = vadd.f32 %v5843_v10, %v5633_v53  ;;  %v13631_v10 = vld [vmem:[#allocation43_spill] sm:$0xff]  ;;  %vm13657_vm11 = vmmov %vm13632_vm0 }
 0x455   : > { %6344 = vrot.lane.b32.xlu0 %v7315_v63, %s8177_s8  ;;  %v6053_v47 = vmul.f32 %v11935_v13, %v12132_v20  ;;  %v5949_v22 = vadd.f32 %v5917_v27, %v5739_v11  ;;  %v5498_v33 = vmul.f32 %v11891_v17, %v12047_v31  ;;  %v5566_v8 = vmul.f32 %v11896_v14, %v12045_v2  ;;  %v12180_v27 = vld [vmem:[#allocation3 + $0x6f] sm:$0xff] }
 0x456   : > { %v5634_v25 = vmul.f32 %v11901_v36, %v12049_v18  ;;  %v6212_v61 = vadd.f32 %v6148_v56, %v6084_v28  ;;  %v6017_v45 = vadd.f32 %v5985_v39, %v5807_v9  ;;  %v5708_v58 = vmul.f32 %v11910_v23, %v12105_v16  ;;  %v12182_v9 = vld [vmem:[#allocation3 + $0x70] sm:$0xff] }
 0x457   : > { %v6085_v49 = vadd.f32 %v6053_v47, %v5875_v48  ;;  %v5776_v57 = vmul.f32 %v11915_v51, %v12103_v38  ;;  %v5844_v31 = vmul.f32 %v11925_v34, %v12109_v19  ;;  %v5918_v2 = vmul.f32 %v11930_v5, %v12153_v6  ;;  %v12184_v48 = vld [vmem:[#allocation3 + $0x71] sm:$0xff] }
 0x458   : > { %v5986_v18 = vmul.f32 %v11920_v3, %v12151_v24  ;;  %v7316_v52 = vpack.c.bf16 %v6212_v61, %v6212_v61  ;;  %v6149_v7 = vadd.f32 %v6017_v45, %v5949_v22  ;;  %v5740_v35 = vadd.f32 %v5708_v58, %v5498_v33 }
 0x459   : > { %v7964_v44 = vpop.permute.xlu0 %7963  ;;  %v6181_v53 = vsel %vm8924_vm3, %v6085_v49, 0.0  ;;  %v5808_v63 = vadd.f32 %v5776_v57, %v5566_v8  ;;  %v5876_v28 = vadd.f32 %v5844_v31, %v5634_v25  ;;  %v6054_v11 = vmul.f32 %v11935_v13, %v12163_v41 }
 0x45a   : > { %v8147_v59 = vadd.high.f32.bf16 %v11352_v0, %v7964_v44  ;;  %v8148_v50 = vadd.low.f32.bf16 %v13631_v10, %v7964_v44  ;;  %6346 = vrot.lane.b32.xlu1 %v7316_v52, %s8177_s8  ;;  %v6213_v54 = vadd.f32 %v6181_v53, %v6149_v7  ;;  %v5950_v39 = vadd.f32 %v5918_v2, %v5740_v35  ;;  %v12211_v52 = vld [vmem:[#allocation3 + $0x77] sm:$0xff] }
 0x45b   : > { %v6018_v56 = vadd.f32 %v5986_v18, %v5808_v63  ;;  %v5499_v47 = vmul.f32 %v11891_v17, %v12064_v21  ;;  %v5567_v0 = vmul.f32 %v11896_v14, %v12068_v15  ;;  %v6086_v33 = vadd.f32 %v6054_v11, %v5876_v28  ;;  %v12209_v18 = vld [vmem:[#allocation3 + $0x78] sm:$0xff] }
 0x45c   : > { %5364 = vst.msk [vmem:[#allocation3 + $0x90] sm:$0xff] %vm13632_vm0, %v8148_v50  ;;  %v7317_v22 = vpack.c.bf16 %v6213_v54, %v6213_v54  ;;  %v5635_v8 = vmul.f32 %v11901_v36, %v12070_v55  ;;  %v5709_v25 = vmul.f32 %v11910_v23, %v12124_v12  ;;  %v6118_v45 = vsel %vm9008_vm2, %v5950_v39, 0.0  ;;  %v12221_v50 = vld [vmem:[#allocation3 + $0x79] sm:$0xff]  ;;  %vm13639_vm2 = vmmov %vm13632_vm0 }
 0x45d   : > { %5365 = vst.msk [vmem:[#allocation3 + $0x98] sm:$0xff] %vm13633_vm1, %v8147_v59  ;;  %v5777_v21 = vmul.f32 %v11915_v51, %v12122_v43  ;;  %v5845_v15 = vmul.f32 %v11925_v34, %v12132_v20  ;;  %v5919_v49 = vmul.f32 %v11930_v5, %v12180_v27  ;;  %v6150_v58 = vadd.f32 %v6118_v45, %v6018_v56  ;;  %v13636_v45 = vld [vmem:[#allocation21_spill] sm:$0xff]  ;;  %vm13664_vm1 = vmmov %vm13632_vm0 }
 0x45e   : > { %6348 = vrot.lane.b32.xlu0 %v7317_v22, %s8177_s8  ;;  %v5741_v44 = vadd.f32 %v5709_v25, %v5499_v47  ;;  %v5987_v55 = vmul.f32 %v11920_v3, %v12182_v9  ;;  %v6055_v57 = vmul.f32 %v11935_v13, %v12184_v48  ;;  %v5500_v7 = vmul.f32 %v11891_v17, %v12105_v16 }
 0x45f   : > { %v5809_v31 = vadd.f32 %v5777_v21, %v5567_v0  ;;  %v5877_v2 = vadd.f32 %v5845_v15, %v5635_v8  ;;  %v5568_v1 = vmul.f32 %v11896_v14, %v12103_v38  ;;  %v6214_v53 = vadd.f32 %v6150_v58, %v6086_v33  ;;  %v13637_v15 = vld [vmem:[#allocation5_spill] sm:$0xff]  ;;  %v12271_v0 = vld [vmem:[#allocation3 + $0x88] sm:$0xff] }
 0x460   : > { %v5951_v35 = vadd.f32 %v5919_v49, %v5741_v44  ;;  %v5636_v63 = vmul.f32 %v11901_v36, %v12109_v19  ;;  %v5710_v28 = vmul.f32 %v11910_v23, %v12153_v6  ;;  %v5778_v54 = vmul.f32 %v11915_v51, %v12151_v24  ;;  %v12238_v44 = vld [vmem:[#allocation3 + $0x80] sm:$0xff] }
 0x461   : > { %v6019_v59 = vadd.f32 %v5987_v55, %v5809_v31  ;;  %v6087_v10 = vadd.f32 %v6055_v57, %v5877_v2  ;;  %v5846_v16 = vmul.f32 %v11925_v34, %v12163_v41  ;;  %v7318_v38 = vpack.c.bf16 %v6214_v53, %v6214_v53  ;;  %v12240_v55 = vld [vmem:[#allocation3 + $0x7f] sm:$0xff] }
 0x462   : > { %v5742_v39 = vadd.f32 %v5710_v28, %v5500_v7  ;;  %v5920_v56 = vmul.f32 %v11930_v5, %v12211_v52  ;;  %v5988_v19 = vmul.f32 %v11920_v3, %v12209_v18  ;;  %v5810_v33 = vadd.f32 %v5778_v54, %v5568_v1  ;;  %v12246_v53 = vld [vmem:[#allocation3 + $0x81] sm:$0xff] }
 0x463   : > { %v7969_v11 = vpop.permute.xlu1 %7968  ;;  %v6151_v47 = vadd.f32 %v6019_v59, %v5951_v35  ;;  %v6183_v22 = vsel %vm9022_vm6, %v6087_v10, 0.0  ;;  %6350 = vrot.lane.b32.xlu1 %v7318_v38, %s8177_s8  ;;  %v5878_v8 = vadd.f32 %v5846_v16, %v5636_v63  ;;  %v6056_v61 = vmul.f32 %v11935_v13, %v12221_v50  ;;  %vm13640_vm6 = vmmov %vm13632_vm0 }
 0x464   : > { %v5952_v25 = vadd.f32 %v5920_v56, %v5742_v39  ;;  %v8149_v21 = vadd.high.f32.bf16 %v13636_v45, %v7969_v11  ;;  %v8150_v49 = vadd.low.f32.bf16 %v13637_v15, %v7969_v11  ;;  %v5501_v57 = vmul.f32 %v11891_v17, %v12124_v12  ;;  %v12267_v39 = vld [vmem:[#allocation3 + $0x87] sm:$0xff] }
 0x465   : > { %v6215_v58 = vadd.f32 %v6183_v22, %v6151_v47  ;;  %v6020_v31 = vadd.f32 %v5988_v19, %v5810_v33  ;;  %v6088_v2 = vadd.f32 %v6056_v61, %v5878_v8  ;;  %v5569_v35 = vmul.f32 %v11896_v14, %v12122_v43  ;;  %v12281_v15 = vld [vmem:[#allocation3 + $0x89] sm:$0xff] }
 0x466   : > { %v6120_v1 = vsel %vm9097_vm13, %v5952_v25, 0.0  ;;  %5366 = vst.msk [vmem:[#allocation3 + $0xa0] sm:$0xff] %vm13639_vm2, %v8150_v49  ;;  %v5637_v28 = vmul.f32 %v11901_v36, %v12132_v20  ;;  %v5711_v12 = vmul.f32 %v11910_v23, %v12180_v27  ;;  %v5779_v59 = vmul.f32 %v11915_v51, %v12182_v9  ;;  %vm13644_vm13 = vmmov %vm13632_vm0 }
 0x467   : > { %5367 = vst.msk [vmem:[#allocation3 + $0xa8] sm:$0xff] %vm13640_vm6, %v8149_v21  ;;  %v7319_v63 = vpack.c.bf16 %v6215_v58, %v6215_v58  ;;  %v6152_v10 = vadd.f32 %v6120_v1, %v6020_v31  ;;  %v5847_v54 = vmul.f32 %v11925_v34, %v12184_v48  ;;  %v5921_v43 = vmul.f32 %v11930_v5, %v12240_v55 }
 0x468   : > { %v5989_v16 = vmul.f32 %v11920_v3, %v12238_v44  ;;  %v5743_v11 = vadd.f32 %v5711_v12, %v5501_v57  ;;  %v5811_v20 = vadd.f32 %v5779_v59, %v5569_v35  ;;  %v6057_v38 = vmul.f32 %v11935_v13, %v12246_v53 }
 0x469   : > { %6352 = vrot.lane.b32.xlu0 %v7319_v63, %s8177_s8  ;;  %v5502_v56 = vmul.f32 %v11891_v17, %v12153_v6  ;;  %v6216_v19 = vadd.f32 %v6152_v10, %v6088_v2  ;;  %v5879_v47 = vadd.f32 %v5847_v54, %v5637_v28  ;;  %v5570_v22 = vmul.f32 %v11896_v14, %v12151_v24 }
 0x46a   : > { %v5638_v33 = vmul.f32 %v11901_v36, %v12163_v41  ;;  %v5953_v8 = vadd.f32 %v5921_v43, %v5743_v11  ;;  %v6021_v25 = vadd.f32 %v5989_v16, %v5811_v20  ;;  %v5712_v61 = vmul.f32 %v11910_v23, %v12211_v52  ;;  %v12296_v43 = vld [vmem:[#allocation3 + $0x90] sm:$0xff] }
 0x46b   : > { %v5780_v45 = vmul.f32 %v11915_v51, %v12209_v18  ;;  %v7320_v21 = vpack.c.bf16 %v6216_v19, %v6216_v19  ;;  %v6089_v6 = vadd.f32 %v6057_v38, %v5879_v47  ;;  %v5848_v49 = vmul.f32 %v11925_v34, %v12221_v50  ;;  %v12298_v16 = vld [vmem:[#allocation3 + $0x8f] sm:$0xff] }
 0x46c   : > { %v5922_v24 = vmul.f32 %v11930_v5, %v12267_v39  ;;  %v6153_v41 = vadd.f32 %v6021_v25, %v5953_v8  ;;  %v5744_v57 = vadd.f32 %v5712_v61, %v5502_v56  ;;  %v5990_v2 = vmul.f32 %v11920_v3, %v12271_v0  ;;  %v12300_v11 = vld [vmem:[#allocation3 + $0x91] sm:$0xff] }
 0x46d   : > { %v5812_v31 = vadd.f32 %v5780_v45, %v5570_v22  ;;  %6354 = vrot.lane.b32.xlu1 %v7320_v21, %s8177_s8  ;;  %v6185_v1 = vsel %vm13541_vm14, %v6089_v6, 0.0  ;;  %v5880_v35 = vadd.f32 %v5848_v49, %v5638_v33  ;;  %v6058_v59 = vmul.f32 %v11935_v13, %v12281_v15  ;;  %v13642_v47 = vld [vmem:[#allocation44_spill] sm:$0xff]  ;;  %vm13645_vm14 = vmmov %vm13632_vm0 }
 0x46e   : > { %v7974_v58 = vpop.permute.xlu0 %7973  ;;  %v6217_v63 = vadd.f32 %v6185_v1, %v6153_v41  ;;  %v5954_v28 = vadd.f32 %v5922_v24, %v5744_v57  ;;  %v5503_v20 = vmul.f32 %v11891_v17, %v12180_v27  ;;  %v5571_v38 = vmul.f32 %v11896_v14, %v12182_v9  ;;  %v12327_v24 = vld [vmem:[#allocation3 + $0x97] sm:$0xff] }
 0x46f   : > { %v6022_v12 = vadd.f32 %v5990_v2, %v5812_v31  ;;  %v8151_v10 = vadd.high.f32.bf16 %v11533_v32, %v7974_v58  ;;  %v8152_v54 = vadd.low.f32.bf16 %v11496_v4, %v7974_v58  ;;  %v6090_v19 = vadd.f32 %v6058_v59, %v5880_v35  ;;  %v12337_v35 = vld [vmem:[#allocation3 + $0x98] sm:$0xff] }
 0x470   : > { %v7321_v56 = vpack.c.bf16 %v6217_v63, %v6217_v63  ;;  %vm13643_vm3 = vnez %v13642_v47  ;;  %v5639_v4 = vmul.f32 %v11901_v36, %v12184_v48  ;;  %v5713_v33 = vmul.f32 %v11910_v23, %v12240_v55  ;;  %v12339_v63 = vld [vmem:[#allocation3 + $0x99] sm:$0xff] }
 0x471   : > { %v6122_v22 = vsel %vm13643_vm3, %v5954_v28, 0.0  ;;  %5368 = vst.msk [vmem:[#allocation3 + $0xb0] sm:$0xff] %vm13644_vm13, %v8152_v54  ;;  %v5781_v27 = vmul.f32 %v11915_v51, %v12238_v44  ;;  %v5849_v9 = vmul.f32 %v11925_v34, %v12246_v53  ;;  %v5923_v8 = vmul.f32 %v11930_v5, %v12298_v16  ;;  %v13646_v54 = vld [vmem:[#allocation8_spill] sm:$0xff]  ;;  %vm13670_vm3 = vmmov %vm13632_vm0 }
 0x472   : > { %5369 = vst.msk [vmem:[#allocation3 + $0xb8] sm:$0xff] %vm13645_vm14, %v8151_v10  ;;  %v6154_v32 = vadd.f32 %v6122_v22, %v6022_v12  ;;  %6356 = vrot.lane.b32.xlu0 %v7321_v56, %s8177_s8  ;;  %v5991_v48 = vmul.f32 %v11920_v3, %v12296_v43  ;;  %v6059_v25 = vmul.f32 %v11935_v13, %v12300_v11  ;;  %vm13671_vm13 = vmmov %vm13632_vm0 }
 0x473   : > { %v5504_v61 = vmul.f32 %v11891_v17, %v12211_v52  ;;  %v5745_v21 = vadd.f32 %v5713_v33, %v5503_v20  ;;  %v5813_v6 = vadd.f32 %v5781_v27, %v5571_v38  ;;  %v5881_v49 = vadd.f32 %v5849_v9, %v5639_v4  ;;  %v12354_v33 = vld [vmem:[#allocation3 + $0xa0] sm:$0xff] }
 0x474   : > { %v6218_v45 = vadd.f32 %v6154_v32, %v6090_v19  ;;  %v5572_v58 = vmul.f32 %v11896_v14, %v12209_v18  ;;  %v5640_v41 = vmul.f32 %v11901_v36, %v12221_v50  ;;  %v5714_v57 = vmul.f32 %v11910_v23, %v12267_v39  ;;  %v12356_v27 = vld [vmem:[#allocation3 + $0x9f] sm:$0xff] }
 0x475   : > { %v5782_v31 = vmul.f32 %v11915_v51, %v12271_v0  ;;  %v5955_v52 = vadd.f32 %v5923_v8, %v5745_v21  ;;  %v6023_v7 = vadd.f32 %v5991_v48, %v5813_v6  ;;  %v6091_v1 = vadd.f32 %v6059_v25, %v5881_v49  ;;  %v13648_v25 = vld [vmem:[#allocation26_spill] sm:$0xff] }
 0x476   : > { %v7322_v2 = vpack.c.bf16 %v6218_v45, %v6218_v45  ;;  %v5746_v12 = vadd.f32 %v5714_v57, %v5504_v61  ;;  %v5850_v50 = vmul.f32 %v11925_v34, %v12281_v15  ;;  %v5924_v59 = vmul.f32 %v11930_v5, %v12327_v24  ;;  %v12362_v45 = vld [vmem:[#allocation3 + $0xa1] sm:$0xff] }
 0x477   : > { %v5814_v18 = vadd.f32 %v5782_v31, %v5572_v58  ;;  %v6155_v10 = vadd.f32 %v6023_v7, %v5955_v52  ;;  %vm13647_vm12 = vnez %v13646_v54  ;;  %v5992_v19 = vmul.f32 %v11920_v3, %v12337_v35 }
 0x478   : > { %6358 = vrot.lane.b32.xlu1 %v7322_v2, %s8177_s8  ;;  %v6187_v20 = vsel %vm13647_vm12, %v6091_v1, 0.0  ;;  %v5882_v38 = vadd.f32 %v5850_v50, %v5640_v41  ;;  %v5956_v56 = vadd.f32 %v5924_v59, %v5746_v12  ;;  %v6060_v47 = vmul.f32 %v11935_v13, %v12339_v63  ;;  %v12389_v59 = vld [vmem:[#allocation3 + $0xa7] sm:$0xff]  ;;  %vm13674_vm12 = vmmov %vm13632_vm0 }
 0x479   : > { %v7979_v28 = vpop.permute.xlu1 %7978  ;;  %v6219_v32 = vadd.f32 %v6187_v20, %v6155_v10  ;;  %v5505_v9 = vmul.f32 %v11891_v17, %v12240_v55  ;;  %v6024_v8 = vadd.f32 %v5992_v19, %v5814_v18  ;;  %vm13649_vm10 = vnez %v13648_v25 }
 0x47a   : > { %v8153_v22 = vadd.high.f32.bf16 %v11603_v29, %v7979_v28  ;;  %v8154_v4 = vadd.low.f32.bf16 %v11564_v62, %v7979_v28  ;;  %v6092_v48 = vadd.f32 %v6060_v47, %v5882_v38  ;;  %v6124_v61 = vsel %vm13649_vm10, %v5956_v56, 0.0  ;;  %v12395_v38 = vld [vmem:[#allocation3 + $0xa8] sm:$0xff]  ;;  %vm13675_vm10 = vmmov %vm13632_vm0 }
 0x47b   : > { %v5573_v29 = vmul.f32 %v11896_v14, %v12238_v44  ;;  %v7323_v62 = vpack.c.bf16 %v6219_v32, %v6219_v32  ;;  %v5641_v21 = vmul.f32 %v11901_v36, %v12246_v53  ;;  %v5715_v55 = vmul.f32 %v11910_v23, %v12298_v16  ;;  %v12397_v56 = vld [vmem:[#allocation3 + $0xa9] sm:$0xff] }
 0x47c   : > { %5370 = vst.msk [vmem:[#allocation3 + $0xc0] sm:$0xff] %vm13650_vm9, %v8154_v4  ;;  %v5783_v6 = vmul.f32 %v11915_v51, %v12296_v43  ;;  %v6156_v49 = vadd.f32 %v6124_v61, %v6024_v8  ;;  %v5851_v58 = vmul.f32 %v11925_v34, %v12300_v11  ;;  %v5925_v44 = vmul.f32 %v11930_v5, %v12356_v27  ;;  %v13653_v32 = vld [vmem:[#allocation55_spill] sm:$0xff]  ;;  %v13654_v8 = vld [vmem:[#allocation30_spill] sm:$0xff]  ;;  %vm13676_vm9 = vmmov %vm13632_vm0 }
 0x47d   : > { %5371 = vst.msk [vmem:[#allocation3 + $0xc8] sm:$0xff] %vm13651_vm4, %v8153_v22  ;;  %v5993_v41 = vmul.f32 %v11920_v3, %v12354_v33  ;;  %6360 = vrot.lane.b32.xlu0 %v7323_v62, %s8177_s8  ;;  %v5747_v57 = vadd.f32 %v5715_v55, %v5505_v9  ;;  %v6061_v31 = vmul.f32 %v11935_v13, %v12362_v45  ;;  %v13652_v22 = vld [vmem:[#allocation57_spill] sm:$0xff]  ;;  %v12412_v55 = vld [vmem:[#allocation3 + $0xaf] sm:$0xff] }
 0x47e   : > { %v5815_v53 = vadd.f32 %v5783_v6, %v5573_v29  ;;  %v5506_v2 = vmul.f32 %v11891_v17, %v12267_v39  ;;  %v6220_v52 = vadd.f32 %v6156_v49, %v6092_v48  ;;  %v5883_v7 = vadd.f32 %v5851_v58, %v5641_v21  ;;  %v12416_v49 = vld [vmem:[#allocation3 + $0xb0] sm:$0xff] }
 0x47f   : > { %v5574_v1 = vmul.f32 %v11896_v14, %v12271_v0  ;;  %v5642_v28 = vmul.f32 %v11901_v36, %v12281_v15  ;;  %v5957_v18 = vadd.f32 %v5925_v44, %v5747_v57  ;;  %v5716_v10 = vmul.f32 %v11910_v23, %v12327_v24  ;;  %v12418_v58 = vld [vmem:[#allocation3 + $0xb1] sm:$0xff] }
 0x480   : > { %v6025_v50 = vadd.f32 %v5993_v41, %v5815_v53  ;;  %v5784_v54 = vmul.f32 %v11915_v51, %v12337_v35  ;;  %v7324_v39 = vpack.c.bf16 %v6220_v52, %v6220_v52  ;;  %v6093_v20 = vadd.f32 %v6061_v31, %v5883_v7  ;;  %v13658_v7 = vld [vmem:[#allocation29_spill] sm:$0xff] }
 0x481   : > { %v5748_v19 = vadd.f32 %v5716_v10, %v5506_v2  ;;  %v5852_v47 = vmul.f32 %v11925_v34, %v12339_v63  ;;  %vm13655_vm5 = vnez %v13654_v8  ;;  %v5926_v25 = vmul.f32 %v11930_v5, %v12389_v59  ;;  %v12451_v8 = vld [vmem:[#allocation3 + $0xb7] sm:$0xff] }
 0x482   : > { %v6157_v0 = vadd.f32 %v6025_v50, %v5957_v18  ;;  %v5816_v15 = vadd.f32 %v5784_v54, %v5574_v1  ;;  %6362 = vrot.lane.b32.xlu1 %v7324_v39, %s8177_s8  ;;  %v6189_v48 = vsel %vm13655_vm5, %v6093_v20, 0.0  ;;  %v5994_v62 = vmul.f32 %v11920_v3, %v12395_v38 }
 0x483   : > { %v7984_v12 = vpop.permute.xlu0 %7983  ;;  %v5884_v29 = vadd.f32 %v5852_v47, %v5642_v28  ;;  %v6062_v21 = vmul.f32 %v11935_v13, %v12397_v56  ;;  %v5958_v6 = vadd.f32 %v5926_v25, %v5748_v19  ;;  %v5507_v44 = vmul.f32 %v11891_v17, %v12298_v16  ;;  %v13661_v25 = vld [vmem:[#allocation39_spill] sm:$0xff] }
 0x484   : > { %v8155_v4 = vadd.high.f32.bf16 %v13652_v22, %v7984_v12  ;;  %v8156_v9 = vadd.low.f32.bf16 %v13653_v32, %v7984_v12  ;;  %v6221_v61 = vadd.f32 %v6189_v48, %v6157_v0  ;;  %v5575_v41 = vmul.f32 %v11896_v14, %v12296_v43 }
 0x485   : > { %v5643_v57 = vmul.f32 %v11901_v36, %v12300_v11  ;;  %v6026_v31 = vadd.f32 %v5994_v62, %v5816_v15  ;;  %v6094_v2 = vadd.f32 %v6062_v21, %v5884_v29  ;;  %v5717_v52 = vmul.f32 %v11910_v23, %v12356_v27  ;;  %v13662_v29 = vld [vmem:[#allocation9_spill] sm:$0xff] }
 0x486   : > { %5372 = vst.msk [vmem:[#allocation3 + $0xd0] sm:$0xff] %vm13656_vm7, %v8156_v9  ;;  %v7325_v53 = vpack.c.bf16 %v6221_v61, %v6221_v61  ;;  %vm13659_vm8 = vnez %v13658_v7  ;;  %v5785_v28 = vmul.f32 %v11915_v51, %v12354_v33  ;;  %v5853_v16 = vmul.f32 %v11925_v34, %v12362_v45  ;;  %v12449_v9 = vld [vmem:[#allocation3 + $0xb8] sm:$0xff]  ;;  %v12490_v7 = vld [vmem:[#allocation3 + $0xc1] sm:$0xff] }
 0x487   : > { %5373 = vst.msk [vmem:[#allocation3 + $0xd8] sm:$0xff] %vm13657_vm11, %v8155_v4  ;;  %v6126_v1 = vsel %vm13659_vm8, %v5958_v6, 0.0  ;;  %v5927_v43 = vmul.f32 %v11930_v5, %v12412_v55  ;;  %v5749_v12 = vadd.f32 %v5717_v52, %v5507_v44  ;;  %v5995_v18 = vmul.f32 %v11920_v3, %v12416_v49 }
 0x488   : > { %6364 = vrot.lane.b32.xlu0 %v7325_v53, %s8177_s8  ;;  %v6158_v11 = vadd.f32 %v6126_v1, %v6026_v31  ;;  %v6063_v50 = vmul.f32 %v11935_v13, %v12418_v58  ;;  %v5817_v10 = vadd.f32 %v5785_v28, %v5575_v41  ;;  %v5885_v54 = vadd.f32 %v5853_v16, %v5643_v57  ;;  %v12472_v57 = vld [vmem:[#allocation3 + $0xc0] sm:$0xff]  ;;  %v12479_v31 = vld [vmem:[%s12975_s2 + $0x1b] ss:$0 sm:$0xff]  ;;  %v12495_v1 = vld [vmem:[%s12975_s2 + $0x1d] ss:$0 sm:$0xff] }
 0x489   : > { %v5508_v39 = vmul.f32 %v11891_v17, %v12327_v24  ;;  %v5576_v20 = vmul.f32 %v11896_v14, %v12337_v35  ;;  %v5959_v15 = vadd.f32 %v5927_v43, %v5749_v12  ;;  %v5644_v47 = vmul.f32 %v11901_v36, %v12339_v63  ;;  %v12453_v17 = vld [vmem:[#allocation3 + $0xb9] sm:$0xff]  ;;  %v13660_v36 = vld [vmem:[#allocation56_spill] sm:$0xff] }
 0x48a   : > { %v6222_v19 = vadd.f32 %v6158_v11, %v6094_v2  ;;  %v5718_v22 = vmul.f32 %v11910_v23, %v12389_v59  ;;  %v6027_v4 = vadd.f32 %v5995_v18, %v5817_v10  ;;  %v6095_v32 = vadd.f32 %v6063_v50, %v5885_v54  ;;  %v12474_v53 = vld [vmem:[#allocation3 + $0xbf] sm:$0xff]  ;;  %v12502_v28 = vld [vmem:[%s12975_s2 + $0x1e] ss:$0 sm:$0xff] }
 0x48b   : > { %v5786_v14 = vmul.f32 %v11915_v51, %v12395_v38  ;;  %v5854_v35 = vmul.f32 %v11925_v34, %v12397_v56  ;;  %vm13663_vm15 = vnez %v13662_v29  ;;  %v5928_v44 = vmul.f32 %v11930_v5, %v12451_v8  ;;  %v12486_v5 = vld [vmem:[%s12975_s2 + $0x1c] ss:$0 sm:$0xff]  ;;  %v12509_v11 = vld [vmem:[%s12975_s2 + $0x1f] ss:$0 sm:$0xff]  ;;  %v13665_v50 = vld [vmem:[#allocation42_spill] sm:$0xff] }
 0x48c   : > { %v7326_v48 = vpack.c.bf16 %v6222_v19, %v6222_v19  ;;  %v5750_v24 = vadd.f32 %v5718_v22, %v5508_v39  ;;  %v6159_v61 = vadd.f32 %v6027_v4, %v5959_v15  ;;  %v6191_v62 = vsel %vm13663_vm15, %v6095_v32, 0.0  ;;  %v12525_v39 = vld [vmem:[%s12975_s2 + $0x21] ss:$0 sm:$0xff]  ;;  %v12540_v32 = vld [vmem:[%s12975_s2 + $0x23] ss:$0 sm:$0xff] }
 0x48d   : > { %v7989_v0 = vpop.permute.xlu1 %7988  ;;  %v5818_v21 = vadd.f32 %v5786_v14, %v5576_v20  ;;  %v5886_v6 = vadd.f32 %v5854_v35, %v5644_v47  ;;  %v5996_v51 = vmul.f32 %v11920_v3, %v12449_v9  ;;  %v6064_v41 = vmul.f32 %v11935_v13, %v12453_v17 }
 0x48e   : > { %v8157_v63 = vadd.high.f32.bf16 %v13660_v36, %v7989_v0  ;;  %v8158_v23 = vadd.low.f32.bf16 %v13661_v25, %v7989_v0  ;;  %6366 = vrot.lane.b32.xlu1 %v7326_v48, %s8177_s8  ;;  %v6223_v34 = vadd.f32 %v6191_v62, %v6159_v61  ;;  %v5509_v3 = vmul.f32 %v12479_v31, %v12356_v27  ;;  %v12532_v0 = vld [vmem:[%s12975_s2 + $0x22] ss:$0 sm:$0xff]  ;;  %v12546_v25 = vld [vmem:[#allocation3 + $0xc8] sm:$0xff] }
 0x48f   : > { %v5577_v13 = vmul.f32 %v12486_v5, %v12354_v33  ;;  %v5960_v2 = vadd.f32 %v5928_v44, %v5750_v24  ;;  %v6028_v52 = vadd.f32 %v5996_v51, %v5818_v21  ;;  %v5645_v27 = vmul.f32 %v12495_v1, %v12362_v45  ;;  %v12516_v45 = vld [vmem:[%s12975_s2 + $0x20] ss:$0 sm:$0xff] }
 0x490   : > { %5374 = vst.msk [vmem:[#allocation3 + $0xe0] sm:$0xff] %vm13632_vm0, %v8158_v23  ;;  %v5719_v33 = vmul.f32 %v12502_v28, %v12412_v55  ;;  %v7327_v16 = vpack.c.bf16 %v6223_v34, %v6223_v34  ;;  %v6096_v43 = vadd.f32 %v6064_v41, %v5886_v6  ;;  %v5787_v12 = vmul.f32 %v12509_v11, %v12416_v49  ;;  %v12548_v23 = vld [vmem:[#allocation3 + $0xc7] sm:$0xff]  ;;  %v13668_v41 = vld [vmem:[#allocation49_spill] sm:$0xff] }
 0x491   : > { %5375 = vst.msk [vmem:[#allocation3 + $0xe8] sm:$0xff] %vm13664_vm1, %v8157_v63  ;;  %v5855_v18 = vmul.f32 %v12516_v45, %v12418_v58  ;;  %vm13666_vm2 = vnez %v13665_v50  ;;  %v5929_v20 = vmul.f32 %v12525_v39, %v12474_v53  ;;  %v5997_v19 = vmul.f32 %v12532_v0, %v12472_v57  ;;  %v13667_v62 = vld [vmem:[#allocation54_spill] sm:$0xff]  ;;  %v12554_v6 = vld [vmem:[#allocation3 + $0xc9] sm:$0xff] }
 0x492   : > { %v6128_v10 = vsel %vm13666_vm2, %v5960_v2, 0.0  ;;  %v5751_v54 = vadd.f32 %v5719_v33, %v5509_v3  ;;  %6368 = vrot.lane.b32.xlu0 %v7327_v16, %s8177_s8  ;;  %v5819_v22 = vadd.f32 %v5787_v12, %v5577_v13  ;;  %v6065_v48 = vmul.f32 %v12540_v32, %v12490_v7 }
 0x493   : > { %v6160_v47 = vadd.f32 %v6128_v10, %v6028_v52  ;;  %v5887_v4 = vadd.f32 %v5855_v18, %v5645_v27  ;;  %v5510_v14 = vmul.f32 %v12479_v31, %v12389_v59  ;;  %v5578_v61 = vmul.f32 %v12486_v5, %v12395_v38  ;;  %v12577_v18 = vld [vmem:[#allocation3 + $0xcf] sm:$0xff] }
 0x494   : > { %v5961_v24 = vadd.f32 %v5929_v20, %v5751_v54  ;;  %v6029_v36 = vadd.f32 %v5997_v19, %v5819_v22  ;;  %v5646_v44 = vmul.f32 %v12495_v1, %v12397_v56  ;;  %v5720_v59 = vmul.f32 %v12502_v28, %v12451_v8 }
 0x495   : > { %v6224_v35 = vadd.f32 %v6160_v47, %v6096_v43  ;;  %v6097_v63 = vadd.f32 %v6065_v48, %v5887_v4  ;;  %vm13669_vm6 = vnez %v13668_v41  ;;  %v5788_v38 = vmul.f32 %v12509_v11, %v12449_v9  ;;  %v13672_v48 = vld [vmem:[#allocation11_spill] sm:$0xff] }
 0x496   : > { %v6161_v34 = vadd.f32 %v6029_v36, %v5961_v24  ;;  %v5856_v13 = vmul.f32 %v12516_v45, %v12453_v17  ;;  %v5930_v56 = vmul.f32 %v12525_v39, %v12548_v23  ;;  %v5998_v2 = vmul.f32 %v12532_v0, %v12546_v25  ;;  %v12592_v24 = vld [vmem:[#allocation3 + $0xd1] sm:$0xff] }
 0x497   : > { %v7994_v15 = vpop.permute.xlu0 %7993  ;;  %v7328_v51 = vpack.c.bf16 %v6224_v35, %v6224_v35  ;;  %v6193_v3 = vsel %vm13669_vm6, %v6097_v63, 0.0  ;;  %v5820_v27 = vadd.f32 %v5788_v38, %v5578_v61  ;;  %v6066_v33 = vmul.f32 %v12540_v32, %v12554_v6  ;;  %v12610_v38 = vld [vmem:[#allocation3 + $0xd8] sm:$0xff] }
 0x498   : > { %v8159_v29 = vadd.high.f32.bf16 %v11779_v42, %v7994_v15  ;;  %v8160_v21 = vadd.low.f32.bf16 %v13667_v62, %v7994_v15  ;;  %v5752_v42 = vadd.f32 %v5720_v59, %v5510_v14  ;;  %v6225_v52 = vadd.f32 %v6193_v3, %v6161_v34  ;;  %v12583_v15 = vld [vmem:[#allocation3 + $0xd0] sm:$0xff] }
 0x499   : > { %6370 = vrot.lane.b32.xlu1 %v7328_v51, %s8177_s8  ;;  %v5511_v16 = vmul.f32 %v12479_v31, %v12412_v55  ;;  %v5888_v43 = vadd.f32 %v5856_v13, %v5646_v44  ;;  %v5579_v50 = vmul.f32 %v12486_v5, %v12416_v49  ;;  %v5647_v10 = vmul.f32 %v12495_v1, %v12418_v58  ;;  %v12604_v59 = vld [vmem:[#allocation3 + $0xd7] sm:$0xff] }
 0x49a   : > { %5376 = vst.msk [vmem:[#allocation3 + $0xf0] sm:$0xff] %vm13670_vm3, %v8160_v21  ;;  %v5962_v12 = vadd.f32 %v5930_v56, %v5752_v42  ;;  %v7329_v20 = vpack.c.bf16 %v6225_v52, %v6225_v52  ;;  %v6030_v19 = vadd.f32 %v5998_v2, %v5820_v27  ;;  %v5721_v47 = vmul.f32 %v12502_v28, %v12474_v53  ;;  %v12612_v42 = vld [vmem:[#allocation3 + $0xd9] sm:$0xff] }
 0x49b   : > { %5377 = vst.msk [vmem:[#allocation3 + $0xf8] sm:$0xff] %vm13671_vm13, %v8159_v29  ;;  %v5789_v55 = vmul.f32 %v12509_v11, %v12472_v57  ;;  %v6098_v4 = vadd.f32 %v6066_v33, %v5888_v43  ;;  %vm13673_vm14 = vnez %v13672_v48  ;;  %v5857_v58 = vmul.f32 %v12516_v45, %v12490_v7 }
 0x49c   : > { %v6130_v49 = vsel %vm13673_vm14, %v5962_v12, 0.0  ;;  %6372 = vrot.lane.b32.xlu0 %v7329_v20, %s8177_s8  ;;  %v5753_v36 = vadd.f32 %v5721_v47, %v5511_v16  ;;  %v5931_v61 = vmul.f32 %v12525_v39, %v12577_v18  ;;  %v5999_v29 = vmul.f32 %v12532_v0, %v12583_v15  ;;  %v12635_v20 = vld [vmem:[#allocation3 + $0xdf] sm:$0xff] }
 0x49d   : > { %v6162_v35 = vadd.f32 %v6130_v49, %v6030_v19  ;;  %v5821_v63 = vadd.f32 %v5789_v55, %v5579_v50  ;;  %v6067_v44 = vmul.f32 %v12540_v32, %v12592_v24  ;;  %v5512_v51 = vmul.f32 %v12479_v31, %v12451_v8  ;;  %v12639_v55 = vld [vmem:[#allocation3 + $0xe0] sm:$0xff] }
 0x49e   : > { %v5284_v54 = vpop.permute.xlu0 %5283  ;;  %v5963_v21 = vadd.f32 %v5931_v61, %v5753_v36  ;;  %v5580_v13 = vmul.f32 %v12486_v5, %v12449_v9  ;;  %v5648_v52 = vmul.f32 %v12495_v1, %v12453_v17  ;;  %v5722_v8 = vmul.f32 %v12502_v28, %v12548_v23  ;;  %v13677_v17 = vld [vmem:[#allocation50_spill] sm:$0xff]  ;;  %v13679_v36 = vld [vmem:[#allocation13_spill] sm:$0xff] }
 0x49f   : > { %v5348_v22 = vadd.f32 %v5284_v54, %v11832_v26  ;;  %v5889_v26 = vadd.f32 %v5857_v58, %v5647_v10  ;;  %v6226_v62 = vadd.f32 %v6162_v35, %v6098_v4  ;;  %v6031_v3 = vadd.f32 %v5999_v29, %v5821_v63 }
 0x4a0   : > { %v7999_v14 = vpop.permute.xlu1 %7998  ;;  %v5858_v27 = vmul.f32 %v12516_v45, %v12554_v6  ;;  %v5932_v9 = vmul.f32 %v12525_v39, %v12604_v59  ;;  %vm13678_vm4 = vnez %v13677_v17  ;;  %v5754_v16 = vadd.f32 %v5722_v8, %v5512_v51 }
 0x4a1   : > { %5380 = vst.msk [vmem:[#allocation3 + $0x110] sm:$0xff] %vm13674_vm12, %v5348_v22  ;;  %v8161_v34 = vadd.high.f32.bf16 %v11813_v37, %v7999_v14  ;;  %v8162_v41 = vadd.low.f32.bf16 %v11793_v46, %v7999_v14  ;;  %v7330_v56 = vpack.c.bf16 %v6226_v62, %v6226_v62  ;;  %v6099_v2 = vadd.f32 %v6067_v44, %v5889_v26  ;;  %v12641_v22 = vld [vmem:[#allocation3 + $0xe1] sm:$0xff] }
 0x4a2   : > { %v6163_v46 = vadd.f32 %v6031_v3, %v5963_v21  ;;  %v5790_v37 = vmul.f32 %v12509_v11, %v12546_v25  ;;  %v6000_v43 = vmul.f32 %v12532_v0, %v12610_v38  ;;  %v6068_v12 = vmul.f32 %v12540_v32, %v12612_v42  ;;  %v12662_v44 = vld [vmem:[#allocation3 + $0xe7] sm:$0xff] }
 0x4a3   : > { %5378 = vst.msk [vmem:[#allocation3 + $0x100] sm:$0xff] %vm13675_vm10, %v8162_v41  ;;  %6374 = vrot.lane.b32.xlu1 %v7330_v56, %s8177_s8  ;;  %v6195_v33 = vsel %vm13678_vm4, %v6099_v2, 0.0  ;;  %v5890_v54 = vadd.f32 %v5858_v27, %v5648_v52  ;;  %v5513_v19 = vmul.f32 %v12479_v31, %v12474_v53  ;;  %v5964_v47 = vadd.f32 %v5932_v9, %v5754_v16  ;;  %v12664_v41 = vld [vmem:[#allocation3 + $0xe8] sm:$0xff] }
 0x4a4   : > { %5379 = vst.msk [vmem:[#allocation3 + $0x108] sm:$0xff] %vm13676_vm9, %v8161_v34  ;;  %v6227_v50 = vadd.f32 %v6195_v33, %v6163_v46  ;;  %v5822_v10 = vadd.f32 %v5790_v37, %v5580_v13  ;;  %v5581_v4 = vmul.f32 %v12486_v5, %v12472_v57  ;;  %v5649_v48 = vmul.f32 %v12495_v1, %v12490_v7  ;;  %v12670_v52 = vld [vmem:[#allocation3 + $0xe9] sm:$0xff] }
 0x4a5   : > { %v5723_v49 = vmul.f32 %v12502_v28, %v12577_v18  ;;  %v6100_v35 = vadd.f32 %v6068_v12, %v5890_v54  ;;  %v5791_v53 = vmul.f32 %v12509_v11, %v12583_v15  ;;  %vm13680_vm5 = vnez %v13679_v36 }
 0x4a6   : > { %v7331_v58 = vpack.c.bf16 %v6227_v50, %v6227_v50  ;;  %v6032_v14 = vadd.f32 %v6000_v43, %v5822_v10  ;;  %v6132_v63 = vsel %vm13680_vm5, %v5964_v47, 0.0  ;;  %v5859_v26 = vmul.f32 %v12516_v45, %v12592_v24  ;;  %v12689_v47 = vld [vmem:[#allocation3 + $0xf0] sm:$0xff] }
 0x4a7   : > { %v5755_v61 = vadd.f32 %v5723_v49, %v5513_v19  ;;  %v5933_v57 = vmul.f32 %v12525_v39, %v12635_v20  ;;  %v5823_v29 = vadd.f32 %v5791_v53, %v5581_v4  ;;  %v6001_v62 = vmul.f32 %v12532_v0, %v12639_v55  ;;  %v12691_v4 = vld [vmem:[#allocation3 + $0xef] sm:$0xff] }
 0x4a8   : > { %6376 = vrot.lane.b32.xlu0 %v7331_v58, %s8177_s8  ;;  %v6164_v7 = vadd.f32 %v6132_v63, %v6032_v14  ;;  %v6069_v21 = vmul.f32 %v12540_v32, %v12641_v22  ;;  %v5891_v51 = vadd.f32 %v5859_v26, %v5649_v48  ;;  %v5514_v3 = vmul.f32 %v12479_v31, %v12548_v23 }
 0x4a9   : > { %v5965_v34 = vadd.f32 %v5933_v57, %v5755_v61  ;;  %v5582_v13 = vmul.f32 %v12486_v5, %v12546_v25  ;;  %v6033_v2 = vadd.f32 %v6001_v62, %v5823_v29  ;;  %v5650_v8 = vmul.f32 %v12495_v1, %v12554_v6  ;;  %v13681_v6 = vld [vmem:[#allocation51_spill] sm:$0xff]  ;;  %v13683_v61 = vld [vmem:[#allocation20_spill] sm:$0xff] }
 0x4aa   : > { %v6228_v56 = vadd.f32 %v6164_v7, %v6100_v35  ;;  %v5724_v46 = vmul.f32 %v12502_v28, %v12604_v59  ;;  %v6101_v37 = vadd.f32 %v6069_v21, %v5891_v51  ;;  %v5792_v27 = vmul.f32 %v12509_v11, %v12610_v38  ;;  %v12697_v35 = vld [vmem:[#allocation3 + $0xf1] sm:$0xff] }
 0x4ab   : > { %v5860_v23 = vmul.f32 %v12516_v45, %v12612_v42  ;;  %v5934_v25 = vmul.f32 %v12525_v39, %v12662_v44  ;;  %v6165_v17 = vadd.f32 %v6033_v2, %v5965_v34  ;;  %v6002_v16 = vmul.f32 %v12532_v0, %v12664_v41  ;;  %v12716_v34 = vld [vmem:[#allocation3 + $0xf8] sm:$0xff] }
 0x4ac   : > { %v7332_v9 = vpack.c.bf16 %v6228_v56, %v6228_v56  ;;  %v5756_v33 = vadd.f32 %v5724_v46, %v5514_v3  ;;  %vm13682_vm7 = vnez %v13681_v6  ;;  %v5824_v12 = vadd.f32 %v5792_v27, %v5582_v13  ;;  %v12718_v3 = vld [vmem:[#allocation3 + $0xf7] sm:$0xff] }
 0x4ad   : > { %v6197_v43 = vsel %vm13682_vm7, %v6101_v37, 0.0  ;;  %v5892_v50 = vadd.f32 %v5860_v23, %v5650_v8  ;;  %v6070_v10 = vmul.f32 %v12540_v32, %v12670_v52  ;;  %v5515_v48 = vmul.f32 %v12479_v31, %v12577_v18  ;;  %v12726_v23 = vld [vmem:[#allocation3 + $0xf9] sm:$0xff] }
 0x4ae   : > { %6378 = vrot.lane.b32.xlu1 %v7332_v9, %s8177_s8  ;;  %v6229_v54 = vadd.f32 %v6197_v43, %v6165_v17  ;;  %v5966_v19 = vadd.f32 %v5934_v25, %v5756_v33  ;;  %v5583_v49 = vmul.f32 %v12486_v5, %v12583_v15  ;;  %v6034_v58 = vadd.f32 %v6002_v16, %v5824_v12  ;;  %v13685_v16 = vld [vmem:[#allocation52_spill] sm:$0xff] }
 0x4af   : > { %v6102_v14 = vadd.f32 %v6070_v10, %v5892_v50  ;;  %v5651_v53 = vmul.f32 %v12495_v1, %v12592_v24  ;;  %v5725_v36 = vmul.f32 %v12502_v28, %v12635_v20  ;;  %vm13684_vm11 = vnez %v13683_v61  ;;  %v12753_v61 = vld [vmem:[#allocation3 + $0x101] sm:$0xff] }
 0x4b0   : > { %v7333_v63 = vpack.c.bf16 %v6229_v54, %v6229_v54  ;;  %v6134_v26 = vsel %vm13684_vm11, %v5966_v19, 0.0  ;;  %v5793_v18 = vmul.f32 %v12509_v11, %v12639_v55  ;;  %v5861_v15 = vmul.f32 %v12516_v45, %v12641_v22  ;;  %v12743_v54 = vld [vmem:[#allocation3 + $0x100] sm:$0xff] }
 0x4b1   : > { %v6166_v57 = vadd.f32 %v6134_v26, %v6034_v58  ;;  %v5757_v7 = vadd.f32 %v5725_v36, %v5515_v48  ;;  %v5935_v29 = vmul.f32 %v12525_v39, %v12691_v4  ;;  %v6003_v24 = vmul.f32 %v12532_v0, %v12689_v47  ;;  %v12745_v19 = vld [vmem:[#allocation3 + $0xff] sm:$0xff] }
 0x4b2   : > { %6380 = vrot.lane.b32.xlu0 %v7333_v63, %s8177_s8  ;;  %v5825_v62 = vadd.f32 %v5793_v18, %v5583_v49  ;;  %v5893_v21 = vadd.f32 %v5861_v15, %v5651_v53  ;;  %v6071_v51 = vmul.f32 %v12540_v32, %v12697_v35  ;;  %v5516_v13 = vmul.f32 %v12479_v31, %v12604_v59 }
 0x4b3   : > { %v6230_v56 = vadd.f32 %v6166_v57, %v6102_v14  ;;  %v5967_v2 = vadd.f32 %v5935_v29, %v5757_v7  ;;  %v5584_v8 = vmul.f32 %v12486_v5, %v12610_v38  ;;  %v5652_v46 = vmul.f32 %v12495_v1, %v12612_v42 }
 0x4b4   : > { %v6035_v37 = vadd.f32 %v6003_v24, %v5825_v62  ;;  %v6103_v27 = vadd.f32 %v6071_v51, %v5893_v21  ;;  %v5726_v25 = vmul.f32 %v12502_v28, %v12662_v44  ;;  %v5794_v9 = vmul.f32 %v12509_v11, %v12664_v41  ;;  %v5692_v51 = vld [vmem:[#allocation3 + $0x107] sm:$0xff] }
 0x4b5   : > { %v7334_v17 = vpack.c.bf16 %v6230_v56, %v6230_v56  ;;  %v5862_v59 = vmul.f32 %v12516_v45, %v12670_v52  ;;  %v5936_v38 = vmul.f32 %v12525_v39, %v12718_v3  ;;  %v6004_v42 = vmul.f32 %v12532_v0, %v12716_v34 }
 0x4b6   : > { %v6167_v33 = vadd.f32 %v6035_v37, %v5967_v2  ;;  %vm13686_vm8 = vnez %v13685_v16  ;;  %v5758_v43 = vadd.f32 %v5726_v25, %v5516_v13  ;;  %v5826_v12 = vadd.f32 %v5794_v9, %v5584_v8  ;;  %v5694_v9 = vld [vmem:[#allocation3 + $0x109] sm:$0xff] }
 0x4b7   : > { %v6199_v6 = vsel %vm13686_vm8, %v6103_v27, 0.0  ;;  %6382 = vrot.lane.b32.xlu1 %v7334_v17, %s8177_s8  ;;  %v5894_v50 = vadd.f32 %v5862_v59, %v5652_v46  ;;  %v6072_v10 = vmul.f32 %v12540_v32, %v12726_v23  ;;  %v5517_v48 = vmul.f32 %v12479_v31, %v12635_v20  ;;  %v5690_v46 = vld [vmem:[#allocation3 + $0x108] sm:$0xff]  ;;  %v12778_v59 = vpop.permute.xlu1 %6334 }
 0x4b8   : > { %v5585_v49 = vmul.f32 %v12486_v5, %v12639_v55  ;;  %v6231_v58 = vadd.f32 %v6199_v6, %v6167_v33  ;;  %v5968_v14 = vadd.f32 %v5936_v38, %v5758_v43  ;;  %v6036_v53 = vadd.f32 %v6004_v42, %v5826_v12  ;;  %v13687_v55 = vld [vmem:[#allocation33_spill] sm:$0xff] }
 0x4b9   : > { %v5653_v36 = vmul.f32 %v12495_v1, %v12641_v22  ;;  %v6104_v63 = vadd.f32 %v6072_v10, %v5894_v50  ;;  %v5727_v26 = vmul.f32 %v12502_v28, %v12691_v4  ;;  %v5795_v18 = vmul.f32 %v12509_v11, %v12689_v47  ;;  %v13689_v43 = vld [vmem:[#allocation53_spill] sm:$0xff] }
 0x4ba   : > { %v5863_v20 = vmul.f32 %v12516_v45, %v12697_v35  ;;  %v7335_v15 = vpack.c.bf16 %v6231_v58, %v6231_v58  ;;  %vm13688_vm15 = vnez %v13687_v55  ;;  %v5937_v7 = vmul.f32 %v12525_v39, %v12745_v19  ;;  %v5695_v55 = vld [vmem:[#allocation3 + $0x111] sm:$0xff] }
 0x4bb   : > { %v6136_v57 = vsel %vm13688_vm15, %v5968_v14, 0.0  ;;  %v6005_v22 = vmul.f32 %v12532_v0, %v12743_v54  ;;  %v5759_v24 = vadd.f32 %v5727_v26, %v5517_v48  ;;  %v5827_v62 = vadd.f32 %v5795_v18, %v5585_v49  ;;  %v12789_v49 = vpop.permute.xlu0 %6336  ;;  %v5693_v26 = vld [vmem:[#allocation3 + $0x10f] sm:$0xff] }
 0x4bc   : > { %v6168_v29 = vadd.f32 %v6136_v57, %v6036_v53  ;;  %v5895_v21 = vadd.f32 %v5863_v20, %v5653_v36  ;;  %6384 = vrot.lane.b32.xlu0 %v7335_v15, %s8177_s8  ;;  %v6073_v13 = vmul.f32 %v12540_v32, %v12753_v61  ;;  %v5518_v56 = vmul.f32 %v12479_v31, %v12662_v44 }
 0x4bd   : > { %v5586_v2 = vmul.f32 %v12486_v5, %v12664_v41  ;;  %v5654_v8 = vmul.f32 %v12495_v1, %v12670_v52  ;;  %v5969_v27 = vadd.f32 %v5937_v7, %v5759_v24  ;;  %v6037_v25 = vadd.f32 %v6005_v22, %v5827_v62  ;;  %v13691_v22 = vld [vmem:[#allocation35_spill] sm:$0xff]  ;;  %v12806_v24 = vpop.permute.xlu1 %6338 }
 0x4be   : > { %v6232_v37 = vadd.f32 %v6168_v29, %v6104_v63  ;;  %v5728_v17 = vmul.f32 %v12502_v28, %v12718_v3  ;;  %v6105_v38 = vadd.f32 %v6073_v13, %v5895_v21  ;;  %v5796_v44 = vmul.f32 %v12509_v11, %v12716_v34  ;;  %v5691_v63 = vld [vmem:[#allocation3 + $0x110] sm:$0xff] }
 0x4bf   : > { %v5864_v41 = vmul.f32 %v12516_v45, %v12726_v23  ;;  %v5938_v42 = vmul.f32 %v12525_v39, %v5692_v51  ;;  %v6169_v33 = vadd.f32 %v6037_v25, %v5969_v27  ;;  %v6006_v6 = vmul.f32 %v12532_v0, %v5690_v46  ;;  %v5900_v27 = vld [vmem:[#allocation3 + $0x118] sm:$0xff] }
 0x4c0   : > { %v7336_v52 = vpack.c.bf16 %v6232_v37, %v6232_v37  ;;  %v5760_v16 = vadd.f32 %v5728_v17, %v5518_v56  ;;  %vm13690_vm0 = vnez %v13689_v43  ;;  %v5828_v50 = vadd.f32 %v5796_v44, %v5586_v2  ;;  %v5902_v25 = vld [vmem:[#allocation3 + $0x117] sm:$0xff] }
 0x4c1   : > { %v6201_v12 = vsel %vm13690_vm0, %v6105_v38, 0.0  ;;  %v5896_v10 = vadd.f32 %v5864_v41, %v5654_v8  ;;  %v6074_v48 = vmul.f32 %v12540_v32, %v5694_v9  ;;  %v5519_v53 = vmul.f32 %v12479_v31, %v12691_v4  ;;  %v5904_v43 = vld [vmem:[#allocation3 + $0x119] sm:$0xff] }
 0x4c2   : > { %6386 = vrot.lane.b32.xlu1 %v7336_v52, %s8177_s8  ;;  %v6233_v58 = vadd.f32 %v6201_v12, %v6169_v33  ;;  %v5970_v14 = vadd.f32 %v5938_v42, %v5760_v16  ;;  %v5587_v36 = vmul.f32 %v12486_v5, %v12689_v47  ;;  %v6038_v18 = vadd.f32 %v6006_v6, %v5828_v50  ;;  %v6341_v42 = vpop.permute.xlu0 %6340  ;;  %v6343_v12 = vpop.permute.xlu1 %6342 }
 0x4c3   : > { %v6106_v20 = vadd.f32 %v6074_v48, %v5896_v10  ;;  %v5655_v15 = vmul.f32 %v12495_v1, %v12697_v35  ;;  %v5729_v57 = vmul.f32 %v12502_v28, %v12745_v19  ;;  %vm13692_vm1 = vnez %v13691_v22 }
 0x4c4   : > { %v7337_v7 = vpack.c.bf16 %v6233_v58, %v6233_v58  ;;  %v6138_v29 = vsel %vm13692_vm1, %v5970_v14, 0.0  ;;  %v5797_v4 = vmul.f32 %v12509_v11, %v12743_v54  ;;  %v5865_v47 = vmul.f32 %v12516_v45, %v12753_v61 }
 0x4c5   : > { %v6170_v62 = vadd.f32 %v6138_v29, %v6038_v18  ;;  %v5761_v21 = vadd.f32 %v5729_v57, %v5519_v53  ;;  %v5939_v35 = vmul.f32 %v12525_v39, %v5693_v26  ;;  %v6007_v13 = vmul.f32 %v12532_v0, %v5691_v63  ;;  %v5903_v18 = vld [vmem:[#allocation3 + $0x11f] sm:$0xff] }
 0x4c6   : > { %6388 = vrot.lane.b32.xlu0 %v7337_v7, %s8177_s8  ;;  %v5829_v56 = vadd.f32 %v5797_v4, %v5587_v36  ;;  %v5897_v2 = vadd.f32 %v5865_v47, %v5655_v15  ;;  %v6075_v8 = vmul.f32 %v12540_v32, %v5695_v55  ;;  %v5520_v37 = vmul.f32 %v12479_v31, %v12718_v3  ;;  %v5901_v36 = vld [vmem:[#allocation3 + $0x120] sm:$0xff] }
 0x4c7   : > { %v6234_v17 = vadd.f32 %v6170_v62, %v6106_v20  ;;  %v5971_v38 = vadd.f32 %v5939_v35, %v5761_v21  ;;  %v5588_v44 = vmul.f32 %v12486_v5, %v12716_v34  ;;  %v5656_v41 = vmul.f32 %v12495_v1, %v12726_v23  ;;  %v6345_v20 = vpop.permute.xlu0 %6344 }
 0x4c8   : > { %v6039_v52 = vadd.f32 %v6007_v13, %v5829_v56  ;;  %v6107_v33 = vadd.f32 %v6075_v8, %v5897_v2  ;;  %v5730_v16 = vmul.f32 %v12502_v28, %v5692_v51  ;;  %v5798_v6 = vmul.f32 %v12509_v11, %v5690_v46 }
 0x4c9   : > { %v7338_v3 = vpack.c.bf16 %v6234_v17, %v6234_v17  ;;  %v5866_v50 = vmul.f32 %v12516_v45, %v5694_v9  ;;  %v5940_v10 = vmul.f32 %v12525_v39, %v5902_v25  ;;  %v6008_v48 = vmul.f32 %v12532_v0, %v5900_v27 }
 0x4ca   : > { %v6171_v34 = vadd.f32 %v6039_v52, %v5971_v38  ;;  %vm13693_vm2 = vnez %v13478_v40  ;;  %v5762_v58 = vadd.f32 %v5730_v16, %v5520_v37  ;;  %v5830_v14 = vadd.f32 %v5798_v6, %v5588_v44 }
 0x4cb   : > { %v6203_v23 = vsel %vm13693_vm2, %v6107_v33, 0.0  ;;  %6390 = vrot.lane.b32.xlu1 %v7338_v3, %s8177_s8  ;;  %v5898_v51 = vadd.f32 %v5866_v50, %v5656_v41  ;;  %v6076_v46 = vmul.f32 %v12540_v32, %v5904_v43  ;;  %v5521_v53 = vmul.f32 %v12479_v31, %v12745_v19  ;;  %v5905_v31 = vld [vmem:[#allocation3 + $0x121] sm:$0xff] }
 0x4cc   : > { %v5589_v9 = vmul.f32 %v12486_v5, %v12743_v54  ;;  %v6235_v15 = vadd.f32 %v6203_v23, %v6171_v34  ;;  %v5972_v57 = vadd.f32 %v5940_v10, %v5762_v58  ;;  %v6040_v40 = vadd.f32 %v6008_v48, %v5830_v14 }
 0x4cd   : > { %v5657_v7 = vmul.f32 %v12495_v1, %v12753_v61  ;;  %v6108_v22 = vadd.f32 %v6076_v46, %v5898_v51  ;;  %v5731_v29 = vmul.f32 %v12502_v28, %v5693_v26  ;;  %v5799_v4 = vmul.f32 %v12509_v11, %v5691_v63  ;;  %v6495_v1 = vld [vmem:[%s12976_s3] sm:$0xf]  ;;  %v6347_v61 = vpop.permute.xlu1 %6346 }
 0x4ce   : > { %v5867_v47 = vmul.f32 %v12516_v45, %v5695_v55  ;;  %v7339_v19 = vpack.c.bf16 %v6235_v15, %v6235_v15  ;;  %vm13694_vm6 = vnez %v13481_v30  ;;  %v5941_v54 = vmul.f32 %v12525_v39, %v5903_v18 }
 0x4cf   : > { %v6140_v5 = vsel %vm13694_vm6, %v5972_v57, 0.0  ;;  %v6009_v62 = vmul.f32 %v12532_v0, %v5901_v36  ;;  %v5763_v28 = vadd.f32 %v5731_v29, %v5521_v53  ;;  %v5831_v26 = vadd.f32 %v5799_v4, %v5589_v9 }
 0x4d0   : > { %v6172_v21 = vadd.f32 %v6140_v5, %v6040_v40  ;;  %v5899_v11 = vadd.f32 %v5867_v47, %v5657_v7  ;;  %6392 = vrot.lane.b32.xlu0 %v7339_v19, %s8177_s8  ;;  %v6077_v45 = vmul.f32 %v12540_v32, %v5905_v31  ;;  %vm6430_vm3 = vcmask 60464   ;;  %v6349_v32 = vpop.permute.xlu0 %6348 }
 0x4d1   : > { %vm6625_vm13 = vcmask 1043456   ;;  %v5973_v63 = vadd.f32 %v5941_v54, %v5763_v28  ;;  %v6041_v39 = vadd.f32 %v6009_v62, %v5831_v26  ;;  %6431 = vst.msk [vmem:[#allocation2] sm:$0xf] %vm6430_vm3, %v12778_v59  ;;  %6432 = vst.msk [vmem:[#allocation2 + $0x4] sm:$0xf] %vm6430_vm3, %v12789_v49  ;;  %vm13695_vm14 = vnez %v13603_v60 }
 0x4d2   : > { %v6236_v30 = vadd.f32 %v6172_v21, %v6108_v22  ;;  %6433 = vst.msk [vmem:[#allocation2 + $0x8] sm:$0xf] %vm6430_vm3, %v12806_v24  ;;  %6434 = vst.msk [vmem:[#allocation2 + $0xc] sm:$0xf] %vm6430_vm3, %v6341_v42  ;;  %7761 = vmatprep.subr.msk.bf16.mxu1 %vm6625_vm13, %v6495_v1  ;;  %v6627_v0 = vsel %vm6625_vm13, %v6495_v1, 0  ;;  %v6109_v55 = vadd.f32 %v6077_v45, %v5899_v11  ;;  %vm6576_vm12 = vcmask 64512  }
 0x4d3   : > { %6435 = vst.msk [vmem:[#allocation2 + $0x10] sm:$0xf] %vm6430_vm3, %v6343_v12  ;;  %6436 = vst.msk [vmem:[#allocation2 + $0x14] sm:$0xf] %vm6430_vm3, %v6345_v20  ;;  %7727 = vmatpush3.bf16.msra.mxu1 %v6627_v0  ;;  %v6173_v49 = vadd.f32 %v6041_v39, %v5973_v63 }
 0x4d4   : > { %6437 = vst.msk [vmem:[#allocation2 + $0x18] sm:$0xf] %vm6430_vm3, %v6347_v61  ;;  %6438 = vst.msk [vmem:[#allocation2 + $0x1c] sm:$0xf] %vm6430_vm3, %v6349_v32  ;;  %v7340_v59 = vpack.c.bf16 %v6236_v30, %v6236_v30  ;;  %v6205_v24 = vsel %vm13695_vm14, %v6109_v55, 0.0 }
 0x4d5   : > { %v6237_v35 = vadd.f32 %v6205_v24, %v6173_v49  ;;  %v6351_v56 = vpop.permute.xlu1 %6350 }
 0x4d6   : > { %6394 = vrot.lane.b32.xlu1 %v7340_v59, %s8177_s8  ;;  %6439 = vst.msk [vmem:[#allocation2 + $0x20] sm:$0xf] %vm6430_vm3, %v6351_v56 }
 0x4d7   : > { %v7341_v13 = vpack.c.bf16 %v6237_v35, %v6237_v35 }
 0x4d8   : > { %v8018_v2 = vld [vmem:[#allocation2] sm:$0xff]  }
 0x4d9   : > { %6396 = vrot.lane.b32.xlu0 %v7341_v13, %s8177_s8  ;;  %v8019_v8 = vld [vmem:[#allocation2 + $0x8] sm:$0xff]   ;;  %7728 = vmatprep.mubr.msk.bf16.mxu1 %vm6576_vm12, %v8018_v2  ;;  %s12904_s8 = scalar_lea.vmem %s12977_s4, %s7181_s17 }
 0x4da   : > { %v8020_v37 = vld [vmem:[#allocation2 + $0x10] sm:$0xff]   ;;  %7729 = vmatmul.mubr.msk.bf16.vlgmr.msra.gmra.mxu1 %vm6576_vm12, %v8019_v8 }
 0x4db   : > { %v6353_v27 = vpop.permute.xlu0 %6352  ;;  %7732 = vmatprep.mubr.msk.bf16.mxu1 %vm6576_vm12, %v8020_v37  ;;  %v8021_v60 = vld [vmem:[#allocation2 + $0x18] sm:$0xff]  }
 0x4dc   : > { %6440 = vst.msk [vmem:[#allocation2 + $0x24] sm:$0xf] %vm6430_vm3, %v6353_v27 }
 0x4df   : > { %v6355_v25 = vpop.permute.xlu1 %6354 }
 0x4e0   : > { %6441 = vst.msk [vmem:[#allocation2 + $0x28] sm:$0xf] %vm6430_vm3, %v6355_v25 }
 0x4e2   : > { %7733 = vmatmul.mubr.msk.bf16.gmra.mxu1 %vm6576_vm12, %v8021_v60 }
 0x4e3   : > { %v8022_v17 = vld [vmem:[#allocation2 + $0x20] sm:$0xff]  }
 0x4e4   : > { %v6357_v38 = vpop.permute.xlu0 %6356  ;;  %7736 = vmatprep.mubr.msk.bf16.mxu1 %vm6576_vm12, %v8022_v17 }
 0x4e5   : > { %6442 = vst.msk [vmem:[#allocation2 + $0x2c] sm:$0xf] %vm6430_vm3, %v6357_v38 }
 0x4ea   : > { %v6359_v44 = vpop.permute.xlu1 %6358 }
 0x4eb   : > { %6443 = vst.msk [vmem:[#allocation2 + $0x30] sm:$0xf] %vm6430_vm3, %v6359_v44 }
 0x4ec   : > { %v8023_v41 = vld [vmem:[#allocation2 + $0x28] sm:$0xff]  }
 0x4ed   : > { %7737 = vmatmul.mubr.msk.bf16.gmra.mxu1 %vm6576_vm12, %v8023_v41 }
 0x4ef   : > { %v6361_v42 = vpop.permute.xlu0 %6360 }
 0x4f0   : > { %6444 = vst.msk [vmem:[#allocation2 + $0x34] sm:$0xf] %vm6430_vm3, %v6361_v42 }
 0x4f4   : > { %v6363_v52 = vpop.permute.xlu1 %6362 }
 0x4f5   : > { %6445 = vst.msk [vmem:[#allocation2 + $0x38] sm:$0xf] %vm6430_vm3, %v6363_v52 }
 0x4f7   : > { %v8024_v33 = vld [vmem:[#allocation2 + $0x30] sm:$0xff]  }
 0x4f8   : > { %7740 = vmatprep.mubr.msk.bf16.mxu1 %vm6576_vm12, %v8024_v33 }
 0x4fa   : > { %v6365_v16 = vpop.permute.xlu0 %6364 }
 0x4fb   : > { %6446 = vst.msk [vmem:[#allocation2 + $0x3c] sm:$0xf] %vm6430_vm3, %v6365_v16 }
 0x500   : > { %v6367_v6 = vpop.permute.xlu1 %6366 }
 0x501   : > { %6447 = vst.msk [vmem:[#allocation2 + $0x40] sm:$0xf] %vm6430_vm3, %v6367_v6 }
 0x502   : > { %v8025_v43 = vld [vmem:[#allocation2 + $0x38] sm:$0xff]  }
 0x503   : > { %7741 = vmatmul.mubr.msk.bf16.gmra.mxu1 %vm6576_vm12, %v8025_v43 }
 0x504   : > { %v6369_v12 = vpop.permute.xlu0 %6368 }
 0x505   : > { %6448 = vst.msk [vmem:[#allocation2 + $0x44] sm:$0xf] %vm6430_vm3, %v6369_v12 }
 0x50b   : > { %v6371_v3 = vpop.permute.xlu1 %6370 }
 0x50c   : > { %6449 = vst.msk [vmem:[#allocation2 + $0x48] sm:$0xf] %vm6430_vm3, %v6371_v3  ;;  %v8026_v50 = vld [vmem:[#allocation2 + $0x40] sm:$0xff]  }
 0x50d   : > { %7744 = vmatprep.mubr.msk.bf16.mxu1 %vm6576_vm12, %v8026_v50 }
 0x50e   : > { %v6373_v10 = vpop.permute.xlu0 %6372 }
 0x50f   : > { %6450 = vst.msk [vmem:[#allocation2 + $0x4c] sm:$0xf] %vm6430_vm3, %v6373_v10 }
 0x515   : > { %v6375_v48 = vpop.permute.xlu1 %6374 }
 0x516   : > { %6451 = vst.msk [vmem:[#allocation2 + $0x50] sm:$0xf] %vm6430_vm3, %v6375_v48  ;;  %v8027_v34 = vld [vmem:[#allocation2 + $0x48] sm:$0xff]  }
 0x517   : > { %7745 = vmatmul.mubr.msk.bf16.gmra.mxu1 %vm6576_vm12, %v8027_v34 }
 0x51a   : > { %v6377_v23 = vpop.permute.xlu0 %6376 }
 0x51b   : > { %6452 = vst.msk [vmem:[#allocation2 + $0x54] sm:$0xf] %vm6430_vm3, %v6377_v23 }
 0x520   : > { %v6379_v58 = vpop.permute.xlu1 %6378 }
 0x521   : > { %6453 = vst.msk [vmem:[#allocation2 + $0x58] sm:$0xf] %vm6430_vm3, %v6379_v58 }
 0x522   : > { %v8028_v14 = vld [vmem:[#allocation2 + $0x50] sm:$0xff]  }
 0x523   : > { %7748 = vmatprep.mubr.msk.bf16.mxu1 %vm6576_vm12, %v8028_v14 }
 0x524   : > { %v6381_v51 = vpop.permute.xlu0 %6380 }
 0x525   : > { %6454 = vst.msk [vmem:[#allocation2 + $0x5c] sm:$0xf] %vm6430_vm3, %v6381_v51 }
 0x529   : > { %v6383_v46 = vpop.permute.xlu1 %6382 }
 0x52a   : > { %6455 = vst.msk [vmem:[#allocation2 + $0x60] sm:$0xf] %vm6430_vm3, %v6383_v46 }
 0x52c   : > { %v8029_v53 = vld [vmem:[#allocation2 + $0x58] sm:$0xff]  }
 0x52d   : > { %7749 = vmatmul.mubr.msk.bf16.gmra.mxu1 %vm6576_vm12, %v8029_v53 }
 0x52e   : > { %v6385_v9 = vpop.permute.xlu0 %6384 }
 0x52f   : > { %6456 = vst.msk [vmem:[#allocation2 + $0x64] sm:$0xf] %vm6430_vm3, %v6385_v9 }
 0x534   : > { %v6387_v36 = vpop.permute.xlu1 %6386 }
 0x535   : > { %6457 = vst.msk [vmem:[#allocation2 + $0x68] sm:$0xf] %vm6430_vm3, %v6387_v36 }
 0x536   : > { %v8030_v18 = vld [vmem:[#allocation2 + $0x60] sm:$0xff]  }
 0x537   : > { %7752 = vmatprep.mubr.msk.bf16.mxu1 %vm6576_vm12, %v8030_v18 }
 0x538   : > { %v6389_v20 = vpop.permute.xlu0 %6388 }
 0x539   : > { %6458 = vst.msk [vmem:[#allocation2 + $0x6c] sm:$0xf] %vm6430_vm3, %v6389_v20 }
 0x53d   : > { %v6391_v15 = vpop.permute.xlu1 %6390 }
 0x53e   : > { %6459 = vst.msk [vmem:[#allocation2 + $0x70] sm:$0xf] %vm6430_vm3, %v6391_v15 }
 0x540   : > { %v8031_v57 = vld [vmem:[#allocation2 + $0x68] sm:$0xff]  }
 0x541   : > { %7753 = vmatmul.mubr.msk.bf16.gmra.mxu1 %vm6576_vm12, %v8031_v57 }
 0x542   : > { %v6393_v40 = vpop.permute.xlu0 %6392 }
 0x543   : > { %6460 = vst.msk [vmem:[#allocation2 + $0x74] sm:$0xf] %vm6430_vm3, %v6393_v40 }
 0x548   : > { %v6395_v7 = vpop.permute.xlu1 %6394 }
 0x549   : > { %6461 = vst.msk [vmem:[#allocation2 + $0x78] sm:$0xf] %vm6430_vm3, %v6395_v7 }
 0x54a   : > { %v8032_v22 = vld [vmem:[#allocation2 + $0x70] sm:$0xff]  }
 0x54b   : > { %v6397_v29 = vpop.permute.xlu0 %6396  ;;  %7756 = vmatprep.mubr.msk.bf16.mxu1 %vm6576_vm12, %v8032_v22 }
 0x54c   : > { %6462 = vst.msk [vmem:[#allocation2 + $0x7c] sm:$0xf] %vm6430_vm3, %v6397_v29 }
 0x553   : > { %v8033_v4 = vld [vmem:[#allocation2 + $0x78] sm:$0xff]  }
 0x554   : > { %7757 = vmatmul.mubr.msk.bf16.gmra.mxu1 %vm6576_vm12, %v8033_v4 }
 0x59a   : > { %v7730_v47 = vpop.f32.mrf.mxu1 }
 0x59b   : > { %v6792_v31 = vmax.f32 %v7730_v47, 0.0 }
 0x59c   : > { %v6663_v19 = vpop.f32.mrf.mxu1 }
 0x59d   : > { %6824 = vst.msk [vmem:[%s12904_s8 + $0x10] sm:$0xff] %vm6576_vm12, %v6792_v31  ;;  %v6790_v5 = vmax.f32 %v6663_v19, 0.0 }
 0x59e   : > { %v7731_v54 = vpop.f32.mrf.mxu1 }
 0x59f   : > { %6822 = vst.msk [vmem:[%s12904_s8] sm:$0xff] %vm6576_vm12, %v6790_v5  ;;  %v6793_v62 = vmax.f32 %v7731_v54, 0.0 }
 0x5a0   : > { %v6666_v1 = vpop.f32.mrf.mxu1 }
 0x5a1   : > { %6825 = vst.msk [vmem:[%s12904_s8 + $0x18] sm:$0xff] %vm6576_vm12, %v6793_v62  ;;  %v6791_v61 = vmax.f32 %v6666_v1, 0.0 }
 0x5a2   : > { %v7734_v21 = vpop.f32.mrf.mxu1 }
 0x5a3   : > { %6823 = vst.msk [vmem:[%s12904_s8 + $0x8] sm:$0xff] %vm6576_vm12, %v6791_v61  ;;  %v6796_v28 = vmax.f32 %v7734_v21, 0.0 }
 0x5a4   : > { %v6679_v26 = vpop.f32.mrf.mxu1 }
 0x5a5   : > { %6828 = vst.msk [vmem:[%s12904_s8 + $0x30] sm:$0xff] %vm6576_vm12, %v6796_v28  ;;  %v6794_v11 = vmax.f32 %v6679_v26, 0.0 }
 0x5a6   : > { %v7735_v45 = vpop.f32.mrf.mxu1 }
 0x5a7   : > { %6826 = vst.msk [vmem:[%s12904_s8 + $0x20] sm:$0xff] %vm6576_vm12, %v6794_v11  ;;  %v6797_v30 = vmax.f32 %v7735_v45, 0.0 }
 0x5a8   : > { %v6682_v63 = vpop.f32.mrf.mxu1 }
 0x5a9   : > { %6829 = vst.msk [vmem:[%s12904_s8 + $0x38] sm:$0xff] %vm6576_vm12, %v6797_v30  ;;  %v6795_v39 = vmax.f32 %v6682_v63, 0.0 }
 0x5ab   : > { %6827 = vst.msk [vmem:[%s12904_s8 + $0x28] sm:$0xff] %vm6576_vm12, %v6795_v39 }
 0x5ad   : > { %v7738_v0 = vpop.f32.mrf.mxu1 }
 0x5ae   : > { %v6800_v32 = vmax.f32 %v7738_v0, 0.0 }
 0x5af   : > { %v6695_v55 = vpop.f32.mrf.mxu1 }
 0x5b0   : > { %6832 = vst.msk [vmem:[%s12904_s8 + $0x50] sm:$0xff] %vm6576_vm12, %v6800_v32  ;;  %v6798_v59 = vmax.f32 %v6695_v55, 0.0 }
 0x5b1   : > { %v7739_v49 = vpop.f32.mrf.mxu1 }
 0x5b2   : > { %6830 = vst.msk [vmem:[%s12904_s8 + $0x40] sm:$0xff] %vm6576_vm12, %v6798_v59  ;;  %v6801_v24 = vmax.f32 %v7739_v49, 0.0 }
 0x5b3   : > { %v6698_v35 = vpop.f32.mrf.mxu1 }
 0x5b4   : > { %6833 = vst.msk [vmem:[%s12904_s8 + $0x58] sm:$0xff] %vm6576_vm12, %v6801_v24  ;;  %v6799_v13 = vmax.f32 %v6698_v35, 0.0 }
 0x5b6   : > { %6831 = vst.msk [vmem:[%s12904_s8 + $0x48] sm:$0xff] %vm6576_vm12, %v6799_v13 }
 0x5c3   : > { %v7742_v56 = vpop.f32.mrf.mxu1 }
 0x5c4   : > { %v6804_v2 = vmax.f32 %v7742_v56, 0.0 }
 0x5c5   : > { %v6711_v8 = vpop.f32.mrf.mxu1 }
 0x5c6   : > { %6836 = vst.msk [vmem:[%s12904_s8 + $0x70] sm:$0xff] %vm6576_vm12, %v6804_v2  ;;  %v6802_v37 = vmax.f32 %v6711_v8, 0.0 }
 0x5c7   : > { %v7743_v27 = vpop.f32.mrf.mxu1 }
 0x5c8   : > { %6834 = vst.msk [vmem:[%s12904_s8 + $0x60] sm:$0xff] %vm6576_vm12, %v6802_v37  ;;  %v6805_v60 = vmax.f32 %v7743_v27, 0.0 }
 0x5c9   : > { %v6714_v25 = vpop.f32.mrf.mxu1 }
 0x5ca   : > { %6837 = vst.msk [vmem:[%s12904_s8 + $0x78] sm:$0xff] %vm6576_vm12, %v6805_v60  ;;  %v6803_v17 = vmax.f32 %v6714_v25, 0.0 }
 0x5cc   : > { %6835 = vst.msk [vmem:[%s12904_s8 + $0x68] sm:$0xff] %vm6576_vm12, %v6803_v17 }
 0x5d7   : > { %v7746_v38 = vpop.f32.mrf.mxu1 }
 0x5d8   : > { %v6808_v44 = vmax.f32 %v7746_v38, 0.0 }
 0x5d9   : > { %v6727_v41 = vpop.f32.mrf.mxu1 }
 0x5da   : > { %6840 = vst.msk [vmem:[%s12904_s8 + $0x90] sm:$0xff] %vm6576_vm12, %v6808_v44  ;;  %v6806_v42 = vmax.f32 %v6727_v41, 0.0 }
 0x5db   : > { %v7747_v52 = vpop.f32.mrf.mxu1 }
 0x5dc   : > { %6838 = vst.msk [vmem:[%s12904_s8 + $0x80] sm:$0xff] %vm6576_vm12, %v6806_v42  ;;  %v6809_v33 = vmax.f32 %v7747_v52, 0.0 }
 0x5dd   : > { %v6730_v16 = vpop.f32.mrf.mxu1 }
 0x5de   : > { %6841 = vst.msk [vmem:[%s12904_s8 + $0x98] sm:$0xff] %vm6576_vm12, %v6809_v33  ;;  %v6807_v6 = vmax.f32 %v6730_v16, 0.0 }
 0x5e0   : > { %6839 = vst.msk [vmem:[%s12904_s8 + $0x88] sm:$0xff] %vm6576_vm12, %v6807_v6 }
 0x5ed   : > { %v7750_v43 = vpop.f32.mrf.mxu1 }
 0x5ee   : > { %v6812_v12 = vmax.f32 %v7750_v43, 0.0 }
 0x5ef   : > { %v6743_v3 = vpop.f32.mrf.mxu1 }
 0x5f0   : > { %6844 = vst.msk [vmem:[%s12904_s8 + $0xb0] sm:$0xff] %vm6576_vm12, %v6812_v12  ;;  %v6810_v50 = vmax.f32 %v6743_v3, 0.0 }
 0x5f1   : > { %v7751_v10 = vpop.f32.mrf.mxu1 }
 0x5f2   : > { %6842 = vst.msk [vmem:[%s12904_s8 + $0xa0] sm:$0xff] %vm6576_vm12, %v6810_v50  ;;  %v6813_v48 = vmax.f32 %v7751_v10, 0.0 }
 0x5f3   : > { %v6746_v34 = vpop.f32.mrf.mxu1 }
 0x5f4   : > { %6845 = vst.msk [vmem:[%s12904_s8 + $0xb8] sm:$0xff] %vm6576_vm12, %v6813_v48  ;;  %v6811_v23 = vmax.f32 %v6746_v34, 0.0 }
 0x5f6   : > { %6843 = vst.msk [vmem:[%s12904_s8 + $0xa8] sm:$0xff] %vm6576_vm12, %v6811_v23 }
 0x601   : > { %v7754_v58 = vpop.f32.mrf.mxu1 }
 0x602   : > { %v6816_v14 = vmax.f32 %v7754_v58, 0.0 }
 0x603   : > { %v6759_v51 = vpop.f32.mrf.mxu1 }
 0x604   : > { %6848 = vst.msk [vmem:[%s12904_s8 + $0xd0] sm:$0xff] %vm6576_vm12, %v6816_v14  ;;  %v6814_v46 = vmax.f32 %v6759_v51, 0.0 }
 0x605   : > { %v7755_v53 = vpop.f32.mrf.mxu1 }
 0x606   : > { %6846 = vst.msk [vmem:[%s12904_s8 + $0xc0] sm:$0xff] %vm6576_vm12, %v6814_v46  ;;  %v6817_v9 = vmax.f32 %v7755_v53, 0.0 }
 0x607   : > { %v6762_v36 = vpop.f32.mrf.mxu1 }
 0x608   : > { %6849 = vst.msk [vmem:[%s12904_s8 + $0xd8] sm:$0xff] %vm6576_vm12, %v6817_v9  ;;  %v6815_v18 = vmax.f32 %v6762_v36, 0.0 }
 0x60a   : > { %6847 = vst.msk [vmem:[%s12904_s8 + $0xc8] sm:$0xff] %vm6576_vm12, %v6815_v18 }
 0x614   : > { %v7758_v20 = vpop.f32.mrf.mxu1 }
 0x615   : > { %v6820_v15 = vmax.f32 %v7758_v20, 0.0 }
 0x616   : > { %v6775_v57 = vpop.f32.mrf.mxu1 }
 0x617   : > { %6852 = vst.msk [vmem:[%s12904_s8 + $0xf0] sm:$0xff] %vm6576_vm12, %v6820_v15  ;;  %v6818_v40 = vmax.f32 %v6775_v57, 0.0 }
 0x618   : > { %v7759_v7 = vpop.f32.mrf.mxu1 }
 0x619   : > { %6850 = vst.msk [vmem:[%s12904_s8 + $0xe0] sm:$0xff] %vm6576_vm12, %v6818_v40  ;;  %v6821_v22 = vmax.f32 %v7759_v7, 0.0 }
 0x61a   : > { %v6778_v29 = vpop.f32.mrf.mxu1 }
 0x61b   : > { %6853 = vst.msk [vmem:[%s12904_s8 + $0xf8] sm:$0xff] %vm6576_vm12, %v6821_v22  ;;  %v6819_v4 = vmax.f32 %v6778_v29, 0.0 }
 0x61d   : > { %6851 = vst.msk [vmem:[%s12904_s8 + $0xe8] sm:$0xff] %vm6576_vm12, %v6819_v4 }
 0x61e PF: > { %s14_s15 = sadd.s32 1, %s8169_s15  }
 0x61f   : > { %p11_p4 = scmp.ge.s32.totalorder %s14_s15, 4  }
 0x621   :  { %13 = sbr.rel (!%p11_p4) target bundleno = 1 (0x1), region = 66 }

</bundles_post_ra>
